<compile_context>
chip_gen: v7x
topology: tpu7x:2x2x1
jax: 0.10.0
libtpu: 0.0.40
codegen_flags: <defaults>
</compile_context>

<pallas_src>
import jax
import jax.numpy as jnp
from jax import lax
from jax.experimental import pallas as pl
from jax.experimental.pallas import tpu as pltpu

EPS = 1e-5    # nn.BatchNorm2d default eps
KS = 3        # 3x3 convs
LANE = 128    # TPU lane width


def _residual1_kernel(xpad_ref, w1_ref, w2_ref, gamma_ref, beta_ref,
                      out_ref, ypad_ref):
    # xpad_ref: (N, H+2, W+2, Cp) zero-padded NHWC input, f32, Cp lane-dense.
    # w1_ref/w2_ref: (9, Cp, Cp) bf16 per-tap conv weights (kh-major, kw-minor).
    # gamma_ref/beta_ref: (1, Cp) f32 shared BN affine parameters.
    # out_ref: (M, Cp) f32 with M = N*H*W (lane-dense stores).
    # ypad_ref: (N, H+2, W+2, Cp) f32 scratch (re-padded conv1 output).
    N, Hp, Wp, Cp = xpad_ref.shape
    H, W = Hp - 2, Wp - 2
    M = N * H * W
    inv_m = 1.0 / M

    gamma = gamma_ref[...]   # (1, Cp)
    beta = beta_ref[...]     # (1, Cp)

    def conv3x3(src_ref, w_ref):
        # 9 per-tap accumulating matmuls: tap (M, Cp) bf16  x  w (Cp, Cp) bf16
        # -> f32 accumulator.  No im2col slab is ever materialized.
        acc = None
        for kh in range(KS):
            for kw in range(KS):
                tap = src_ref[:, kh:kh + H, kw:kw + W, :].reshape(M, Cp)
                part = jnp.dot(tap.astype(jnp.bfloat16),
                               w_ref[kh * KS + kw],
                               preferred_element_type=jnp.float32)
                acc = part if acc is None else acc + part
        return acc

    def batchnorm(h):
        # training-mode BatchNorm2d, biased variance, two-pass (robust to the
        # non-zero mean of post-ReLU activations).
        mean = jnp.sum(h, axis=0, keepdims=True) * inv_m
        centered = h - mean
        var = jnp.sum(centered * centered, axis=0, keepdims=True) * inv_m
        scale = gamma * lax.rsqrt(var + EPS)
        return centered * scale + beta

    # ---- conv1 -> BN -> ReLU -------------------------------------------------
    h1 = jnp.maximum(batchnorm(conv3x3(xpad_ref, w1_ref)), 0.0)

    # ---- re-pad h1 for conv2 -------------------------------------------------
    # Top/bottom rows are full-width contiguous stores; the two 1-pixel column
    # strips are folded into the single interior row-block store.
    h1_nhwc = h1.reshape(N, H, W, Cp)
    zrow = jnp.zeros((N, 1, Wp, Cp), jnp.float32)
    zcol = jnp.zeros((N, H, 1, Cp), jnp.float32)
    ypad_ref[:, 0:1, :, :] = zrow
    ypad_ref[:, H + 1:H + 2, :, :] = zrow
    ypad_ref[:, 1:H + 1, :, :] = jnp.concatenate([zcol, h1_nhwc, zcol], axis=2)

    # ---- conv2 -> BN (same gamma/beta, fresh batch stats) --------------------
    h2 = batchnorm(conv3x3(ypad_ref, w2_ref))

    # ---- identity shortcut (exact f32 centre tap of xpad) + ReLU -------------
    x_center = xpad_ref[:, 1:H + 1, 1:W + 1, :].reshape(M, Cp)
    out_ref[...] = jnp.maximum(h2 + x_center, 0.0)


def residual1_forward(x_nchw, params):
    """x_nchw: (N, C, H, W) float32. Returns (N, C, H, W) float32."""
    w1, b1, w2, b2, gamma, beta = params
    # conv biases are exactly cancelled by training-mode BN -> not used here.
    del b1, b2

    x = jnp.transpose(x_nchw, (0, 2, 3, 1)).astype(jnp.float32)   # -> NHWC
    N, H, W, C = x.shape
    Co = w1.shape[-1]
    assert C == Co, "identity shortcut requires in_channels == out_channels"

    # lane-dense channel padding (last dim -> multiple of 128)
    # NOTE: at C=4 this is heavily over-provisioned (architectural 128-lane
    # floor); perf conclusions only transfer at realistic C >= 64.
    Cp = LANE * pl.cdiv(Co, LANE)
    Hp, Wp = H + 2, W + 2
    M = N * H * W

    # spatial pad=1 + channel pad, done once at the boundary
    xpad = jnp.pad(x, ((0, 0), (1, 1), (1, 1), (0, Cp - C)))

    def pack_w(w):   # (3,3,cin,cout) HWIO -> (9, Cp, Cp) bf16 per-tap matrices
        wp = jnp.zeros((KS, KS, Cp, Cp), jnp.float32)
        wp = wp.at[:, :, :w.shape[2], :w.shape[3]].set(w)
        return wp.reshape(KS * KS, Cp, Cp).astype(jnp.bfloat16)

    w1m, w2m = pack_w(w1), pack_w(w2)
    gp = jnp.zeros((1, Cp), jnp.float32).at[:, :Co].set(gamma.reshape(1, -1))
    bp = jnp.zeros((1, Cp), jnp.float32).at[:, :Co].set(beta.reshape(1, -1))

    # ---- resident-buffer sizing for the scoped VMEM limit --------------------
    resident_bytes = (
        N * Hp * Wp * Cp * 4            # xpad (f32)
        + 2 * KS * KS * Cp * Cp * 2     # w1m + w2m (bf16)
        + 2 * Cp * 4                    # gamma/beta
        + M * Cp * 4                    # out (f32)
        + N * Hp * Wp * Cp * 4          # ypad scratch (f32)
        + 6 * M * Cp * 4                # in-kernel f32/bf16 temporaries (h1, h2, acc, taps)
    )
    vmem_limit = int(min(64 << 20, max(2 * resident_bytes, 32 << 20)))

    cost = pl.CostEstimate(
        flops=int(2 * 2 * M * (KS * KS * Cp) * Cp + 20 * M * Cp),
        transcendentals=int(2 * Cp),
        bytes_accessed=int(N * Hp * Wp * Cp * 4          # xpad in
                           + 2 * KS * KS * Cp * Cp * 2   # weights in
                           + 2 * Cp * 4                  # gamma/beta in
                           + M * Cp * 4),                # out
    )

    out_flat = pl.pallas_call(
        _residual1_kernel,
        out_shape=jax.ShapeDtypeStruct((M, Cp), jnp.float32),
        in_specs=[pl.BlockSpec(memory_space=pltpu.MemorySpace.VMEM)] * 5,
        out_specs=pl.BlockSpec(memory_space=pltpu.MemorySpace.VMEM),
        scratch_shapes=[pltpu.VMEM((N, Hp, Wp, Cp), jnp.float32)],
        compiler_params=pltpu.CompilerParams(vmem_limit_bytes=vmem_limit),
        cost_estimate=cost,
    )(xpad, w1m, w2m, gp, bp)

    out = out_flat.reshape(N, H, W, Cp)[:, :, :, :Co]
    return jnp.transpose(out, (0, 3, 1, 2))   # back to NCHW


def residual1_reference(x_nchw, params):
    """Pure-JAX f32 reference of the PyTorch forward (with conv biases)."""
    w1, b1, w2, b2, gamma, beta = params
    x = jnp.transpose(x_nchw, (0, 2, 3, 1)).astype(jnp.float32)

    def conv(h, w, b):
        y = lax.conv_general_dilated(h, w, (1, 1), 'SAME',
                                     dimension_numbers=('NHWC', 'HWIO', 'NHWC'))
        return y + b

    def bn(h):
        mean = jnp.mean(h, axis=(0, 1, 2), keepdims=True)
        var = jnp.mean((h - mean) ** 2, axis=(0, 1, 2), keepdims=True)
        return (h - mean) * lax.rsqrt(var + EPS) * gamma + beta

    h = jax.nn.relu(bn(conv(x, w1, b1)))
    h = bn(conv(h, w2, b2))
    out = jax.nn.relu(h + x)   # Identity shortcut (downsampling=False)
    return jnp.transpose(out, (0, 3, 1, 2))


if __name__ == "__main__":
    key = jax.random.PRNGKey(0)
    kx, k1, kb1, k2, kb2, kg, kb = jax.random.split(key, 7)

    N, C, H, W = 2, 4, 16, 16     # in_channels == out_channels (no downsampling)
    Co = C

    x = jax.random.normal(kx, (N, C, H, W), jnp.float32)

    # Deterministic synthetic parameters (HWIO conv weights).
    w1 = 0.1 * jax.random.normal(k1, (KS, KS, C, Co), jnp.float32)
    b1 = 0.1 * jax.random.normal(kb1, (Co,), jnp.float32)
    w2 = 0.1 * jax.random.normal(k2, (KS, KS, Co, Co), jnp.float32)
    b2 = 0.1 * jax.random.normal(kb2, (Co,), jnp.float32)
    gamma = 1.0 + 0.1 * jax.random.normal(kg, (Co,), jnp.float32)
    beta = 0.1 * jax.random.normal(kb, (Co,), jnp.float32)
    params = (w1, b1, w2, b2, gamma, beta)

    out = jax.block_until_ready(residual1_forward(x, params))
    ref = jax.block_until_ready(residual1_reference(x, params))

    assert out.shape == (N, Co, H, W), out.shape
    # bf16 MXU operands (f32 accumulate) -> widened tolerance vs. f32 reference.
    assert jnp.allclose(out, ref, atol=4e-2, rtol=4e-2), \
        f"max abs diff {jnp.max(jnp.abs(out - ref))}"

    print("KERNEL_OK")
</pallas_src>

<mosaic_0001>
module attributes {stable_mosaic.version = 11 : i64} {
  func.func @_residual1_kernel(%arg0: memref<2x18x18x128xf32, #tpu.memory_space<vmem>>, %arg1: memref<9x128x128xbf16, #tpu.memory_space<vmem>>, %arg2: memref<9x128x128xbf16, #tpu.memory_space<vmem>>, %arg3: memref<1x128xf32, #tpu.memory_space<vmem>>, %arg4: memref<1x128xf32, #tpu.memory_space<vmem>>, %arg5: memref<512x128xf32, #tpu.memory_space<vmem>>, %arg6: memref<2x18x18x128xf32, #tpu.memory_space<vmem>>) attributes {dimension_semantics = [], scalar_prefetch = 0 : i64, scratch_operands = 1 : i64, tpu.core_type = #tpu.core_type<tc>} {
    %c0 = arith.constant 0 : index
    %c0_0 = arith.constant 0 : index
    %0 = vector.load %arg3[%c0, %c0_0] : memref<1x128xf32, #tpu.memory_space<vmem>>, vector<1x128xf32>
    %c0_1 = arith.constant 0 : index
    %c0_2 = arith.constant 0 : index
    %1 = vector.load %arg4[%c0_1, %c0_2] : memref<1x128xf32, #tpu.memory_space<vmem>>, vector<1x128xf32>
    %c0_3 = arith.constant 0 : index
    %c0_4 = arith.constant 0 : index
    %c0_5 = arith.constant 0 : index
    %c0_6 = arith.constant 0 : index
    %2 = vector.load %arg0[%c0_3, %c0_4, %c0_5, %c0_6] : memref<2x18x18x128xf32, #tpu.memory_space<vmem>>, vector<2x16x16x128xf32>
    %3 = vector.shape_cast %2 : vector<2x16x16x128xf32> to vector<512x128xf32>
    %4 = arith.truncf %3 : vector<512x128xf32> to vector<512x128xbf16>
    %c0_7 = arith.constant 0 : index
    %c0_8 = arith.constant 0 : index
    %c0_9 = arith.constant 0 : index
    %5 = vector.load %arg1[%c0_7, %c0_8, %c0_9] : memref<9x128x128xbf16, #tpu.memory_space<vmem>>, vector<1x128x128xbf16>
    %6 = vector.shape_cast %5 : vector<1x128x128xbf16> to vector<128x128xbf16>
    %cst = arith.constant dense<0.000000e+00> : vector<512x128xf32>
    %7 = tpu.matmul %4, %6, %cst {dimension_numbers = #tpu.dot_dimension_numbers<[1], [0], [0], [1], [0, 0, 1, 1], [], []>} : vector<512x128xbf16>, vector<128x128xbf16>, vector<512x128xf32> -> vector<512x128xf32>
    %c0_10 = arith.constant 0 : index
    %c0_11 = arith.constant 0 : index
    %c1 = arith.constant 1 : index
    %c0_12 = arith.constant 0 : index
    %8 = vector.load %arg0[%c0_10, %c0_11, %c1, %c0_12] : memref<2x18x18x128xf32, #tpu.memory_space<vmem>>, vector<2x16x16x128xf32>
    %9 = vector.shape_cast %8 : vector<2x16x16x128xf32> to vector<512x128xf32>
    %10 = arith.truncf %9 : vector<512x128xf32> to vector<512x128xbf16>
    %c1_13 = arith.constant 1 : index
    %c0_14 = arith.constant 0 : index
    %c0_15 = arith.constant 0 : index
    %11 = vector.load %arg1[%c1_13, %c0_14, %c0_15] : memref<9x128x128xbf16, #tpu.memory_space<vmem>>, vector<1x128x128xbf16>
    %12 = vector.shape_cast %11 : vector<1x128x128xbf16> to vector<128x128xbf16>
    %cst_16 = arith.constant dense<0.000000e+00> : vector<512x128xf32>
    %13 = tpu.matmul %10, %12, %cst_16 {dimension_numbers = #tpu.dot_dimension_numbers<[1], [0], [0], [1], [0, 0, 1, 1], [], []>} : vector<512x128xbf16>, vector<128x128xbf16>, vector<512x128xf32> -> vector<512x128xf32>
    %14 = arith.addf %7, %13 : vector<512x128xf32>
    %c0_17 = arith.constant 0 : index
    %c0_18 = arith.constant 0 : index
    %c2 = arith.constant 2 : index
    %c0_19 = arith.constant 0 : index
    %15 = vector.load %arg0[%c0_17, %c0_18, %c2, %c0_19] : memref<2x18x18x128xf32, #tpu.memory_space<vmem>>, vector<2x16x16x128xf32>
    %16 = vector.shape_cast %15 : vector<2x16x16x128xf32> to vector<512x128xf32>
    %17 = arith.truncf %16 : vector<512x128xf32> to vector<512x128xbf16>
    %c2_20 = arith.constant 2 : index
    %c0_21 = arith.constant 0 : index
    %c0_22 = arith.constant 0 : index
    %18 = vector.load %arg1[%c2_20, %c0_21, %c0_22] : memref<9x128x128xbf16, #tpu.memory_space<vmem>>, vector<1x128x128xbf16>
    %19 = vector.shape_cast %18 : vector<1x128x128xbf16> to vector<128x128xbf16>
    %cst_23 = arith.constant dense<0.000000e+00> : vector<512x128xf32>
    %20 = tpu.matmul %17, %19, %cst_23 {dimension_numbers = #tpu.dot_dimension_numbers<[1], [0], [0], [1], [0, 0, 1, 1], [], []>} : vector<512x128xbf16>, vector<128x128xbf16>, vector<512x128xf32> -> vector<512x128xf32>
    %21 = arith.addf %14, %20 : vector<512x128xf32>
    %c0_24 = arith.constant 0 : index
    %c1_25 = arith.constant 1 : index
    %c0_26 = arith.constant 0 : index
    %c0_27 = arith.constant 0 : index
    %22 = vector.load %arg0[%c0_24, %c1_25, %c0_26, %c0_27] : memref<2x18x18x128xf32, #tpu.memory_space<vmem>>, vector<2x16x16x128xf32>
    %23 = vector.shape_cast %22 : vector<2x16x16x128xf32> to vector<512x128xf32>
    %24 = arith.truncf %23 : vector<512x128xf32> to vector<512x128xbf16>
    %c3 = arith.constant 3 : index
    %c0_28 = arith.constant 0 : index
    %c0_29 = arith.constant 0 : index
    %25 = vector.load %arg1[%c3, %c0_28, %c0_29] : memref<9x128x128xbf16, #tpu.memory_space<vmem>>, vector<1x128x128xbf16>
    %26 = vector.shape_cast %25 : vector<1x128x128xbf16> to vector<128x128xbf16>
    %cst_30 = arith.constant dense<0.000000e+00> : vector<512x128xf32>
    %27 = tpu.matmul %24, %26, %cst_30 {dimension_numbers = #tpu.dot_dimension_numbers<[1], [0], [0], [1], [0, 0, 1, 1], [], []>} : vector<512x128xbf16>, vector<128x128xbf16>, vector<512x128xf32> -> vector<512x128xf32>
    %28 = arith.addf %21, %27 : vector<512x128xf32>
    %c0_31 = arith.constant 0 : index
    %c1_32 = arith.constant 1 : index
    %c1_33 = arith.constant 1 : index
    %c0_34 = arith.constant 0 : index
    %29 = vector.load %arg0[%c0_31, %c1_32, %c1_33, %c0_34] : memref<2x18x18x128xf32, #tpu.memory_space<vmem>>, vector<2x16x16x128xf32>
    %30 = vector.shape_cast %29 : vector<2x16x16x128xf32> to vector<512x128xf32>
    %31 = arith.truncf %30 : vector<512x128xf32> to vector<512x128xbf16>
    %c4 = arith.constant 4 : index
    %c0_35 = arith.constant 0 : index
    %c0_36 = arith.constant 0 : index
    %32 = vector.load %arg1[%c4, %c0_35, %c0_36] : memref<9x128x128xbf16, #tpu.memory_space<vmem>>, vector<1x128x128xbf16>
    %33 = vector.shape_cast %32 : vector<1x128x128xbf16> to vector<128x128xbf16>
    %cst_37 = arith.constant dense<0.000000e+00> : vector<512x128xf32>
    %34 = tpu.matmul %31, %33, %cst_37 {dimension_numbers = #tpu.dot_dimension_numbers<[1], [0], [0], [1], [0, 0, 1, 1], [], []>} : vector<512x128xbf16>, vector<128x128xbf16>, vector<512x128xf32> -> vector<512x128xf32>
    %35 = arith.addf %28, %34 : vector<512x128xf32>
    %c0_38 = arith.constant 0 : index
    %c1_39 = arith.constant 1 : index
    %c2_40 = arith.constant 2 : index
    %c0_41 = arith.constant 0 : index
    %36 = vector.load %arg0[%c0_38, %c1_39, %c2_40, %c0_41] : memref<2x18x18x128xf32, #tpu.memory_space<vmem>>, vector<2x16x16x128xf32>
    %37 = vector.shape_cast %36 : vector<2x16x16x128xf32> to vector<512x128xf32>
    %38 = arith.truncf %37 : vector<512x128xf32> to vector<512x128xbf16>
    %c5 = arith.constant 5 : index
    %c0_42 = arith.constant 0 : index
    %c0_43 = arith.constant 0 : index
    %39 = vector.load %arg1[%c5, %c0_42, %c0_43] : memref<9x128x128xbf16, #tpu.memory_space<vmem>>, vector<1x128x128xbf16>
    %40 = vector.shape_cast %39 : vector<1x128x128xbf16> to vector<128x128xbf16>
    %cst_44 = arith.constant dense<0.000000e+00> : vector<512x128xf32>
    %41 = tpu.matmul %38, %40, %cst_44 {dimension_numbers = #tpu.dot_dimension_numbers<[1], [0], [0], [1], [0, 0, 1, 1], [], []>} : vector<512x128xbf16>, vector<128x128xbf16>, vector<512x128xf32> -> vector<512x128xf32>
    %42 = arith.addf %35, %41 : vector<512x128xf32>
    %c0_45 = arith.constant 0 : index
    %c2_46 = arith.constant 2 : index
    %c0_47 = arith.constant 0 : index
    %c0_48 = arith.constant 0 : index
    %43 = vector.load %arg0[%c0_45, %c2_46, %c0_47, %c0_48] : memref<2x18x18x128xf32, #tpu.memory_space<vmem>>, vector<2x16x16x128xf32>
    %44 = vector.shape_cast %43 : vector<2x16x16x128xf32> to vector<512x128xf32>
    %45 = arith.truncf %44 : vector<512x128xf32> to vector<512x128xbf16>
    %c6 = arith.constant 6 : index
    %c0_49 = arith.constant 0 : index
    %c0_50 = arith.constant 0 : index
    %46 = vector.load %arg1[%c6, %c0_49, %c0_50] : memref<9x128x128xbf16, #tpu.memory_space<vmem>>, vector<1x128x128xbf16>
    %47 = vector.shape_cast %46 : vector<1x128x128xbf16> to vector<128x128xbf16>
    %cst_51 = arith.constant dense<0.000000e+00> : vector<512x128xf32>
    %48 = tpu.matmul %45, %47, %cst_51 {dimension_numbers = #tpu.dot_dimension_numbers<[1], [0], [0], [1], [0, 0, 1, 1], [], []>} : vector<512x128xbf16>, vector<128x128xbf16>, vector<512x128xf32> -> vector<512x128xf32>
    %49 = arith.addf %42, %48 : vector<512x128xf32>
    %c0_52 = arith.constant 0 : index
    %c2_53 = arith.constant 2 : index
    %c1_54 = arith.constant 1 : index
    %c0_55 = arith.constant 0 : index
    %50 = vector.load %arg0[%c0_52, %c2_53, %c1_54, %c0_55] : memref<2x18x18x128xf32, #tpu.memory_space<vmem>>, vector<2x16x16x128xf32>
    %51 = vector.shape_cast %50 : vector<2x16x16x128xf32> to vector<512x128xf32>
    %52 = arith.truncf %51 : vector<512x128xf32> to vector<512x128xbf16>
    %c7 = arith.constant 7 : index
    %c0_56 = arith.constant 0 : index
    %c0_57 = arith.constant 0 : index
    %53 = vector.load %arg1[%c7, %c0_56, %c0_57] : memref<9x128x128xbf16, #tpu.memory_space<vmem>>, vector<1x128x128xbf16>
    %54 = vector.shape_cast %53 : vector<1x128x128xbf16> to vector<128x128xbf16>
    %cst_58 = arith.constant dense<0.000000e+00> : vector<512x128xf32>
    %55 = tpu.matmul %52, %54, %cst_58 {dimension_numbers = #tpu.dot_dimension_numbers<[1], [0], [0], [1], [0, 0, 1, 1], [], []>} : vector<512x128xbf16>, vector<128x128xbf16>, vector<512x128xf32> -> vector<512x128xf32>
    %56 = arith.addf %49, %55 : vector<512x128xf32>
    %c0_59 = arith.constant 0 : index
    %c2_60 = arith.constant 2 : index
    %c2_61 = arith.constant 2 : index
    %c0_62 = arith.constant 0 : index
    %57 = vector.load %arg0[%c0_59, %c2_60, %c2_61, %c0_62] : memref<2x18x18x128xf32, #tpu.memory_space<vmem>>, vector<2x16x16x128xf32>
    %58 = vector.shape_cast %57 : vector<2x16x16x128xf32> to vector<512x128xf32>
    %59 = arith.truncf %58 : vector<512x128xf32> to vector<512x128xbf16>
    %c8 = arith.constant 8 : index
    %c0_63 = arith.constant 0 : index
    %c0_64 = arith.constant 0 : index
    %60 = vector.load %arg1[%c8, %c0_63, %c0_64] : memref<9x128x128xbf16, #tpu.memory_space<vmem>>, vector<1x128x128xbf16>
    %61 = vector.shape_cast %60 : vector<1x128x128xbf16> to vector<128x128xbf16>
    %cst_65 = arith.constant dense<0.000000e+00> : vector<512x128xf32>
    %62 = tpu.matmul %59, %61, %cst_65 {dimension_numbers = #tpu.dot_dimension_numbers<[1], [0], [0], [1], [0, 0, 1, 1], [], []>} : vector<512x128xbf16>, vector<128x128xbf16>, vector<512x128xf32> -> vector<512x128xf32>
    %63 = arith.addf %56, %62 : vector<512x128xf32>
    %cst_66 = arith.constant dense<0.000000e+00> : vector<128xf32>
    %64 = vector.multi_reduction <add>, %63, %cst_66 [0] : vector<512x128xf32> to vector<128xf32>
    %65 = vector.shape_cast %64 : vector<128xf32> to vector<1x128xf32>
    %cst_67 = arith.constant 0.001953125 : f32
    %66 = vector.broadcast %cst_67 : f32 to vector<1x128xf32>
    %67 = arith.mulf %65, %66 : vector<1x128xf32>
    %68 = vector.broadcast %67 : vector<1x128xf32> to vector<512x128xf32>
    %69 = arith.subf %63, %68 : vector<512x128xf32>
    %70 = arith.mulf %69, %69 : vector<512x128xf32>
    %cst_68 = arith.constant dense<0.000000e+00> : vector<128xf32>
    %71 = vector.multi_reduction <add>, %70, %cst_68 [0] : vector<512x128xf32> to vector<128xf32>
    %72 = vector.shape_cast %71 : vector<128xf32> to vector<1x128xf32>
    %cst_69 = arith.constant 0.001953125 : f32
    %73 = vector.broadcast %cst_69 : f32 to vector<1x128xf32>
    %74 = arith.mulf %72, %73 : vector<1x128xf32>
    %cst_70 = arith.constant 9.99999974E-6 : f32
    %75 = vector.broadcast %cst_70 : f32 to vector<1x128xf32>
    %76 = arith.addf %74, %75 : vector<1x128xf32>
    %77 = math.rsqrt %76 : vector<1x128xf32>
    %78 = arith.mulf %0, %77 : vector<1x128xf32>
    %79 = vector.broadcast %78 : vector<1x128xf32> to vector<512x128xf32>
    %80 = arith.mulf %69, %79 : vector<512x128xf32>
    %81 = vector.broadcast %1 : vector<1x128xf32> to vector<512x128xf32>
    %82 = arith.addf %80, %81 : vector<512x128xf32>
    %cst_71 = arith.constant 0.000000e+00 : f32
    %83 = vector.broadcast %cst_71 : f32 to vector<512x128xf32>
    %84 = arith.maximumf %82, %83 : vector<512x128xf32>
    %85 = vector.shape_cast %84 : vector<512x128xf32> to vector<2x16x16x128xf32>
    %cst_72 = arith.constant 0.000000e+00 : f32
    %86 = vector.broadcast %cst_72 : f32 to vector<2x1x18x128xf32>
    %cst_73 = arith.constant 0.000000e+00 : f32
    %87 = vector.broadcast %cst_73 : f32 to vector<2x16x1x128xf32>
    %c0_74 = arith.constant 0 : index
    %c0_75 = arith.constant 0 : index
    %c0_76 = arith.constant 0 : index
    %c0_77 = arith.constant 0 : index
    %88 = vector.load %arg6[%c0_74, %c0_75, %c0_76, %c0_77] : memref<2x18x18x128xf32, #tpu.memory_space<vmem>>, vector<2x1x18x128xf32>
    tpu.vector_store %arg6[%c0_74, %c0_75, %c0_76, %c0_77], %86 {strides = array<i32>} : memref<2x18x18x128xf32, #tpu.memory_space<vmem>>, vector<2x1x18x128xf32>,
    %c0_78 = arith.constant 0 : index
    %c17 = arith.constant 17 : index
    %c0_79 = arith.constant 0 : index
    %c0_80 = arith.constant 0 : index
    %89 = vector.load %arg6[%c0_78, %c17, %c0_79, %c0_80] : memref<2x18x18x128xf32, #tpu.memory_space<vmem>>, vector<2x1x18x128xf32>
    tpu.vector_store %arg6[%c0_78, %c17, %c0_79, %c0_80], %86 {strides = array<i32>} : memref<2x18x18x128xf32, #tpu.memory_space<vmem>>, vector<2x1x18x128xf32>,
    %90 = tpu.concatenate %87, %85, %87 in 2 : vector<2x16x1x128xf32>, vector<2x16x16x128xf32>, vector<2x16x1x128xf32> -> vector<2x16x18x128xf32>
    %c0_81 = arith.constant 0 : index
    %c1_82 = arith.constant 1 : index
    %c0_83 = arith.constant 0 : index
    %c0_84 = arith.constant 0 : index
    %91 = vector.load %arg6[%c0_81, %c1_82, %c0_83, %c0_84] : memref<2x18x18x128xf32, #tpu.memory_space<vmem>>, vector<2x16x18x128xf32>
    tpu.vector_store %arg6[%c0_81, %c1_82, %c0_83, %c0_84], %90 {strides = array<i32>} : memref<2x18x18x128xf32, #tpu.memory_space<vmem>>, vector<2x16x18x128xf32>,
    %c0_85 = arith.constant 0 : index
    %c0_86 = arith.constant 0 : index
    %c0_87 = arith.constant 0 : index
    %c0_88 = arith.constant 0 : index
    %92 = vector.load %arg6[%c0_85, %c0_86, %c0_87, %c0_88] : memref<2x18x18x128xf32, #tpu.memory_space<vmem>>, vector<2x16x16x128xf32>
    %93 = vector.shape_cast %92 : vector<2x16x16x128xf32> to vector<512x128xf32>
    %94 = arith.truncf %93 : vector<512x128xf32> to vector<512x128xbf16>
    %c0_89 = arith.constant 0 : index
    %c0_90 = arith.constant 0 : index
    %c0_91 = arith.constant 0 : index
    %95 = vector.load %arg2[%c0_89, %c0_90, %c0_91] : memref<9x128x128xbf16, #tpu.memory_space<vmem>>, vector<1x128x128xbf16>
    %96 = vector.shape_cast %95 : vector<1x128x128xbf16> to vector<128x128xbf16>
    %cst_92 = arith.constant dense<0.000000e+00> : vector<512x128xf32>
    %97 = tpu.matmul %94, %96, %cst_92 {dimension_numbers = #tpu.dot_dimension_numbers<[1], [0], [0], [1], [0, 0, 1, 1], [], []>} : vector<512x128xbf16>, vector<128x128xbf16>, vector<512x128xf32> -> vector<512x128xf32>
    %c0_93 = arith.constant 0 : index
    %c0_94 = arith.constant 0 : index
    %c1_95 = arith.constant 1 : index
    %c0_96 = arith.constant 0 : index
    %98 = vector.load %arg6[%c0_93, %c0_94, %c1_95, %c0_96] : memref<2x18x18x128xf32, #tpu.memory_space<vmem>>, vector<2x16x16x128xf32>
    %99 = vector.shape_cast %98 : vector<2x16x16x128xf32> to vector<512x128xf32>
    %100 = arith.truncf %99 : vector<512x128xf32> to vector<512x128xbf16>
    %c1_97 = arith.constant 1 : index
    %c0_98 = arith.constant 0 : index
    %c0_99 = arith.constant 0 : index
    %101 = vector.load %arg2[%c1_97, %c0_98, %c0_99] : memref<9x128x128xbf16, #tpu.memory_space<vmem>>, vector<1x128x128xbf16>
    %102 = vector.shape_cast %101 : vector<1x128x128xbf16> to vector<128x128xbf16>
    %cst_100 = arith.constant dense<0.000000e+00> : vector<512x128xf32>
    %103 = tpu.matmul %100, %102, %cst_100 {dimension_numbers = #tpu.dot_dimension_numbers<[1], [0], [0], [1], [0, 0, 1, 1], [], []>} : vector<512x128xbf16>, vector<128x128xbf16>, vector<512x128xf32> -> vector<512x128xf32>
    %104 = arith.addf %97, %103 : vector<512x128xf32>
    %c0_101 = arith.constant 0 : index
    %c0_102 = arith.constant 0 : index
    %c2_103 = arith.constant 2 : index
    %c0_104 = arith.constant 0 : index
    %105 = vector.load %arg6[%c0_101, %c0_102, %c2_103, %c0_104] : memref<2x18x18x128xf32, #tpu.memory_space<vmem>>, vector<2x16x16x128xf32>
    %106 = vector.shape_cast %105 : vector<2x16x16x128xf32> to vector<512x128xf32>
    %107 = arith.truncf %106 : vector<512x128xf32> to vector<512x128xbf16>
    %c2_105 = arith.constant 2 : index
    %c0_106 = arith.constant 0 : index
    %c0_107 = arith.constant 0 : index
    %108 = vector.load %arg2[%c2_105, %c0_106, %c0_107] : memref<9x128x128xbf16, #tpu.memory_space<vmem>>, vector<1x128x128xbf16>
    %109 = vector.shape_cast %108 : vector<1x128x128xbf16> to vector<128x128xbf16>
    %cst_108 = arith.constant dense<0.000000e+00> : vector<512x128xf32>
    %110 = tpu.matmul %107, %109, %cst_108 {dimension_numbers = #tpu.dot_dimension_numbers<[1], [0], [0], [1], [0, 0, 1, 1], [], []>} : vector<512x128xbf16>, vector<128x128xbf16>, vector<512x128xf32> -> vector<512x128xf32>
    %111 = arith.addf %104, %110 : vector<512x128xf32>
    %c0_109 = arith.constant 0 : index
    %c1_110 = arith.constant 1 : index
    %c0_111 = arith.constant 0 : index
    %c0_112 = arith.constant 0 : index
    %112 = vector.load %arg6[%c0_109, %c1_110, %c0_111, %c0_112] : memref<2x18x18x128xf32, #tpu.memory_space<vmem>>, vector<2x16x16x128xf32>
    %113 = vector.shape_cast %112 : vector<2x16x16x128xf32> to vector<512x128xf32>
    %114 = arith.truncf %113 : vector<512x128xf32> to vector<512x128xbf16>
    %c3_113 = arith.constant 3 : index
    %c0_114 = arith.constant 0 : index
    %c0_115 = arith.constant 0 : index
    %115 = vector.load %arg2[%c3_113, %c0_114, %c0_115] : memref<9x128x128xbf16, #tpu.memory_space<vmem>>, vector<1x128x128xbf16>
    %116 = vector.shape_cast %115 : vector<1x128x128xbf16> to vector<128x128xbf16>
    %cst_116 = arith.constant dense<0.000000e+00> : vector<512x128xf32>
    %117 = tpu.matmul %114, %116, %cst_116 {dimension_numbers = #tpu.dot_dimension_numbers<[1], [0], [0], [1], [0, 0, 1, 1], [], []>} : vector<512x128xbf16>, vector<128x128xbf16>, vector<512x128xf32> -> vector<512x128xf32>
    %118 = arith.addf %111, %117 : vector<512x128xf32>
    %c0_117 = arith.constant 0 : index
    %c1_118 = arith.constant 1 : index
    %c1_119 = arith.constant 1 : index
    %c0_120 = arith.constant 0 : index
    %119 = vector.load %arg6[%c0_117, %c1_118, %c1_119, %c0_120] : memref<2x18x18x128xf32, #tpu.memory_space<vmem>>, vector<2x16x16x128xf32>
    %120 = vector.shape_cast %119 : vector<2x16x16x128xf32> to vector<512x128xf32>
    %121 = arith.truncf %120 : vector<512x128xf32> to vector<512x128xbf16>
    %c4_121 = arith.constant 4 : index
    %c0_122 = arith.constant 0 : index
    %c0_123 = arith.constant 0 : index
    %122 = vector.load %arg2[%c4_121, %c0_122, %c0_123] : memref<9x128x128xbf16, #tpu.memory_space<vmem>>, vector<1x128x128xbf16>
    %123 = vector.shape_cast %122 : vector<1x128x128xbf16> to vector<128x128xbf16>
    %cst_124 = arith.constant dense<0.000000e+00> : vector<512x128xf32>
    %124 = tpu.matmul %121, %123, %cst_124 {dimension_numbers = #tpu.dot_dimension_numbers<[1], [0], [0], [1], [0, 0, 1, 1], [], []>} : vector<512x128xbf16>, vector<128x128xbf16>, vector<512x128xf32> -> vector<512x128xf32>
    %125 = arith.addf %118, %124 : vector<512x128xf32>
    %c0_125 = arith.constant 0 : index
    %c1_126 = arith.constant 1 : index
    %c2_127 = arith.constant 2 : index
    %c0_128 = arith.constant 0 : index
    %126 = vector.load %arg6[%c0_125, %c1_126, %c2_127, %c0_128] : memref<2x18x18x128xf32, #tpu.memory_space<vmem>>, vector<2x16x16x128xf32>
    %127 = vector.shape_cast %126 : vector<2x16x16x128xf32> to vector<512x128xf32>
    %128 = arith.truncf %127 : vector<512x128xf32> to vector<512x128xbf16>
    %c5_129 = arith.constant 5 : index
    %c0_130 = arith.constant 0 : index
    %c0_131 = arith.constant 0 : index
    %129 = vector.load %arg2[%c5_129, %c0_130, %c0_131] : memref<9x128x128xbf16, #tpu.memory_space<vmem>>, vector<1x128x128xbf16>
    %130 = vector.shape_cast %129 : vector<1x128x128xbf16> to vector<128x128xbf16>
    %cst_132 = arith.constant dense<0.000000e+00> : vector<512x128xf32>
    %131 = tpu.matmul %128, %130, %cst_132 {dimension_numbers = #tpu.dot_dimension_numbers<[1], [0], [0], [1], [0, 0, 1, 1], [], []>} : vector<512x128xbf16>, vector<128x128xbf16>, vector<512x128xf32> -> vector<512x128xf32>
    %132 = arith.addf %125, %131 : vector<512x128xf32>
    %c0_133 = arith.constant 0 : index
    %c2_134 = arith.constant 2 : index
    %c0_135 = arith.constant 0 : index
    %c0_136 = arith.constant 0 : index
    %133 = vector.load %arg6[%c0_133, %c2_134, %c0_135, %c0_136] : memref<2x18x18x128xf32, #tpu.memory_space<vmem>>, vector<2x16x16x128xf32>
    %134 = vector.shape_cast %133 : vector<2x16x16x128xf32> to vector<512x128xf32>
    %135 = arith.truncf %134 : vector<512x128xf32> to vector<512x128xbf16>
    %c6_137 = arith.constant 6 : index
    %c0_138 = arith.constant 0 : index
    %c0_139 = arith.constant 0 : index
    %136 = vector.load %arg2[%c6_137, %c0_138, %c0_139] : memref<9x128x128xbf16, #tpu.memory_space<vmem>>, vector<1x128x128xbf16>
    %137 = vector.shape_cast %136 : vector<1x128x128xbf16> to vector<128x128xbf16>
    %cst_140 = arith.constant dense<0.000000e+00> : vector<512x128xf32>
    %138 = tpu.matmul %135, %137, %cst_140 {dimension_numbers = #tpu.dot_dimension_numbers<[1], [0], [0], [1], [0, 0, 1, 1], [], []>} : vector<512x128xbf16>, vector<128x128xbf16>, vector<512x128xf32> -> vector<512x128xf32>
    %139 = arith.addf %132, %138 : vector<512x128xf32>
    %c0_141 = arith.constant 0 : index
    %c2_142 = arith.constant 2 : index
    %c1_143 = arith.constant 1 : index
    %c0_144 = arith.constant 0 : index
    %140 = vector.load %arg6[%c0_141, %c2_142, %c1_143, %c0_144] : memref<2x18x18x128xf32, #tpu.memory_space<vmem>>, vector<2x16x16x128xf32>
    %141 = vector.shape_cast %140 : vector<2x16x16x128xf32> to vector<512x128xf32>
    %142 = arith.truncf %141 : vector<512x128xf32> to vector<512x128xbf16>
    %c7_145 = arith.constant 7 : index
    %c0_146 = arith.constant 0 : index
    %c0_147 = arith.constant 0 : index
    %143 = vector.load %arg2[%c7_145, %c0_146, %c0_147] : memref<9x128x128xbf16, #tpu.memory_space<vmem>>, vector<1x128x128xbf16>
    %144 = vector.shape_cast %143 : vector<1x128x128xbf16> to vector<128x128xbf16>
    %cst_148 = arith.constant dense<0.000000e+00> : vector<512x128xf32>
    %145 = tpu.matmul %142, %144, %cst_148 {dimension_numbers = #tpu.dot_dimension_numbers<[1], [0], [0], [1], [0, 0, 1, 1], [], []>} : vector<512x128xbf16>, vector<128x128xbf16>, vector<512x128xf32> -> vector<512x128xf32>
    %146 = arith.addf %139, %145 : vector<512x128xf32>
    %c0_149 = arith.constant 0 : index
    %c2_150 = arith.constant 2 : index
    %c2_151 = arith.constant 2 : index
    %c0_152 = arith.constant 0 : index
    %147 = vector.load %arg6[%c0_149, %c2_150, %c2_151, %c0_152] : memref<2x18x18x128xf32, #tpu.memory_space<vmem>>, vector<2x16x16x128xf32>
    %148 = vector.shape_cast %147 : vector<2x16x16x128xf32> to vector<512x128xf32>
    %149 = arith.truncf %148 : vector<512x128xf32> to vector<512x128xbf16>
    %c8_153 = arith.constant 8 : index
    %c0_154 = arith.constant 0 : index
    %c0_155 = arith.constant 0 : index
    %150 = vector.load %arg2[%c8_153, %c0_154, %c0_155] : memref<9x128x128xbf16, #tpu.memory_space<vmem>>, vector<1x128x128xbf16>
    %151 = vector.shape_cast %150 : vector<1x128x128xbf16> to vector<128x128xbf16>
    %cst_156 = arith.constant dense<0.000000e+00> : vector<512x128xf32>
    %152 = tpu.matmul %149, %151, %cst_156 {dimension_numbers = #tpu.dot_dimension_numbers<[1], [0], [0], [1], [0, 0, 1, 1], [], []>} : vector<512x128xbf16>, vector<128x128xbf16>, vector<512x128xf32> -> vector<512x128xf32>
    %153 = arith.addf %146, %152 : vector<512x128xf32>
    %cst_157 = arith.constant dense<0.000000e+00> : vector<128xf32>
    %154 = vector.multi_reduction <add>, %153, %cst_157 [0] : vector<512x128xf32> to vector<128xf32>
    %155 = vector.shape_cast %154 : vector<128xf32> to vector<1x128xf32>
    %cst_158 = arith.constant 0.001953125 : f32
    %156 = vector.broadcast %cst_158 : f32 to vector<1x128xf32>
    %157 = arith.mulf %155, %156 : vector<1x128xf32>
    %158 = vector.broadcast %157 : vector<1x128xf32> to vector<512x128xf32>
    %159 = arith.subf %153, %158 : vector<512x128xf32>
    %160 = arith.mulf %159, %159 : vector<512x128xf32>
    %cst_159 = arith.constant dense<0.000000e+00> : vector<128xf32>
    %161 = vector.multi_reduction <add>, %160, %cst_159 [0] : vector<512x128xf32> to vector<128xf32>
    %162 = vector.shape_cast %161 : vector<128xf32> to vector<1x128xf32>
    %cst_160 = arith.constant 0.001953125 : f32
    %163 = vector.broadcast %cst_160 : f32 to vector<1x128xf32>
    %164 = arith.mulf %162, %163 : vector<1x128xf32>
    %cst_161 = arith.constant 9.99999974E-6 : f32
    %165 = vector.broadcast %cst_161 : f32 to vector<1x128xf32>
    %166 = arith.addf %164, %165 : vector<1x128xf32>
    %167 = math.rsqrt %166 : vector<1x128xf32>
    %168 = arith.mulf %0, %167 : vector<1x128xf32>
    %169 = vector.broadcast %168 : vector<1x128xf32> to vector<512x128xf32>
    %170 = arith.mulf %159, %169 : vector<512x128xf32>
    %171 = vector.broadcast %1 : vector<1x128xf32> to vector<512x128xf32>
    %172 = arith.addf %170, %171 : vector<512x128xf32>
    %c0_162 = arith.constant 0 : index
    %c1_163 = arith.constant 1 : index
    %c1_164 = arith.constant 1 : index
    %c0_165 = arith.constant 0 : index
    %173 = vector.load %arg0[%c0_162, %c1_163, %c1_164, %c0_165] : memref<2x18x18x128xf32, #tpu.memory_space<vmem>>, vector<2x16x16x128xf32>
    %174 = vector.shape_cast %173 : vector<2x16x16x128xf32> to vector<512x128xf32>
    %175 = arith.addf %172, %174 : vector<512x128xf32>
    %cst_166 = arith.constant 0.000000e+00 : f32
    %176 = vector.broadcast %cst_166 : f32 to vector<512x128xf32>
    %177 = arith.maximumf %175, %176 : vector<512x128xf32>
    %c0_167 = arith.constant 0 : index
    %c0_168 = arith.constant 0 : index
    %178 = vector.load %arg5[%c0_167, %c0_168] : memref<512x128xf32, #tpu.memory_space<vmem>>, vector<512x128xf32>
    tpu.vector_store %arg5[%c0_167, %c0_168], %177 {strides = array<i32>} : memref<512x128xf32, #tpu.memory_space<vmem>>, vector<512x128xf32>,
    return
  }
}

</mosaic_0001>

<bundles_post_ra>
// kernel: tpu_custom_call.1
= control target key start
LH: loop header
LB: loop body
LE: loop exit
PB: predicated region body
PF: predicated region fallthrough
CT: control target
= control target key end

     0   :  { %s20723_s0 = inlined_call_operand.vmem [shape: f32[2,18,18,128], index: 0, kind: input, shape index: {}]   ;;  %s20724_s1 = inlined_call_operand.vmem [shape: bf16[9,128,128], index: 1, kind: input, shape index: {}]   ;;  %s20725_s2 = inlined_call_operand.vmem [shape: bf16[9,128,128], index: 2, kind: input, shape index: {}]   ;;  %s20726_s3 = inlined_call_operand.vmem [shape: f32[1,128], index: 3, kind: input, shape index: {}]   ;;  %s20727_s4 = inlined_call_operand.vmem [shape: f32[1,128], index: 4, kind: input, shape index: {}]   ;;  %s20728_s5 = inlined_call_operand.hbm [shape: f32[512,128], index: 5, kind: output, shape index: {}]  }
   0x1   :  { %v14641_v0 = vld [vmem:[%s20724_s1 + $0x40] sm:$0xff]   ;;  %v14642_v1 = vld [vmem:[%s20724_s1 + $0x48] sm:$0xff]   ;;  %v14643_v2 = vld [vmem:[%s20724_s1 + $0x50] sm:$0xff]  }
   0x2   :  { %12173 = vmatprep.subr.bf16.mxu0 %v14641_v0  ;;  %v14644_v3 = vld [vmem:[%s20724_s1 + $0x58] sm:$0xff]   ;;  %v136_v4 = vld [vmem:[%s20723_s0 + $0x1] sm:$0xff]  ;;  %v137_v5 = vld [vmem:[%s20723_s0 + $0x9] sm:$0xff] }
   0x3   :  { %12174 = vmatpush3.bf16.msra.mxu0 %v14641_v0  ;;  %v200_v6 = vpack.c.bf16 %v137_v5, %v136_v4  ;;  %v14645_v7 = vld [vmem:[%s20724_s1 + $0x60] sm:$0xff]   ;;  %v14646_v8 = vld [vmem:[%s20724_s1 + $0x68] sm:$0xff]   ;;  %v14647_v9 = vld [vmem:[%s20724_s1 + $0x70] sm:$0xff]  }
   0x4   :  { %12175 = vmatprep.subr.bf16.mxu0 %v14642_v1  ;;  %v14648_v10 = vld [vmem:[%s20724_s1 + $0x78] sm:$0xff]   ;;  %v139_v12 = vld [vmem:[%s20723_s0 + $0x21] sm:$0xff]  ;;  %v142_v19 = vld [vmem:[%s20723_s0 + $0x49] sm:$0xff] }
   0x5   :  { %12189 = vmatprep.mubr.bf16.mxu0 %v200_v6  ;;  %v138_v11 = vld [vmem:[%s20723_s0 + $0x19] sm:$0xff]  ;;  %v140_v14 = vld [vmem:[%s20723_s0 + $0x31] sm:$0xff]  ;;  %v14650_v18 = vld [vmem:[%s20724_s1 + $0x8] sm:$0xff]  }
   0x6   :  { %v14649_v13 = vld [vmem:[%s20724_s1] sm:$0xff]   ;;  %v201_v16 = vpack.c.bf16 %v139_v12, %v138_v11  ;;  %v143_v20 = vld [vmem:[%s20723_s0 + $0x51] sm:$0xff]  ;;  %v145_v22 = vld [vmem:[%s20723_s0 + $0x69] sm:$0xff] }
   0x7   :  { %12176 = vmatpush3.bf16.msra.mxu0 %v14642_v1  ;;  %v141_v15 = vld [vmem:[%s20723_s0 + $0x39] sm:$0xff]  ;;  %v144_v21 = vld [vmem:[%s20723_s0 + $0x61] sm:$0xff]  ;;  %v14651_v23 = vld [vmem:[%s20724_s1 + $0x10] sm:$0xff]   ;;  %v203_v24 = vpack.c.bf16 %v143_v20, %v142_v19 }
   0x8   :  { %12177 = vmatprep.subr.bf16.mxu0 %v14643_v2  ;;  %v202_v17 = vpack.c.bf16 %v141_v15, %v140_v14  ;;  %v204_v25 = vpack.c.bf16 %v145_v22, %v144_v21  ;;  %v14652_v26 = vld [vmem:[%s20724_s1 + $0x18] sm:$0xff]   ;;  %v147_v28 = vld [vmem:[%s20723_s0 + $0x81] sm:$0xff]  ;;  %v150_v35 = vld [vmem:[%s20723_s0 + $0xa9] sm:$0xff] }
   0x9   :  { %v146_v27 = vld [vmem:[%s20723_s0 + $0x79] sm:$0xff]  ;;  %v148_v29 = vld [vmem:[%s20723_s0 + $0x91] sm:$0xff]  ;;  %v14654_v33 = vld [vmem:[%s20724_s1 + $0x28] sm:$0xff]  }
   0xa   :  { %v149_v30 = vld [vmem:[%s20723_s0 + $0x99] sm:$0xff]  ;;  %v205_v32 = vpack.c.bf16 %v147_v28, %v146_v27  ;;  %v151_v36 = vld [vmem:[%s20723_s0 + $0xb1] sm:$0xff]  ;;  %v152_v37 = vld [vmem:[%s20723_s0 + $0xc1] sm:$0xff] }
   0xb   :  { %12178 = vmatpush3.bf16.msra.mxu0 %v14643_v2  ;;  %v14653_v31 = vld [vmem:[%s20724_s1 + $0x20] sm:$0xff]   ;;  %v206_v34 = vpack.c.bf16 %v149_v30, %v148_v29  ;;  %v153_v38 = vld [vmem:[%s20723_s0 + $0xc9] sm:$0xff]  ;;  %v207_v40 = vpack.c.bf16 %v151_v36, %v150_v35  ;;  %v14656_v41 = vld [vmem:[%s20724_s1 + $0x38] sm:$0xff]  }
   0xc   :  { %12179 = vmatprep.subr.bf16.mxu0 %v14644_v3  ;;  %v14655_v39 = vld [vmem:[%s20724_s1 + $0x30] sm:$0xff]   ;;  %v208_v42 = vpack.c.bf16 %v153_v38, %v152_v37  ;;  %v154_v43 = vld [vmem:[%s20723_s0 + $0xd9] sm:$0xff]  ;;  %v155_v44 = vld [vmem:[%s20723_s0 + $0xe1] sm:$0xff] }
   0xd   :  { %v156_v45 = vld [vmem:[%s20723_s0 + $0xf1] sm:$0xff]  ;;  %v157_v46 = vld [vmem:[%s20723_s0 + $0xf9] sm:$0xff]  ;;  %v209_v48 = vpack.c.bf16 %v155_v44, %v154_v43  ;;  %v158_v50 = vld [vmem:[%s20723_s0 + $0x109] sm:$0xff] }
   0xe   :  { %v15086_v47 = vld [vmem:[%s20724_s1 + $0x80] sm:$0xff]   ;;  %v210_v49 = vpack.c.bf16 %v157_v46, %v156_v45  ;;  %v159_v51 = vld [vmem:[%s20723_s0 + $0x111] sm:$0xff]  ;;  %v161_v53 = vld [vmem:[%s20723_s0 + $0x129] sm:$0xff] }
   0xf   :  { %12180 = vmatpush3.bf16.msra.mxu0 %v14644_v3  ;;  %v160_v52 = vld [vmem:[%s20723_s0 + $0x121] sm:$0xff]  ;;  %v211_v54 = vpack.c.bf16 %v159_v51, %v158_v50  ;;  %v162_v56 = vld [vmem:[%s20723_s0 + $0x139] sm:$0xff]  ;;  %v164_v58 = vld [vmem:[%s20723_s0 + $0x151] sm:$0xff] }
  0x10   :  { %12181 = vmatprep.subr.bf16.mxu0 %v14645_v7  ;;  %v212_v55 = vpack.c.bf16 %v161_v53, %v160_v52  ;;  %v163_v57 = vld [vmem:[%s20723_s0 + $0x141] sm:$0xff]  ;;  %v165_v59 = vld [vmem:[%s20723_s0 + $0x159] sm:$0xff]  ;;  %v166_v62 = vld [vmem:[%s20723_s0 + $0x169] sm:$0xff] }
  0x11   :  { %v213_v60 = vpack.c.bf16 %v163_v57, %v162_v56  ;;  %v214_v61 = vpack.c.bf16 %v165_v59, %v164_v58  ;;  %v167_v63 = vld [vmem:[%s20723_s0 + $0x171] sm:$0xff]  ;;  %v169_v1 = vld [vmem:[%s20723_s0 + $0x1b9] sm:$0xff]  ;;  %v170_v4 = vld [vmem:[%s20723_s0 + $0x1c9] sm:$0xff] }
  0x12   :  { %v168_v0 = vld [vmem:[%s20723_s0 + $0x1b1] sm:$0xff]  ;;  %v215_v2 = vpack.c.bf16 %v167_v63, %v166_v62  ;;  %v172_v6 = vld [vmem:[%s20723_s0 + $0x1e1] sm:$0xff]  ;;  %v181_v19 = vld [vmem:[%s20723_s0 + $0x249] sm:$0xff] }
  0x13   :  { %12182 = vmatpush3.bf16.msra.mxu0 %v14645_v7  ;;  %v216_v3 = vpack.c.bf16 %v169_v1, %v168_v0  ;;  %v171_v5 = vld [vmem:[%s20723_s0 + $0x1d1] sm:$0xff]  ;;  %v173_v7 = vld [vmem:[%s20723_s0 + $0x1e9] sm:$0xff]  ;;  %v175_v11 = vld [vmem:[%s20723_s0 + $0x201] sm:$0xff] }
  0x14   :  { %12183 = vmatprep.subr.bf16.mxu0 %v14646_v8  ;;  %v176_v12 = vld [vmem:[%s20723_s0 + $0x211] sm:$0xff]  ;;  %v182_v22 = vld [vmem:[%s20723_s0 + $0x259] sm:$0xff]  ;;  %v186_v28 = vld [vmem:[%s20723_s0 + $0x289] sm:$0xff] }
  0x15   :  { %v187_v29 = vld [vmem:[%s20723_s0 + $0x291] sm:$0xff]  ;;  %v188_v30 = vld [vmem:[%s20723_s0 + $0x2a1] sm:$0xff]  ;;  %v193_v37 = vld [vmem:[%s20723_s0 + $0x2d9] sm:$0xff] }
  0x16   :  { %v191_v35 = vld [vmem:[%s20723_s0 + $0x2c1] sm:$0xff]  ;;  %v192_v36 = vld [vmem:[%s20723_s0 + $0x2d1] sm:$0xff]  ;;  %v197_v43 = vld [vmem:[%s20723_s0 + $0x309] sm:$0xff] }
  0x17   :  { %12184 = vmatpush3.bf16.msra.mxu0 %v14646_v8  ;;  %v217_v8 = vpack.c.bf16 %v171_v5, %v170_v4 }
  0x18   :  { %12185 = vmatprep.subr.bf16.mxu0 %v14647_v9 }
  0x1b   :  { %12186 = vmatpush3.bf16.msra.mxu0 %v14647_v9  ;;  %v218_v9 = vpack.c.bf16 %v173_v7, %v172_v6 }
  0x1c   :  { %12187 = vmatprep.subr.bf16.mxu0 %v14648_v10 }
  0x1f   :  { %12188 = vmatpush3.bf16.msra.mxu0 %v14648_v10  ;;  %v174_v10 = vld [vmem:[%s20723_s0 + $0x1f9] sm:$0xff] }
  0x20   :  { %12253 = vmatprep.subr.bf16.mxu0 %v14649_v13  ;;  %v219_v14 = vpack.c.bf16 %v175_v11, %v174_v10 }
  0x22   :  { %12190 = vmatmul.mubr.bf16.vlgmr.msra.gmra.mrb[0].mxu0 %v201_v16  ;;  %v178_v16 = vld [vmem:[%s20723_s0 + $0x229] sm:$0xff] }
  0x23   :  { %12254 = vmatpush3.bf16.msra.mxu0 %v14649_v13  ;;  %12193 = vmatprep.mubr.bf16.mxu0 %v202_v17  ;;  %v177_v13 = vld [vmem:[%s20723_s0 + $0x219] sm:$0xff]  ;;  %v179_v17 = vld [vmem:[%s20723_s0 + $0x231] sm:$0xff] }
  0x24   :  { %12255 = vmatprep.subr.bf16.mxu0 %v14650_v18  ;;  %v220_v15 = vpack.c.bf16 %v177_v13, %v176_v12  ;;  %v221_v20 = vpack.c.bf16 %v179_v17, %v178_v16 }
  0x27   :  { %12256 = vmatpush3.bf16.msra.mxu0 %v14650_v18  ;;  %v180_v18 = vld [vmem:[%s20723_s0 + $0x241] sm:$0xff] }
  0x28   :  { %12257 = vmatprep.subr.bf16.mxu0 %v14651_v23  ;;  %v222_v21 = vpack.c.bf16 %v181_v19, %v180_v18 }
  0x2a   :  { %12194 = vmatmul.mubr.bf16.gmra.mrb[4].mxu0 %v203_v24  ;;  %v184_v24 = vld [vmem:[%s20723_s0 + $0x271] sm:$0xff] }
  0x2b   :  { %12197 = vmatprep.mubr.bf16.mxu0 %v204_v25  ;;  %12258 = vmatpush3.bf16.msra.mxu0 %v14651_v23  ;;  %v183_v23 = vld [vmem:[%s20723_s0 + $0x261] sm:$0xff]  ;;  %v185_v25 = vld [vmem:[%s20723_s0 + $0x279] sm:$0xff] }
  0x2c   :  { %12259 = vmatprep.subr.bf16.mxu0 %v14652_v26  ;;  %v224_v27 = vpack.c.bf16 %v185_v25, %v184_v24 }
  0x2f   :  { %12260 = vmatpush3.bf16.msra.mxu0 %v14652_v26  ;;  %v223_v26 = vpack.c.bf16 %v183_v23, %v182_v22 }
  0x30   :  { %12261 = vmatprep.subr.bf16.mxu0 %v14653_v31 }
  0x32   :  { %12198 = vmatmul.mubr.bf16.gmra.mrb[8].mxu0 %v205_v32  ;;  %v225_v32 = vpack.c.bf16 %v187_v29, %v186_v28 }
  0x33   :  { %12201 = vmatprep.mubr.bf16.mxu0 %v206_v34  ;;  %12262 = vmatpush3.bf16.msra.mxu0 %v14653_v31  ;;  %v189_v31 = vld [vmem:[%s20723_s0 + $0x2a9] sm:$0xff]  ;;  %v190_v34 = vld [vmem:[%s20723_s0 + $0x2b9] sm:$0xff] }
  0x34   :  { %12263 = vmatprep.subr.bf16.mxu0 %v14654_v33  ;;  %v227_v38 = vpack.c.bf16 %v191_v35, %v190_v34 }
  0x37   :  { %12264 = vmatpush3.bf16.msra.mxu0 %v14654_v33  ;;  %v226_v33 = vpack.c.bf16 %v189_v31, %v188_v30 }
  0x38   :  { %12265 = vmatprep.subr.bf16.mxu0 %v14655_v39 }
  0x3a   :  { %12202 = vmatmul.mubr.bf16.gmra.mrb[12].mxu0 %v207_v40  ;;  %v194_v40 = vld [vmem:[%s20723_s0 + $0x2e9] sm:$0xff] }
  0x3b   :  { %12205 = vmatprep.mubr.bf16.mxu0 %v208_v42  ;;  %12266 = vmatpush3.bf16.msra.mxu0 %v14655_v39  ;;  %v228_v39 = vpack.c.bf16 %v193_v37, %v192_v36  ;;  %v196_v42 = vld [vmem:[%s20723_s0 + $0x301] sm:$0xff] }
  0x3c   :  { %12267 = vmatprep.subr.bf16.mxu0 %v14656_v41  ;;  %v230_v45 = vpack.c.bf16 %v197_v43, %v196_v42 }
  0x3f   :  { %12268 = vmatpush3.bf16.msra.mxu0 %v14656_v41  ;;  %v195_v41 = vld [vmem:[%s20723_s0 + $0x2f1] sm:$0xff] }
  0x40   :  { %12333 = vmatprep.subr.bf16.mxu0 %v15086_v47  ;;  %v229_v44 = vpack.c.bf16 %v195_v41, %v194_v40 }
  0x42   :  { %12206 = vmatmul.mubr.bf16.gmra.mrb[16].mxu0 %v209_v48 }
  0x43   :  { %12209 = vmatprep.mubr.bf16.mxu0 %v210_v49 }
  0x4a   :  { %12210 = vmatmul.mubr.bf16.gmra.mrb[20].mxu0 %v211_v54 }
  0x4b   :  { %12213 = vmatprep.mubr.bf16.mxu0 %v212_v55 }
  0x52   :  { %12214 = vmatmul.mubr.bf16.gmra.mrb[24].mxu0 %v213_v60 }
  0x53   :  { %12217 = vmatprep.mubr.bf16.mxu0 %v214_v61 }
  0x5a   :  { %12218 = vmatmul.mubr.bf16.gmra.mrb[28].mxu0 %v215_v2 }
  0x5b   :  { %12221 = vmatprep.mubr.bf16.mxu0 %v216_v3 }
  0x62   :  { %12222 = vmatmul.mubr.bf16.gmra.mrb[32].mxu0 %v217_v8 }
  0x63   :  { %12225 = vmatprep.mubr.bf16.mxu0 %v218_v9 }
  0x6a   :  { %12226 = vmatmul.mubr.bf16.gmra.mrb[36].mxu0 %v219_v14 }
  0x6b   :  { %12229 = vmatprep.mubr.bf16.mxu0 %v220_v15 }
  0x72   :  { %12230 = vmatmul.mubr.bf16.gmra.mrb[40].mxu0 %v221_v20 }
  0x73   :  { %12233 = vmatprep.mubr.bf16.mxu0 %v222_v21 }
  0x7a   :  { %12234 = vmatmul.mubr.bf16.gmra.mrb[44].mxu0 %v223_v26 }
  0x7b   :  { %12237 = vmatprep.mubr.bf16.mxu0 %v224_v27 }
  0x82   :  { %12238 = vmatmul.mubr.bf16.gmra.mrb[48].mxu0 %v225_v32 }
  0x83   :  { %12241 = vmatprep.mubr.bf16.mxu0 %v226_v33 }
  0x8a   :  { %12242 = vmatmul.mubr.bf16.gmra.mrb[52].mxu0 %v227_v38 }
  0x8b   :  { %12245 = vmatprep.mubr.bf16.mxu0 %v228_v39 }
  0x8c   :  { %10 = vsyncpa [#allocation4], 0  ;;  %v198_v46 = vld [vmem:[%s20723_s0 + $0x319] sm:$0xff]  ;;  %v199_v48 = vld [vmem:[%s20723_s0 + $0x321] sm:$0xff]  ;;  %vm5075_vm0 = vcmask 1040384   ;;  %vm14935_vm2 = vmmov 1  }
  0x8d   :  { %v24_v49 = vld [vmem:[%s20723_s0] sm:$0xff]  ;;  %v25_v50 = vld [vmem:[%s20723_s0 + $0x8] sm:$0xff]  ;;  %v231_v51 = vpack.c.bf16 %v199_v48, %v198_v46  ;;  %v26_v53 = vld [vmem:[%s20723_s0 + $0x18] sm:$0xff] }
  0x8e   :  { %v88_v52 = vpack.c.bf16 %v25_v50, %v24_v49  ;;  %v27_v54 = vld [vmem:[%s20723_s0 + $0x20] sm:$0xff]  ;;  %v28_v55 = vld [vmem:[%s20723_s0 + $0x30] sm:$0xff]  ;;  %v29_v56 = vld [vmem:[%s20723_s0 + $0x38] sm:$0xff] }
  0x8f   :  { %v15233_v57 = vpack.c.bf16 %v27_v54, %v26_v53  ;;  %v15235_v58 = vpack.c.bf16 %v29_v56, %v28_v55  ;;  %v14658_v59 = vld [vmem:[%s20724_s1 + $0x88] sm:$0xff]   ;;  %v31_v61 = vld [vmem:[%s20723_s0 + $0x50] sm:$0xff]  ;;  %v32_v62 = vld [vmem:[%s20723_s0 + $0x60] sm:$0xff] }
  0x90   :  { %v30_v60 = vld [vmem:[%s20723_s0 + $0x48] sm:$0xff]  ;;  %v14660_v2 = vld [vmem:[%s20724_s1 + $0x98] sm:$0xff]   ;;  %v35_v4 = vld [vmem:[%s20723_s0 + $0x80] sm:$0xff] }
  0x91   :  { %v33_v63 = vld [vmem:[%s20723_s0 + $0x68] sm:$0xff]  ;;  %v15258_v0 = vpack.c.bf16 %v31_v61, %v30_v60  ;;  %v34_v3 = vld [vmem:[%s20723_s0 + $0x78] sm:$0xff]  ;;  %v36_v5 = vld [vmem:[%s20723_s0 + $0x90] sm:$0xff] }
  0x92   :  { %12246 = vmatmul.mubr.bf16.gmra.mrb[56].mxu0 %v229_v44  ;;  %v15260_v1 = vpack.c.bf16 %v33_v63, %v32_v62  ;;  %v37_v6 = vld [vmem:[%s20723_s0 + $0x98] sm:$0xff]  ;;  %v14661_v7 = vld [vmem:[%s20724_s1 + $0xa0] sm:$0xff]   ;;  %v15282_v8 = vpack.c.bf16 %v35_v4, %v34_v3  ;;  %v14662_v10 = vld [vmem:[%s20724_s1 + $0xa8] sm:$0xff]  }
  0x93   :  { %12249 = vmatprep.mubr.bf16.mxu0 %v230_v45  ;;  %v15284_v9 = vpack.c.bf16 %v37_v6, %v36_v5  ;;  %v38_v11 = vld [vmem:[%s20723_s0 + $0xa8] sm:$0xff]  ;;  %v39_v12 = vld [vmem:[%s20723_s0 + $0xb0] sm:$0xff]  ;;  %v40_v13 = vld [vmem:[%s20723_s0 + $0xc0] sm:$0xff] }
  0x94   :  { %v41_v14 = vld [vmem:[%s20723_s0 + $0xc8] sm:$0xff]  ;;  %v14663_v15 = vld [vmem:[%s20724_s1 + $0xb0] sm:$0xff]   ;;  %v15306_v16 = vpack.c.bf16 %v39_v12, %v38_v11  ;;  %v14664_v18 = vld [vmem:[%s20724_s1 + $0xb8] sm:$0xff]  }
  0x95   :  { %v15308_v17 = vpack.c.bf16 %v41_v14, %v40_v13  ;;  %v42_v19 = vld [vmem:[%s20723_s0 + $0xd8] sm:$0xff]  ;;  %v43_v20 = vld [vmem:[%s20723_s0 + $0xe0] sm:$0xff]  ;;  %v44_v21 = vld [vmem:[%s20723_s0 + $0xf0] sm:$0xff] }
  0x96   :  { %v45_v22 = vld [vmem:[%s20723_s0 + $0xf8] sm:$0xff]  ;;  %v15330_v23 = vld [vmem:[%s20724_s1 + $0xc0] sm:$0xff]   ;;  %v15332_v24 = vpack.c.bf16 %v43_v20, %v42_v19  ;;  %v46_v26 = vld [vmem:[%s20723_s0 + $0x108] sm:$0xff] }
  0x97   :  { %v15334_v25 = vpack.c.bf16 %v45_v22, %v44_v21  ;;  %v47_v27 = vld [vmem:[%s20723_s0 + $0x110] sm:$0xff]  ;;  %v48_v28 = vld [vmem:[%s20723_s0 + $0x120] sm:$0xff]  ;;  %v49_v29 = vld [vmem:[%s20723_s0 + $0x128] sm:$0xff] }
  0x98   :  { %v15351_v30 = vpack.c.bf16 %v47_v27, %v46_v26  ;;  %v15353_v31 = vpack.c.bf16 %v49_v29, %v48_v28  ;;  %v50_v32 = vld [vmem:[%s20723_s0 + $0x138] sm:$0xff]  ;;  %v51_v33 = vld [vmem:[%s20723_s0 + $0x140] sm:$0xff]  ;;  %v52_v34 = vld [vmem:[%s20723_s0 + $0x150] sm:$0xff] }
  0x99   :  { %v53_v35 = vld [vmem:[%s20723_s0 + $0x158] sm:$0xff]  ;;  %v15369_v36 = vpack.c.bf16 %v51_v33, %v50_v32  ;;  %v54_v38 = vld [vmem:[%s20723_s0 + $0x168] sm:$0xff]  ;;  %v55_v39 = vld [vmem:[%s20723_s0 + $0x170] sm:$0xff] }
  0x9a   :  { %12250 = vmatmul.mubr.bf16.gmra.mrb[60].mxu0 %v231_v51  ;;  %v15371_v37 = vpack.c.bf16 %v53_v35, %v52_v34  ;;  %v56_v40 = vld [vmem:[%s20723_s0 + $0x1b0] sm:$0xff]  ;;  %v57_v41 = vld [vmem:[%s20723_s0 + $0x1b8] sm:$0xff]  ;;  %v15387_v42 = vpack.c.bf16 %v55_v39, %v54_v38  ;;  %v58_v44 = vld [vmem:[%s20723_s0 + $0x1c8] sm:$0xff] }
  0x9b   :  { %12269 = vmatprep.mubr.bf16.mxu0 %v88_v52  ;;  %v104_v43 = vpack.c.bf16 %v57_v41, %v56_v40  ;;  %v59_v45 = vld [vmem:[%s20723_s0 + $0x1d0] sm:$0xff]  ;;  %v60_v46 = vld [vmem:[%s20723_s0 + $0x1e0] sm:$0xff]  ;;  %v61_v48 = vld [vmem:[%s20723_s0 + $0x1e8] sm:$0xff] }
  0x9c   :  { %v15402_v49 = vpack.c.bf16 %v59_v45, %v58_v44  ;;  %v15404_v50 = vpack.c.bf16 %v61_v48, %v60_v46  ;;  %v62_v51 = vld [vmem:[%s20723_s0 + $0x1f8] sm:$0xff]  ;;  %v63_v52 = vld [vmem:[%s20723_s0 + $0x200] sm:$0xff]  ;;  %v64_v53 = vld [vmem:[%s20723_s0 + $0x210] sm:$0xff] }
  0x9d   :  { %v65_v54 = vld [vmem:[%s20723_s0 + $0x218] sm:$0xff]  ;;  %v15420_v55 = vpack.c.bf16 %v63_v52, %v62_v51  ;;  %v67_v60 = vld [vmem:[%s20723_s0 + $0x230] sm:$0xff]  ;;  %v68_v61 = vld [vmem:[%s20723_s0 + $0x240] sm:$0xff] }
  0x9e   :  { %v15422_v56 = vpack.c.bf16 %v65_v54, %v64_v53  ;;  %v69_v62 = vld [vmem:[%s20723_s0 + $0x248] sm:$0xff]  ;;  %v71_v3 = vld [vmem:[%s20723_s0 + $0x260] sm:$0xff]  ;;  %v72_v4 = vld [vmem:[%s20723_s0 + $0x270] sm:$0xff] }
  0x9f   :  { %v73_v5 = vld [vmem:[%s20723_s0 + $0x278] sm:$0xff]  ;;  %v75_v11 = vld [vmem:[%s20723_s0 + $0x290] sm:$0xff]  ;;  %v76_v12 = vld [vmem:[%s20723_s0 + $0x2a0] sm:$0xff] }
  0xa0   :  { %v77_v13 = vld [vmem:[%s20723_s0 + $0x2a8] sm:$0xff]  ;;  %v79_v19 = vld [vmem:[%s20723_s0 + $0x2c0] sm:$0xff]  ;;  %v80_v20 = vld [vmem:[%s20723_s0 + $0x2d0] sm:$0xff] }
  0xa1   :  { %v81_v21 = vld [vmem:[%s20723_s0 + $0x2d8] sm:$0xff]  ;;  %v82_v27 = vld [vmem:[%s20723_s0 + $0x2e8] sm:$0xff]  ;;  %v83_v28 = vld [vmem:[%s20723_s0 + $0x2f0] sm:$0xff] }
  0xa2   :  { %12270 = vmatmul.mubr.bf16.vlgmr.msra.gmra.mrb[0].mxu0 %v15233_v57  ;;  %v15494_v26 = vpack.c.bf16 %v81_v21, %v80_v20  ;;  %v84_v29 = vld [vmem:[%s20723_s0 + $0x300] sm:$0xff]  ;;  %v85_v32 = vld [vmem:[%s20723_s0 + $0x308] sm:$0xff]  ;;  %v15510_v33 = vpack.c.bf16 %v83_v28, %v82_v27  ;;  %v86_v35 = vld [vmem:[%s20723_s0 + $0x318] sm:$0xff] }
  0xa3   :  { %12334 = vmatpush3.bf16.msra.mxu0 %v15086_v47  ;;  %12273 = vmatprep.mubr.bf16.mxu0 %v15235_v58  ;;  %v14659_v47 = vld [vmem:[%s20724_s1 + $0x90] sm:$0xff]   ;;  %v15512_v34 = vpack.c.bf16 %v85_v32, %v84_v29  ;;  %v87_v38 = vld [vmem:[%s20723_s0 + $0x320] sm:$0xff]  ;;  %v14666_v53 = vld [vmem:[%s20724_s1 + $0xc8] sm:$0xff]  }
  0xa4   :  { %12335 = vmatprep.subr.bf16.mxu0 %v14658_v59  ;;  %v923_v39 = vld [vmem:[%s20723_s0 + $0x2] sm:$0xff]  ;;  %v924_v40 = vld [vmem:[%s20723_s0 + $0xa] sm:$0xff]  ;;  %v15528_v41 = vpack.c.bf16 %v87_v38, %v86_v35  ;;  %v925_v44 = vld [vmem:[%s20723_s0 + $0x1a] sm:$0xff] }
  0xa5   :  { %v926_v45 = vld [vmem:[%s20723_s0 + $0x22] sm:$0xff]  ;;  %v927_v46 = vld [vmem:[%s20723_s0 + $0x32] sm:$0xff]  ;;  %v928_v48 = vld [vmem:[%s20723_s0 + $0x3a] sm:$0xff] }
  0xa6   :  { %v15543_v51 = vpack.c.bf16 %v926_v45, %v925_v44  ;;  %v15545_v52 = vpack.c.bf16 %v928_v48, %v927_v46  ;;  %v929_v54 = vld [vmem:[%s20723_s0 + $0x4a] sm:$0xff]  ;;  %v938_v21 = vld [vmem:[%s20723_s0 + $0xb2] sm:$0xff]  ;;  %v939_v27 = vld [vmem:[%s20723_s0 + $0xc2] sm:$0xff] }
  0xa7   :  { %12336 = vmatpush3.bf16.msra.mxu0 %v14658_v59  ;;  %v66_v59 = vld [vmem:[%s20723_s0 + $0x228] sm:$0xff]  ;;  %v14671_v29 = vld [vmem:[%s20724_s1 + $0xf0] sm:$0xff]   ;;  %v14672_v38 = vld [vmem:[%s20724_s1 + $0xf8] sm:$0xff]  }
  0xa8   :  { %12337 = vmatprep.subr.bf16.mxu0 %v14659_v47  ;;  %v15438_v63 = vpack.c.bf16 %v67_v60, %v66_v59  ;;  %v930_v59 = vld [vmem:[%s20723_s0 + $0x52] sm:$0xff]  ;;  %v931_v60 = vld [vmem:[%s20723_s0 + $0x62] sm:$0xff]  ;;  %v937_v20 = vld [vmem:[%s20723_s0 + $0xaa] sm:$0xff] }
  0xa9   :  { %v940_v28 = vld [vmem:[%s20723_s0 + $0xca] sm:$0xff]  ;;  %v15616_v32 = vpack.c.bf16 %v938_v21, %v937_v20  ;;  %v944_v44 = vld [vmem:[%s20723_s0 + $0xfa] sm:$0xff]  ;;  %v954_v20 = vld [vmem:[%s20723_s0 + $0x172] sm:$0xff] }
  0xaa   :  { %12274 = vmatmul.mubr.bf16.gmra.mrb[4].mxu0 %v15258_v0  ;;  %v15618_v35 = vpack.c.bf16 %v940_v28, %v939_v27  ;;  %v15640_v45 = vld [vmem:[%s20724_s1 + $0x100] sm:$0xff]   ;;  %v955_v21 = vld [vmem:[%s20723_s0 + $0x1b2] sm:$0xff]  ;;  %vm14794_vm1 = vmneg %vm5075_vm0 }
  0xab   :  { %12277 = vmatprep.mubr.bf16.mxu0 %v15260_v1  ;;  %12338 = vmatpush3.bf16.msra.mxu0 %v14659_v47  ;;  %v15440_v47 = vpack.c.bf16 %v69_v62, %v68_v61  ;;  %v932_v61 = vld [vmem:[%s20723_s0 + $0x6a] sm:$0xff]  ;;  %v15568_v62 = vpack.c.bf16 %v930_v59, %v929_v54  ;;  %v946_v54 = vld [vmem:[%s20723_s0 + $0x112] sm:$0xff]  ;;  %v947_v59 = vld [vmem:[%s20723_s0 + $0x122] sm:$0xff] }
  0xac   :  { %12339 = vmatprep.subr.bf16.mxu0 %v14660_v2  ;;  %v956_v27 = vld [vmem:[%s20723_s0 + $0x1ba] sm:$0xff]  ;;  %vm18503_vm3 = vmpackc.low %vm14935_vm2, %vm14794_vm1 }
  0xaf   :  { %12340 = vmatpush3.bf16.msra.mxu0 %v14660_v2  ;;  %v70_v2 = vld [vmem:[%s20723_s0 + $0x258] sm:$0xff] }
  0xb0   :  { %12341 = vmatprep.subr.bf16.mxu0 %v14661_v7  ;;  %v15456_v6 = vpack.c.bf16 %v71_v3, %v70_v2  ;;  %v15570_v2 = vpack.c.bf16 %v932_v61, %v931_v60  ;;  %v14668_v3 = vld [vmem:[%s20724_s1 + $0xd8] sm:$0xff]   ;;  %v948_v60 = vld [vmem:[%s20723_s0 + $0x12a] sm:$0xff] }
  0xb2   :  { %12278 = vmatmul.mubr.bf16.gmra.mrb[8].mxu0 %v15282_v8 }
  0xb3   :  { %12281 = vmatprep.mubr.bf16.mxu0 %v15284_v9  ;;  %12342 = vmatpush3.bf16.msra.mxu0 %v14661_v7  ;;  %v15458_v7 = vpack.c.bf16 %v73_v5, %v72_v4  ;;  %v933_v4 = vld [vmem:[%s20723_s0 + $0x7a] sm:$0xff]  ;;  %v934_v5 = vld [vmem:[%s20723_s0 + $0x82] sm:$0xff] }
  0xb4   :  { %12343 = vmatprep.subr.bf16.mxu0 %v14662_v10 }
  0xb7   :  { %12344 = vmatpush3.bf16.msra.mxu0 %v14662_v10  ;;  %v74_v10 = vld [vmem:[%s20723_s0 + $0x288] sm:$0xff] }
  0xb8   :  { %12345 = vmatprep.subr.bf16.mxu0 %v14663_v15  ;;  %v15474_v14 = vpack.c.bf16 %v75_v11, %v74_v10  ;;  %v935_v10 = vld [vmem:[%s20723_s0 + $0x92] sm:$0xff]  ;;  %v936_v11 = vld [vmem:[%s20723_s0 + $0x9a] sm:$0xff] }
  0xba   :  { %12282 = vmatmul.mubr.bf16.gmra.mrb[12].mxu0 %v15306_v16 }
  0xbb   :  { %12285 = vmatprep.mubr.bf16.mxu0 %v15308_v17  ;;  %12346 = vmatpush3.bf16.msra.mxu0 %v14663_v15  ;;  %v15476_v15 = vpack.c.bf16 %v77_v13, %v76_v12  ;;  %v14669_v12 = vld [vmem:[%s20724_s1 + $0xe0] sm:$0xff]   ;;  %v15592_v13 = vpack.c.bf16 %v934_v5, %v933_v4  ;;  %v951_v5 = vld [vmem:[%s20723_s0 + $0x152] sm:$0xff] }
  0xbc   :  { %12347 = vmatprep.subr.bf16.mxu0 %v14664_v18  ;;  %v950_v4 = vld [vmem:[%s20723_s0 + $0x142] sm:$0xff] }
  0xbf   :  { %12348 = vmatpush3.bf16.msra.mxu0 %v14664_v18  ;;  %v78_v18 = vld [vmem:[%s20723_s0 + $0x2b8] sm:$0xff] }
  0xc0   :  { %12413 = vmatprep.subr.bf16.mxu0 %v15330_v23  ;;  %v15492_v22 = vpack.c.bf16 %v79_v19, %v78_v18  ;;  %v15594_v18 = vpack.c.bf16 %v936_v11, %v935_v10  ;;  %v14670_v19 = vld [vmem:[%s20724_s1 + $0xe8] sm:$0xff]   ;;  %v952_v10 = vld [vmem:[%s20723_s0 + $0x15a] sm:$0xff] }
  0xc2   :  { %12286 = vmatmul.mubr.bf16.gmra.mrb[16].mxu0 %v15332_v24 }
  0xc3   :  { %12289 = vmatprep.mubr.bf16.mxu0 %v15334_v25 }
  0xca   :  { %12290 = vmatmul.mubr.bf16.gmra.mrb[20].mxu0 %v15351_v30 }
  0xcb   :  { %12293 = vmatprep.mubr.bf16.mxu0 %v15353_v31 }
  0xd2   :  { %12294 = vmatmul.mubr.bf16.gmra.mrb[24].mxu0 %v15369_v36 }
  0xd3   :  { %12297 = vmatprep.mubr.bf16.mxu0 %v15371_v37 }
  0xda   :  { %12298 = vmatmul.mubr.bf16.gmra.mrb[28].mxu0 %v15387_v42 }
  0xdb   :  { %12301 = vmatprep.mubr.bf16.mxu0 %v104_v43  ;;  %v987_v43 = vpack.c.bf16 %v924_v40, %v923_v39  ;;  %v941_v39 = vld [vmem:[%s20723_s0 + $0xda] sm:$0xff]  ;;  %v942_v40 = vld [vmem:[%s20723_s0 + $0xe2] sm:$0xff] }
  0xdc   :  { %v15642_v46 = vpack.c.bf16 %v942_v40, %v941_v39  ;;  %v958_v39 = vld [vmem:[%s20723_s0 + $0x1d2] sm:$0xff]  ;;  %v959_v40 = vld [vmem:[%s20723_s0 + $0x1e2] sm:$0xff] }
  0xe2   :  { %12302 = vmatmul.mubr.bf16.gmra.mrb[32].mxu0 %v15402_v49 }
  0xe3   :  { %12305 = vmatprep.mubr.bf16.mxu0 %v15404_v50 }
  0xea   :  { %12306 = vmatmul.mubr.bf16.gmra.mrb[36].mxu0 %v15420_v55 }
  0xeb   :  { %12309 = vmatprep.mubr.bf16.mxu0 %v15422_v56 }
  0xf2   :  { %12310 = vmatmul.mubr.bf16.gmra.mrb[40].mxu0 %v15438_v63 }
  0xf3   :  { %12313 = vmatprep.mubr.bf16.mxu0 %v15440_v47 }
  0xfa   :  { %12314 = vmatmul.mubr.bf16.gmra.mrb[44].mxu0 %v15456_v6 }
  0xfb   :  { %12317 = vmatprep.mubr.bf16.mxu0 %v15458_v7 }
 0x102   :  { %12318 = vmatmul.mubr.bf16.gmra.mrb[48].mxu0 %v15474_v14 }
 0x103   :  { %12321 = vmatprep.mubr.bf16.mxu0 %v15476_v15 }
 0x10a   :  { %12322 = vmatmul.mubr.bf16.gmra.mrb[52].mxu0 %v15492_v22 }
 0x10b   :  { %12325 = vmatprep.mubr.bf16.mxu0 %v15494_v26 }
 0x112   :  { %12326 = vmatmul.mubr.bf16.gmra.mrb[56].mxu0 %v15510_v33 }
 0x113   :  { %12329 = vmatprep.mubr.bf16.mxu0 %v15512_v34 }
 0x11a   :  { %12330 = vmatmul.mubr.bf16.gmra.mrb[60].mxu0 %v15528_v41 }
 0x11b   :  { %12349 = vmatprep.mubr.bf16.mxu0 %v987_v43  ;;  %v943_v43 = vld [vmem:[%s20723_s0 + $0xf2] sm:$0xff] }
 0x11c   :  { %v15644_v48 = vpack.c.bf16 %v944_v44, %v943_v43  ;;  %v960_v43 = vld [vmem:[%s20723_s0 + $0x1ea] sm:$0xff] }
 0x122   :  { %12350 = vmatmul.mubr.bf16.vlgmr.msra.gmra.mrb[0].mxu0 %v15543_v51 }
 0x123   :  { %12414 = vmatpush3.bf16.msra.mxu0 %v15330_v23  ;;  %12353 = vmatprep.mubr.bf16.mxu0 %v15545_v52  ;;  %v14667_v23 = vld [vmem:[%s20724_s1 + $0xd0] sm:$0xff]  }
 0x124   :  { %12415 = vmatprep.subr.bf16.mxu0 %v14666_v53 }
 0x127   :  { %12416 = vmatpush3.bf16.msra.mxu0 %v14666_v53  ;;  %v945_v53 = vld [vmem:[%s20723_s0 + $0x10a] sm:$0xff] }
 0x128   :  { %12417 = vmatprep.subr.bf16.mxu0 %v14667_v23  ;;  %v15661_v61 = vpack.c.bf16 %v946_v54, %v945_v53  ;;  %v15714_v53 = vpack.c.bf16 %v960_v43, %v959_v40  ;;  %v961_v54 = vld [vmem:[%s20723_s0 + $0x1fa] sm:$0xff]  ;;  %v971_v40 = vld [vmem:[%s20723_s0 + $0x272] sm:$0xff] }
 0x129   :  { %v972_v43 = vld [vmem:[%s20723_s0 + $0x27a] sm:$0xff] }
 0x12a   :  { %12354 = vmatmul.mubr.bf16.gmra.mrb[4].mxu0 %v15568_v62 }
 0x12b   :  { %12357 = vmatprep.mubr.bf16.mxu0 %v15570_v2  ;;  %12418 = vmatpush3.bf16.msra.mxu0 %v14667_v23  ;;  %v15663_v23 = vpack.c.bf16 %v948_v60, %v947_v59  ;;  %v962_v59 = vld [vmem:[%s20723_s0 + $0x202] sm:$0xff]  ;;  %v963_v60 = vld [vmem:[%s20723_s0 + $0x212] sm:$0xff] }
 0x12c   :  { %12419 = vmatprep.subr.bf16.mxu0 %v14668_v3 }
 0x12f   :  { %12420 = vmatpush3.bf16.msra.mxu0 %v14668_v3  ;;  %v949_v3 = vld [vmem:[%s20723_s0 + $0x13a] sm:$0xff] }
 0x130   :  { %12421 = vmatprep.subr.bf16.mxu0 %v14669_v12  ;;  %v15679_v11 = vpack.c.bf16 %v950_v4, %v949_v3  ;;  %v964_v3 = vld [vmem:[%s20723_s0 + $0x21a] sm:$0xff]  ;;  %v15730_v4 = vpack.c.bf16 %v962_v59, %v961_v54  ;;  %v15768_v59 = vpack.c.bf16 %v972_v43, %v971_v40  ;;  %v979_v40 = vld [vmem:[%s20723_s0 + $0x2d2] sm:$0xff] }
 0x131   :  { %v980_v43 = vld [vmem:[%s20723_s0 + $0x2da] sm:$0xff] }
 0x132   :  { %12358 = vmatmul.mubr.bf16.gmra.mrb[8].mxu0 %v15592_v13 }
 0x133   :  { %12361 = vmatprep.mubr.bf16.mxu0 %v15594_v18  ;;  %12422 = vmatpush3.bf16.msra.mxu0 %v14669_v12  ;;  %v15681_v12 = vpack.c.bf16 %v952_v10, %v951_v5  ;;  %v15732_v5 = vpack.c.bf16 %v964_v3, %v963_v60  ;;  %v965_v10 = vld [vmem:[%s20723_s0 + $0x22a] sm:$0xff]  ;;  %v974_v3 = vld [vmem:[%s20723_s0 + $0x292] sm:$0xff] }
 0x134   :  { %12423 = vmatprep.subr.bf16.mxu0 %v14670_v19  ;;  %v973_v60 = vld [vmem:[%s20723_s0 + $0x28a] sm:$0xff] }
 0x137   :  { %12424 = vmatpush3.bf16.msra.mxu0 %v14670_v19  ;;  %v953_v19 = vld [vmem:[%s20723_s0 + $0x16a] sm:$0xff] }
 0x138   :  { %12425 = vmatprep.subr.bf16.mxu0 %v14671_v29  ;;  %v15697_v28 = vpack.c.bf16 %v954_v20, %v953_v19  ;;  %v966_v19 = vld [vmem:[%s20723_s0 + $0x232] sm:$0xff]  ;;  %v967_v20 = vld [vmem:[%s20723_s0 + $0x242] sm:$0xff] }
 0x13a   :  { %12362 = vmatmul.mubr.bf16.gmra.mrb[12].mxu0 %v15616_v32 }
 0x13b   :  { %12365 = vmatprep.mubr.bf16.mxu0 %v15618_v35  ;;  %12426 = vmatpush3.bf16.msra.mxu0 %v14671_v29  ;;  %v1003_v29 = vpack.c.bf16 %v956_v27, %v955_v21  ;;  %v968_v21 = vld [vmem:[%s20723_s0 + $0x24a] sm:$0xff]  ;;  %v15748_v27 = vpack.c.bf16 %v966_v19, %v965_v10  ;;  %v975_v10 = vld [vmem:[%s20723_s0 + $0x2a2] sm:$0xff] }
 0x13c   :  { %12427 = vmatprep.subr.bf16.mxu0 %v14672_v38  ;;  %v976_v19 = vld [vmem:[%s20723_s0 + $0x2aa] sm:$0xff] }
 0x13f   :  { %12428 = vmatpush3.bf16.msra.mxu0 %v14672_v38  ;;  %v957_v38 = vld [vmem:[%s20723_s0 + $0x1ca] sm:$0xff] }
 0x140   :  { %12493 = vmatprep.subr.bf16.mxu0 %v15640_v45  ;;  %v15712_v44 = vpack.c.bf16 %v958_v39, %v957_v38  ;;  %v969_v38 = vld [vmem:[%s20723_s0 + $0x25a] sm:$0xff]  ;;  %v970_v39 = vld [vmem:[%s20723_s0 + $0x262] sm:$0xff] }
 0x141   :  { %v15766_v54 = vpack.c.bf16 %v970_v39, %v969_v38  ;;  %v977_v38 = vld [vmem:[%s20723_s0 + $0x2ba] sm:$0xff]  ;;  %v978_v39 = vld [vmem:[%s20723_s0 + $0x2c2] sm:$0xff] }
 0x142   :  { %12366 = vmatmul.mubr.bf16.gmra.mrb[16].mxu0 %v15642_v46 }
 0x143   :  { %12369 = vmatprep.mubr.bf16.mxu0 %v15644_v48 }
 0x14a   :  { %12370 = vmatmul.mubr.bf16.gmra.mrb[20].mxu0 %v15661_v61 }
 0x14b   :  { %12373 = vmatprep.mubr.bf16.mxu0 %v15663_v23 }
 0x152   :  { %12374 = vmatmul.mubr.bf16.gmra.mrb[24].mxu0 %v15679_v11 }
 0x153   :  { %12377 = vmatprep.mubr.bf16.mxu0 %v15681_v12 }
 0x15a   :  { %12378 = vmatmul.mubr.bf16.gmra.mrb[28].mxu0 %v15697_v28 }
 0x15b   :  { %12381 = vmatprep.mubr.bf16.mxu0 %v1003_v29  ;;  %v15750_v29 = vpack.c.bf16 %v968_v21, %v967_v20  ;;  %v15784_v20 = vpack.c.bf16 %v974_v3, %v973_v60  ;;  %v15786_v21 = vpack.c.bf16 %v976_v19, %v975_v10  ;;  %v15802_v60 = vpack.c.bf16 %v978_v39, %v977_v38  ;;  %v981_v10 = vld [vmem:[%s20723_s0 + $0x2ea] sm:$0xff]  ;;  %v982_v19 = vld [vmem:[%s20723_s0 + $0x2f2] sm:$0xff] }
 0x15c   :  { %v15804_v3 = vpack.c.bf16 %v980_v43, %v979_v40  ;;  %v984_v38 = vld [vmem:[%s20723_s0 + $0x30a] sm:$0xff]  ;;  %v15820_v39 = vpack.c.bf16 %v982_v19, %v981_v10  ;;  %v985_v43 = vld [vmem:[%s20723_s0 + $0x31a] sm:$0xff] }
 0x15d   :  { %20896 = vst [vmem:[#allocation6_spill] sm:$0xff] %v15786_v21  ;;  %20897 = vst [vmem:[#allocation7_spill] sm:$0xff] %v15802_v60  ;;  %v10759_v10 = vld [vmem:[%s20723_s0 + $0x99] sm:$0xff]  ;;  %v10760_v19 = vld [vmem:[%s20723_s0 + $0xa9] sm:$0xff] }
 0x15e   :  { %20898 = vst [vmem:[#allocation8_spill] sm:$0xff] %v15804_v3 }
 0x162   :  { %12382 = vmatmul.mubr.bf16.gmra.mrb[32].mxu0 %v15712_v44 }
 0x163   :  { %12385 = vmatprep.mubr.bf16.mxu0 %v15714_v53 }
 0x16a   :  { %12386 = vmatmul.mubr.bf16.gmra.mrb[36].mxu0 %v15730_v4 }
 0x16b   :  { %12389 = vmatprep.mubr.bf16.mxu0 %v15732_v5 }
 0x172   :  { %12390 = vmatmul.mubr.bf16.gmra.mrb[40].mxu0 %v15748_v27 }
 0x173   :  { %12393 = vmatprep.mubr.bf16.mxu0 %v15750_v29 }
 0x17a   :  { %12394 = vmatmul.mubr.bf16.gmra.mrb[44].mxu0 %v15766_v54 }
 0x17b   :  { %12397 = vmatprep.mubr.bf16.mxu0 %v15768_v59 }
 0x182   :  { %12398 = vmatmul.mubr.bf16.gmra.mrb[48].mxu0 %v15784_v20 }
 0x183   :  { %12401 = vmatprep.mubr.bf16.mxu0 %v15786_v21  ;;  %v983_v21 = vld [vmem:[%s20723_s0 + $0x302] sm:$0xff] }
 0x184   :  { %v15822_v40 = vpack.c.bf16 %v984_v38, %v983_v21  ;;  %v14674_v21 = vld [vmem:[%s20724_s1 + $0x108] sm:$0xff]   ;;  %v10761_v38 = vld [vmem:[%s20723_s0 + $0xb1] sm:$0xff] }
 0x18a   :  { %12402 = vmatmul.mubr.bf16.gmra.mrb[52].mxu0 %v15802_v60 }
 0x18b   :  { %12405 = vmatprep.mubr.bf16.mxu0 %v15804_v3  ;;  %v986_v3 = vld [vmem:[%s20723_s0 + $0x322] sm:$0xff] }
 0x18c   :  { %v15832_v60 = vpack.c.bf16 %v986_v3, %v985_v43  ;;  %v14675_v3 = vld [vmem:[%s20724_s1 + $0x110] sm:$0xff]   ;;  %v14685_v43 = vld [vmem:[%s20724_s1 + $0x160] sm:$0xff]  }
 0x192   :  { %12406 = vmatmul.mubr.bf16.gmra.mrb[56].mxu0 %v15820_v39 }
 0x193   :  { %12409 = vmatprep.mubr.bf16.mxu0 %v15822_v40 }
 0x19a   :  { %12410 = vmatmul.mubr.bf16.gmra.mrb[60].mxu0 %v15832_v60 }
 0x19b   :  { %12429 = vmatprep.mubr.bf16.mxu0 %v15233_v57  ;;  %v14676_v57 = vld [vmem:[%s20724_s1 + $0x118] sm:$0xff]  }
 0x1a2   :  { %12430 = vmatmul.mubr.bf16.vlgmr.msra.gmra.mrb[0].mxu0 %v15235_v58  ;;  %v14677_v58 = vld [vmem:[%s20724_s1 + $0x120] sm:$0xff]  }
 0x1a3   :  { %12494 = vmatpush3.bf16.msra.mxu0 %v15640_v45  ;;  %12433 = vmatprep.mubr.bf16.mxu0 %v15258_v0  ;;  %v14678_v0 = vld [vmem:[%s20724_s1 + $0x128] sm:$0xff]   ;;  %v10758_v45 = vld [vmem:[%s20723_s0 + $0x91] sm:$0xff] }
 0x1a4   :  { %12495 = vmatprep.subr.bf16.mxu0 %v14674_v21 }
 0x1a7   :  { %12496 = vmatpush3.bf16.msra.mxu0 %v14674_v21  ;;  %v15974_v21 = vpack.c.bf16 %v10759_v10, %v10758_v45  ;;  %v10776_v45 = vld [vmem:[%s20723_s0 + $0x169] sm:$0xff]  ;;  %v10777_v10 = vld [vmem:[%s20723_s0 + $0x171] sm:$0xff] }
 0x1a8   :  { %12497 = vmatprep.subr.bf16.mxu0 %v14675_v3 }
 0x1aa   :  { %12434 = vmatmul.mubr.bf16.gmra.mrb[4].mxu0 %v15260_v1  ;;  %v14679_v1 = vld [vmem:[%s20724_s1 + $0x130] sm:$0xff]  }
 0x1ab   :  { %12437 = vmatprep.mubr.bf16.mxu0 %v15282_v8  ;;  %12498 = vmatpush3.bf16.msra.mxu0 %v14675_v3  ;;  %v14680_v8 = vld [vmem:[%s20724_s1 + $0x138] sm:$0xff]   ;;  %v15976_v3 = vpack.c.bf16 %v10761_v38, %v10760_v19  ;;  %v16063_v38 = vpack.c.bf16 %v10777_v10, %v10776_v45  ;;  %v10790_v45 = vld [vmem:[%s20723_s0 + $0x241] sm:$0xff]  ;;  %v10791_v10 = vld [vmem:[%s20723_s0 + $0x249] sm:$0xff] }
 0x1ac   :  { %12499 = vmatprep.subr.bf16.mxu0 %v14676_v57 }
 0x1af   :  { %12500 = vmatpush3.bf16.msra.mxu0 %v14676_v57  ;;  %v14686_v57 = vld [vmem:[%s20724_s1 + $0x168] sm:$0xff]  }
 0x1b0   :  { %12501 = vmatprep.subr.bf16.mxu0 %v14677_v58 }
 0x1b2   :  { %12438 = vmatmul.mubr.bf16.gmra.mrb[8].mxu0 %v15284_v9  ;;  %v14681_v9 = vld [vmem:[%s20724_s1 + $0x140] sm:$0xff]  }
 0x1b3   :  { %12441 = vmatprep.mubr.bf16.mxu0 %v15306_v16  ;;  %12502 = vmatpush3.bf16.msra.mxu0 %v14677_v58  ;;  %v10690_v16 = vld [vmem:[%s20723_s0 + $0x180] sm:$0xff] }
 0x1b4   :  { %12503 = vmatprep.subr.bf16.mxu0 %v14678_v0  ;;  %v10762_v58 = vld [vmem:[%s20723_s0 + $0xc1] sm:$0xff] }
 0x1b7   :  { %12504 = vmatpush3.bf16.msra.mxu0 %v14678_v0  ;;  %v10763_v0 = vld [vmem:[%s20723_s0 + $0xc9] sm:$0xff] }
 0x1b8   :  { %12505 = vmatprep.subr.bf16.mxu0 %v14679_v1 }
 0x1ba   :  { %12442 = vmatmul.mubr.bf16.gmra.mrb[12].mxu0 %v15308_v17  ;;  %v10691_v17 = vld [vmem:[%s20723_s0 + $0x188] sm:$0xff] }
 0x1bb   :  { %12445 = vmatprep.mubr.bf16.mxu0 %v15332_v24  ;;  %12506 = vmatpush3.bf16.msra.mxu0 %v14679_v1  ;;  %v15881_v24 = vpack.c.bf16 %v10691_v17, %v10690_v16  ;;  %v10764_v1 = vld [vmem:[%s20723_s0 + $0xd9] sm:$0xff]  ;;  %v15998_v16 = vpack.c.bf16 %v10763_v0, %v10762_v58  ;;  %v10780_v58 = vld [vmem:[%s20723_s0 + $0x1c9] sm:$0xff]  ;;  %v10781_v0 = vld [vmem:[%s20723_s0 + $0x1d1] sm:$0xff] }
 0x1bc   :  { %12507 = vmatprep.subr.bf16.mxu0 %v14680_v8 }
 0x1bf   :  { %12508 = vmatpush3.bf16.msra.mxu0 %v14680_v8  ;;  %v10765_v8 = vld [vmem:[%s20723_s0 + $0xe1] sm:$0xff] }
 0x1c0   :  { %12573 = vmatprep.subr.bf16.mxu0 %v14681_v9  ;;  %v16000_v17 = vpack.c.bf16 %v10765_v8, %v10764_v1  ;;  %v2032_v8 = vpack.c.bf16 %v10781_v0, %v10780_v58  ;;  %v16130_v58 = vpack.c.bf16 %v10791_v10, %v10790_v45  ;;  %v10801_v45 = vld [vmem:[%s20723_s0 + $0x2c1] sm:$0xff] }
 0x1c2   :  { %12446 = vmatmul.mubr.bf16.gmra.mrb[16].mxu0 %v15334_v25  ;;  %v10722_v25 = vld [vmem:[%s20723_s0 + $0x330] sm:$0xff] }
 0x1c3   :  { %12449 = vmatprep.mubr.bf16.mxu0 %v15351_v30  ;;  %v10723_v30 = vld [vmem:[%s20723_s0 + $0x338] sm:$0xff] }
 0x1ca   :  { %12450 = vmatmul.mubr.bf16.gmra.mrb[20].mxu0 %v15353_v31  ;;  %v10748_v31 = vld [vmem:[%s20723_s0 + $0x19] sm:$0xff] }
 0x1cb   :  { %12453 = vmatprep.mubr.bf16.mxu0 %v15369_v36  ;;  %v10749_v36 = vld [vmem:[%s20723_s0 + $0x21] sm:$0xff] }
 0x1d2   :  { %12454 = vmatmul.mubr.bf16.gmra.mrb[24].mxu0 %v15371_v37  ;;  %v15911_v37 = vpack.c.bf16 %v10723_v30, %v10722_v25  ;;  %v14688_v25 = vld [vmem:[%s20724_s1 + $0x178] sm:$0xff]  }
 0x1d3   :  { %12457 = vmatprep.mubr.bf16.mxu0 %v15387_v42  ;;  %v2016_v42 = vpack.c.bf16 %v10749_v36, %v10748_v31  ;;  %v10766_v30 = vld [vmem:[%s20723_s0 + $0xf1] sm:$0xff]  ;;  %v10767_v31 = vld [vmem:[%s20723_s0 + $0xf9] sm:$0xff]  ;;  %v10768_v36 = vld [vmem:[%s20723_s0 + $0x109] sm:$0xff] }
 0x1da   :  { %12458 = vmatmul.mubr.bf16.gmra.mrb[28].mxu0 %v15881_v24 }
 0x1db   :  { %12461 = vmatprep.mubr.bf16.mxu0 %v15402_v49  ;;  %v10750_v49 = vld [vmem:[%s20723_s0 + $0x31] sm:$0xff] }
 0x1e2   :  { %12462 = vmatmul.mubr.bf16.gmra.mrb[32].mxu0 %v15404_v50  ;;  %v10751_v50 = vld [vmem:[%s20723_s0 + $0x39] sm:$0xff] }
 0x1e3   :  { %12465 = vmatprep.mubr.bf16.mxu0 %v15420_v55  ;;  %v10752_v55 = vld [vmem:[%s20723_s0 + $0x49] sm:$0xff] }
 0x1ea   :  { %12466 = vmatmul.mubr.bf16.gmra.mrb[36].mxu0 %v15422_v56  ;;  %v10753_v56 = vld [vmem:[%s20723_s0 + $0x51] sm:$0xff] }
 0x1eb   :  { %12469 = vmatprep.mubr.bf16.mxu0 %v15438_v63  ;;  %v15926_v63 = vpack.c.bf16 %v10751_v50, %v10750_v49  ;;  %v16022_v49 = vld [vmem:[%s20724_s1 + $0x180] sm:$0xff]   ;;  %v16024_v50 = vpack.c.bf16 %v10767_v31, %v10766_v30 }
 0x1ec   :  { %v10784_v30 = vld [vmem:[%s20723_s0 + $0x1f9] sm:$0xff]  ;;  %v10785_v31 = vld [vmem:[%s20723_s0 + $0x201] sm:$0xff] }
 0x1f2   :  { %12470 = vmatmul.mubr.bf16.gmra.mrb[40].mxu0 %v15440_v47  ;;  %v15928_v47 = vpack.c.bf16 %v10753_v56, %v10752_v55  ;;  %v10770_v56 = vld [vmem:[%s20723_s0 + $0x121] sm:$0xff] }
 0x1f3   :  { %12473 = vmatprep.mubr.bf16.mxu0 %v15456_v6  ;;  %v14682_v6 = vld [vmem:[%s20724_s1 + $0x148] sm:$0xff]  }
 0x1fa   :  { %12474 = vmatmul.mubr.bf16.gmra.mrb[44].mxu0 %v15458_v7  ;;  %v10754_v7 = vld [vmem:[%s20723_s0 + $0x61] sm:$0xff] }
 0x1fb   :  { %12477 = vmatprep.mubr.bf16.mxu0 %v15474_v14  ;;  %v10755_v14 = vld [vmem:[%s20723_s0 + $0x69] sm:$0xff] }
 0x202   :  { %12478 = vmatmul.mubr.bf16.gmra.mrb[48].mxu0 %v15476_v15  ;;  %v10756_v15 = vld [vmem:[%s20723_s0 + $0x79] sm:$0xff] }
 0x203   :  { %12481 = vmatprep.mubr.bf16.mxu0 %v15492_v22  ;;  %v10757_v22 = vld [vmem:[%s20723_s0 + $0x81] sm:$0xff] }
 0x20a   :  { %12482 = vmatmul.mubr.bf16.gmra.mrb[52].mxu0 %v15494_v26  ;;  %v14683_v26 = vld [vmem:[%s20724_s1 + $0x150] sm:$0xff]  }
 0x20b   :  { %12485 = vmatprep.mubr.bf16.mxu0 %v15510_v33  ;;  %v15950_v33 = vpack.c.bf16 %v10755_v14, %v10754_v7  ;;  %v10772_v7 = vld [vmem:[%s20723_s0 + $0x139] sm:$0xff]  ;;  %v10773_v14 = vld [vmem:[%s20723_s0 + $0x141] sm:$0xff] }
 0x212   :  { %12486 = vmatmul.mubr.bf16.gmra.mrb[56].mxu0 %v15512_v34  ;;  %v15952_v34 = vpack.c.bf16 %v10757_v22, %v10756_v15  ;;  %v16045_v22 = vpack.c.bf16 %v10773_v14, %v10772_v7  ;;  %v10788_v7 = vld [vmem:[%s20723_s0 + $0x229] sm:$0xff]  ;;  %v10789_v14 = vld [vmem:[%s20723_s0 + $0x231] sm:$0xff] }
 0x213   :  { %12489 = vmatprep.mubr.bf16.mxu0 %v15528_v41  ;;  %v14684_v41 = vld [vmem:[%s20724_s1 + $0x158] sm:$0xff]  }
 0x21a   :  { %12490 = vmatmul.mubr.bf16.gmra.mrb[60].mxu0 %v15911_v37 }
 0x21b   :  { %12509 = vmatprep.mubr.bf16.mxu0 %v2016_v42  ;;  %v10769_v42 = vld [vmem:[%s20723_s0 + $0x111] sm:$0xff] }
 0x21c   :  { %v16026_v55 = vpack.c.bf16 %v10769_v42, %v10768_v36  ;;  %v16096_v42 = vpack.c.bf16 %v10785_v31, %v10784_v30  ;;  %v10797_v30 = vld [vmem:[%s20723_s0 + $0x291] sm:$0xff] }
 0x222   :  { %12510 = vmatmul.mubr.bf16.vlgmr.msra.gmra.mrb[0].mxu0 %v15926_v63 }
 0x223   :  { %12574 = vmatpush3.bf16.msra.mxu0 %v14681_v9  ;;  %12513 = vmatprep.mubr.bf16.mxu0 %v15928_v47  ;;  %v14687_v9 = vld [vmem:[%s20724_s1 + $0x170] sm:$0xff]  }
 0x224   :  { %12575 = vmatprep.subr.bf16.mxu0 %v14682_v6 }
 0x227   :  { %12576 = vmatpush3.bf16.msra.mxu0 %v14682_v6  ;;  %v10771_v6 = vld [vmem:[%s20723_s0 + $0x129] sm:$0xff] }
 0x228   :  { %12577 = vmatprep.subr.bf16.mxu0 %v14683_v26  ;;  %v16043_v15 = vpack.c.bf16 %v10771_v6, %v10770_v56  ;;  %v10786_v56 = vld [vmem:[%s20723_s0 + $0x211] sm:$0xff]  ;;  %v10787_v6 = vld [vmem:[%s20723_s0 + $0x219] sm:$0xff] }
 0x22a   :  { %12514 = vmatmul.mubr.bf16.gmra.mrb[4].mxu0 %v15950_v33 }
 0x22b   :  { %12517 = vmatprep.mubr.bf16.mxu0 %v15952_v34  ;;  %12578 = vmatpush3.bf16.msra.mxu0 %v14683_v26  ;;  %v10774_v26 = vld [vmem:[%s20723_s0 + $0x151] sm:$0xff] }
 0x22c   :  { %12579 = vmatprep.subr.bf16.mxu0 %v14684_v41 }
 0x22f   :  { %12580 = vmatpush3.bf16.msra.mxu0 %v14684_v41  ;;  %v10775_v41 = vld [vmem:[%s20723_s0 + $0x159] sm:$0xff] }
 0x230   :  { %12581 = vmatprep.subr.bf16.mxu0 %v14685_v43  ;;  %v16061_v19 = vpack.c.bf16 %v10775_v41, %v10774_v26  ;;  %v16112_v26 = vpack.c.bf16 %v10787_v6, %v10786_v56  ;;  %v16114_v41 = vpack.c.bf16 %v10789_v14, %v10788_v7  ;;  %v10798_v6 = vld [vmem:[%s20723_s0 + $0x2a1] sm:$0xff]  ;;  %v10799_v7 = vld [vmem:[%s20723_s0 + $0x2a9] sm:$0xff]  ;;  %v10800_v14 = vld [vmem:[%s20723_s0 + $0x2b9] sm:$0xff] }
 0x231   :  { %v16166_v10 = vpack.c.bf16 %v10799_v7, %v10798_v6  ;;  %v10806_v7 = vld [vmem:[%s20723_s0 + $0x301] sm:$0xff] }
 0x232   :  { %12518 = vmatmul.mubr.bf16.gmra.mrb[8].mxu0 %v15974_v21 }
 0x233   :  { %12521 = vmatprep.mubr.bf16.mxu0 %v15976_v3  ;;  %12582 = vmatpush3.bf16.msra.mxu0 %v14685_v43  ;;  %v10778_v43 = vld [vmem:[%s20723_s0 + $0x181] sm:$0xff] }
 0x234   :  { %12583 = vmatprep.subr.bf16.mxu0 %v14686_v57 }
 0x237   :  { %12584 = vmatpush3.bf16.msra.mxu0 %v14686_v57  ;;  %v10779_v57 = vld [vmem:[%s20723_s0 + $0x189] sm:$0xff] }
 0x238   :  { %12585 = vmatprep.subr.bf16.mxu0 %v14687_v9  ;;  %v16079_v1 = vpack.c.bf16 %v10779_v57, %v10778_v43  ;;  %v10792_v43 = vld [vmem:[%s20723_s0 + $0x259] sm:$0xff]  ;;  %v10793_v57 = vld [vmem:[%s20723_s0 + $0x261] sm:$0xff] }
 0x239   :  { %v16132_v0 = vpack.c.bf16 %v10793_v57, %v10792_v43  ;;  %v16168_v43 = vpack.c.bf16 %v10801_v45, %v10800_v14  ;;  %v10802_v57 = vld [vmem:[%s20723_s0 + $0x2d1] sm:$0xff]  ;;  %v10807_v14 = vld [vmem:[%s20723_s0 + $0x309] sm:$0xff]  ;;  %v10808_v45 = vld [vmem:[%s20723_s0 + $0x319] sm:$0xff] }
 0x23a   :  { %12522 = vmatmul.mubr.bf16.gmra.mrb[12].mxu0 %v15998_v16 }
 0x23b   :  { %12525 = vmatprep.mubr.bf16.mxu0 %v16000_v17  ;;  %12586 = vmatpush3.bf16.msra.mxu0 %v14687_v9  ;;  %v10782_v9 = vld [vmem:[%s20723_s0 + $0x1e1] sm:$0xff] }
 0x23c   :  { %12587 = vmatprep.subr.bf16.mxu0 %v14688_v25 }
 0x23f   :  { %12588 = vmatpush3.bf16.msra.mxu0 %v14688_v25  ;;  %v10783_v25 = vld [vmem:[%s20723_s0 + $0x1e9] sm:$0xff] }
 0x240   :  { %12653 = vmatprep.subr.bf16.mxu0 %v16022_v49  ;;  %v16094_v36 = vpack.c.bf16 %v10783_v25, %v10782_v9  ;;  %v10795_v9 = vld [vmem:[%s20723_s0 + $0x279] sm:$0xff]  ;;  %v10796_v25 = vld [vmem:[%s20723_s0 + $0x289] sm:$0xff] }
 0x241   :  { %v16150_v56 = vpack.c.bf16 %v10797_v30, %v10796_v25  ;;  %v10805_v25 = vld [vmem:[%s20723_s0 + $0x2f1] sm:$0xff] }
 0x242   :  { %12526 = vmatmul.mubr.bf16.gmra.mrb[16].mxu0 %v16024_v50 }
 0x243   :  { %12529 = vmatprep.mubr.bf16.mxu0 %v16026_v55 }
 0x24a   :  { %12530 = vmatmul.mubr.bf16.gmra.mrb[20].mxu0 %v16043_v15 }
 0x24b   :  { %12533 = vmatprep.mubr.bf16.mxu0 %v16045_v22 }
 0x252   :  { %12534 = vmatmul.mubr.bf16.gmra.mrb[24].mxu0 %v16061_v19 }
 0x253   :  { %12537 = vmatprep.mubr.bf16.mxu0 %v16063_v38 }
 0x25a   :  { %12538 = vmatmul.mubr.bf16.gmra.mrb[28].mxu0 %v16079_v1 }
 0x25b   :  { %12541 = vmatprep.mubr.bf16.mxu0 %v2032_v8  ;;  %v10794_v8 = vld [vmem:[%s20723_s0 + $0x271] sm:$0xff] }
 0x25c   :  { %v16148_v31 = vpack.c.bf16 %v10795_v9, %v10794_v8  ;;  %v10803_v8 = vld [vmem:[%s20723_s0 + $0x2d9] sm:$0xff]  ;;  %v10804_v9 = vld [vmem:[%s20723_s0 + $0x2e9] sm:$0xff] }
 0x25d   :  { %v16184_v30 = vpack.c.bf16 %v10803_v8, %v10802_v57  ;;  %v16186_v6 = vpack.c.bf16 %v10805_v25, %v10804_v9  ;;  %v10809_v57 = vld [vmem:[%s20723_s0 + $0x321] sm:$0xff]  ;;  %v16202_v8 = vpack.c.bf16 %v10807_v14, %v10806_v7  ;;  %v10810_v25 = vld [vmem:[%s20723_s0 + $0x331] sm:$0xff] }
 0x25e   :  { %v16204_v9 = vpack.c.bf16 %v10809_v57, %v10808_v45  ;;  %v14690_v7 = vld [vmem:[%s20724_s1 + $0x188] sm:$0xff]   ;;  %v10933_v14 = vld [vmem:[%s20723_s0 + $0x98] sm:$0xff]  ;;  %v14699_v45 = vld [vmem:[%s20724_s1 + $0x1d0] sm:$0xff]  }
 0x25f   :  { %20899 = vst [vmem:[#allocation9_spill] sm:$0xff] %v16184_v30  ;;  %20900 = vst [vmem:[#allocation10_spill] sm:$0xff] %v16186_v6 }
 0x262   :  { %12542 = vmatmul.mubr.bf16.gmra.mrb[32].mxu0 %v16094_v36 }
 0x263   :  { %12545 = vmatprep.mubr.bf16.mxu0 %v16096_v42 }
 0x26a   :  { %12546 = vmatmul.mubr.bf16.gmra.mrb[36].mxu0 %v16112_v26 }
 0x26b   :  { %12549 = vmatprep.mubr.bf16.mxu0 %v16114_v41 }
 0x272   :  { %12550 = vmatmul.mubr.bf16.gmra.mrb[40].mxu0 %v16130_v58 }
 0x273   :  { %12553 = vmatprep.mubr.bf16.mxu0 %v16132_v0 }
 0x27a   :  { %12554 = vmatmul.mubr.bf16.gmra.mrb[44].mxu0 %v16148_v31 }
 0x27b   :  { %12557 = vmatprep.mubr.bf16.mxu0 %v16150_v56 }
 0x282   :  { %12558 = vmatmul.mubr.bf16.gmra.mrb[48].mxu0 %v16166_v10 }
 0x283   :  { %12561 = vmatprep.mubr.bf16.mxu0 %v16168_v43 }
 0x28a   :  { %12562 = vmatmul.mubr.bf16.gmra.mrb[52].mxu0 %v16184_v30 }
 0x28b   :  { %12565 = vmatprep.mubr.bf16.mxu0 %v16186_v6  ;;  %v10811_v6 = vld [vmem:[%s20723_s0 + $0x339] sm:$0xff] }
 0x28c   :  { %v16214_v30 = vpack.c.bf16 %v10811_v6, %v10810_v25  ;;  %v14691_v6 = vld [vmem:[%s20724_s1 + $0x190] sm:$0xff]  }
 0x292   :  { %12566 = vmatmul.mubr.bf16.gmra.mrb[56].mxu0 %v16202_v8 }
 0x293   :  { %12569 = vmatprep.mubr.bf16.mxu0 %v16204_v9 }
 0x29a   :  { %12570 = vmatmul.mubr.bf16.gmra.mrb[60].mxu0 %v16214_v30 }
 0x29b   :  { %12589 = vmatprep.mubr.bf16.mxu0 %v15543_v51  ;;  %v14692_v51 = vld [vmem:[%s20724_s1 + $0x198] sm:$0xff]  }
 0x2a2   :  { %12590 = vmatmul.mubr.bf16.vlgmr.msra.gmra.mrb[0].mxu0 %v15545_v52  ;;  %v14693_v52 = vld [vmem:[%s20724_s1 + $0x1a0] sm:$0xff]  }
 0x2a3   :  { %12654 = vmatpush3.bf16.msra.mxu0 %v16022_v49  ;;  %12593 = vmatprep.mubr.bf16.mxu0 %v15568_v62  ;;  %v14694_v62 = vld [vmem:[%s20724_s1 + $0x1a8] sm:$0xff]   ;;  %v10932_v49 = vld [vmem:[%s20723_s0 + $0x90] sm:$0xff] }
 0x2a4   :  { %12655 = vmatprep.subr.bf16.mxu0 %v14690_v7  ;;  %v3049_v25 = vpack.c.bf16 %v10933_v14, %v10932_v49  ;;  %v10949_v49 = vld [vmem:[%s20723_s0 + $0x158] sm:$0xff] }
 0x2a7   :  { %12656 = vmatpush3.bf16.msra.mxu0 %v14690_v7  ;;  %v14700_v7 = vld [vmem:[%s20724_s1 + $0x1d8] sm:$0xff]  }
 0x2a8   :  { %12657 = vmatprep.subr.bf16.mxu0 %v14691_v6 }
 0x2aa   :  { %12594 = vmatmul.mubr.bf16.gmra.mrb[4].mxu0 %v15570_v2  ;;  %v14695_v2 = vld [vmem:[%s20724_s1 + $0x1b0] sm:$0xff]  }
 0x2ab   :  { %12597 = vmatprep.mubr.bf16.mxu0 %v15592_v13  ;;  %12658 = vmatpush3.bf16.msra.mxu0 %v14691_v6  ;;  %v14696_v13 = vld [vmem:[%s20724_s1 + $0x1b8] sm:$0xff]   ;;  %v10934_v6 = vld [vmem:[%s20723_s0 + $0xa8] sm:$0xff] }
 0x2ac   :  { %12659 = vmatprep.subr.bf16.mxu0 %v14692_v51 }
 0x2af   :  { %12660 = vmatpush3.bf16.msra.mxu0 %v14692_v51  ;;  %v10935_v51 = vld [vmem:[%s20723_s0 + $0xb0] sm:$0xff] }
 0x2b0   :  { %12661 = vmatprep.subr.bf16.mxu0 %v14693_v52 }
 0x2b2   :  { %12598 = vmatmul.mubr.bf16.gmra.mrb[8].mxu0 %v15594_v18  ;;  %v14697_v18 = vld [vmem:[%s20724_s1 + $0x1c0] sm:$0xff]  }
 0x2b3   :  { %12601 = vmatprep.mubr.bf16.mxu0 %v15616_v32  ;;  %12662 = vmatpush3.bf16.msra.mxu0 %v14693_v52  ;;  %v10866_v32 = vld [vmem:[%s20723_s0 + $0x182] sm:$0xff] }
 0x2b4   :  { %12663 = vmatprep.subr.bf16.mxu0 %v14694_v62  ;;  %v10936_v52 = vld [vmem:[%s20723_s0 + $0xc0] sm:$0xff] }
 0x2b7   :  { %12664 = vmatpush3.bf16.msra.mxu0 %v14694_v62  ;;  %v10937_v62 = vld [vmem:[%s20723_s0 + $0xc8] sm:$0xff] }
 0x2b8   :  { %12665 = vmatprep.subr.bf16.mxu0 %v14695_v2 }
 0x2ba   :  { %12602 = vmatmul.mubr.bf16.gmra.mrb[12].mxu0 %v15618_v35  ;;  %v10867_v35 = vld [vmem:[%s20723_s0 + $0x18a] sm:$0xff] }
 0x2bb   :  { %12605 = vmatprep.mubr.bf16.mxu0 %v15642_v46  ;;  %12666 = vmatpush3.bf16.msra.mxu0 %v14695_v2  ;;  %v16263_v46 = vpack.c.bf16 %v10867_v35, %v10866_v32  ;;  %v14701_v2 = vld [vmem:[%s20724_s1 + $0x1e0] sm:$0xff]   ;;  %v14702_v32 = vld [vmem:[%s20724_s1 + $0x1e8] sm:$0xff]   ;;  %v10938_v35 = vld [vmem:[%s20723_s0 + $0xd8] sm:$0xff] }
 0x2bc   :  { %12667 = vmatprep.subr.bf16.mxu0 %v14696_v13 }
 0x2bf   :  { %12668 = vmatpush3.bf16.msra.mxu0 %v14696_v13  ;;  %v3050_v13 = vpack.c.bf16 %v10935_v51, %v10934_v6  ;;  %v10954_v6 = vld [vmem:[%s20723_s0 + $0x198] sm:$0xff]  ;;  %v10955_v51 = vld [vmem:[%s20723_s0 + $0x1a0] sm:$0xff] }
 0x2c0   :  { %12733 = vmatprep.subr.bf16.mxu0 %v14697_v18 }
 0x2c2   :  { %12606 = vmatmul.mubr.bf16.gmra.mrb[16].mxu0 %v15644_v48  ;;  %v20901_v48 = vld [vmem:[#allocation6_spill] sm:$0xff] }
 0x2c3   :  { %12609 = vmatprep.mubr.bf16.mxu0 %v15661_v61  ;;  %v20902_v61 = vld [vmem:[#allocation7_spill] sm:$0xff] }
 0x2ca   :  { %12610 = vmatmul.mubr.bf16.gmra.mrb[20].mxu0 %v15663_v23  ;;  %v20903_v23 = vld [vmem:[#allocation8_spill] sm:$0xff] }
 0x2cb   :  { %12613 = vmatprep.mubr.bf16.mxu0 %v15679_v11  ;;  %v10898_v11 = vld [vmem:[%s20723_s0 + $0x332] sm:$0xff] }
 0x2d2   :  { %12614 = vmatmul.mubr.bf16.gmra.mrb[24].mxu0 %v15681_v12  ;;  %v10899_v12 = vld [vmem:[%s20723_s0 + $0x33a] sm:$0xff] }
 0x2d3   :  { %12617 = vmatprep.mubr.bf16.mxu0 %v15697_v28  ;;  %v10924_v28 = vld [vmem:[%s20723_s0 + $0x30] sm:$0xff] }
 0x2da   :  { %12618 = vmatmul.mubr.bf16.gmra.mrb[28].mxu0 %v16263_v46 }
 0x2db   :  { %12621 = vmatprep.mubr.bf16.mxu0 %v15712_v44  ;;  %v10925_v44 = vld [vmem:[%s20723_s0 + $0x38] sm:$0xff] }
 0x2e2   :  { %12622 = vmatmul.mubr.bf16.gmra.mrb[32].mxu0 %v15714_v53  ;;  %v16293_v53 = vpack.c.bf16 %v10899_v12, %v10898_v11  ;;  %v14703_v11 = vld [vmem:[%s20724_s1 + $0x1f0] sm:$0xff]  }
 0x2e3   :  { %12625 = vmatprep.mubr.bf16.mxu0 %v15730_v4  ;;  %v3045_v4 = vpack.c.bf16 %v10925_v44, %v10924_v28  ;;  %v14704_v44 = vld [vmem:[%s20724_s1 + $0x1f8] sm:$0xff]  }
 0x2ea   :  { %12626 = vmatmul.mubr.bf16.gmra.mrb[36].mxu0 %v15732_v5  ;;  %v10926_v5 = vld [vmem:[%s20723_s0 + $0x48] sm:$0xff] }
 0x2eb   :  { %12629 = vmatprep.mubr.bf16.mxu0 %v15748_v27  ;;  %v10927_v27 = vld [vmem:[%s20723_s0 + $0x50] sm:$0xff] }
 0x2f2   :  { %12630 = vmatmul.mubr.bf16.gmra.mrb[40].mxu0 %v15750_v29  ;;  %v10928_v29 = vld [vmem:[%s20723_s0 + $0x60] sm:$0xff] }
 0x2f3   :  { %12633 = vmatprep.mubr.bf16.mxu0 %v15766_v54  ;;  %v10929_v54 = vld [vmem:[%s20723_s0 + $0x68] sm:$0xff] }
 0x2fa   :  { %12634 = vmatmul.mubr.bf16.gmra.mrb[44].mxu0 %v15768_v59  ;;  %v3046_v59 = vpack.c.bf16 %v10927_v27, %v10926_v5  ;;  %v10943_v5 = vld [vmem:[%s20723_s0 + $0x110] sm:$0xff]  ;;  %v10944_v27 = vld [vmem:[%s20723_s0 + $0x120] sm:$0xff] }
 0x2fb   :  { %12637 = vmatprep.mubr.bf16.mxu0 %v15784_v20  ;;  %v3047_v20 = vpack.c.bf16 %v10929_v54, %v10928_v29  ;;  %v10945_v29 = vld [vmem:[%s20723_s0 + $0x128] sm:$0xff]  ;;  %v16380_v54 = vld [vmem:[%s20724_s1 + $0x200] sm:$0xff]  }
 0x302   :  { %12638 = vmatmul.mubr.bf16.gmra.mrb[48].mxu0 %v20901_v48  ;;  %v10939_v48 = vld [vmem:[%s20723_s0 + $0xe0] sm:$0xff] }
 0x303   :  { %12641 = vmatprep.mubr.bf16.mxu0 %v20902_v61  ;;  %v10940_v61 = vld [vmem:[%s20723_s0 + $0xf0] sm:$0xff]  ;;  %v3052_v12 = vpack.c.bf16 %v10939_v48, %v10938_v35  ;;  %v10961_v35 = vld [vmem:[%s20723_s0 + $0x218] sm:$0xff] }
 0x30a   :  { %12642 = vmatmul.mubr.bf16.gmra.mrb[52].mxu0 %v20903_v23  ;;  %v10941_v23 = vld [vmem:[%s20723_s0 + $0xf8] sm:$0xff] }
 0x30b   :  { %12645 = vmatprep.mubr.bf16.mxu0 %v15820_v39  ;;  %v10930_v39 = vld [vmem:[%s20723_s0 + $0x78] sm:$0xff]  ;;  %v3053_v28 = vpack.c.bf16 %v10941_v23, %v10940_v61  ;;  %v10962_v23 = vld [vmem:[%s20723_s0 + $0x228] sm:$0xff] }
 0x312   :  { %12646 = vmatmul.mubr.bf16.gmra.mrb[56].mxu0 %v15822_v40  ;;  %v10931_v40 = vld [vmem:[%s20723_s0 + $0x80] sm:$0xff] }
 0x313   :  { %12649 = vmatprep.mubr.bf16.mxu0 %v15832_v60  ;;  %v14698_v60 = vld [vmem:[%s20724_s1 + $0x1c8] sm:$0xff]   ;;  %v3048_v57 = vpack.c.bf16 %v10931_v40, %v10930_v39  ;;  %v10947_v39 = vld [vmem:[%s20723_s0 + $0x140] sm:$0xff]  ;;  %v10948_v40 = vld [vmem:[%s20723_s0 + $0x150] sm:$0xff] }
 0x31a   :  { %12650 = vmatmul.mubr.bf16.gmra.mrb[60].mxu0 %v16293_v53 }
 0x31b   :  { %12669 = vmatprep.mubr.bf16.mxu0 %v3045_v4  ;;  %v10942_v4 = vld [vmem:[%s20723_s0 + $0x108] sm:$0xff] }
 0x322   :  { %12670 = vmatmul.mubr.bf16.vlgmr.msra.gmra.mrb[0].mxu0 %v3046_v59  ;;  %v3054_v59 = vpack.c.bf16 %v10943_v5, %v10942_v4  ;;  %v10966_v5 = vld [vmem:[%s20723_s0 + $0x258] sm:$0xff] }
 0x323   :  { %12734 = vmatpush3.bf16.msra.mxu0 %v14697_v18  ;;  %12673 = vmatprep.mubr.bf16.mxu0 %v3047_v20  ;;  %v3051_v18 = vpack.c.bf16 %v10937_v62, %v10936_v52  ;;  %v3055_v20 = vpack.c.bf16 %v10945_v29, %v10944_v27  ;;  %v10956_v52 = vld [vmem:[%s20723_s0 + $0x1e0] sm:$0xff]  ;;  %v10957_v62 = vld [vmem:[%s20723_s0 + $0x1e8] sm:$0xff]  ;;  %v10968_v29 = vld [vmem:[%s20723_s0 + $0x270] sm:$0xff] }
 0x324   :  { %12735 = vmatprep.subr.bf16.mxu0 %v14698_v60  ;;  %v10967_v27 = vld [vmem:[%s20723_s0 + $0x260] sm:$0xff] }
 0x327   :  { %12736 = vmatpush3.bf16.msra.mxu0 %v14698_v60  ;;  %v10946_v60 = vld [vmem:[%s20723_s0 + $0x138] sm:$0xff] }
 0x328   :  { %12737 = vmatprep.subr.bf16.mxu0 %v14699_v45  ;;  %v3056_v14 = vpack.c.bf16 %v10947_v39, %v10946_v60  ;;  %v10970_v39 = vld [vmem:[%s20723_s0 + $0x288] sm:$0xff] }
 0x32a   :  { %12674 = vmatmul.mubr.bf16.gmra.mrb[4].mxu0 %v3048_v57  ;;  %v10950_v57 = vld [vmem:[%s20723_s0 + $0x168] sm:$0xff] }
 0x32b   :  { %12677 = vmatprep.mubr.bf16.mxu0 %v3049_v25  ;;  %12738 = vmatpush3.bf16.msra.mxu0 %v14699_v45  ;;  %v3057_v45 = vpack.c.bf16 %v10949_v49, %v10948_v40  ;;  %v10951_v25 = vld [vmem:[%s20723_s0 + $0x170] sm:$0xff]  ;;  %v10972_v49 = vld [vmem:[%s20723_s0 + $0x2a0] sm:$0xff] }
 0x32c   :  { %12739 = vmatprep.subr.bf16.mxu0 %v14700_v7  ;;  %v10971_v40 = vld [vmem:[%s20723_s0 + $0x290] sm:$0xff] }
 0x32f   :  { %12740 = vmatpush3.bf16.msra.mxu0 %v14700_v7  ;;  %v3058_v7 = vpack.c.bf16 %v10951_v25, %v10950_v57  ;;  %v10974_v25 = vld [vmem:[%s20723_s0 + $0x2b8] sm:$0xff] }
 0x330   :  { %12741 = vmatprep.subr.bf16.mxu0 %v14701_v2 }
 0x332   :  { %12678 = vmatmul.mubr.bf16.gmra.mrb[8].mxu0 %v3050_v13  ;;  %v3061_v13 = vpack.c.bf16 %v10957_v62, %v10956_v52 }
 0x333   :  { %12681 = vmatprep.mubr.bf16.mxu0 %v3051_v18  ;;  %12742 = vmatpush3.bf16.msra.mxu0 %v14701_v2  ;;  %v3060_v2 = vpack.c.bf16 %v10955_v51, %v10954_v6  ;;  %v10959_v18 = vld [vmem:[%s20723_s0 + $0x200] sm:$0xff]  ;;  %v10976_v6 = vld [vmem:[%s20723_s0 + $0x2d0] sm:$0xff]  ;;  %v10977_v51 = vld [vmem:[%s20723_s0 + $0x2d8] sm:$0xff] }
 0x334   :  { %12743 = vmatprep.subr.bf16.mxu0 %v14702_v32  ;;  %v3071_v62 = vpack.c.bf16 %v10977_v51, %v10976_v6 }
 0x337   :  { %12744 = vmatpush3.bf16.msra.mxu0 %v14702_v32  ;;  %v10960_v32 = vld [vmem:[%s20723_s0 + $0x210] sm:$0xff] }
 0x338   :  { %12745 = vmatprep.subr.bf16.mxu0 %v14703_v11  ;;  %v3063_v61 = vpack.c.bf16 %v10961_v35, %v10960_v32 }
 0x33a   :  { %12682 = vmatmul.mubr.bf16.gmra.mrb[12].mxu0 %v3052_v12  ;;  %v10964_v12 = vld [vmem:[%s20723_s0 + $0x240] sm:$0xff] }
 0x33b   :  { %12685 = vmatprep.mubr.bf16.mxu0 %v3053_v28  ;;  %12746 = vmatpush3.bf16.msra.mxu0 %v14703_v11  ;;  %v10963_v11 = vld [vmem:[%s20723_s0 + $0x230] sm:$0xff]  ;;  %v10965_v28 = vld [vmem:[%s20723_s0 + $0x248] sm:$0xff] }
 0x33c   :  { %12747 = vmatprep.subr.bf16.mxu0 %v14704_v44  ;;  %v3065_v4 = vpack.c.bf16 %v10965_v28, %v10964_v12  ;;  %v10987_v12 = vld [vmem:[%s20723_s0 + $0x350] sm:$0xff] }
 0x33f   :  { %12748 = vmatpush3.bf16.msra.mxu0 %v14704_v44  ;;  %v3064_v44 = vpack.c.bf16 %v10963_v11, %v10962_v23  ;;  %v10986_v11 = vld [vmem:[%s20723_s0 + $0x348] sm:$0xff] }
 0x340   :  { %12813 = vmatprep.subr.bf16.mxu0 %v16380_v54  ;;  %v3076_v28 = vpack.c.bf16 %v10987_v12, %v10986_v11  ;;  %v11132_v11 = vld [vmem:[%s20723_s0 + $0x1e2] sm:$0xff]  ;;  %v11133_v12 = vld [vmem:[%s20723_s0 + $0x1ea] sm:$0xff] }
 0x342   :  { %12686 = vmatmul.mubr.bf16.gmra.mrb[16].mxu0 %v3054_v59  ;;  %v10969_v59 = vld [vmem:[%s20723_s0 + $0x278] sm:$0xff] }
 0x343   :  { %12689 = vmatprep.mubr.bf16.mxu0 %v3055_v20  ;;  %v3066_v20 = vpack.c.bf16 %v10967_v27, %v10966_v5  ;;  %v3067_v60 = vpack.c.bf16 %v10969_v59, %v10968_v29  ;;  %v11112_v5 = vld [vmem:[%s20723_s0 + $0xc2] sm:$0xff]  ;;  %v11113_v27 = vld [vmem:[%s20723_s0 + $0xca] sm:$0xff] }
 0x344   :  { %v4079_v59 = vpack.c.bf16 %v11113_v27, %v11112_v5  ;;  %v11156_v5 = vld [vmem:[%s20723_s0 + $0x302] sm:$0xff]  ;;  %v11157_v27 = vld [vmem:[%s20723_s0 + $0x30a] sm:$0xff] }
 0x34a   :  { %12690 = vmatmul.mubr.bf16.gmra.mrb[20].mxu0 %v3056_v14  ;;  %v10973_v14 = vld [vmem:[%s20723_s0 + $0x2a8] sm:$0xff] }
 0x34b   :  { %12693 = vmatprep.mubr.bf16.mxu0 %v3057_v45  ;;  %v3068_v45 = vpack.c.bf16 %v10971_v40, %v10970_v39  ;;  %v3069_v57 = vpack.c.bf16 %v10973_v14, %v10972_v49  ;;  %v11116_v39 = vld [vmem:[%s20723_s0 + $0xf2] sm:$0xff]  ;;  %v11117_v40 = vld [vmem:[%s20723_s0 + $0xfa] sm:$0xff] }
 0x34c   :  { %v4081_v14 = vpack.c.bf16 %v11117_v40, %v11116_v39  ;;  %v11162_v40 = vld [vmem:[%s20723_s0 + $0x34a] sm:$0xff] }
 0x352   :  { %12694 = vmatmul.mubr.bf16.gmra.mrb[24].mxu0 %v3058_v7  ;;  %v10975_v7 = vld [vmem:[%s20723_s0 + $0x2c0] sm:$0xff] }
 0x353   :  { %12697 = vmatprep.mubr.bf16.mxu0 %v15881_v24  ;;  %v10958_v24 = vld [vmem:[%s20723_s0 + $0x1f8] sm:$0xff]  ;;  %v3070_v52 = vpack.c.bf16 %v10975_v7, %v10974_v25  ;;  %v11120_v25 = vld [vmem:[%s20723_s0 + $0x122] sm:$0xff]  ;;  %v11121_v7 = vld [vmem:[%s20723_s0 + $0x12a] sm:$0xff] }
 0x354   :  { %v3062_v48 = vpack.c.bf16 %v10959_v18, %v10958_v24  ;;  %v10980_v24 = vld [vmem:[%s20723_s0 + $0x300] sm:$0xff]  ;;  %v10981_v18 = vld [vmem:[%s20723_s0 + $0x308] sm:$0xff]  ;;  %v4083_v51 = vpack.c.bf16 %v11121_v7, %v11120_v25 }
 0x355   :  { %v3073_v35 = vpack.c.bf16 %v10981_v18, %v10980_v24 }
 0x35a   :  { %12698 = vmatmul.mubr.bf16.gmra.mrb[28].mxu0 %v3060_v2  ;;  %v10978_v2 = vld [vmem:[%s20723_s0 + $0x2e8] sm:$0xff] }
 0x35b   :  { %12701 = vmatprep.mubr.bf16.mxu0 %v3061_v13  ;;  %v10979_v13 = vld [vmem:[%s20723_s0 + $0x2f0] sm:$0xff] }
 0x35c   :  { %v3072_v32 = vpack.c.bf16 %v10979_v13, %v10978_v2  ;;  %v11124_v2 = vld [vmem:[%s20723_s0 + $0x152] sm:$0xff]  ;;  %v11125_v13 = vld [vmem:[%s20723_s0 + $0x15a] sm:$0xff] }
 0x35d   :  { %v4085_v18 = vpack.c.bf16 %v11125_v13, %v11124_v2 }
 0x362   :  { %12702 = vmatmul.mubr.bf16.gmra.mrb[32].mxu0 %v3062_v48  ;;  %v10982_v48 = vld [vmem:[%s20723_s0 + $0x318] sm:$0xff] }
 0x363   :  { %12705 = vmatprep.mubr.bf16.mxu0 %v3063_v61  ;;  %v10983_v61 = vld [vmem:[%s20723_s0 + $0x320] sm:$0xff] }
 0x364   :  { %v3074_v23 = vpack.c.bf16 %v10983_v61, %v10982_v48  ;;  %v11130_v61 = vld [vmem:[%s20723_s0 + $0x19a] sm:$0xff] }
 0x36a   :  { %12706 = vmatmul.mubr.bf16.gmra.mrb[36].mxu0 %v3064_v44  ;;  %v14706_v44 = vld [vmem:[%s20724_s1 + $0x208] sm:$0xff]  }
 0x36b   :  { %12709 = vmatprep.mubr.bf16.mxu0 %v3065_v4  ;;  %v11111_v4 = vld [vmem:[%s20723_s0 + $0xb2] sm:$0xff] }
 0x372   :  { %12710 = vmatmul.mubr.bf16.gmra.mrb[40].mxu0 %v3066_v20  ;;  %v11114_v20 = vld [vmem:[%s20723_s0 + $0xda] sm:$0xff] }
 0x373   :  { %12713 = vmatprep.mubr.bf16.mxu0 %v3067_v60  ;;  %v11115_v60 = vld [vmem:[%s20723_s0 + $0xe2] sm:$0xff] }
 0x374   :  { %v4080_v49 = vpack.c.bf16 %v11115_v60, %v11114_v20  ;;  %v11158_v20 = vld [vmem:[%s20723_s0 + $0x31a] sm:$0xff]  ;;  %v11159_v60 = vld [vmem:[%s20723_s0 + $0x322] sm:$0xff] }
 0x375   :  { %v4102_v39 = vpack.c.bf16 %v11159_v60, %v11158_v20 }
 0x37a   :  { %12714 = vmatmul.mubr.bf16.gmra.mrb[44].mxu0 %v3068_v45  ;;  %v11118_v45 = vld [vmem:[%s20723_s0 + $0x10a] sm:$0xff] }
 0x37b   :  { %12717 = vmatprep.mubr.bf16.mxu0 %v3069_v57  ;;  %v11119_v57 = vld [vmem:[%s20723_s0 + $0x112] sm:$0xff] }
 0x37c   :  { %v4082_v6 = vpack.c.bf16 %v11119_v57, %v11118_v45 }
 0x382   :  { %12718 = vmatmul.mubr.bf16.gmra.mrb[48].mxu0 %v3070_v52  ;;  %v11122_v52 = vld [vmem:[%s20723_s0 + $0x13a] sm:$0xff] }
 0x383   :  { %12721 = vmatprep.mubr.bf16.mxu0 %v3071_v62  ;;  %v11123_v62 = vld [vmem:[%s20723_s0 + $0x142] sm:$0xff] }
 0x384   :  { %v4084_v24 = vpack.c.bf16 %v11123_v62, %v11122_v52 }
 0x38a   :  { %12722 = vmatmul.mubr.bf16.gmra.mrb[52].mxu0 %v3072_v32  ;;  %v11126_v32 = vld [vmem:[%s20723_s0 + $0x16a] sm:$0xff] }
 0x38b   :  { %12725 = vmatprep.mubr.bf16.mxu0 %v3073_v35  ;;  %v11127_v35 = vld [vmem:[%s20723_s0 + $0x172] sm:$0xff] }
 0x38c   :  { %v4086_v48 = vpack.c.bf16 %v11127_v35, %v11126_v32 }
 0x392   :  { %12726 = vmatmul.mubr.bf16.gmra.mrb[56].mxu0 %v3074_v23  ;;  %v11131_v23 = vld [vmem:[%s20723_s0 + $0x1a2] sm:$0xff] }
 0x393   :  { %12729 = vmatprep.mubr.bf16.mxu0 %v15911_v37  ;;  %v14707_v37 = vld [vmem:[%s20724_s1 + $0x210] sm:$0xff]  }
 0x39a   :  { %12730 = vmatmul.mubr.bf16.gmra.mrb[60].mxu0 %v3076_v28  ;;  %v4088_v28 = vpack.c.bf16 %v11131_v23, %v11130_v61 }
 0x39b   :  { %12749 = vmatprep.mubr.bf16.mxu0 %v15926_v63  ;;  %v14708_v63 = vld [vmem:[%s20724_s1 + $0x218] sm:$0xff]  }
 0x3a2   :  { %12750 = vmatmul.mubr.bf16.vlgmr.msra.gmra.mrb[0].mxu0 %v15928_v47  ;;  %v14709_v47 = vld [vmem:[%s20724_s1 + $0x220] sm:$0xff]  }
 0x3a3   :  { %12814 = vmatpush3.bf16.msra.mxu0 %v16380_v54  ;;  %12753 = vmatprep.mubr.bf16.mxu0 %v15950_v33  ;;  %v14710_v33 = vld [vmem:[%s20724_s1 + $0x228] sm:$0xff]  }
 0x3a4   :  { %12815 = vmatprep.subr.bf16.mxu0 %v14706_v44  ;;  %v11110_v54 = vld [vmem:[%s20723_s0 + $0xaa] sm:$0xff] }
 0x3a5   :  { %v4078_v29 = vpack.c.bf16 %v11111_v4, %v11110_v54  ;;  %v11154_v54 = vld [vmem:[%s20723_s0 + $0x2ea] sm:$0xff]  ;;  %v11155_v4 = vld [vmem:[%s20723_s0 + $0x2f2] sm:$0xff] }
 0x3a7   :  { %12816 = vmatpush3.bf16.msra.mxu0 %v14706_v44  ;;  %v4089_v44 = vpack.c.bf16 %v11133_v12, %v11132_v11 }
 0x3a8   :  { %12817 = vmatprep.subr.bf16.mxu0 %v14707_v37 }
 0x3aa   :  { %12754 = vmatmul.mubr.bf16.gmra.mrb[4].mxu0 %v15952_v34  ;;  %v14711_v34 = vld [vmem:[%s20724_s1 + $0x230] sm:$0xff]  }
 0x3ab   :  { %12757 = vmatprep.mubr.bf16.mxu0 %v15974_v21  ;;  %12818 = vmatpush3.bf16.msra.mxu0 %v14707_v37  ;;  %v14712_v21 = vld [vmem:[%s20724_s1 + $0x238] sm:$0xff]   ;;  %v11135_v37 = vld [vmem:[%s20723_s0 + $0x202] sm:$0xff] }
 0x3ac   :  { %12819 = vmatprep.subr.bf16.mxu0 %v14708_v63 }
 0x3af   :  { %12820 = vmatpush3.bf16.msra.mxu0 %v14708_v63  ;;  %v11136_v63 = vld [vmem:[%s20723_s0 + $0x212] sm:$0xff] }
 0x3b0   :  { %12821 = vmatprep.subr.bf16.mxu0 %v14709_v47 }
 0x3b2   :  { %12758 = vmatmul.mubr.bf16.gmra.mrb[8].mxu0 %v15976_v3  ;;  %v11042_v3 = vld [vmem:[%s20723_s0 + $0x199] sm:$0xff] }
 0x3b3   :  { %12761 = vmatprep.mubr.bf16.mxu0 %v15998_v16  ;;  %12822 = vmatpush3.bf16.msra.mxu0 %v14709_v47  ;;  %v11043_v16 = vld [vmem:[%s20723_s0 + $0x1a1] sm:$0xff] }
 0x3b4   :  { %12823 = vmatprep.subr.bf16.mxu0 %v14710_v33  ;;  %v11137_v47 = vld [vmem:[%s20723_s0 + $0x21a] sm:$0xff] }
 0x3b7   :  { %12824 = vmatpush3.bf16.msra.mxu0 %v14710_v33 }
 0x3b8   :  { %12825 = vmatprep.subr.bf16.mxu0 %v14711_v34 }
 0x3ba   :  { %12762 = vmatmul.mubr.bf16.gmra.mrb[12].mxu0 %v16000_v17  ;;  %v3574_v17 = vpack.c.bf16 %v11043_v16, %v11042_v3  ;;  %v11139_v3 = vld [vmem:[%s20723_s0 + $0x232] sm:$0xff]  ;;  %v11140_v16 = vld [vmem:[%s20723_s0 + $0x242] sm:$0xff] }
 0x3bb   :  { %12765 = vmatprep.mubr.bf16.mxu0 %v16024_v50  ;;  %12826 = vmatpush3.bf16.msra.mxu0 %v14711_v34  ;;  %v20904_v50 = vld [vmem:[#allocation9_spill] sm:$0xff]  ;;  %v4091_v34 = vpack.c.bf16 %v11137_v47, %v11136_v63 }
 0x3bc   :  { %12827 = vmatprep.subr.bf16.mxu0 %v14712_v21 }
 0x3bf   :  { %12828 = vmatpush3.bf16.msra.mxu0 %v14712_v21  ;;  %v11138_v21 = vld [vmem:[%s20723_s0 + $0x22a] sm:$0xff] }
 0x3c2   :  { %12766 = vmatmul.mubr.bf16.gmra.mrb[16].mxu0 %v16026_v55  ;;  %v20905_v55 = vld [vmem:[#allocation10_spill] sm:$0xff] }
 0x3c3   :  { %12769 = vmatprep.mubr.bf16.mxu0 %v16043_v15  ;;  %v11074_v15 = vld [vmem:[%s20723_s0 + $0x349] sm:$0xff] }
 0x3ca   :  { %12770 = vmatmul.mubr.bf16.gmra.mrb[20].mxu0 %v16045_v22  ;;  %v11075_v22 = vld [vmem:[%s20723_s0 + $0x351] sm:$0xff] }
 0x3cb   :  { %12773 = vmatprep.mubr.bf16.mxu0 %v16061_v19  ;;  %v11100_v19 = vld [vmem:[%s20723_s0 + $0x32] sm:$0xff] }
 0x3d2   :  { %12774 = vmatmul.mubr.bf16.gmra.mrb[24].mxu0 %v16063_v38  ;;  %v11101_v38 = vld [vmem:[%s20723_s0 + $0x3a] sm:$0xff] }
 0x3d3   :  { %12777 = vmatprep.mubr.bf16.mxu0 %v16079_v1  ;;  %v3590_v1 = vpack.c.bf16 %v11075_v22, %v11074_v15  ;;  %v11142_v15 = vld [vmem:[%s20723_s0 + $0x25a] sm:$0xff]  ;;  %v11143_v22 = vld [vmem:[%s20723_s0 + $0x262] sm:$0xff] }
 0x3da   :  { %12778 = vmatmul.mubr.bf16.gmra.mrb[28].mxu0 %v3574_v17  ;;  %v11141_v17 = vld [vmem:[%s20723_s0 + $0x24a] sm:$0xff] }
 0x3db   :  { %12781 = vmatprep.mubr.bf16.mxu0 %v16094_v36  ;;  %v4073_v36 = vpack.c.bf16 %v11101_v38, %v11100_v19  ;;  %v11144_v19 = vld [vmem:[%s20723_s0 + $0x272] sm:$0xff]  ;;  %v11145_v38 = vld [vmem:[%s20723_s0 + $0x27a] sm:$0xff] }
 0x3e2   :  { %12782 = vmatmul.mubr.bf16.gmra.mrb[32].mxu0 %v16096_v42  ;;  %v11102_v42 = vld [vmem:[%s20723_s0 + $0x4a] sm:$0xff] }
 0x3e3   :  { %12785 = vmatprep.mubr.bf16.mxu0 %v16112_v26  ;;  %v11103_v26 = vld [vmem:[%s20723_s0 + $0x52] sm:$0xff] }
 0x3ea   :  { %12786 = vmatmul.mubr.bf16.gmra.mrb[36].mxu0 %v16114_v41  ;;  %v11104_v41 = vld [vmem:[%s20723_s0 + $0x62] sm:$0xff] }
 0x3eb   :  { %12789 = vmatprep.mubr.bf16.mxu0 %v16130_v58  ;;  %v11105_v58 = vld [vmem:[%s20723_s0 + $0x6a] sm:$0xff] }
 0x3f2   :  { %12790 = vmatmul.mubr.bf16.gmra.mrb[40].mxu0 %v16132_v0  ;;  %v4074_v0 = vpack.c.bf16 %v11103_v26, %v11102_v42  ;;  %v11146_v42 = vld [vmem:[%s20723_s0 + $0x28a] sm:$0xff]  ;;  %v11147_v26 = vld [vmem:[%s20723_s0 + $0x292] sm:$0xff] }
 0x3f3   :  { %12793 = vmatprep.mubr.bf16.mxu0 %v16148_v31  ;;  %v4075_v31 = vpack.c.bf16 %v11105_v58, %v11104_v41  ;;  %v11148_v41 = vld [vmem:[%s20723_s0 + $0x2a2] sm:$0xff]  ;;  %v11149_v58 = vld [vmem:[%s20723_s0 + $0x2aa] sm:$0xff] }
 0x3fa   :  { %12794 = vmatmul.mubr.bf16.gmra.mrb[44].mxu0 %v16150_v56  ;;  %v11106_v56 = vld [vmem:[%s20723_s0 + $0x7a] sm:$0xff] }
 0x3fb   :  { %12797 = vmatprep.mubr.bf16.mxu0 %v16166_v10  ;;  %v11107_v10 = vld [vmem:[%s20723_s0 + $0x82] sm:$0xff] }
 0x402   :  { %12798 = vmatmul.mubr.bf16.gmra.mrb[48].mxu0 %v16168_v43  ;;  %v11108_v43 = vld [vmem:[%s20723_s0 + $0x92] sm:$0xff] }
 0x403   :  { %12801 = vmatprep.mubr.bf16.mxu0 %v20904_v50  ;;  %v4092_v50 = vpack.c.bf16 %v11139_v3, %v11138_v21 }
 0x40a   :  { %12802 = vmatmul.mubr.bf16.gmra.mrb[52].mxu0 %v20905_v55  ;;  %v4093_v55 = vpack.c.bf16 %v11141_v17, %v11140_v16 }
 0x40b   :  { %12805 = vmatprep.mubr.bf16.mxu0 %v16202_v8  ;;  %v4076_v8 = vpack.c.bf16 %v11107_v10, %v11106_v56  ;;  %v11150_v56 = vld [vmem:[%s20723_s0 + $0x2ba] sm:$0xff]  ;;  %v11151_v10 = vld [vmem:[%s20723_s0 + $0x2c2] sm:$0xff] }
 0x412   :  { %12806 = vmatmul.mubr.bf16.gmra.mrb[56].mxu0 %v16204_v9 }
 0x413   :  { %12809 = vmatprep.mubr.bf16.mxu0 %v16214_v30  ;;  %v11109_v30 = vld [vmem:[%s20723_s0 + $0x9a] sm:$0xff] }
 0x414   :  { %v4077_v9 = vpack.c.bf16 %v11109_v30, %v11108_v43  ;;  %v11152_v43 = vld [vmem:[%s20723_s0 + $0x2d2] sm:$0xff]  ;;  %v11153_v30 = vld [vmem:[%s20723_s0 + $0x2da] sm:$0xff] }
 0x41a   :  { %12810 = vmatmul.mubr.bf16.gmra.mrb[60].mxu0 %v3590_v1  ;;  %v4094_v1 = vpack.c.bf16 %v11143_v22, %v11142_v15 }
 0x41b   :  { %12829 = vmatprep.mubr.bf16.mxu0 %v4073_v36  ;;  %v4095_v36 = vpack.c.bf16 %v11145_v38, %v11144_v19 }
 0x422   :  { %12830 = vmatmul.mubr.bf16.vlgmr.msra.gmra.mrb[0].mxu0 %v4074_v0  ;;  %v4096_v0 = vpack.c.bf16 %v11147_v26, %v11146_v42 }
 0x423   :  { %12833 = vmatprep.mubr.bf16.mxu0 %v4075_v31  ;;  %v4097_v31 = vpack.c.bf16 %v11149_v58, %v11148_v41 }
 0x42a   :  { %12834 = vmatmul.mubr.bf16.gmra.mrb[4].mxu0 %v4076_v8  ;;  %v4098_v8 = vpack.c.bf16 %v11151_v10, %v11150_v56 }
 0x42b   :  { %12837 = vmatprep.mubr.bf16.mxu0 %v4077_v9  ;;  %v4099_v9 = vpack.c.bf16 %v11153_v30, %v11152_v43 }
 0x432   :  { %12838 = vmatmul.mubr.bf16.gmra.mrb[8].mxu0 %v4078_v29  ;;  %v4100_v29 = vpack.c.bf16 %v11155_v4, %v11154_v54 }
 0x433   :  { %12841 = vmatprep.mubr.bf16.mxu0 %v4079_v59  ;;  %v4101_v59 = vpack.c.bf16 %v11157_v27, %v11156_v5 }
 0x43a   :  { %12842 = vmatmul.mubr.bf16.gmra.mrb[12].mxu0 %v4080_v49  ;;  %v11163_v49 = vld [vmem:[%s20723_s0 + $0x352] sm:$0xff] }
 0x43b   :  { %12845 = vmatprep.mubr.bf16.mxu0 %v4081_v14  ;;  %v4104_v14 = vpack.c.bf16 %v11163_v49, %v11162_v40 }
 0x442   :  { %12846 = vmatmul.mubr.bf16.gmra.mrb[16].mxu0 %v4082_v6 }
 0x443   :  { %12849 = vmatprep.mubr.bf16.mxu0 %v4083_v51 }
 0x44a   :  { %12850 = vmatmul.mubr.bf16.gmra.mrb[20].mxu0 %v4084_v24 }
 0x44b   :  { %12853 = vmatprep.mubr.bf16.mxu0 %v4085_v18 }
 0x452   :  { %12854 = vmatmul.mubr.bf16.gmra.mrb[24].mxu0 %v4086_v48 }
 0x453   :  { %12857 = vmatprep.mubr.bf16.mxu0 %v16263_v46  ;;  %v11134_v46 = vld [vmem:[%s20723_s0 + $0x1fa] sm:$0xff] }
 0x454   :  { %v4090_v33 = vpack.c.bf16 %v11135_v37, %v11134_v46 }
 0x45a   :  { %12858 = vmatmul.mubr.bf16.gmra.mrb[28].mxu0 %v4088_v28 }
 0x45b   :  { %12861 = vmatprep.mubr.bf16.mxu0 %v4089_v44 }
 0x462   :  { %12862 = vmatmul.mubr.bf16.gmra.mrb[32].mxu0 %v4090_v33 }
 0x463   :  { %12865 = vmatprep.mubr.bf16.mxu0 %v4091_v34 }
 0x46a   :  { %12866 = vmatmul.mubr.bf16.gmra.mrb[36].mxu0 %v4092_v50 }
 0x46b   :  { %12869 = vmatprep.mubr.bf16.mxu0 %v4093_v55 }
 0x472   :  { %12870 = vmatmul.mubr.bf16.gmra.mrb[40].mxu0 %v4094_v1 }
 0x473   :  { %12873 = vmatprep.mubr.bf16.mxu0 %v4095_v36 }
 0x47a   :  { %12874 = vmatmul.mubr.bf16.gmra.mrb[44].mxu0 %v4096_v0 }
 0x47b   :  { %12877 = vmatprep.mubr.bf16.mxu0 %v4097_v31 }
 0x482   :  { %12878 = vmatmul.mubr.bf16.gmra.mrb[48].mxu0 %v4098_v8 }
 0x483   :  { %12881 = vmatprep.mubr.bf16.mxu0 %v4099_v9 }
 0x48a   :  { %12882 = vmatmul.mubr.bf16.gmra.mrb[52].mxu0 %v4100_v29 }
 0x48b   :  { %12885 = vmatprep.mubr.bf16.mxu0 %v4101_v59 }
 0x492   :  { %12886 = vmatmul.mubr.bf16.gmra.mrb[56].mxu0 %v4102_v39 }
 0x493   :  { %12889 = vmatprep.mubr.bf16.mxu0 %v16293_v53 }
 0x49a   :  { %12890 = vmatmul.mubr.bf16.gmra.mrb[60].mxu0 %v4104_v14 }
 0x4f5   :  { %v16745_v45 = vpop.f32.mrb[0].mxu0 }
 0x4f6   :  { %v16747_v57 = vpop.f32.mrb[1].mxu0 }
 0x4f7   :  { %v16749_v25 = vpop.f32.mrb[2].mxu0 }
 0x4f8   :  { %v16751_v7 = vpop.f32.mrb[3].mxu0 }
 0x4f9   :  { %v4523_v53 = vadd.f32 %v16751_v7, %v16747_v57 }
 0x4fb   :  { %v4524_v6 = vadd.f32 %v16745_v45, %v4523_v53 }
 0x4fd   :  { %v16756_v51 = vpop.f32.mrb[4].mxu0  ;;  %v4525_v52 = vadd.f32 %v16749_v25, %v4524_v6 }
 0x4fe   :  { %v16759_v62 = vpop.f32.mrb[5].mxu0 }
 0x4ff   :  { %v4526_v2 = vadd.f32 %v4525_v52, %v16759_v62  ;;  %v16762_v13 = vpop.f32.mrb[6].mxu0 }
 0x500   :  { %v16764_v24 = vpop.f32.mrb[7].mxu0 }
 0x501   :  { %v4527_v18 = vadd.f32 %v4526_v2, %v16764_v24 }
 0x503   :  { %v4528_v32 = vadd.f32 %v16756_v51, %v4527_v18 }
 0x505   :  { %v16768_v35 = vpop.f32.mrb[8].mxu0  ;;  %v4529_v48 = vadd.f32 %v16762_v13, %v4528_v32 }
 0x506   :  { %v16771_v61 = vpop.f32.mrb[9].mxu0 }
 0x507   :  { %v4530_v23 = vadd.f32 %v4529_v48, %v16771_v61  ;;  %v16774_v11 = vpop.f32.mrb[10].mxu0 }
 0x508   :  { %v16776_v12 = vpop.f32.mrb[11].mxu0 }
 0x509   :  { %v4531_v28 = vadd.f32 %v4530_v23, %v16776_v12 }
 0x50b   :  { %v4532_v44 = vadd.f32 %v16768_v35, %v4531_v28 }
 0x50d   :  { %v16780_v46 = vpop.f32.mrb[12].mxu0  ;;  %v4533_v37 = vadd.f32 %v16774_v11, %v4532_v44 }
 0x50e   :  { %v16783_v63 = vpop.f32.mrb[13].mxu0 }
 0x50f   :  { %v4534_v47 = vadd.f32 %v4533_v37, %v16783_v63  ;;  %v16786_v33 = vpop.f32.mrb[14].mxu0 }
 0x510   :  { %v16788_v34 = vpop.f32.mrb[15].mxu0 }
 0x511   :  { %v4535_v21 = vadd.f32 %v4534_v47, %v16788_v34 }
 0x513   :  { %v4536_v3 = vadd.f32 %v16780_v46, %v4535_v21 }
 0x515   :  { %v16792_v16 = vpop.f32.mrb[16].mxu0  ;;  %v4537_v17 = vadd.f32 %v16786_v33, %v4536_v3 }
 0x516   :  { %v16795_v50 = vpop.f32.mrb[17].mxu0 }
 0x517   :  { %v4538_v55 = vadd.f32 %v4537_v17, %v16795_v50  ;;  %v16798_v15 = vpop.f32.mrb[18].mxu0 }
 0x518   :  { %v16800_v22 = vpop.f32.mrb[19].mxu0 }
 0x519   :  { %v4539_v19 = vadd.f32 %v4538_v55, %v16800_v22 }
 0x51b   :  { %v4540_v38 = vadd.f32 %v16792_v16, %v4539_v19 }
 0x51d   :  { %v16804_v1 = vpop.f32.mrb[20].mxu0  ;;  %v4541_v36 = vadd.f32 %v16798_v15, %v4540_v38 }
 0x51e   :  { %v16807_v42 = vpop.f32.mrb[21].mxu0 }
 0x51f   :  { %v4542_v26 = vadd.f32 %v4541_v36, %v16807_v42  ;;  %v16810_v41 = vpop.f32.mrb[22].mxu0 }
 0x520   :  { %v16812_v58 = vpop.f32.mrb[23].mxu0 }
 0x521   :  { %v4543_v0 = vadd.f32 %v4542_v26, %v16812_v58 }
 0x523   :  { %v4544_v31 = vadd.f32 %v16804_v1, %v4543_v0 }
 0x525   :  { %v16816_v56 = vpop.f32.mrb[24].mxu0  ;;  %v4545_v10 = vadd.f32 %v16810_v41, %v4544_v31 }
 0x526   :  { %v16819_v43 = vpop.f32.mrb[25].mxu0 }
 0x527   :  { %v4546_v30 = vadd.f32 %v4545_v10, %v16819_v43  ;;  %v16822_v8 = vpop.f32.mrb[26].mxu0 }
 0x528   :  { %v16824_v9 = vpop.f32.mrb[27].mxu0 }
 0x529   :  { %v4547_v54 = vadd.f32 %v4546_v30, %v16824_v9 }
 0x52b   :  { %v4548_v4 = vadd.f32 %v16816_v56, %v4547_v54 }
 0x52d   :  { %v16828_v5 = vpop.f32.mrb[28].mxu0  ;;  %v4549_v27 = vadd.f32 %v16822_v8, %v4548_v4 }
 0x52e   :  { %v16831_v29 = vpop.f32.mrb[29].mxu0 }
 0x52f   :  { %v4550_v59 = vadd.f32 %v4549_v27, %v16831_v29  ;;  %v16834_v20 = vpop.f32.mrb[30].mxu0 }
 0x530   :  { %v16836_v60 = vpop.f32.mrb[31].mxu0 }
 0x531   :  { %v4551_v39 = vadd.f32 %v4550_v59, %v16836_v60 }
 0x533   :  { %v4552_v40 = vadd.f32 %v16828_v5, %v4551_v39 }
 0x535   :  { %v16840_v49 = vpop.f32.mrb[32].mxu0  ;;  %v4553_v14 = vadd.f32 %v16834_v20, %v4552_v40 }
 0x536   :  { %v16843_v53 = vpop.f32.mrb[33].mxu0 }
 0x537   :  { %v4554_v6 = vadd.f32 %v4553_v14, %v16843_v53  ;;  %v16846_v52 = vpop.f32.mrb[34].mxu0 }
 0x538   :  { %v16848_v2 = vpop.f32.mrb[35].mxu0 }
 0x539   :  { %v4555_v18 = vadd.f32 %v4554_v6, %v16848_v2 }
 0x53b   :  { %v4556_v32 = vadd.f32 %v16840_v49, %v4555_v18 }
 0x53d   :  { %v16852_v48 = vpop.f32.mrb[36].mxu0  ;;  %v4557_v23 = vadd.f32 %v16846_v52, %v4556_v32 }
 0x53e   :  { %v16855_v28 = vpop.f32.mrb[37].mxu0 }
 0x53f   :  { %v4558_v44 = vadd.f32 %v4557_v23, %v16855_v28  ;;  %v16858_v37 = vpop.f32.mrb[38].mxu0 }
 0x540   :  { %v16860_v47 = vpop.f32.mrb[39].mxu0 }
 0x541   :  { %v4559_v21 = vadd.f32 %v4558_v44, %v16860_v47 }
 0x543   :  { %v4560_v3 = vadd.f32 %v16852_v48, %v4559_v21 }
 0x545   :  { %v16864_v17 = vpop.f32.mrb[40].mxu0  ;;  %v4561_v55 = vadd.f32 %v16858_v37, %v4560_v3 }
 0x546   :  { %v16867_v19 = vpop.f32.mrb[41].mxu0 }
 0x547   :  { %v4562_v38 = vadd.f32 %v4561_v55, %v16867_v19  ;;  %v16870_v36 = vpop.f32.mrb[42].mxu0 }
 0x548   :  { %v16872_v26 = vpop.f32.mrb[43].mxu0 }
 0x549   :  { %v4563_v0 = vadd.f32 %v4562_v38, %v16872_v26 }
 0x54b   :  { %v4564_v31 = vadd.f32 %v16864_v17, %v4563_v0 }
 0x54d   :  { %v16876_v10 = vpop.f32.mrb[44].mxu0  ;;  %v4565_v30 = vadd.f32 %v16870_v36, %v4564_v31 }
 0x54e   :  { %v16879_v54 = vpop.f32.mrb[45].mxu0 }
 0x54f   :  { %v4566_v4 = vadd.f32 %v4565_v30, %v16879_v54  ;;  %v16882_v27 = vpop.f32.mrb[46].mxu0 }
 0x550   :  { %v16884_v59 = vpop.f32.mrb[47].mxu0 }
 0x551   :  { %v4567_v39 = vadd.f32 %v4566_v4, %v16884_v59 }
 0x553   :  { %v4568_v40 = vadd.f32 %v16876_v10, %v4567_v39 }
 0x555   :  { %v16888_v14 = vpop.f32.mrb[48].mxu0  ;;  %v4569_v6 = vadd.f32 %v16882_v27, %v4568_v40 }
 0x556   :  { %20906 = vst [vmem:[#allocation6_spill] sm:$0xff] %v16888_v14  ;;  %v16891_v18 = vpop.f32.mrb[49].mxu0 }
 0x557   :  { %20907 = vst [vmem:[#allocation7_spill] sm:$0xff] %v16891_v18  ;;  %v4570_v32 = vadd.f32 %v4569_v6, %v16891_v18  ;;  %v16894_v23 = vpop.f32.mrb[50].mxu0 }
 0x558   :  { %20908 = vst [vmem:[#allocation8_spill] sm:$0xff] %v16894_v23  ;;  %v16896_v44 = vpop.f32.mrb[51].mxu0 }
 0x559   :  { %20909 = vst [vmem:[#allocation9_spill] sm:$0xff] %v16896_v44  ;;  %v4571_v21 = vadd.f32 %v4570_v32, %v16896_v44 }
 0x55b   :  { %v4572_v3 = vadd.f32 %v16888_v14, %v4571_v21 }
 0x55d   :  { %v16900_v55 = vpop.f32.mrb[52].mxu0  ;;  %v4573_v38 = vadd.f32 %v16894_v23, %v4572_v3 }
 0x55e   :  { %20910 = vst [vmem:[#allocation10_spill] sm:$0xff] %v16900_v55  ;;  %v16903_v0 = vpop.f32.mrb[53].mxu0 }
 0x55f   :  { %20911 = vst [vmem:[#allocation11_spill] sm:$0xff] %v16903_v0  ;;  %v4574_v31 = vadd.f32 %v4573_v38, %v16903_v0  ;;  %v16906_v30 = vpop.f32.mrb[54].mxu0 }
 0x560   :  { %20912 = vst [vmem:[#allocation12_spill] sm:$0xff] %v16906_v30  ;;  %v16908_v4 = vpop.f32.mrb[55].mxu0 }
 0x561   :  { %20913 = vst [vmem:[#allocation13_spill] sm:$0xff] %v16908_v4  ;;  %v4575_v39 = vadd.f32 %v4574_v31, %v16908_v4 }
 0x563   :  { %v4576_v40 = vadd.f32 %v16900_v55, %v4575_v39 }
 0x565   :  { %v16912_v6 = vpop.f32.mrb[56].mxu0  ;;  %v4577_v32 = vadd.f32 %v16906_v30, %v4576_v40 }
 0x566   :  { %20914 = vst [vmem:[#allocation14_spill] sm:$0xff] %v16912_v6  ;;  %v16915_v21 = vpop.f32.mrb[57].mxu0 }
 0x567   :  { %20915 = vst [vmem:[#allocation15_spill] sm:$0xff] %v16915_v21  ;;  %v4578_v3 = vadd.f32 %v4577_v32, %v16915_v21  ;;  %v16918_v23 = vpop.f32.mrb[58].mxu0 }
 0x568   :  { %20916 = vst [vmem:[#allocation16_spill] sm:$0xff] %v16918_v23  ;;  %v16920_v14 = vpop.f32.mrb[59].mxu0 }
 0x569   :  { %20917 = vst [vmem:[#allocation17_spill] sm:$0xff] %v16920_v14  ;;  %v4579_v38 = vadd.f32 %v4578_v3, %v16920_v14 }
 0x56b   :  { %v4580_v0 = vadd.f32 %v16912_v6, %v4579_v38 }
 0x56d   :  { %v16924_v44 = vpop.f32.mrb[60].mxu0  ;;  %v4581_v31 = vadd.f32 %v16918_v23, %v4580_v0 }
 0x56e   :  { %v16927_v39 = vpop.f32.mrb[61].mxu0 }
 0x56f   :  { %20918 = vst [vmem:[#allocation18_spill] sm:$0xff] %v16927_v39  ;;  %v4582_v40 = vadd.f32 %v4581_v31, %v16927_v39  ;;  %v16930_v30 = vpop.f32.mrb[62].mxu0 }
 0x570   :  { %v16932_v55 = vpop.f32.mrb[63].mxu0 }
 0x571   :  { %v4583_v32 = vadd.f32 %v4582_v40, %v16932_v55 }
 0x573   :  { %v4584_v21 = vadd.f32 %v16924_v44, %v4583_v32  ;;  %v20931_v32 = vld [vmem:[#allocation8_spill] sm:$0xff] }
 0x575   :  { %v4585_v3 = vadd.f32 %v16930_v30, %v4584_v21  ;;  %v20929_v21 = vld [vmem:[#allocation6_spill] sm:$0xff] }
 0x577   :  { %v4586_v14 = vrot.slane %v4585_v3, 4 }
 0x579   :  { %v4587_v38 = vadd.f32 %v4586_v14, %v4585_v3  ;;  %v20933_v3 = vld [vmem:[#allocation11_spill] sm:$0xff] }
 0x57b   :  { %v4588_v6 = vrot.slane %v4587_v38, 2 }
 0x57d   :  { %v4589_v4 = vadd.f32 %v4588_v6, %v4587_v38  ;;  %v20927_v6 = vld [vmem:[#allocation9_spill] sm:$0xff] }
 0x57e   :  { %v20935_v38 = vld [vmem:[#allocation13_spill] sm:$0xff] }
 0x57f   :  { %v4590_v18 = vrot.slane %v4589_v4, 1 }
 0x581   :  { %v4591_v0 = vadd.f32 %v4590_v18, %v4589_v4  ;;  %v20925_v4 = vld [vmem:[#allocation7_spill] sm:$0xff] }
 0x583   :  { %v16937_v23 = vmul.f32 0.001953125, %v4591_v0 }
 0x585   :  { %v16941_v31 = vsub.f32 %v16747_v57, %v16937_v23  ;;  %v16945_v39 = vsub.f32 %v16751_v7, %v16937_v23  ;;  %v16949_v40 = vsub.f32 %v16745_v45, %v16937_v23  ;;  %v16953_v14 = vsub.f32 %v16749_v25, %v16937_v23 }
 0x586   :  { %v16957_v18 = vsub.f32 %v16759_v62, %v16937_v23  ;;  %v16961_v57 = vsub.f32 %v16764_v24, %v16937_v23  ;;  %v16965_v7 = vsub.f32 %v16756_v51, %v16937_v23  ;;  %v16969_v45 = vsub.f32 %v16762_v13, %v16937_v23 }
 0x587   :  { %20919 = vst [vmem:[#allocation19_spill] sm:$0xff] %v16941_v31  ;;  %20920 = vst [vmem:[#allocation20_spill] sm:$0xff] %v16945_v39  ;;  %v16973_v25 = vsub.f32 %v16771_v61, %v16937_v23  ;;  %v16977_v62 = vsub.f32 %v16776_v12, %v16937_v23  ;;  %v16981_v24 = vsub.f32 %v16768_v35, %v16937_v23 }
 0x588   :  { %20921 = vst [vmem:[#allocation21_spill] sm:$0xff] %v16949_v40  ;;  %v16985_v51 = vsub.f32 %v16774_v11, %v16937_v23  ;;  %v16989_v13 = vsub.f32 %v16783_v63, %v16937_v23  ;;  %v16993_v61 = vsub.f32 %v16788_v34, %v16937_v23  ;;  %v16997_v12 = vsub.f32 %v16780_v46, %v16937_v23 }
 0x589   :  { %v17001_v35 = vsub.f32 %v16786_v33, %v16937_v23  ;;  %v17005_v11 = vsub.f32 %v16795_v50, %v16937_v23  ;;  %v17009_v63 = vsub.f32 %v16800_v22, %v16937_v23  ;;  %v17013_v34 = vsub.f32 %v16792_v16, %v16937_v23 }
 0x58a   :  { %v17017_v46 = vsub.f32 %v16798_v15, %v16937_v23  ;;  %v17021_v33 = vsub.f32 %v16807_v42, %v16937_v23  ;;  %v17025_v50 = vsub.f32 %v16812_v58, %v16937_v23  ;;  %v17029_v22 = vsub.f32 %v16804_v1, %v16937_v23 }
 0x58b   :  { %v17033_v16 = vsub.f32 %v16810_v41, %v16937_v23  ;;  %v17037_v15 = vsub.f32 %v16819_v43, %v16937_v23  ;;  %v17041_v42 = vsub.f32 %v16824_v9, %v16937_v23  ;;  %v17045_v58 = vsub.f32 %v16816_v56, %v16937_v23 }
 0x58c   :  { %v17049_v1 = vsub.f32 %v16822_v8, %v16937_v23  ;;  %v17053_v41 = vsub.f32 %v16831_v29, %v16937_v23  ;;  %v17057_v43 = vsub.f32 %v16836_v60, %v16937_v23  ;;  %v17061_v9 = vsub.f32 %v16828_v5, %v16937_v23 }
 0x58d   :  { %v17065_v56 = vsub.f32 %v16834_v20, %v16937_v23  ;;  %v17069_v8 = vsub.f32 %v16843_v53, %v16937_v23  ;;  %v17073_v29 = vsub.f32 %v16848_v2, %v16937_v23  ;;  %v17077_v60 = vsub.f32 %v16840_v49, %v16937_v23 }
 0x58e   :  { %v17081_v5 = vsub.f32 %v16846_v52, %v16937_v23  ;;  %v17085_v20 = vsub.f32 %v16855_v28, %v16937_v23  ;;  %v17089_v53 = vsub.f32 %v16860_v47, %v16937_v23  ;;  %v17093_v2 = vsub.f32 %v16852_v48, %v16937_v23 }
 0x58f   :  { %v17097_v49 = vsub.f32 %v16858_v37, %v16937_v23  ;;  %v17101_v52 = vsub.f32 %v16867_v19, %v16937_v23  ;;  %v17105_v28 = vsub.f32 %v16872_v26, %v16937_v23  ;;  %v17109_v47 = vsub.f32 %v16864_v17, %v16937_v23 }
 0x590   :  { %v17113_v48 = vsub.f32 %v16870_v36, %v16937_v23  ;;  %v17117_v37 = vsub.f32 %v16879_v54, %v16937_v23  ;;  %v17121_v19 = vsub.f32 %v16884_v59, %v16937_v23  ;;  %v17125_v26 = vsub.f32 %v16876_v10, %v16937_v23 }
 0x591   :  { %v17129_v17 = vsub.f32 %v16882_v27, %v16937_v23  ;;  %v17133_v36 = vsub.f32 %v20925_v4, %v16937_v23  ;;  %v17137_v54 = vsub.f32 %v20927_v6, %v16937_v23  ;;  %v17141_v59 = vsub.f32 %v20929_v21, %v16937_v23  ;;  %v20937_v4 = vld [vmem:[#allocation10_spill] sm:$0xff] }
 0x592   :  { %20922 = vst [vmem:[#allocation22_spill] sm:$0xff] %v17121_v19  ;;  %20923 = vst [vmem:[#allocation23_spill] sm:$0xff] %v17125_v26  ;;  %v17145_v10 = vsub.f32 %v20931_v32, %v16937_v23  ;;  %v17149_v27 = vsub.f32 %v20933_v3, %v16937_v23  ;;  %v17153_v0 = vsub.f32 %v20935_v38, %v16937_v23 }
 0x593   :  { %20924 = vst [vmem:[#allocation24_spill] sm:$0xff] %v17129_v17  ;;  %20926 = vst [vmem:[#allocation7_spill] sm:$0xff] %v17133_v36  ;;  %v17157_v6 = vsub.f32 %v20937_v4, %v16937_v23 }
 0x594   :  { %20928 = vst [vmem:[#allocation9_spill] sm:$0xff] %v17137_v54  ;;  %20930 = vst [vmem:[#allocation6_spill] sm:$0xff] %v17141_v59  ;;  %v20939_v54 = vld [vmem:[#allocation12_spill] sm:$0xff]  ;;  %v20941_v59 = vld [vmem:[#allocation15_spill] sm:$0xff] }
 0x595   :  { %20932 = vst [vmem:[#allocation8_spill] sm:$0xff] %v17145_v10  ;;  %20934 = vst [vmem:[#allocation11_spill] sm:$0xff] %v17149_v27  ;;  %v17161_v21 = vsub.f32 %v20939_v54, %v16937_v23  ;;  %v17165_v32 = vsub.f32 %v20941_v59, %v16937_v23  ;;  %v20943_v10 = vld [vmem:[#allocation17_spill] sm:$0xff]  ;;  %v20945_v27 = vld [vmem:[#allocation14_spill] sm:$0xff]  ;;  %v17185_v59 = vsub.f32 %v16932_v55, %v16937_v23 }
 0x596   :  { %20936 = vst [vmem:[#allocation13_spill] sm:$0xff] %v17153_v0  ;;  %20938 = vst [vmem:[#allocation10_spill] sm:$0xff] %v17157_v6  ;;  %v17169_v3 = vsub.f32 %v20943_v10, %v16937_v23  ;;  %v17173_v38 = vsub.f32 %v20945_v27, %v16937_v23  ;;  %v20947_v0 = vld [vmem:[#allocation16_spill] sm:$0xff]  ;;  %v20949_v6 = vld [vmem:[#allocation18_spill] sm:$0xff]  ;;  %v17189_v10 = vsub.f32 %v16924_v44, %v16937_v23 }
 0x597   :  { %20940 = vst [vmem:[#allocation12_spill] sm:$0xff] %v17161_v21  ;;  %20942 = vst [vmem:[#allocation15_spill] sm:$0xff] %v17165_v32  ;;  %v17177_v4 = vsub.f32 %v20947_v0, %v16937_v23  ;;  %v17181_v54 = vsub.f32 %v20949_v6, %v16937_v23  ;;  %v17193_v27 = vsub.f32 %v16930_v30, %v16937_v23 }
 0x598   :  { %20944 = vst [vmem:[#allocation17_spill] sm:$0xff] %v17169_v3  ;;  %20946 = vst [vmem:[#allocation14_spill] sm:$0xff] %v17173_v38  ;;  %v4657_v0 = vmul.f32 %v16941_v31, %v16941_v31  ;;  %v4659_v6 = vmul.f32 %v16949_v40, %v16949_v40  ;;  %v4660_v55 = vmul.f32 %v16953_v14, %v16953_v14 }
 0x599   :  { %20948 = vst [vmem:[#allocation16_spill] sm:$0xff] %v17177_v4  ;;  %20950 = vst [vmem:[#allocation18_spill] sm:$0xff] %v17181_v54  ;;  %v4658_v4 = vmul.f32 %v16945_v39, %v16945_v39  ;;  %v4661_v44 = vmul.f32 %v16957_v18, %v16957_v18  ;;  %v4662_v23 = vmul.f32 %v16961_v57, %v16961_v57 }
 0x59a   :  { %20951 = vst [vmem:[#allocation25_spill] sm:$0xff] %v17185_v59  ;;  %20952 = vst [vmem:[#allocation26_spill] sm:$0xff] %v17189_v10  ;;  %v4663_v31 = vmul.f32 %v16965_v7, %v16965_v7  ;;  %v4664_v40 = vmul.f32 %v16969_v45, %v16969_v45 }
 0x59b   :  { %20953 = vst [vmem:[#allocation27_spill] sm:$0xff] %v17193_v27  ;;  %v4721_v54 = vadd.f32 %v4658_v4, %v4657_v0  ;;  %v4665_v0 = vmul.f32 %v16973_v25, %v16973_v25 }
 0x59d   :  { %v4722_v59 = vadd.f32 %v4721_v54, %v4659_v6  ;;  %v4666_v6 = vmul.f32 %v16977_v62, %v16977_v62 }
 0x59f   :  { %v4723_v10 = vadd.f32 %v4722_v59, %v4660_v55  ;;  %v4667_v55 = vmul.f32 %v16981_v24, %v16981_v24 }
 0x5a1   :  { %v4724_v30 = vadd.f32 %v4723_v10, %v4661_v44  ;;  %v4668_v44 = vmul.f32 %v16985_v51, %v16985_v51 }
 0x5a3   :  { %v4725_v39 = vadd.f32 %v4724_v30, %v4662_v23  ;;  %v4669_v30 = vmul.f32 %v16989_v13, %v16989_v13 }
 0x5a5   :  { %v4726_v4 = vadd.f32 %v4725_v39, %v4663_v31  ;;  %v4670_v31 = vmul.f32 %v16993_v61, %v16993_v61 }
 0x5a7   :  { %v4727_v54 = vadd.f32 %v4726_v4, %v4664_v40  ;;  %v4671_v4 = vmul.f32 %v16997_v12, %v16997_v12 }
 0x5a9   :  { %v4728_v59 = vadd.f32 %v4727_v54, %v4665_v0  ;;  %v4672_v54 = vmul.f32 %v17001_v35, %v17001_v35 }
 0x5ab   :  { %v4729_v10 = vadd.f32 %v4728_v59, %v4666_v6  ;;  %v4673_v59 = vmul.f32 %v17005_v11, %v17005_v11 }
 0x5ad   :  { %v4730_v23 = vadd.f32 %v4729_v10, %v4667_v55  ;;  %v4674_v10 = vmul.f32 %v17009_v63, %v17009_v63 }
 0x5af   :  { %v4731_v39 = vadd.f32 %v4730_v23, %v4668_v44  ;;  %v4675_v23 = vmul.f32 %v17013_v34, %v17013_v34 }
 0x5b1   :  { %v4732_v40 = vadd.f32 %v4731_v39, %v4669_v30  ;;  %v4676_v39 = vmul.f32 %v17017_v46, %v17017_v46 }
 0x5b3   :  { %v4733_v0 = vadd.f32 %v4732_v40, %v4670_v31  ;;  %v4677_v40 = vmul.f32 %v17021_v33, %v17021_v33 }
 0x5b5   :  { %v4734_v6 = vadd.f32 %v4733_v0, %v4671_v4  ;;  %v4678_v0 = vmul.f32 %v17025_v50, %v17025_v50 }
 0x5b7   :  { %v4735_v55 = vadd.f32 %v4734_v6, %v4672_v54  ;;  %v4679_v6 = vmul.f32 %v17029_v22, %v17029_v22 }
 0x5b9   :  { %v4736_v44 = vadd.f32 %v4735_v55, %v4673_v59  ;;  %v4680_v55 = vmul.f32 %v17033_v16, %v17033_v16 }
 0x5bb   :  { %v4737_v30 = vadd.f32 %v4736_v44, %v4674_v10  ;;  %v4681_v44 = vmul.f32 %v17037_v15, %v17037_v15 }
 0x5bd   :  { %v4738_v31 = vadd.f32 %v4737_v30, %v4675_v23  ;;  %v4682_v30 = vmul.f32 %v17041_v42, %v17041_v42 }
 0x5bf   :  { %v4739_v4 = vadd.f32 %v4738_v31, %v4676_v39  ;;  %v4683_v31 = vmul.f32 %v17045_v58, %v17045_v58 }
 0x5c1   :  { %v4740_v54 = vadd.f32 %v4739_v4, %v4677_v40  ;;  %v4684_v4 = vmul.f32 %v17049_v1, %v17049_v1 }
 0x5c3   :  { %v4741_v59 = vadd.f32 %v4740_v54, %v4678_v0  ;;  %v4685_v54 = vmul.f32 %v17053_v41, %v17053_v41 }
 0x5c5   :  { %v4742_v10 = vadd.f32 %v4741_v59, %v4679_v6  ;;  %v4686_v59 = vmul.f32 %v17057_v43, %v17057_v43 }
 0x5c7   :  { %v4743_v23 = vadd.f32 %v4742_v10, %v4680_v55  ;;  %v4687_v10 = vmul.f32 %v17061_v9, %v17061_v9 }
 0x5c9   :  { %v4744_v39 = vadd.f32 %v4743_v23, %v4681_v44  ;;  %v4688_v23 = vmul.f32 %v17065_v56, %v17065_v56 }
 0x5cb   :  { %v4745_v40 = vadd.f32 %v4744_v39, %v4682_v30  ;;  %v4689_v39 = vmul.f32 %v17069_v8, %v17069_v8 }
 0x5cd   :  { %v4746_v0 = vadd.f32 %v4745_v40, %v4683_v31  ;;  %v4690_v40 = vmul.f32 %v17073_v29, %v17073_v29 }
 0x5cf   :  { %v4747_v6 = vadd.f32 %v4746_v0, %v4684_v4  ;;  %v4691_v0 = vmul.f32 %v17077_v60, %v17077_v60 }
 0x5d1   :  { %v4748_v55 = vadd.f32 %v4747_v6, %v4685_v54  ;;  %v4692_v6 = vmul.f32 %v17081_v5, %v17081_v5 }
 0x5d3   :  { %v4749_v44 = vadd.f32 %v4748_v55, %v4686_v59  ;;  %v4693_v55 = vmul.f32 %v17085_v20, %v17085_v20 }
 0x5d5   :  { %v4750_v30 = vadd.f32 %v4749_v44, %v4687_v10  ;;  %v4694_v44 = vmul.f32 %v17089_v53, %v17089_v53 }
 0x5d7   :  { %v4751_v31 = vadd.f32 %v4750_v30, %v4688_v23  ;;  %v4695_v30 = vmul.f32 %v17093_v2, %v17093_v2 }
 0x5d9   :  { %v4752_v4 = vadd.f32 %v4751_v31, %v4689_v39  ;;  %v4696_v31 = vmul.f32 %v17097_v49, %v17097_v49 }
 0x5db   :  { %v4753_v54 = vadd.f32 %v4752_v4, %v4690_v40  ;;  %v4697_v4 = vmul.f32 %v17101_v52, %v17101_v52 }
 0x5dd   :  { %v4754_v59 = vadd.f32 %v4753_v54, %v4691_v0  ;;  %v4698_v54 = vmul.f32 %v17105_v28, %v17105_v28 }
 0x5df   :  { %v4755_v10 = vadd.f32 %v4754_v59, %v4692_v6  ;;  %v4699_v59 = vmul.f32 %v17109_v47, %v17109_v47 }
 0x5e1   :  { %v4756_v23 = vadd.f32 %v4755_v10, %v4693_v55  ;;  %v4700_v10 = vmul.f32 %v17113_v48, %v17113_v48 }
 0x5e3   :  { %v4757_v39 = vadd.f32 %v4756_v23, %v4694_v44  ;;  %v4701_v23 = vmul.f32 %v17117_v37, %v17117_v37 }
 0x5e5   :  { %v4758_v40 = vadd.f32 %v4757_v39, %v4695_v30  ;;  %v4702_v39 = vmul.f32 %v17121_v19, %v17121_v19  ;;  %v4795_v19 = vlaneseq }
 0x5e7   :  { %v4759_v0 = vadd.f32 %v4758_v40, %v4696_v31  ;;  %v4703_v40 = vmul.f32 %v17125_v26, %v17125_v26 }
 0x5e9   :  { %v4760_v6 = vadd.f32 %v4759_v0, %v4697_v4  ;;  %v4704_v0 = vmul.f32 %v17129_v17, %v17129_v17 }
 0x5eb   :  { %v4761_v55 = vadd.f32 %v4760_v6, %v4698_v54  ;;  %v4705_v6 = vmul.f32 %v17133_v36, %v17133_v36  ;;  %v20957_v36 = vld [vmem:[#allocation11_spill] sm:$0xff] }
 0x5ec   :  { %v4709_v17 = vmul.f32 %v20957_v36, %v20957_v36 }
 0x5ed   :  { %v4762_v44 = vadd.f32 %v4761_v55, %v4699_v59  ;;  %v14713_v55 = vld [vmem:[%s20725_s2 + $0x40] sm:$0xff]  }
 0x5ee   :  { %12893 = vmatprep.subr.bf16.mxu1 %v14713_v55 }
 0x5ef   :  { %v4763_v30 = vadd.f32 %v4762_v44, %v4700_v10  ;;  %v20954_v10 = vld [vmem:[#allocation9_spill] sm:$0xff]  ;;  %12894 = vmatpush3.bf16.msra.mxu1 %v14713_v55 }
 0x5f0   :  { %v4706_v44 = vmul.f32 %v20954_v10, %v20954_v10 }
 0x5f1   :  { %v4764_v31 = vadd.f32 %v4763_v30, %v4701_v23  ;;  %v20955_v30 = vld [vmem:[#allocation6_spill] sm:$0xff] }
 0x5f3   :  { %v4765_v4 = vadd.f32 %v4764_v31, %v4702_v39  ;;  %v4707_v39 = vmul.f32 %v20955_v30, %v20955_v30 }
 0x5f5   :  { %v4766_v54 = vadd.f32 %v4765_v4, %v4703_v40  ;;  %v14714_v40 = vld [vmem:[%s20725_s2 + $0x48] sm:$0xff]   ;;  %v20956_v4 = vld [vmem:[#allocation8_spill] sm:$0xff] }
 0x5f6   :  { %12895 = vmatprep.subr.bf16.mxu1 %v14714_v40 }
 0x5f7   :  { %v4767_v59 = vadd.f32 %v4766_v54, %v4704_v0  ;;  %v4708_v0 = vmul.f32 %v20956_v4, %v20956_v4  ;;  %12896 = vmatpush3.bf16.msra.mxu1 %v14714_v40 }
 0x5f9   :  { %v4768_v23 = vadd.f32 %v4767_v59, %v4705_v6  ;;  %v14715_v6 = vld [vmem:[%s20725_s2 + $0x50] sm:$0xff]   ;;  %v20958_v59 = vld [vmem:[#allocation13_spill] sm:$0xff] }
 0x5fa   :  { %v4710_v55 = vmul.f32 %v20958_v59, %v20958_v59  ;;  %12897 = vmatprep.subr.bf16.mxu1 %v14715_v6 }
 0x5fb   :  { %v4769_v31 = vadd.f32 %v4768_v23, %v4706_v44  ;;  %v20959_v23 = vld [vmem:[#allocation10_spill] sm:$0xff]  ;;  %12898 = vmatpush3.bf16.msra.mxu1 %v14715_v6 }
 0x5fc   :  { %v4711_v30 = vmul.f32 %v20959_v23, %v20959_v23 }
 0x5fd   :  { %v4770_v54 = vadd.f32 %v4769_v31, %v4707_v39  ;;  %v14716_v39 = vld [vmem:[%s20725_s2 + $0x58] sm:$0xff]   ;;  %v4712_v31 = vmul.f32 %v17161_v21, %v17161_v21 }
 0x5fe   :  { %12899 = vmatprep.subr.bf16.mxu1 %v14716_v39 }
 0x5ff   :  { %v4771_v10 = vadd.f32 %v4770_v54, %v4708_v0  ;;  %v4713_v0 = vmul.f32 %v17165_v32, %v17165_v32  ;;  %12900 = vmatpush3.bf16.msra.mxu1 %v14716_v39 }
 0x601   :  { %v4772_v44 = vadd.f32 %v4771_v10, %v4709_v17  ;;  %v14717_v17 = vld [vmem:[%s20725_s2 + $0x60] sm:$0xff]   ;;  %v4714_v10 = vmul.f32 %v17169_v3, %v17169_v3 }
 0x602   :  { %12901 = vmatprep.subr.bf16.mxu1 %v14717_v17 }
 0x603   :  { %v4773_v4 = vadd.f32 %v4772_v44, %v4710_v55  ;;  %v4715_v55 = vmul.f32 %v17173_v38, %v17173_v38  ;;  %12902 = vmatpush3.bf16.msra.mxu1 %v14717_v17  ;;  %v14720_v17 = vld [vmem:[%s20725_s2 + $0x78] sm:$0xff]  }
 0x605   :  { %v4774_v40 = vadd.f32 %v4773_v4, %v4711_v30  ;;  %v14718_v30 = vld [vmem:[%s20725_s2 + $0x68] sm:$0xff]   ;;  %v20960_v4 = vld [vmem:[#allocation16_spill] sm:$0xff] }
 0x606   :  { %v4716_v39 = vmul.f32 %v20960_v4, %v20960_v4  ;;  %12903 = vmatprep.subr.bf16.mxu1 %v14718_v30 }
 0x607   :  { %v4775_v54 = vadd.f32 %v4774_v40, %v4712_v31  ;;  %v20961_v40 = vld [vmem:[#allocation18_spill] sm:$0xff]  ;;  %12904 = vmatpush3.bf16.msra.mxu1 %v14718_v30 }
 0x608   :  { %v4717_v32 = vmul.f32 %v20961_v40, %v20961_v40 }
 0x609   :  { %v4776_v6 = vadd.f32 %v4775_v54, %v4713_v0  ;;  %v14934_v0 = vmov 0.0   ;;  %v14719_v54 = vld [vmem:[%s20725_s2 + $0x70] sm:$0xff]  }
 0x60a   :  { %4998 = vst [vmem:[#allocation2] sm:$0xff] %v14934_v0  ;;  %4999 = vst [vmem:[#allocation2 + $0x8] sm:$0xff] %v14934_v0  ;;  %12905 = vmatprep.subr.bf16.mxu1 %v14719_v54 }
 0x60b   :  { %v4777_v44 = vadd.f32 %v4776_v6, %v4714_v10  ;;  %5000 = vst [vmem:[#allocation2 + $0x10] sm:$0x3] %v14934_v0  ;;  %5001 = vst [vmem:[#allocation2 + $0x1b0] sm:$0xff] %v14934_v0  ;;  %v20962_v10 = vld [vmem:[#allocation25_spill] sm:$0xff]  ;;  %12906 = vmatpush3.bf16.msra.mxu1 %v14719_v54 }
 0x60c   :  { %5002 = vst [vmem:[#allocation2 + $0x1b8] sm:$0xff] %v14934_v0  ;;  %5003 = vst [vmem:[#allocation2 + $0x1c0] sm:$0x3] %v14934_v0  ;;  %v4718_v6 = vmul.f32 %v20962_v10, %v20962_v10  ;;  %12907 = vmatprep.subr.bf16.mxu1 %v14720_v17 }
 0x60d   :  { %v4778_v31 = vadd.f32 %v4777_v44, %v4715_v55  ;;  %5005 = vst [vmem:[#allocation2 + $0x198] sm:$0xff] %v14934_v0  ;;  %5006 = vst [vmem:[#allocation2 + $0x1a0] sm:$0xff] %v14934_v0  ;;  %v20963_v44 = vld [vmem:[#allocation26_spill] sm:$0xff] }
 0x60e   :  { %5007 = vst [vmem:[#allocation2 + $0x1a8] sm:$0x3] %v14934_v0  ;;  %5008 = vst [vmem:[#allocation2 + $0x348] sm:$0xff] %v14934_v0  ;;  %v4719_v30 = vmul.f32 %v20963_v44, %v20963_v44 }
 0x60f   :  { %v4779_v3 = vadd.f32 %v4778_v31, %v4716_v39  ;;  %5009 = vst [vmem:[#allocation2 + $0x350] sm:$0xff] %v14934_v0  ;;  %5010 = vst [vmem:[#allocation2 + $0x358] sm:$0x3] %v14934_v0  ;;  %v17348_v31 = vld [vmem:[%s20725_s2] sm:$0xff]   ;;  %v4720_v0 = vmul.f32 %v17193_v27, %v17193_v27  ;;  %12908 = vmatpush3.bf16.msra.mxu1 %v14720_v17  ;;  %v17353_v27 = vshrl.u32 %v4795_v19, 7 }
 0x610   :  { %20964 = vst [vmem:[#allocation18_spill] sm:$0xff] %v17348_v31  ;;  %12973 = vmatprep.subr.bf16.mxu1 %v17348_v31  ;;  %v20984_v31 = vld [vmem:[#allocation12_spill] sm:$0xff] }
 0x611   :  { %v4780_v55 = vadd.f32 %v4779_v3, %v4717_v32  ;;  %v5541_v38 = vld [vmem:[#allocation2 + $0x1] sm:$0xff]  ;;  %20965 = vst [vmem:[#allocation25_spill] sm:$0xff] %v17353_v27 }
 0x612   :  { %v5542_v21 = vld [vmem:[#allocation2 + $0x9] sm:$0xff] }
 0x613   :  { %v4781_v39 = vadd.f32 %v4780_v55, %v4718_v6  ;;  %v5605_v32 = vpack.c.bf16 %v5542_v21, %v5541_v38  ;;  %v20769_v21 = vsub.s32 0, %v17353_v27  ;;  %v20982_v27 = vld [vmem:[#allocation10_spill] sm:$0xff] }
 0x615   :  { %v4782_v4 = vadd.f32 %v4781_v39, %v4719_v30  ;;  %12909 = vmatprep.mubr.bf16.mxu1 %v5605_v32  ;;  %v20967_v30 = vld [vmem:[#allocation20_spill] sm:$0xff] }
 0x617   :  { %v4783_v23 = vadd.f32 %v4782_v4, %v4720_v0  ;;  %v22_v4 = vld [vmem:[%s20726_s3] sm:$0x1]  ;;  %v20968_v0 = vld [vmem:[#allocation21_spill] sm:$0xff] }
 0x619   :  { %v4784_v3 = vrot.slane %v4783_v23, 4 }
 0x61b   :  { %v4785_v54 = vadd.f32 %v4784_v3, %v4783_v23 }
 0x61d   :  { %v4786_v6 = vrot.slane %v4785_v54, 2 }
 0x61f   :  { %v4787_v55 = vadd.f32 %v4786_v6, %v4785_v54 }
 0x621   :  { %v4788_v44 = vrot.slane %v4787_v55, 1 }
 0x623   :  { %v4789_v59 = vadd.f32 %v4788_v44, %v4787_v55 }
 0x625   :  { %v4790_v36 = vmul.f32 0.001953125, %v4789_v59  ;;  %v20966_v59 = vld [vmem:[#allocation19_spill] sm:$0xff] }
 0x627   :  { %v4791_v26 = vadd.f32 1e-05, %v4790_v36  ;;  %v17366_v36 = vld [vmem:[%s20727_s4] ss:$0 sm:$0xff] }
 0x629   :  { %14785 = vrsqrt.f32 %v4791_v26 }
 0x633   :  { %v14786_v38 = vpop.eup %14785 }
 0x634   :  { %v4793_v17 = vmul.f32 %v14786_v38, %v22_v4 }
 0x636   :  { %v17361_v23 = vrot.slane %v4793_v17, %v20769_v21  ;;  %v20980_v21 = vld [vmem:[#allocation13_spill] sm:$0xff] }
 0x638   :  { %v4860_v19 = vmul.f32 %v17361_v23, %v20961_v40  ;;  %v4861_v26 = vmul.f32 %v17361_v23, %v20962_v10  ;;  %v17374_v44 = vmul.f32 %v17361_v23, %v20966_v59  ;;  %v17378_v39 = vmul.f32 %v17361_v23, %v20967_v30 }
 0x639   :  { %v17382_v32 = vmul.f32 %v17361_v23, %v20968_v0  ;;  %v17386_v3 = vmul.f32 %v17361_v23, %v16953_v14  ;;  %v17390_v40 = vmul.f32 %v17361_v23, %v16957_v18  ;;  %v17394_v10 = vmul.f32 %v17361_v23, %v16961_v57  ;;  %v20969_v0 = vld [vmem:[#allocation22_spill] sm:$0xff] }
 0x63a   :  { %v4930_v54 = vadd.f32 %v17366_v36, %v4860_v19  ;;  %v4931_v6 = vadd.f32 %v17366_v36, %v4861_v26  ;;  %v17400_v55 = vmul.f32 %v17361_v23, %v16965_v7  ;;  %v17404_v14 = vmul.f32 %v17361_v23, %v16969_v45 }
 0x63b   :  { %v17408_v18 = vmul.f32 %v17361_v23, %v16973_v25  ;;  %v17412_v57 = vmul.f32 %v17361_v23, %v16977_v62  ;;  %v17416_v4 = vmul.f32 %v17361_v23, %v16981_v24  ;;  %v17420_v7 = vmul.f32 %v17361_v23, %v16985_v51 }
 0x63c   :  { %v4994_v38 = vmax.f32 %v4930_v54, 0.0  ;;  %v4995_v17 = vmax.f32 %v4931_v6, 0.0  ;;  %v17424_v45 = vmul.f32 %v17361_v23, %v16989_v13  ;;  %v17428_v25 = vmul.f32 %v17361_v23, %v16993_v61  ;;  %v20970_v54 = vld [vmem:[#allocation23_spill] sm:$0xff]  ;;  %v20971_v6 = vld [vmem:[#allocation24_spill] sm:$0xff] }
 0x63d   :  { %v17432_v62 = vmul.f32 %v17361_v23, %v16997_v12  ;;  %v17436_v24 = vmul.f32 %v17361_v23, %v17001_v35  ;;  %v17440_v51 = vmul.f32 %v17361_v23, %v17005_v11  ;;  %v17444_v13 = vmul.f32 %v17361_v23, %v17009_v63 }
 0x63e   :  { %v5166_v19 = vrot.slane %v4994_v38, 7  ;;  %v5167_v26 = vrot.slane %v4995_v17, 7  ;;  %v17448_v61 = vmul.f32 %v17361_v23, %v17013_v34  ;;  %v17452_v12 = vmul.f32 %v17361_v23, %v17017_v46  ;;  %v20972_v38 = vld [vmem:[#allocation7_spill] sm:$0xff]  ;;  %v20973_v17 = vld [vmem:[#allocation9_spill] sm:$0xff] }
 0x63f   :  { %v17456_v35 = vmul.f32 %v17361_v23, %v17021_v33  ;;  %v17460_v11 = vmul.f32 %v17361_v23, %v17025_v50  ;;  %v17464_v63 = vmul.f32 %v17361_v23, %v17029_v22  ;;  %v17468_v34 = vmul.f32 %v17361_v23, %v17033_v16 }
 0x640   :  { %v5168_v59 = vsel %vm5075_vm0, %v5166_v19, %v5167_v26  ;;  %v5330_v46 = vsel %vm5075_vm0, %v5167_v26, 0.0  ;;  %v17474_v33 = vmul.f32 %v17361_v23, %v17037_v15  ;;  %v17478_v50 = vmul.f32 %v17361_v23, %v17041_v42  ;;  %v20974_v26 = vld [vmem:[#allocation6_spill] sm:$0xff] }
 0x641   :  { %5424 = vst [vmem:[#allocation2 + $0x320] sm:$0xff] %v5168_v59  ;;  %5425 = vst [vmem:[#allocation2 + $0x328] sm:$0x3] %v5330_v46  ;;  %v17482_v22 = vmul.f32 %v17361_v23, %v17045_v58  ;;  %v17486_v16 = vmul.f32 %v17361_v23, %v17049_v1  ;;  %v17490_v30 = vmul.f32 %v17361_v23, %v17053_v41  ;;  %v20976_v46 = vld [vmem:[#allocation8_spill] sm:$0xff] }
 0x642   :  { %v17494_v15 = vmul.f32 %v17361_v23, %v17057_v43  ;;  %v17498_v42 = vmul.f32 %v17361_v23, %v17061_v9  ;;  %v17502_v58 = vmul.f32 %v17361_v23, %v17065_v56  ;;  %v17506_v1 = vmul.f32 %v17361_v23, %v17069_v8 }
 0x643   :  { %v17510_v41 = vmul.f32 %v17361_v23, %v17073_v29  ;;  %v17514_v43 = vmul.f32 %v17361_v23, %v17077_v60  ;;  %v17518_v9 = vmul.f32 %v17361_v23, %v17081_v5  ;;  %v17522_v56 = vmul.f32 %v17361_v23, %v17085_v20 }
 0x644   :  { %v17526_v8 = vmul.f32 %v17361_v23, %v17089_v53  ;;  %v17530_v29 = vmul.f32 %v17361_v23, %v17093_v2  ;;  %v17534_v60 = vmul.f32 %v17361_v23, %v17097_v49  ;;  %v17538_v5 = vmul.f32 %v17361_v23, %v17101_v52 }
 0x645   :  { %v17542_v20 = vmul.f32 %v17361_v23, %v17105_v28  ;;  %v17546_v53 = vmul.f32 %v17361_v23, %v17109_v47  ;;  %v17550_v2 = vmul.f32 %v17361_v23, %v17113_v48  ;;  %v17554_v49 = vmul.f32 %v17361_v23, %v17117_v37 }
 0x646   :  { %v17558_v52 = vmul.f32 %v17361_v23, %v20969_v0  ;;  %v17562_v28 = vmul.f32 %v17361_v23, %v20970_v54  ;;  %v17566_v47 = vmul.f32 %v17361_v23, %v20971_v6  ;;  %v17570_v48 = vmul.f32 %v17361_v23, %v20972_v38  ;;  %v20978_v54 = vld [vmem:[#allocation11_spill] sm:$0xff] }
 0x647   :  { %v17574_v37 = vmul.f32 %v17361_v23, %v20973_v17  ;;  %v17578_v59 = vmul.f32 %v17361_v23, %v20974_v26  ;;  %v17582_v0 = vmul.f32 %v17361_v23, %v20976_v46  ;;  %v17586_v6 = vmul.f32 %v17361_v23, %v20978_v54 }
 0x648   :  { %v17590_v38 = vmul.f32 %v17361_v23, %v20980_v21  ;;  %v17594_v17 = vmul.f32 %v17361_v23, %v20982_v27  ;;  %v17598_v26 = vmul.f32 %v17361_v23, %v20984_v31 }
 0x649   :  { %20975 = vst [vmem:[#allocation19_spill] sm:$0xff] %v17578_v59  ;;  %20977 = vst [vmem:[#allocation20_spill] sm:$0xff] %v17582_v0  ;;  %v20986_v59 = vld [vmem:[#allocation15_spill] sm:$0xff]  ;;  %v20988_v0 = vld [vmem:[#allocation17_spill] sm:$0xff] }
 0x64a   :  { %20979 = vst [vmem:[#allocation21_spill] sm:$0xff] %v17586_v6  ;;  %20981 = vst [vmem:[#allocation22_spill] sm:$0xff] %v17590_v38  ;;  %v17602_v46 = vmul.f32 %v17361_v23, %v20986_v59  ;;  %v17606_v54 = vmul.f32 %v17361_v23, %v20988_v0  ;;  %v20989_v6 = vld [vmem:[#allocation14_spill] sm:$0xff]  ;;  %v20990_v38 = vld [vmem:[#allocation16_spill] sm:$0xff]  ;;  %v17627_v0 = vadd.f32 %v17366_v36, %v17374_v44 }
 0x64b   :  { %20983 = vst [vmem:[#allocation23_spill] sm:$0xff] %v17594_v17  ;;  %20985 = vst [vmem:[#allocation24_spill] sm:$0xff] %v17598_v26  ;;  %v17610_v21 = vmul.f32 %v17361_v23, %v20989_v6  ;;  %v17614_v27 = vmul.f32 %v17361_v23, %v20990_v38  ;;  %v20991_v17 = vld [vmem:[#allocation26_spill] sm:$0xff]  ;;  %v20992_v26 = vld [vmem:[#allocation27_spill] sm:$0xff]  ;;  %v17631_v6 = vadd.f32 %v17366_v36, %v17378_v39 }
 0x64c   :  { %20987 = vst [vmem:[#allocation7_spill] sm:$0xff] %v17602_v46  ;;  %v17618_v31 = vmul.f32 %v17361_v23, %v20991_v17  ;;  %v17622_v59 = vmul.f32 %v17361_v23, %v20992_v26  ;;  %v5298_v46 = vsel %vm5075_vm0, 0.0, %v5166_v19  ;;  %v17635_v38 = vadd.f32 %v17366_v36, %v17382_v32 }
 0x64d   :  { %v17639_v17 = vadd.f32 %v17366_v36, %v17386_v3  ;;  %v17643_v23 = vadd.f32 %v17366_v36, %v17390_v40  ;;  %v17647_v44 = vadd.f32 %v17366_v36, %v17394_v10  ;;  %v17651_v39 = vadd.f32 %v17366_v36, %v17400_v55  ;;  %5423 = vst [vmem:[#allocation2 + $0x318] sm:$0xff] %v5298_v46 }
 0x64e   :  { %v17655_v32 = vadd.f32 %v17366_v36, %v17404_v14  ;;  %v17659_v3 = vadd.f32 %v17366_v36, %v17408_v18  ;;  %v17663_v40 = vadd.f32 %v17366_v36, %v17412_v57  ;;  %v17667_v10 = vadd.f32 %v17366_v36, %v17416_v4 }
 0x64f   :  { %v17671_v55 = vadd.f32 %v17366_v36, %v17420_v7  ;;  %v17675_v14 = vadd.f32 %v17366_v36, %v17424_v45  ;;  %v17679_v18 = vadd.f32 %v17366_v36, %v17428_v25  ;;  %v17683_v57 = vadd.f32 %v17366_v36, %v17432_v62 }
 0x650   :  { %v17687_v4 = vadd.f32 %v17366_v36, %v17436_v24  ;;  %v17691_v7 = vadd.f32 %v17366_v36, %v17440_v51  ;;  %v17695_v45 = vadd.f32 %v17366_v36, %v17444_v13  ;;  %v17699_v25 = vadd.f32 %v17366_v36, %v17448_v61  ;;  %v21003_v26 = vld [vmem:[#allocation20_spill] sm:$0xff] }
 0x651   :  { %v17703_v62 = vadd.f32 %v17366_v36, %v17452_v12  ;;  %v17707_v24 = vadd.f32 %v17366_v36, %v17456_v35  ;;  %v17711_v51 = vadd.f32 %v17366_v36, %v17460_v11  ;;  %v17715_v13 = vadd.f32 %v17366_v36, %v17464_v63  ;;  %v21005_v46 = vld [vmem:[#allocation21_spill] sm:$0xff] }
 0x652   :  { %v17719_v19 = vadd.f32 %v17366_v36, %v17468_v34  ;;  %v17723_v61 = vadd.f32 %v17366_v36, %v17474_v33  ;;  %v17727_v12 = vadd.f32 %v17366_v36, %v17478_v50  ;;  %v17731_v35 = vadd.f32 %v17366_v36, %v17482_v22 }
 0x653   :  { %v17735_v11 = vadd.f32 %v17366_v36, %v17486_v16  ;;  %v17739_v63 = vadd.f32 %v17366_v36, %v17490_v30  ;;  %v17743_v34 = vadd.f32 %v17366_v36, %v17494_v15  ;;  %v17747_v33 = vadd.f32 %v17366_v36, %v17498_v42 }
 0x654   :  { %v17751_v50 = vadd.f32 %v17366_v36, %v17502_v58  ;;  %v17755_v22 = vadd.f32 %v17366_v36, %v17506_v1  ;;  %v17759_v16 = vadd.f32 %v17366_v36, %v17510_v41  ;;  %v17763_v30 = vadd.f32 %v17366_v36, %v17514_v43 }
 0x655   :  { %v17767_v15 = vadd.f32 %v17366_v36, %v17518_v9  ;;  %v17771_v42 = vadd.f32 %v17366_v36, %v17522_v56  ;;  %v17775_v58 = vadd.f32 %v17366_v36, %v17526_v8  ;;  %v17779_v1 = vadd.f32 %v17366_v36, %v17530_v29 }
 0x656   :  { %v17783_v41 = vadd.f32 %v17366_v36, %v17534_v60  ;;  %v17787_v43 = vadd.f32 %v17366_v36, %v17538_v5  ;;  %v17791_v9 = vadd.f32 %v17366_v36, %v17542_v20  ;;  %v17795_v56 = vadd.f32 %v17366_v36, %v17546_v53 }
 0x657   :  { %20993 = vst [vmem:[#allocation9_spill] sm:$0xff] %v17775_v58  ;;  %20994 = vst [vmem:[#allocation6_spill] sm:$0xff] %v17779_v1  ;;  %v17799_v8 = vadd.f32 %v17366_v36, %v17550_v2  ;;  %v17803_v29 = vadd.f32 %v17366_v36, %v17554_v49  ;;  %v17807_v60 = vadd.f32 %v17366_v36, %v17558_v52  ;;  %v21001_v49 = vld [vmem:[#allocation19_spill] sm:$0xff] }
 0x658   :  { %20995 = vst [vmem:[#allocation8_spill] sm:$0xff] %v17783_v41  ;;  %v17811_v5 = vadd.f32 %v17366_v36, %v17562_v28  ;;  %v17815_v20 = vadd.f32 %v17366_v36, %v17566_v47  ;;  %v17819_v53 = vadd.f32 %v17366_v36, %v17570_v48  ;;  %v17823_v2 = vadd.f32 %v17366_v36, %v17574_v37 }
 0x659   :  { %20996 = vst [vmem:[#allocation11_spill] sm:$0xff] %v17807_v60  ;;  %v17827_v52 = vadd.f32 %v17366_v36, %v21001_v49  ;;  %v17831_v28 = vadd.f32 %v17366_v36, %v21003_v26  ;;  %v17835_v47 = vadd.f32 %v17366_v36, %v21005_v46  ;;  %v17855_v46 = vadd.f32 %v17366_v36, %v17606_v54 }
 0x65a   :  { %20997 = vst [vmem:[#allocation13_spill] sm:$0xff] %v17811_v5  ;;  %20998 = vst [vmem:[#allocation10_spill] sm:$0xff] %v17815_v20  ;;  %v21006_v20 = vld [vmem:[#allocation22_spill] sm:$0xff]  ;;  %v4935_v54 = vmax.f32 %v17631_v6, 0.0 }
 0x65b   :  { %20999 = vst [vmem:[#allocation12_spill] sm:$0xff] %v17819_v53  ;;  %21000 = vst [vmem:[#allocation15_spill] sm:$0xff] %v17823_v2  ;;  %v17839_v48 = vadd.f32 %v17366_v36, %v21006_v20  ;;  %v21007_v53 = vld [vmem:[#allocation23_spill] sm:$0xff]  ;;  %v21008_v2 = vld [vmem:[#allocation24_spill] sm:$0xff]  ;;  %v17859_v20 = vadd.f32 %v17366_v36, %v17610_v21  ;;  %v4937_v21 = vmax.f32 %v17639_v17, 0.0 }
 0x65c   :  { %21002 = vst [vmem:[#allocation17_spill] sm:$0xff] %v17827_v52  ;;  %21004 = vst [vmem:[#allocation14_spill] sm:$0xff] %v17831_v28  ;;  %v17843_v37 = vadd.f32 %v17366_v36, %v21007_v53  ;;  %v17847_v49 = vadd.f32 %v17366_v36, %v21008_v2  ;;  %v21009_v52 = vld [vmem:[#allocation7_spill] sm:$0xff]  ;;  %v17863_v53 = vadd.f32 %v17366_v36, %v17614_v27  ;;  %v4939_v27 = vmax.f32 %v17647_v44, 0.0 }
 0x65d   :  { %v17851_v26 = vadd.f32 %v17366_v36, %v21009_v52  ;;  %21011 = vst [vmem:[#allocation26_spill] sm:$0xff] %v17855_v46  ;;  %21012 = vst [vmem:[#allocation27_spill] sm:$0xff] %v17859_v20  ;;  %v17867_v2 = vadd.f32 %v17366_v36, %v17618_v31  ;;  %v17871_v52 = vadd.f32 %v17366_v36, %v17622_v59  ;;  %v4936_v46 = vmax.f32 %v17635_v38, 0.0 }
 0x65e   :  { %21013 = vst [vmem:[#allocation19_spill] sm:$0xff] %v17863_v53  ;;  %v4938_v20 = vmax.f32 %v17643_v23, 0.0  ;;  %v4940_v53 = vmax.f32 %v17651_v39, 0.0  ;;  %v4943_v36 = vmax.f32 %v17663_v40, 0.0  ;;  %v17937_v6 = vrot.slane %v4935_v54, 7 }
 0x65f   :  { %21010 = vst [vmem:[#allocation16_spill] sm:$0xff] %v17851_v26  ;;  %21014 = vst [vmem:[#allocation20_spill] sm:$0xff] %v17867_v2  ;;  %v4934_v26 = vmax.f32 %v17627_v0, 0.0  ;;  %v21023_v1 = vmov %v17867_v2  ;;  %v17939_v38 = vrot.slane %v4936_v46, 7  ;;  %v17941_v17 = vrot.slane %v4937_v21, 7 }
 0x660   :  { %v17943_v23 = vrot.slane %v4938_v20, 7  ;;  %v17945_v44 = vrot.slane %v4939_v27, 7  ;;  %v17947_v39 = vrot.slane %v4940_v53, 7  ;;  %v21026_v46 = vmax.f32 %v17659_v3, 0.0 }
 0x661   :  { %v17935_v28 = vrot.slane %v4934_v26, 7  ;;  %v21025_v26 = vmax.f32 %v17655_v32, 0.0  ;;  %v17962_v21 = vrot.slane %v4943_v36, 7  ;;  %v17967_v20 = vsel %vm5075_vm0, %v17939_v38, %v17941_v17 }
 0x662   :  { %v17960_v54 = vrot.slane %v21026_v46, 7  ;;  %21028 = vst [vmem:[#allocation23_spill] sm:$0xff] %v17967_v20  ;;  %v17972_v53 = vsel %vm5075_vm0, %v17943_v23, %v17945_v44  ;;  %v21030_v32 = vmax.f32 %v17667_v10, 0.0  ;;  %v21031_v3 = vmax.f32 %v17671_v55, 0.0  ;;  %5337 = vst [vmem:[#allocation2 + $0x38] sm:$0xff] %v17967_v20 }
 0x663   :  { %v21018_v41 = vld [vmem:[#allocation17_spill] sm:$0xff]  ;;  %v17952_v59 = vsel %vm5075_vm0, %v17935_v28, %v17937_v6  ;;  %v17956_v0 = vrot.slane %v21025_v26, 7  ;;  %21029 = vst [vmem:[#allocation24_spill] sm:$0xff] %v17972_v53  ;;  %v21034_v10 = vmax.f32 %v17675_v14, 0.0  ;;  %v21035_v55 = vmax.f32 %v17679_v18, 0.0  ;;  %5340 = vst [vmem:[#allocation2 + $0x50] sm:$0xff] %v17972_v53 }
 0x664   :  { %v21020_v5 = vld [vmem:[#allocation26_spill] sm:$0xff]  ;;  %v21021_v31 = vld [vmem:[#allocation27_spill] sm:$0xff]  ;;  %21024 = vst [vmem:[#allocation21_spill] sm:$0xff] %v17952_v59  ;;  %21027 = vst [vmem:[#allocation22_spill] sm:$0xff] %v17960_v54  ;;  %v17976_v27 = vrot.slane %v21030_v32, 7  ;;  %v17980_v26 = vrot.slane %v21031_v3, 7  ;;  %v17991_v46 = vsel %vm5075_vm0, %v17960_v54, %v17962_v21 }
 0x665   :  { %v21022_v58 = vld [vmem:[#allocation19_spill] sm:$0xff]  ;;  %5334 = vst [vmem:[#allocation2 + $0x20] sm:$0xff] %v17952_v59  ;;  %v17986_v36 = vsel %vm5075_vm0, %v17947_v39, %v17956_v0  ;;  %21033 = vst [vmem:[#allocation17_spill] sm:$0xff] %v17991_v46  ;;  %v17995_v32 = vrot.slane %v21034_v10, 7  ;;  %v17999_v3 = vrot.slane %v21035_v55, 7  ;;  %v21037_v2 = vmax.f32 %v17683_v57, 0.0 }
 0x666   :  { %v21019_v60 = vld [vmem:[#allocation16_spill] sm:$0xff]  ;;  %21032 = vst [vmem:[#allocation7_spill] sm:$0xff] %v17986_v36  ;;  %v18006_v40 = vsel %vm5075_vm0, %v17976_v27, %v17980_v26  ;;  %v21038_v14 = vmax.f32 %v17687_v4, 0.0  ;;  %v21039_v18 = vmax.f32 %v17691_v7, 0.0  ;;  %5343 = vst [vmem:[#allocation2 + $0x68] sm:$0xff] %v17986_v36  ;;  %v21041_v57 = vmax.f32 %v17695_v45, 0.0 }
 0x667   :  { %21036 = vst [vmem:[#allocation16_spill] sm:$0xff] %v18006_v40  ;;  %v18010_v59 = vrot.slane %v21037_v2, 7  ;;  %5346 = vst [vmem:[#allocation2 + $0x80] sm:$0xff] %v17991_v46  ;;  %v18025_v53 = vsel %vm5075_vm0, %v17995_v32, %v17999_v3  ;;  %v21042_v4 = vmax.f32 %v17699_v25, 0.0  ;;  %v21043_v7 = vmax.f32 %v17703_v62, 0.0 }
 0x668   :  { %v18014_v10 = vrot.slane %v21038_v14, 7  ;;  %v18018_v55 = vrot.slane %v21039_v18, 7  ;;  %21040 = vst [vmem:[#allocation26_spill] sm:$0xff] %v18025_v53  ;;  %v18029_v2 = vrot.slane %v21041_v57, 7  ;;  %5349 = vst [vmem:[#allocation2 + $0x98] sm:$0xff] %v18006_v40  ;;  %v21045_v36 = vmax.f32 %v17707_v24, 0.0 }
 0x669   :  { %v18033_v14 = vrot.slane %v21042_v4, 7  ;;  %v18037_v18 = vrot.slane %v21043_v7, 7  ;;  %v21046_v57 = vmax.f32 %v17711_v51, 0.0  ;;  %v21047_v4 = vmax.f32 %v17715_v13, 0.0  ;;  %5352 = vst [vmem:[#allocation2 + $0xb0] sm:$0xff] %v18025_v53 }
 0x66a   :  { %v18043_v46 = vsel %vm5075_vm0, %v18010_v59, %v18014_v10  ;;  %v18047_v45 = vrot.slane %v21045_v36, 7  ;;  %v18061_v7 = vsel %vm5075_vm0, %v18018_v55, %v18029_v2  ;;  %v21050_v51 = vmax.f32 %v17719_v19, 0.0 }
 0x66b   :  { %21044 = vst [vmem:[#allocation27_spill] sm:$0xff] %v18043_v46  ;;  %v18051_v25 = vrot.slane %v21046_v57, 7  ;;  %v18055_v62 = vrot.slane %v21047_v4, 7  ;;  %21048 = vst [vmem:[#allocation19_spill] sm:$0xff] %v18061_v7  ;;  %v18066_v24 = vsel %vm5075_vm0, %v18033_v14, %v18037_v18  ;;  %v21051_v13 = vmax.f32 %v17723_v61, 0.0 }
 0x66c   :  { %21049 = vst [vmem:[#allocation20_spill] sm:$0xff] %v18066_v24  ;;  %v18070_v36 = vrot.slane %v21050_v51, 7  ;;  %5355 = vst [vmem:[#allocation2 + $0xc8] sm:$0xff] %v18043_v46  ;;  %v21053_v53 = vmax.f32 %v17727_v12, 0.0  ;;  %v21054_v20 = vmax.f32 %v17731_v35, 0.0  ;;  %v21055_v51 = vmax.f32 %v17735_v11, 0.0 }
 0x66d   :  { %v18074_v57 = vrot.slane %v21051_v13, 7  ;;  %v18080_v4 = vsel %vm5075_vm0, %v18047_v45, %v18051_v25  ;;  %5358 = vst [vmem:[#allocation2 + $0xe0] sm:$0xff] %v18061_v7  ;;  %5361 = vst [vmem:[#allocation2 + $0xf8] sm:$0xff] %v18066_v24  ;;  %v21058_v12 = vmax.f32 %v17739_v63, 0.0  ;;  %v21059_v35 = vmax.f32 %v17743_v34, 0.0 }
 0x66e   :  { %21052 = vst [vmem:[#allocation28_spill] sm:$0xff] %v18080_v4  ;;  %v18084_v40 = vrot.slane %v21053_v53, 7  ;;  %v18088_v19 = vrot.slane %v21054_v20, 7  ;;  %v18092_v61 = vrot.slane %v21055_v51, 7  ;;  %v18099_v13 = vsel %vm5075_vm0, %v18055_v62, %v18070_v36  ;;  %5364 = vst [vmem:[#allocation2 + $0x110] sm:$0xff] %v18080_v4 }
 0x66f   :  { %21057 = vst [vmem:[#allocation30_spill] sm:$0xff] %v18099_v13  ;;  %v18103_v53 = vrot.slane %v21058_v12, 7  ;;  %v18107_v20 = vrot.slane %v21059_v35, 7  ;;  %v21061_v11 = vmax.f32 %v17747_v33, 0.0  ;;  %v21064_v34 = vmax.f32 %v17751_v50, 0.0  ;;  %5367 = vst [vmem:[#allocation2 + $0x128] sm:$0xff] %v18099_v13 }
 0x670   :  { %21056 = vst [vmem:[#allocation29_spill] sm:$0xff] %v18092_v61  ;;  %v18117_v24 = vsel %vm5075_vm0, %v18074_v57, %v18084_v40  ;;  %v18122_v63 = vsel %vm5075_vm0, %v18088_v19, %v18092_v61  ;;  %v21066_v33 = vmax.f32 %v17755_v22, 0.0  ;;  %v21068_v4 = vmax.f32 %v17759_v16, 0.0  ;;  %v21074_v13 = vld [vmem:[#allocation9_spill] sm:$0xff] }
 0x671   :  { %21060 = vst [vmem:[#allocation31_spill] sm:$0xff] %v18107_v20  ;;  %v18111_v51 = vrot.slane %v21061_v11, 7  ;;  %21062 = vst [vmem:[#allocation32_spill] sm:$0xff] %v18117_v24  ;;  %v18126_v12 = vrot.slane %v21064_v34, 7  ;;  %v18136_v11 = vsel %vm5075_vm0, %v18103_v53, %v18107_v20  ;;  %v21070_v46 = vmax.f32 %v17763_v30, 0.0  ;;  %v21077_v20 = vld [vmem:[#allocation6_spill] sm:$0xff] }
 0x672   :  { %21063 = vst [vmem:[#allocation33_spill] sm:$0xff] %v18122_v63  ;;  %v18130_v35 = vrot.slane %v21066_v33, 7  ;;  %21067 = vst [vmem:[#allocation35_spill] sm:$0xff] %v18136_v11  ;;  %v18140_v7 = vrot.slane %v21068_v4, 7  ;;  %v21071_v34 = vmax.f32 %v17767_v15, 0.0  ;;  %v21073_v16 = vmax.f32 %v17771_v42, 0.0 }
 0x673   :  { %21065 = vst [vmem:[#allocation34_spill] sm:$0xff] %v18126_v12  ;;  %v18144_v50 = vrot.slane %v21070_v46, 7  ;;  %5370 = vst [vmem:[#allocation2 + $0x140] sm:$0xff] %v18117_v24  ;;  %v5123_v33 = vsel %vm5075_vm0, %v18111_v51, %v18126_v12  ;;  %v21075_v30 = vmax.f32 %v21074_v13, 0.0  ;;  %v21078_v15 = vmax.f32 %v21077_v20, 0.0 }
 0x674   :  { %21069 = vst [vmem:[#allocation36_spill] sm:$0xff] %v18140_v7  ;;  %v18148_v22 = vrot.slane %v21071_v34, 7  ;;  %5373 = vst [vmem:[#allocation2 + $0x158] sm:$0xff] %v18122_v63  ;;  %v18157_v4 = vrot.slane %v21073_v16, 7  ;;  %v18171_v63 = vsel %vm5075_vm0, %v18130_v35, %v18140_v7  ;;  %v21081_v16 = vld [vmem:[#allocation8_spill] sm:$0xff]  ;;  %v21084_v20 = vmax.f32 %v17787_v43, 0.0 }
 0x675   :  { %v18161_v46 = vrot.slane %v21075_v30, 7  ;;  %v18165_v34 = vrot.slane %v21078_v15, 7  ;;  %5376 = vst [vmem:[#allocation2 + $0x170] sm:$0xff] %v18136_v11  ;;  %21079 = vst [vmem:[#allocation6_spill] sm:$0xff] %v18171_v63  ;;  %v21082_v13 = vmax.f32 %v21081_v16, 0.0  ;;  %v21086_v24 = vmax.f32 %v17791_v9, 0.0 }
 0x676   :  { %21072 = vst [vmem:[#allocation37_spill] sm:$0xff] %v18148_v22  ;;  %v18176_v42 = vsel %vm5075_vm0, %v18144_v50, %v18148_v22  ;;  %v18184_v15 = vrot.slane %v21084_v20, 7  ;;  %5379 = vst [vmem:[#allocation2 + $0x188] sm:$0xff] %v5123_v33  ;;  %v21088_v22 = vmax.f32 %v17795_v56, 0.0  ;;  %v21089_v16 = vmax.f32 %v17799_v8, 0.0  ;;  %v21093_v56 = vld [vmem:[#allocation11_spill] sm:$0xff] }
 0x677   :  { %21076 = vst [vmem:[#allocation9_spill] sm:$0xff] %v18161_v46  ;;  %21080 = vst [vmem:[#allocation38_spill] sm:$0xff] %v18176_v42  ;;  %v18180_v30 = vrot.slane %v21082_v13, 7  ;;  %v18189_v11 = vsel %vm5075_vm0, %v18157_v4, %v18161_v46  ;;  %v18193_v7 = vrot.slane %v21086_v24, 7  ;;  %v21092_v9 = vmax.f32 %v17803_v29, 0.0  ;;  %v21095_v8 = vld [vmem:[#allocation13_spill] sm:$0xff] }
 0x678   :  { %21085 = vst [vmem:[#allocation39_spill] sm:$0xff] %v18189_v11  ;;  %v18197_v12 = vrot.slane %v21088_v22, 7  ;;  %v18201_v13 = vrot.slane %v21089_v16, 7  ;;  %5382 = vst [vmem:[#allocation2 + $0x1d0] sm:$0xff] %v18171_v63  ;;  %v21094_v22 = vmax.f32 %v21093_v56, 0.0  ;;  %v21096_v20 = vmax.f32 %v21095_v8, 0.0 }
 0x679   :  { %21083 = vst [vmem:[#allocation8_spill] sm:$0xff] %v18180_v30  ;;  %21087 = vst [vmem:[#allocation40_spill] sm:$0xff] %v18193_v7  ;;  %v18208_v43 = vsel %vm5075_vm0, %v18165_v34, %v18180_v30  ;;  %v18212_v24 = vrot.slane %v21092_v9, 7  ;;  %v21099_v9 = vld [vmem:[#allocation10_spill] sm:$0xff]  ;;  %v21101_v63 = vld [vmem:[#allocation12_spill] sm:$0xff] }
 0x67a   :  { %21090 = vst [vmem:[#allocation41_spill] sm:$0xff] %v18201_v13  ;;  %5385 = vst [vmem:[#allocation2 + $0x1e8] sm:$0xff] %v18176_v42  ;;  %v18216_v33 = vrot.slane %v21094_v22, 7  ;;  %v18220_v16 = vrot.slane %v21096_v20, 7  ;;  %v18226_v42 = vsel %vm5075_vm0, %v18184_v15, %v18193_v7  ;;  %v18231_v29 = vsel %vm5075_vm0, %v18197_v12, %v18201_v13  ;;  %v21104_v7 = vld [vmem:[#allocation15_spill] sm:$0xff] }
 0x67b   :  { %21091 = vst [vmem:[#allocation42_spill] sm:$0xff] %v18208_v43  ;;  %5388 = vst [vmem:[#allocation2 + $0x200] sm:$0xff] %v18189_v11  ;;  %v21100_v56 = vmax.f32 %v21099_v9, 0.0  ;;  %v21102_v8 = vmax.f32 %v21101_v63, 0.0  ;;  %v21105_v30 = vmax.f32 %v21104_v7, 0.0  ;;  %v21106_v13 = vmax.f32 %v21018_v41, 0.0 }
 0x67c   :  { %21097 = vst [vmem:[#allocation11_spill] sm:$0xff] %v18226_v42  ;;  %21098 = vst [vmem:[#allocation13_spill] sm:$0xff] %v18231_v29  ;;  %v18245_v11 = vsel %vm5075_vm0, %v18212_v24, %v18216_v33  ;;  %v21110_v7 = vmax.f32 %v17835_v47, 0.0  ;;  %v21111_v41 = vmax.f32 %v17839_v48, 0.0  ;;  %v21115_v48 = vmax.f32 %v17847_v49, 0.0 }
 0x67d   :  { %v18235_v22 = vrot.slane %v21100_v56, 7  ;;  %v18239_v20 = vrot.slane %v21102_v8, 7  ;;  %5391 = vst [vmem:[#allocation2 + $0x218] sm:$0xff] %v18208_v43  ;;  %21103 = vst [vmem:[#allocation10_spill] sm:$0xff] %v18245_v11  ;;  %v18249_v46 = vrot.slane %v21105_v30, 7  ;;  %v18253_v9 = vrot.slane %v21106_v13, 7 }
 0x67e   :  { %v21107_v56 = vld [vmem:[#allocation14_spill] sm:$0xff]  ;;  %5394 = vst [vmem:[#allocation2 + $0x230] sm:$0xff] %v18226_v42  ;;  %5397 = vst [vmem:[#allocation2 + $0x248] sm:$0xff] %v18231_v29  ;;  %v18268_v30 = vrot.slane %v21110_v7, 7  ;;  %v18272_v13 = vrot.slane %v21111_v41, 7  ;;  %v18291_v7 = vrot.slane %v21115_v48, 7 }
 0x67f   :  { %v21108_v61 = vmax.f32 %v21107_v56, 0.0  ;;  %v18264_v8 = vsel %vm5075_vm0, %v18220_v16, %v18235_v22  ;;  %5400 = vst [vmem:[#allocation2 + $0x260] sm:$0xff] %v18245_v11  ;;  %v18282_v29 = vsel %vm5075_vm0, %v18239_v20, %v18249_v46  ;;  %v21118_v11 = vmax.f32 %v21020_v5, 0.0 }
 0x680   :  { %21109 = vst [vmem:[#allocation12_spill] sm:$0xff] %v18264_v8  ;;  %21113 = vst [vmem:[#allocation15_spill] sm:$0xff] %v18282_v29  ;;  %v21119_v43 = vmax.f32 %v21021_v31, 0.0  ;;  %v21120_v48 = vmax.f32 %v21022_v58, 0.0  ;;  %v21122_v5 = vmax.f32 %v21023_v1, 0.0  ;;  %v21123_v31 = vmax.f32 %v17871_v52, 0.0 }
 0x681   :  { %v18257_v63 = vrot.slane %v21108_v61, 7  ;;  %v21112_v61 = vmax.f32 %v17843_v37, 0.0  ;;  %v21116_v37 = vmax.f32 %v21019_v60, 0.0  ;;  %5403 = vst [vmem:[#allocation2 + $0x278] sm:$0xff] %v18264_v8  ;;  %v18305_v42 = vrot.slane %v21118_v11, 7  ;;  %5406 = vst [vmem:[#allocation2 + $0x290] sm:$0xff] %v18282_v29 }
 0x682   :  { %v18309_v49 = vrot.slane %v21119_v43, 7  ;;  %v18313_v60 = vrot.slane %v21120_v48, 7  ;;  %v18324_v11 = vrot.slane %v21122_v5, 7  ;;  %v18328_v43 = vrot.slane %v21123_v31, 7 }
 0x683   :  { %v18276_v56 = vrot.slane %v21112_v61, 7  ;;  %v18287_v47 = vsel %vm5075_vm0, %v18253_v9, %v18257_v63  ;;  %v18295_v41 = vrot.slane %v21116_v37, 7  ;;  %v18301_v61 = vsel %vm5075_vm0, %v18268_v30, %v18272_v13 }
 0x684   :  { %21114 = vst [vmem:[#allocation14_spill] sm:$0xff] %v18287_v47  ;;  %21117 = vst [vmem:[#allocation43_spill] sm:$0xff] %v18301_v61  ;;  %v5268_v58 = vsel %vm5075_vm0, 0.0, %v17935_v28  ;;  %v18341_v1 = vsel %vm5075_vm0, %v18309_v49, %v18313_v60  ;;  %v5269_v52 = vsel %vm5075_vm0, 0.0, %v17939_v38  ;;  %v5270_v5 = vsel %vm5075_vm0, 0.0, %v17943_v23 }
 0x685   :  { %5409 = vst [vmem:[#allocation2 + $0x2a8] sm:$0xff] %v18287_v47  ;;  %v18320_v37 = vsel %vm5075_vm0, %v18276_v56, %v18291_v7  ;;  %5412 = vst [vmem:[#allocation2 + $0x2c0] sm:$0xff] %v18301_v61  ;;  %v18336_v48 = vsel %vm5075_vm0, %v18295_v41, %v18305_v42  ;;  %v5171_v31 = vsel %vm5075_vm0, %v18324_v11, %v18328_v43  ;;  %v5271_v61 = vsel %vm5075_vm0, 0.0, %v17947_v39 }
 0x686   :  { %21121 = vst [vmem:[#allocation44_spill] sm:$0xff] %v18320_v37  ;;  %21124 = vst [vmem:[#allocation45_spill] sm:$0xff] %v18336_v48  ;;  %v5272_v47 = vsel %vm5075_vm0, 0.0, %v17960_v54  ;;  %v5273_v29 = vsel %vm5075_vm0, 0.0, %v17976_v27  ;;  %v5276_v8 = vsel %vm5075_vm0, 0.0, %v18018_v55  ;;  %v5277_v54 = vsel %vm5075_vm0, 0.0, %v18033_v14 }
 0x687   :  { %21125 = vst [vmem:[#allocation46_spill] sm:$0xff] %v18341_v1  ;;  %5333 = vst [vmem:[#allocation2 + $0x18] sm:$0xff] %v5268_v58  ;;  %v5274_v58 = vsel %vm5075_vm0, 0.0, %v17995_v32 }
 0x688   :  { %5415 = vst [vmem:[#allocation2 + $0x2d8] sm:$0xff] %v18320_v37  ;;  %5336 = vst [vmem:[#allocation2 + $0x30] sm:$0xff] %v5269_v52  ;;  %v5275_v37 = vsel %vm5075_vm0, 0.0, %v18010_v59  ;;  %v5278_v52 = vsel %vm5075_vm0, 0.0, %v18047_v45 }
 0x689   :  { %5339 = vst [vmem:[#allocation2 + $0x48] sm:$0xff] %v5270_v5  ;;  %5418 = vst [vmem:[#allocation2 + $0x2f0] sm:$0xff] %v18336_v48  ;;  %v5279_v5 = vsel %vm5075_vm0, 0.0, %v18055_v62  ;;  %v5281_v48 = vsel %vm5075_vm0, 0.0, %v18088_v19 }
 0x68a   :  { %5421 = vst [vmem:[#allocation2 + $0x308] sm:$0xff] %v18341_v1  ;;  %5342 = vst [vmem:[#allocation2 + $0x60] sm:$0xff] %v5271_v61  ;;  %v5280_v1 = vsel %vm5075_vm0, 0.0, %v18074_v57  ;;  %v5284_v61 = vsel %vm5075_vm0, 0.0, %v18130_v35 }
 0x68b   :  { %5345 = vst [vmem:[#allocation2 + $0x78] sm:$0xff] %v5272_v47  ;;  %5348 = vst [vmem:[#allocation2 + $0x90] sm:$0xff] %v5273_v29  ;;  %v5282_v29 = vsel %vm5075_vm0, 0.0, %v18103_v53  ;;  %v5283_v47 = vsel %vm5075_vm0, 0.0, %v18111_v51  ;;  %v5289_v51 = vsel %vm5075_vm0, 0.0, %v18197_v12 }
 0x68c   :  { %5427 = vst [vmem:[#allocation2 + $0x338] sm:$0xff] %v5171_v31  ;;  %5351 = vst [vmem:[#allocation2 + $0xa8] sm:$0xff] %v5274_v58  ;;  %v5285_v31 = vsel %vm5075_vm0, 0.0, %v18144_v50  ;;  %v5292_v58 = vsel %vm5075_vm0, 0.0, %v18239_v20 }
 0x68d   :  { %5354 = vst [vmem:[#allocation2 + $0xc0] sm:$0xff] %v5275_v37  ;;  %5357 = vst [vmem:[#allocation2 + $0xd8] sm:$0xff] %v5276_v8  ;;  %v5286_v8 = vsel %vm5075_vm0, 0.0, %v18157_v4  ;;  %v5288_v37 = vsel %vm5075_vm0, 0.0, %v18184_v15 }
 0x68e   :  { %5360 = vst [vmem:[#allocation2 + $0xf0] sm:$0xff] %v5277_v54  ;;  %5363 = vst [vmem:[#allocation2 + $0x108] sm:$0xff] %v5278_v52  ;;  %v5287_v54 = vsel %vm5075_vm0, 0.0, %v18165_v34  ;;  %v5293_v52 = vsel %vm5075_vm0, 0.0, %v18253_v9 }
 0x68f   :  { %5366 = vst [vmem:[#allocation2 + $0x120] sm:$0xff] %v5279_v5  ;;  %5369 = vst [vmem:[#allocation2 + $0x138] sm:$0xff] %v5280_v1  ;;  %v5290_v1 = vsel %vm5075_vm0, 0.0, %v18212_v24  ;;  %v5294_v5 = vsel %vm5075_vm0, 0.0, %v18268_v30 }
 0x690   :  { %5372 = vst [vmem:[#allocation2 + $0x150] sm:$0xff] %v5281_v48  ;;  %5375 = vst [vmem:[#allocation2 + $0x168] sm:$0xff] %v5282_v29  ;;  %v5291_v48 = vsel %vm5075_vm0, 0.0, %v18220_v16  ;;  %v5295_v29 = vsel %vm5075_vm0, 0.0, %v18276_v56 }
 0x691   :  { %5378 = vst [vmem:[#allocation2 + $0x180] sm:$0xff] %v5283_v47  ;;  %5381 = vst [vmem:[#allocation2 + $0x1c8] sm:$0xff] %v5284_v61  ;;  %v5296_v47 = vsel %vm5075_vm0, 0.0, %v18295_v41  ;;  %v5297_v61 = vsel %vm5075_vm0, 0.0, %v18309_v49 }
 0x692   :  { %5384 = vst [vmem:[#allocation2 + $0x1e0] sm:$0xff] %v5285_v31  ;;  %5387 = vst [vmem:[#allocation2 + $0x1f8] sm:$0xff] %v5286_v8  ;;  %v5299_v31 = vsel %vm5075_vm0, 0.0, %v18324_v11  ;;  %v5300_v8 = vsel %vm5075_vm0, %v17937_v6, 0.0  ;;  %v5305_v11 = vsel %vm5075_vm0, %v17980_v26, 0.0  ;;  %v5306_v6 = vsel %vm5075_vm0, %v17999_v3, 0.0 }
 0x693   :  { %5390 = vst [vmem:[#allocation2 + $0x210] sm:$0xff] %v5287_v54  ;;  %5393 = vst [vmem:[#allocation2 + $0x228] sm:$0xff] %v5288_v37  ;;  %v5301_v54 = vsel %vm5075_vm0, %v17941_v17, 0.0  ;;  %v5302_v37 = vsel %vm5075_vm0, %v17945_v44, 0.0  ;;  %v5307_v17 = vsel %vm5075_vm0, %v18014_v10, 0.0  ;;  %v5308_v44 = vsel %vm5075_vm0, %v18029_v2, 0.0 }
 0x694   :  { %5396 = vst [vmem:[#allocation2 + $0x240] sm:$0xff] %v5289_v51  ;;  %5399 = vst [vmem:[#allocation2 + $0x258] sm:$0xff] %v5290_v1  ;;  %v5303_v51 = vsel %vm5075_vm0, %v17956_v0, 0.0  ;;  %v5304_v1 = vsel %vm5075_vm0, %v17962_v21, 0.0  ;;  %v5309_v0 = vsel %vm5075_vm0, %v18037_v18, 0.0  ;;  %v5310_v21 = vsel %vm5075_vm0, %v18051_v25, 0.0 }
 0x695   :  { %5402 = vst [vmem:[#allocation2 + $0x270] sm:$0xff] %v5291_v48  ;;  %5405 = vst [vmem:[#allocation2 + $0x288] sm:$0xff] %v5292_v58  ;;  %v5311_v26 = vsel %vm5075_vm0, %v18070_v36, 0.0  ;;  %v5312_v3 = vsel %vm5075_vm0, %v18084_v40, 0.0  ;;  %v21126_v10 = vld [vmem:[#allocation29_spill] sm:$0xff]  ;;  %v21127_v2 = vld [vmem:[#allocation31_spill] sm:$0xff] }
 0x696   :  { %5408 = vst [vmem:[#allocation2 + $0x2a0] sm:$0xff] %v5293_v52  ;;  %5411 = vst [vmem:[#allocation2 + $0x2b8] sm:$0xff] %v5294_v5  ;;  %v5313_v48 = vsel %vm5075_vm0, %v21126_v10, 0.0  ;;  %v5314_v58 = vsel %vm5075_vm0, %v21127_v2, 0.0  ;;  %v21128_v18 = vld [vmem:[#allocation34_spill] sm:$0xff]  ;;  %v21129_v52 = vld [vmem:[#allocation36_spill] sm:$0xff] }
 0x697   :  { %5414 = vst [vmem:[#allocation2 + $0x2d0] sm:$0xff] %v5295_v29  ;;  %5417 = vst [vmem:[#allocation2 + $0x2e8] sm:$0xff] %v5296_v47  ;;  %v5315_v25 = vsel %vm5075_vm0, %v21128_v18, 0.0  ;;  %v5316_v5 = vsel %vm5075_vm0, %v21129_v52, 0.0  ;;  %v21130_v36 = vld [vmem:[#allocation37_spill] sm:$0xff]  ;;  %v5547_v10 = vld [vmem:[#allocation2 + $0x49] sm:$0xff] }
 0x698   :  { %5420 = vst [vmem:[#allocation2 + $0x300] sm:$0xff] %v5297_v61  ;;  %5335 = vst [vmem:[#allocation2 + $0x28] sm:$0x3] %v5300_v8  ;;  %v5317_v29 = vsel %vm5075_vm0, %v21130_v36, 0.0  ;;  %v21131_v40 = vld [vmem:[#allocation9_spill] sm:$0xff]  ;;  %v21132_v61 = vld [vmem:[#allocation8_spill] sm:$0xff] }
 0x699   :  { %5338 = vst [vmem:[#allocation2 + $0x40] sm:$0x3] %v5301_v54  ;;  %5341 = vst [vmem:[#allocation2 + $0x58] sm:$0x3] %v5302_v37  ;;  %v5318_v47 = vsel %vm5075_vm0, %v21131_v40, 0.0  ;;  %v21133_v8 = vld [vmem:[#allocation40_spill] sm:$0xff] }
 0x69a   :  { %5426 = vst [vmem:[#allocation2 + $0x330] sm:$0xff] %v5299_v31  ;;  %5344 = vst [vmem:[#allocation2 + $0x70] sm:$0x3] %v5303_v51  ;;  %v5319_v31 = vsel %vm5075_vm0, %v21132_v61, 0.0  ;;  %v5320_v54 = vsel %vm5075_vm0, %v21133_v8, 0.0  ;;  %v21134_v37 = vld [vmem:[#allocation41_spill] sm:$0xff] }
 0x69b   :  { %5347 = vst [vmem:[#allocation2 + $0x88] sm:$0x3] %v5304_v1  ;;  %5350 = vst [vmem:[#allocation2 + $0xa0] sm:$0x3] %v5305_v11  ;;  %v5321_v51 = vsel %vm5075_vm0, %v21134_v37, 0.0  ;;  %v5322_v1 = vsel %vm5075_vm0, %v18216_v33, 0.0 }
 0x69c   :  { %5353 = vst [vmem:[#allocation2 + $0xb8] sm:$0x3] %v5306_v6  ;;  %5356 = vst [vmem:[#allocation2 + $0xd0] sm:$0x3] %v5307_v17  ;;  %v5323_v11 = vsel %vm5075_vm0, %v18235_v22, 0.0  ;;  %v5324_v6 = vsel %vm5075_vm0, %v18249_v46, 0.0 }
 0x69d   :  { %5359 = vst [vmem:[#allocation2 + $0xe8] sm:$0x3] %v5308_v44  ;;  %5362 = vst [vmem:[#allocation2 + $0x100] sm:$0x3] %v5309_v0  ;;  %v5325_v17 = vsel %vm5075_vm0, %v18257_v63, 0.0  ;;  %v5326_v44 = vsel %vm5075_vm0, %v18272_v13, 0.0 }
 0x69e   :  { %5365 = vst [vmem:[#allocation2 + $0x118] sm:$0x3] %v5310_v21  ;;  %5368 = vst [vmem:[#allocation2 + $0x130] sm:$0x3] %v5311_v26  ;;  %v5543_v33 = vld [vmem:[#allocation2 + $0x19] sm:$0xff]  ;;  %v5545_v0 = vld [vmem:[#allocation2 + $0x31] sm:$0xff] }
 0x69f   :  { %5371 = vst [vmem:[#allocation2 + $0x148] sm:$0x3] %v5312_v3  ;;  %5374 = vst [vmem:[#allocation2 + $0x160] sm:$0x3] %v5313_v48  ;;  %v5327_v21 = vsel %vm5075_vm0, %v18291_v7, 0.0  ;;  %v5328_v22 = vsel %vm5075_vm0, %v18305_v42, 0.0 }
 0x6a0   :  { %5377 = vst [vmem:[#allocation2 + $0x178] sm:$0x3] %v5314_v58  ;;  %5380 = vst [vmem:[#allocation2 + $0x190] sm:$0x3] %v5315_v25  ;;  %v5329_v46 = vsel %vm5075_vm0, %v18313_v60, 0.0  ;;  %v5331_v63 = vsel %vm5075_vm0, %v18328_v43, 0.0 }
 0x6a1   :  { %5383 = vst [vmem:[#allocation2 + $0x1d8] sm:$0x3] %v5316_v5  ;;  %5386 = vst [vmem:[#allocation2 + $0x1f0] sm:$0x3] %v5317_v29  ;;  %v5544_v13 = vld [vmem:[#allocation2 + $0x21] sm:$0xff]  ;;  %v5546_v26 = vld [vmem:[#allocation2 + $0x39] sm:$0xff] }
 0x6a2   :  { %5389 = vst [vmem:[#allocation2 + $0x208] sm:$0x3] %v5318_v47  ;;  %5392 = vst [vmem:[#allocation2 + $0x220] sm:$0x3] %v5319_v31  ;;  %v5606_v7 = vpack.c.bf16 %v5544_v13, %v5543_v33  ;;  %v5607_v3 = vpack.c.bf16 %v5546_v26, %v5545_v0  ;;  %v14722_v42 = vld [vmem:[%s20725_s2 + $0x8] sm:$0xff]   ;;  %v21135_v60 = vld [vmem:[#allocation18_spill] sm:$0xff] }
 0x6a3   :  { %5395 = vst [vmem:[#allocation2 + $0x238] sm:$0x3] %v5320_v54  ;;  %5398 = vst [vmem:[#allocation2 + $0x250] sm:$0x3] %v5321_v51  ;;  %v14723_v43 = vld [vmem:[%s20725_s2 + $0x10] sm:$0xff]   ;;  %v5549_v2 = vld [vmem:[#allocation2 + $0x61] sm:$0xff] }
 0x6a4   :  { %5401 = vst [vmem:[#allocation2 + $0x268] sm:$0x3] %v5322_v1  ;;  %5404 = vst [vmem:[#allocation2 + $0x280] sm:$0x3] %v5323_v11  ;;  %12910 = vmatmul.mubr.bf16.vlgmr.msra.gmra.mrb[0].mxu1 %v5606_v7  ;;  %v5548_v48 = vld [vmem:[#allocation2 + $0x51] sm:$0xff]  ;;  %v5550_v58 = vld [vmem:[#allocation2 + $0x69] sm:$0xff] }
 0x6a5   :  { %5407 = vst [vmem:[#allocation2 + $0x298] sm:$0x3] %v5324_v6  ;;  %5410 = vst [vmem:[#allocation2 + $0x2b0] sm:$0x3] %v5325_v17  ;;  %12913 = vmatprep.mubr.bf16.mxu1 %v5607_v3  ;;  %12974 = vmatpush3.bf16.msra.mxu1 %v21135_v60  ;;  %v5608_v18 = vpack.c.bf16 %v5548_v48, %v5547_v10  ;;  %v14724_v25 = vld [vmem:[%s20725_s2 + $0x18] sm:$0xff]   ;;  %v5609_v52 = vpack.c.bf16 %v5550_v58, %v5549_v2  ;;  %v14725_v5 = vld [vmem:[%s20725_s2 + $0x20] sm:$0xff]  }
 0x6a6   :  { %5413 = vst [vmem:[#allocation2 + $0x2c8] sm:$0x3] %v5326_v44  ;;  %5416 = vst [vmem:[#allocation2 + $0x2e0] sm:$0x3] %v5327_v21  ;;  %12975 = vmatprep.subr.bf16.mxu1 %v14722_v42  ;;  %v5551_v36 = vld [vmem:[#allocation2 + $0x79] sm:$0xff]  ;;  %v5552_v29 = vld [vmem:[#allocation2 + $0x81] sm:$0xff] }
 0x6a7   :  { %5419 = vst [vmem:[#allocation2 + $0x2f8] sm:$0x3] %v5328_v22  ;;  %5422 = vst [vmem:[#allocation2 + $0x310] sm:$0x3] %v5329_v46  ;;  %v5553_v40 = vld [vmem:[#allocation2 + $0x91] sm:$0xff]  ;;  %v5554_v47 = vld [vmem:[#allocation2 + $0x99] sm:$0xff]  ;;  %v5610_v61 = vpack.c.bf16 %v5552_v29, %v5551_v36 }
 0x6a8   :  { %5428 = vst [vmem:[#allocation2 + $0x340] sm:$0x3] %v5331_v63  ;;  %v14726_v31 = vld [vmem:[%s20725_s2 + $0x28] sm:$0xff]   ;;  %v5611_v8 = vpack.c.bf16 %v5554_v47, %v5553_v40  ;;  %v14727_v54 = vld [vmem:[%s20725_s2 + $0x30] sm:$0xff]   ;;  %v14728_v17 = vld [vmem:[%s20725_s2 + $0x38] sm:$0xff]  }
 0x6a9   :  { %12976 = vmatpush3.bf16.msra.mxu1 %v14722_v42  ;;  %v5555_v37 = vld [vmem:[#allocation2 + $0xa9] sm:$0xff]  ;;  %v5556_v51 = vld [vmem:[#allocation2 + $0xb1] sm:$0xff]  ;;  %v5557_v1 = vld [vmem:[#allocation2 + $0xc1] sm:$0xff] }
 0x6aa   :  { %12977 = vmatprep.subr.bf16.mxu1 %v14723_v43  ;;  %v5558_v11 = vld [vmem:[#allocation2 + $0xc9] sm:$0xff]  ;;  %v5612_v6 = vpack.c.bf16 %v5556_v51, %v5555_v37  ;;  %v18496_v33 = vld [vmem:[%s20725_s2 + $0x80] sm:$0xff]   ;;  %v5561_v22 = vld [vmem:[#allocation2 + $0xf1] sm:$0xff] }
 0x6ab   :  { %v5613_v44 = vpack.c.bf16 %v5558_v11, %v5557_v1  ;;  %v5559_v0 = vld [vmem:[#allocation2 + $0xd9] sm:$0xff]  ;;  %v5560_v21 = vld [vmem:[#allocation2 + $0xe1] sm:$0xff]  ;;  %v5563_v26 = vld [vmem:[#allocation2 + $0x109] sm:$0xff] }
 0x6ac   :  { %12914 = vmatmul.mubr.bf16.gmra.mrb[4].mxu1 %v5608_v18  ;;  %v5562_v46 = vld [vmem:[#allocation2 + $0xf9] sm:$0xff]  ;;  %v5614_v63 = vpack.c.bf16 %v5560_v21, %v5559_v0  ;;  %v5564_v7 = vld [vmem:[#allocation2 + $0x111] sm:$0xff]  ;;  %v5565_v3 = vld [vmem:[#allocation2 + $0x121] sm:$0xff] }
 0x6ad   :  { %12917 = vmatprep.mubr.bf16.mxu1 %v5609_v52  ;;  %12978 = vmatpush3.bf16.msra.mxu1 %v14723_v43  ;;  %v5615_v13 = vpack.c.bf16 %v5562_v46, %v5561_v22  ;;  %v5566_v42 = vld [vmem:[#allocation2 + $0x129] sm:$0xff]  ;;  %v5616_v60 = vpack.c.bf16 %v5564_v7, %v5563_v26  ;;  %v5567_v10 = vld [vmem:[#allocation2 + $0x139] sm:$0xff]  ;;  %v5568_v48 = vld [vmem:[#allocation2 + $0x141] sm:$0xff] }
 0x6ae   :  { %12979 = vmatprep.subr.bf16.mxu1 %v14724_v25  ;;  %v5617_v43 = vpack.c.bf16 %v5566_v42, %v5565_v3  ;;  %v5569_v2 = vld [vmem:[#allocation2 + $0x151] sm:$0xff]  ;;  %v5570_v58 = vld [vmem:[#allocation2 + $0x159] sm:$0xff]  ;;  %v5618_v18 = vpack.c.bf16 %v5568_v48, %v5567_v10  ;;  %v5571_v36 = vld [vmem:[#allocation2 + $0x169] sm:$0xff] }
 0x6af   :  { %v5573_v52 = vld [vmem:[#allocation2 + $0x1b1] sm:$0xff]  ;;  %v5579_v1 = vld [vmem:[#allocation2 + $0x1f9] sm:$0xff]  ;;  %v5580_v11 = vld [vmem:[#allocation2 + $0x201] sm:$0xff] }
 0x6b0   :  { %v5572_v29 = vld [vmem:[#allocation2 + $0x171] sm:$0xff]  ;;  %v5583_v21 = vld [vmem:[#allocation2 + $0x229] sm:$0xff]  ;;  %v5585_v46 = vld [vmem:[#allocation2 + $0x241] sm:$0xff] }
 0x6b1   :  { %12980 = vmatpush3.bf16.msra.mxu1 %v14724_v25  ;;  %v5619_v25 = vpack.c.bf16 %v5570_v58, %v5569_v2  ;;  %v5620_v47 = vpack.c.bf16 %v5572_v29, %v5571_v36  ;;  %v5584_v22 = vld [vmem:[#allocation2 + $0x231] sm:$0xff]  ;;  %v5587_v7 = vld [vmem:[#allocation2 + $0x259] sm:$0xff]  ;;  %v5588_v3 = vld [vmem:[#allocation2 + $0x261] sm:$0xff] }
 0x6b2   :  { %12981 = vmatprep.subr.bf16.mxu1 %v14725_v5  ;;  %v5589_v42 = vld [vmem:[#allocation2 + $0x271] sm:$0xff]  ;;  %v5591_v48 = vld [vmem:[#allocation2 + $0x289] sm:$0xff]  ;;  %v5593_v58 = vld [vmem:[#allocation2 + $0x2a1] sm:$0xff] }
 0x6b3   :  { %v5592_v2 = vld [vmem:[#allocation2 + $0x291] sm:$0xff]  ;;  %v5596_v36 = vld [vmem:[#allocation2 + $0x2c1] sm:$0xff] }
 0x6b4   :  { %12918 = vmatmul.mubr.bf16.gmra.mrb[8].mxu1 %v5610_v61  ;;  %v5575_v61 = vld [vmem:[#allocation2 + $0x1c9] sm:$0xff]  ;;  %v5597_v29 = vld [vmem:[#allocation2 + $0x2d1] sm:$0xff] }
 0x6b5   :  { %12921 = vmatprep.mubr.bf16.mxu1 %v5611_v8  ;;  %12982 = vmatpush3.bf16.msra.mxu1 %v14725_v5  ;;  %v5574_v5 = vld [vmem:[#allocation2 + $0x1b9] sm:$0xff]  ;;  %v5577_v8 = vld [vmem:[#allocation2 + $0x1e1] sm:$0xff] }
 0x6b6   :  { %12983 = vmatprep.subr.bf16.mxu1 %v14726_v31  ;;  %v5621_v40 = vpack.c.bf16 %v5574_v5, %v5573_v52  ;;  %v5595_v5 = vld [vmem:[#allocation2 + $0x2b9] sm:$0xff] }
 0x6b9   :  { %12984 = vmatpush3.bf16.msra.mxu1 %v14726_v31  ;;  %v5576_v31 = vld [vmem:[#allocation2 + $0x1d1] sm:$0xff] }
 0x6ba   :  { %12985 = vmatprep.subr.bf16.mxu1 %v14727_v54  ;;  %v5622_v37 = vpack.c.bf16 %v5576_v31, %v5575_v61  ;;  %v5599_v31 = vld [vmem:[#allocation2 + $0x2e9] sm:$0xff] }
 0x6bc   :  { %12922 = vmatmul.mubr.bf16.gmra.mrb[12].mxu1 %v5612_v6  ;;  %v5581_v6 = vld [vmem:[#allocation2 + $0x211] sm:$0xff] }
 0x6bd   :  { %12925 = vmatprep.mubr.bf16.mxu1 %v5613_v44  ;;  %12986 = vmatpush3.bf16.msra.mxu1 %v14727_v54  ;;  %v5578_v54 = vld [vmem:[#allocation2 + $0x1e9] sm:$0xff]  ;;  %v5624_v44 = vpack.c.bf16 %v5580_v11, %v5579_v1  ;;  %v5603_v11 = vld [vmem:[#allocation2 + $0x319] sm:$0xff] }
 0x6be   :  { %12987 = vmatprep.subr.bf16.mxu1 %v14728_v17  ;;  %v5623_v51 = vpack.c.bf16 %v5578_v54, %v5577_v8  ;;  %v5600_v8 = vld [vmem:[#allocation2 + $0x2f1] sm:$0xff]  ;;  %v5601_v54 = vld [vmem:[#allocation2 + $0x301] sm:$0xff] }
 0x6c1   :  { %12988 = vmatpush3.bf16.msra.mxu1 %v14728_v17  ;;  %v5582_v17 = vld [vmem:[#allocation2 + $0x219] sm:$0xff] }
 0x6c2   :  { %13053 = vmatprep.subr.bf16.mxu1 %v18496_v33  ;;  %v5625_v0 = vpack.c.bf16 %v5582_v17, %v5581_v6  ;;  %v5604_v6 = vld [vmem:[#allocation2 + $0x321] sm:$0xff] }
 0x6c3   :  { %v14789_v17 = vld [vmem:[#allocation2] sm:$0xff] }
 0x6c4   :  { %12926 = vmatmul.mubr.bf16.gmra.mrb[16].mxu1 %v5614_v63  ;;  %v5586_v63 = vld [vmem:[#allocation2 + $0x249] sm:$0xff] }
 0x6c5   :  { %12929 = vmatprep.mubr.bf16.mxu1 %v5615_v13  ;;  %v5626_v13 = vpack.c.bf16 %v5584_v22, %v5583_v21  ;;  %v5627_v26 = vpack.c.bf16 %v5586_v63, %v5585_v46  ;;  %v14730_v21 = vld [vmem:[%s20725_s2 + $0x88] sm:$0xff]   ;;  %v21138_v46 = vld [vmem:[#allocation21_spill] sm:$0xff] }
 0x6c6   :  { %v14796_v63 = vpack.c.bf16 %v21138_v46, %v17935_v28  ;;  %v14732_v28 = vld [vmem:[%s20725_s2 + $0x98] sm:$0xff]  }
 0x6cc   :  { %12930 = vmatmul.mubr.bf16.gmra.mrb[20].mxu1 %v5616_v60  ;;  %v5590_v60 = vld [vmem:[#allocation2 + $0x279] sm:$0xff] }
 0x6cd   :  { %12933 = vmatprep.mubr.bf16.mxu1 %v5617_v43  ;;  %v5628_v43 = vpack.c.bf16 %v5588_v3, %v5587_v7  ;;  %v5629_v10 = vpack.c.bf16 %v5590_v60, %v5589_v42  ;;  %v14731_v7 = vld [vmem:[%s20725_s2 + $0x90] sm:$0xff]   ;;  %v14733_v60 = vld [vmem:[%s20725_s2 + $0xa0] sm:$0xff]  }
 0x6ce   :  { %v21140_v3 = vld [vmem:[#allocation24_spill] sm:$0xff] }
 0x6cf   :  { %v14804_v42 = vpack.c.bf16 %v21140_v3, %v17943_v23  ;;  %v14734_v23 = vld [vmem:[%s20725_s2 + $0xa8] sm:$0xff]  }
 0x6d4   :  { %12934 = vmatmul.mubr.bf16.gmra.mrb[24].mxu1 %v5618_v18  ;;  %v5594_v18 = vld [vmem:[#allocation2 + $0x2a9] sm:$0xff] }
 0x6d5   :  { %12937 = vmatprep.mubr.bf16.mxu1 %v5619_v25  ;;  %v5630_v25 = vpack.c.bf16 %v5592_v2, %v5591_v48  ;;  %v5631_v52 = vpack.c.bf16 %v5594_v18, %v5593_v58  ;;  %v14735_v58 = vld [vmem:[%s20725_s2 + $0xb0] sm:$0xff]   ;;  %v14736_v18 = vld [vmem:[%s20725_s2 + $0xb8] sm:$0xff]  }
 0x6dc   :  { %12938 = vmatmul.mubr.bf16.gmra.mrb[28].mxu1 %v5620_v47  ;;  %v5632_v47 = vpack.c.bf16 %v5596_v36, %v5595_v5  ;;  %v14737_v36 = vld [vmem:[%s20725_s2 + $0xc0] sm:$0xff]  }
 0x6dd   :  { %12941 = vmatprep.mubr.bf16.mxu1 %v5621_v40  ;;  %v5598_v40 = vld [vmem:[#allocation2 + $0x2d9] sm:$0xff] }
 0x6de   :  { %v5633_v61 = vpack.c.bf16 %v5598_v40, %v5597_v29  ;;  %v21147_v29 = vld [vmem:[#allocation19_spill] sm:$0xff]  ;;  %v21148_v40 = vld [vmem:[#allocation20_spill] sm:$0xff] }
 0x6e4   :  { %12942 = vmatmul.mubr.bf16.gmra.mrb[32].mxu1 %v5622_v37  ;;  %v5602_v37 = vld [vmem:[#allocation2 + $0x309] sm:$0xff] }
 0x6e5   :  { %12945 = vmatprep.mubr.bf16.mxu1 %v5623_v51  ;;  %v5634_v51 = vpack.c.bf16 %v5600_v8, %v5599_v31  ;;  %v5635_v1 = vpack.c.bf16 %v5602_v37, %v5601_v54  ;;  %v21150_v31 = vld [vmem:[#allocation30_spill] sm:$0xff] }
 0x6e6   :  { %v14840_v8 = vpack.c.bf16 %v21150_v31, %v18055_v62  ;;  %v21154_v62 = vld [vmem:[#allocation6_spill] sm:$0xff] }
 0x6ec   :  { %12946 = vmatmul.mubr.bf16.gmra.mrb[36].mxu1 %v5624_v44  ;;  %v5493_v44 = vpack.c.bf16 %v14789_v17, %v14789_v17 }
 0x6ed   :  { %12949 = vmatprep.mubr.bf16.mxu1 %v5625_v0  ;;  %v5636_v0 = vpack.c.bf16 %v5604_v6, %v5603_v11 }
 0x6f4   :  { %12950 = vmatmul.mubr.bf16.gmra.mrb[40].mxu1 %v5626_v13  ;;  %v21139_v13 = vld [vmem:[#allocation23_spill] sm:$0xff] }
 0x6f5   :  { %12953 = vmatprep.mubr.bf16.mxu1 %v5627_v26  ;;  %v14800_v26 = vpack.c.bf16 %v21139_v13, %v17939_v38  ;;  %v21141_v38 = vld [vmem:[#allocation7_spill] sm:$0xff] }
 0x6fc   :  { %12954 = vmatmul.mubr.bf16.gmra.mrb[44].mxu1 %v5628_v43  ;;  %v21142_v43 = vld [vmem:[#allocation22_spill] sm:$0xff] }
 0x6fd   :  { %12957 = vmatprep.mubr.bf16.mxu1 %v5629_v10  ;;  %v21143_v10 = vld [vmem:[#allocation17_spill] sm:$0xff] }
 0x6fe   :  { %v14812_v48 = vpack.c.bf16 %v21143_v10, %v21142_v43  ;;  %v6332_v43 = vld [vmem:[#allocation2 + $0x32] sm:$0xff]  ;;  %v6333_v10 = vld [vmem:[#allocation2 + $0x3a] sm:$0xff] }
 0x6ff   :  { %v18653_v22 = vpack.c.bf16 %v6333_v10, %v6332_v43  ;;  %v6369_v43 = vld [vmem:[#allocation2 + $0x21a] sm:$0xff] }
 0x704   :  { %12958 = vmatmul.mubr.bf16.gmra.mrb[48].mxu1 %v5630_v25  ;;  %v21145_v25 = vld [vmem:[#allocation26_spill] sm:$0xff] }
 0x705   :  { %12961 = vmatprep.mubr.bf16.mxu1 %v5631_v52  ;;  %v14820_v52 = vpack.c.bf16 %v21145_v25, %v17995_v32  ;;  %v14828_v32 = vpack.c.bf16 %v21147_v29, %v18018_v55  ;;  %v21151_v55 = vld [vmem:[#allocation32_spill] sm:$0xff]  ;;  %v6338_v29 = vld [vmem:[#allocation2 + $0x7a] sm:$0xff] }
 0x706   :  { %v14844_v54 = vpack.c.bf16 %v21151_v55, %v18074_v57  ;;  %v21155_v57 = vld [vmem:[#allocation38_spill] sm:$0xff]  ;;  %v6337_v25 = vld [vmem:[#allocation2 + $0x6a] sm:$0xff] }
 0x707   :  { %v14860_v11 = vpack.c.bf16 %v21155_v57, %v18144_v50  ;;  %v21159_v50 = vld [vmem:[#allocation13_spill] sm:$0xff]  ;;  %v6342_v55 = vld [vmem:[#allocation2 + $0xaa] sm:$0xff] }
 0x708   :  { %v6346_v57 = vld [vmem:[#allocation2 + $0xda] sm:$0xff] }
 0x70c   :  { %12962 = vmatmul.mubr.bf16.gmra.mrb[52].mxu1 %v5632_v47  ;;  %v21149_v47 = vld [vmem:[#allocation28_spill] sm:$0xff] }
 0x70d   :  { %12965 = vmatprep.mubr.bf16.mxu1 %v5633_v61  ;;  %v14836_v61 = vpack.c.bf16 %v21149_v47, %v18047_v45  ;;  %v21153_v45 = vld [vmem:[#allocation35_spill] sm:$0xff] }
 0x714   :  { %12966 = vmatmul.mubr.bf16.gmra.mrb[56].mxu1 %v5634_v51  ;;  %v14852_v51 = vpack.c.bf16 %v21153_v45, %v18103_v53  ;;  %v21157_v53 = vld [vmem:[#allocation42_spill] sm:$0xff] }
 0x715   :  { %12969 = vmatprep.mubr.bf16.mxu1 %v5635_v1  ;;  %v14856_v1 = vpack.c.bf16 %v21154_v62, %v18130_v35  ;;  %v14868_v17 = vpack.c.bf16 %v21157_v53, %v18165_v34  ;;  %v21158_v35 = vld [vmem:[#allocation11_spill] sm:$0xff]  ;;  %v21161_v34 = vld [vmem:[#allocation12_spill] sm:$0xff] }
 0x716   :  { %v14884_v46 = vpack.c.bf16 %v21161_v34, %v18220_v16  ;;  %v21165_v16 = vld [vmem:[#allocation44_spill] sm:$0xff]  ;;  %v6354_v34 = vld [vmem:[#allocation2 + $0x13a] sm:$0xff] }
 0x71c   :  { %12970 = vmatmul.mubr.bf16.gmra.mrb[60].mxu1 %v5636_v0  ;;  %v14876_v0 = vpack.c.bf16 %v21159_v50, %v18197_v12  ;;  %v21163_v12 = vld [vmem:[#allocation14_spill] sm:$0xff] }
 0x71d   :  { %12989 = vmatprep.mubr.bf16.mxu1 %v5493_v44  ;;  %v14892_v13 = vpack.c.bf16 %v21163_v12, %v18253_v9  ;;  %v21167_v9 = vld [vmem:[#allocation46_spill] sm:$0xff] }
 0x71e   :  { %v14908_v3 = vpack.c.bf16 %v21167_v9, %v18309_v49  ;;  %v14738_v49 = vld [vmem:[%s20725_s2 + $0xc8] sm:$0xff]  }
 0x71f   :  { %v6352_v50 = vld [vmem:[#allocation2 + $0x122] sm:$0xff]  ;;  %v6362_v9 = vld [vmem:[#allocation2 + $0x1ca] sm:$0xff] }
 0x724   :  { %14797 = vmatmul.mubr.msk.bf16.vlgmr.msra.gmra.mrb[0].mxu1 %vm18503_vm3, %v14796_v63 }
 0x725   :  { %14801 = vmatprep.mubr.msk.bf16.mxu1 %vm18503_vm3, %v14800_v26  ;;  %13054 = vmatpush3.bf16.msra.mxu1 %v18496_v33  ;;  %v14808_v33 = vpack.c.bf16 %v21141_v38, %v17947_v39  ;;  %v21144_v39 = vld [vmem:[#allocation16_spill] sm:$0xff]  ;;  %v18645_v38 = vld [vmem:[#allocation2 + $0x320] sm:$0xff] }
 0x726   :  { %13055 = vmatprep.subr.bf16.mxu1 %v14730_v21  ;;  %v14816_v2 = vpack.c.bf16 %v21144_v39, %v17976_v27  ;;  %v21146_v27 = vld [vmem:[#allocation27_spill] sm:$0xff]  ;;  %v14739_v39 = vld [vmem:[%s20725_s2 + $0xd0] sm:$0xff]  }
 0x727   :  { %v14824_v5 = vpack.c.bf16 %v21146_v27, %v18010_v59  ;;  %v14832_v59 = vpack.c.bf16 %v21148_v40, %v18033_v14  ;;  %v21152_v14 = vld [vmem:[#allocation33_spill] sm:$0xff] }
 0x728   :  { %v14848_v37 = vpack.c.bf16 %v21152_v14, %v18088_v19  ;;  %v21156_v19 = vld [vmem:[#allocation39_spill] sm:$0xff]  ;;  %v14740_v27 = vld [vmem:[%s20725_s2 + $0xd8] sm:$0xff]  }
 0x729   :  { %13056 = vmatpush3.bf16.msra.mxu1 %v14730_v21  ;;  %v14864_v6 = vpack.c.bf16 %v21156_v19, %v18157_v4  ;;  %v21160_v4 = vld [vmem:[#allocation10_spill] sm:$0xff]  ;;  %v6340_v40 = vld [vmem:[#allocation2 + $0x92] sm:$0xff] }
 0x72a   :  { %13057 = vmatprep.subr.bf16.mxu1 %v14731_v7  ;;  %v14880_v21 = vpack.c.bf16 %v21160_v4, %v18212_v24  ;;  %v21164_v24 = vld [vmem:[#allocation43_spill] sm:$0xff]  ;;  %v6348_v19 = vld [vmem:[#allocation2 + $0xf2] sm:$0xff] }
 0x72b   :  { %v14896_v26 = vpack.c.bf16 %v21164_v24, %v18268_v30  ;;  %v6328_v30 = vld [vmem:[#allocation2 + $0x2] sm:$0xff]  ;;  %v6360_v24 = vld [vmem:[#allocation2 + $0x1b2] sm:$0xff] }
 0x72c   :  { %14805 = vmatmul.mubr.msk.bf16.gmra.mrb[4].mxu1 %vm18503_vm3, %v14804_v42  ;;  %v6329_v42 = vld [vmem:[#allocation2 + $0xa] sm:$0xff]  ;;  %v6344_v14 = vld [vmem:[#allocation2 + $0xc2] sm:$0xff] }
 0x72d   :  { %14809 = vmatprep.mubr.msk.bf16.mxu1 %vm18503_vm3, %v14808_v33  ;;  %13058 = vmatpush3.bf16.msra.mxu1 %v14731_v7  ;;  %v14900_v7 = vpack.c.bf16 %v21165_v16, %v18276_v56  ;;  %v6392_v56 = vpack.c.bf16 %v6329_v42, %v6328_v30  ;;  %v14790_v33 = vld [vmem:[#allocation2 + $0x318] sm:$0xff]  ;;  %v6358_v16 = vld [vmem:[#allocation2 + $0x16a] sm:$0xff]  ;;  %v6364_v30 = vld [vmem:[#allocation2 + $0x1e2] sm:$0xff] }
 0x72e   :  { %13059 = vmatprep.subr.bf16.mxu1 %v14732_v28  ;;  %v6365_v42 = vld [vmem:[#allocation2 + $0x1ea] sm:$0xff] }
 0x731   :  { %13060 = vmatpush3.bf16.msra.mxu1 %v14732_v28 }
 0x732   :  { %13061 = vmatprep.subr.bf16.mxu1 %v14733_v60 }
 0x734   :  { %14813 = vmatmul.mubr.msk.bf16.gmra.mrb[8].mxu1 %vm18503_vm3, %v14812_v48 }
 0x735   :  { %14817 = vmatprep.mubr.msk.bf16.mxu1 %vm18503_vm3, %v14816_v2  ;;  %13062 = vmatpush3.bf16.msra.mxu1 %v14733_v60  ;;  %v5524_v60 = vpack.c.bf16 %v18645_v38, %v14790_v33  ;;  %v6334_v2 = vld [vmem:[#allocation2 + $0x4a] sm:$0xff]  ;;  %v18722_v33 = vpack.c.bf16 %v6365_v42, %v6364_v30  ;;  %v6845_v30 = vld [vmem:[#allocation2 + $0x38] sm:$0xff] }
 0x736   :  { %13063 = vmatprep.subr.bf16.mxu1 %v14734_v23  ;;  %v6846_v42 = vld [vmem:[#allocation2 + $0x48] sm:$0xff] }
 0x739   :  { %13064 = vmatpush3.bf16.msra.mxu1 %v14734_v23  ;;  %v6331_v23 = vld [vmem:[#allocation2 + $0x22] sm:$0xff] }
 0x73a   :  { %13065 = vmatprep.subr.bf16.mxu1 %v14735_v58 }
 0x73c   :  { %14821 = vmatmul.mubr.msk.bf16.gmra.mrb[12].mxu1 %vm18503_vm3, %v14820_v52 }
 0x73d   :  { %14825 = vmatprep.mubr.msk.bf16.mxu1 %vm18503_vm3, %v14824_v5  ;;  %13066 = vmatpush3.bf16.msra.mxu1 %v14735_v58  ;;  %v6335_v58 = vld [vmem:[#allocation2 + $0x52] sm:$0xff] }
 0x73e   :  { %13067 = vmatprep.subr.bf16.mxu1 %v14736_v18  ;;  %v18660_v52 = vpack.c.bf16 %v6335_v58, %v6334_v2  ;;  %v6371_v2 = vld [vmem:[#allocation2 + $0x232] sm:$0xff]  ;;  %v6372_v58 = vld [vmem:[#allocation2 + $0x242] sm:$0xff] }
 0x741   :  { %13068 = vmatpush3.bf16.msra.mxu1 %v14736_v18  ;;  %v6336_v18 = vld [vmem:[#allocation2 + $0x62] sm:$0xff] }
 0x742   :  { %13133 = vmatprep.subr.bf16.mxu1 %v14737_v36  ;;  %v18665_v5 = vpack.c.bf16 %v6337_v25, %v6336_v18  ;;  %v6373_v18 = vld [vmem:[#allocation2 + $0x24a] sm:$0xff] }
 0x744   :  { %14829 = vmatmul.mubr.msk.bf16.gmra.mrb[16].mxu1 %vm18503_vm3, %v14828_v32  ;;  %v6339_v32 = vld [vmem:[#allocation2 + $0x82] sm:$0xff] }
 0x745   :  { %14833 = vmatprep.mubr.msk.bf16.mxu1 %vm18503_vm3, %v14832_v59  ;;  %v6341_v59 = vld [vmem:[#allocation2 + $0x9a] sm:$0xff]  ;;  %v18672_v47 = vpack.c.bf16 %v6339_v32, %v6338_v29  ;;  %v6375_v29 = vld [vmem:[#allocation2 + $0x262] sm:$0xff]  ;;  %v6376_v32 = vld [vmem:[#allocation2 + $0x272] sm:$0xff] }
 0x746   :  { %v18677_v31 = vpack.c.bf16 %v6341_v59, %v6340_v40  ;;  %v6377_v40 = vld [vmem:[#allocation2 + $0x27a] sm:$0xff] }
 0x74c   :  { %14837 = vmatmul.mubr.msk.bf16.gmra.mrb[20].mxu1 %vm18503_vm3, %v14836_v61  ;;  %v14742_v61 = vld [vmem:[%s20725_s2 + $0xe8] sm:$0xff]  }
 0x74d   :  { %14841 = vmatprep.mubr.msk.bf16.mxu1 %vm18503_vm3, %v14840_v8  ;;  %v14743_v8 = vld [vmem:[%s20725_s2 + $0xf0] sm:$0xff]  }
 0x754   :  { %14845 = vmatmul.mubr.msk.bf16.gmra.mrb[24].mxu1 %vm18503_vm3, %v14844_v54  ;;  %v6343_v54 = vld [vmem:[#allocation2 + $0xb2] sm:$0xff] }
 0x755   :  { %14849 = vmatprep.mubr.msk.bf16.mxu1 %vm18503_vm3, %v14848_v37  ;;  %v6345_v37 = vld [vmem:[#allocation2 + $0xca] sm:$0xff]  ;;  %v18684_v45 = vpack.c.bf16 %v6343_v54, %v6342_v55  ;;  %v6379_v55 = vld [vmem:[#allocation2 + $0x292] sm:$0xff]  ;;  %v6380_v54 = vld [vmem:[#allocation2 + $0x2a2] sm:$0xff] }
 0x756   :  { %v18689_v62 = vpack.c.bf16 %v6345_v37, %v6344_v14  ;;  %v6381_v14 = vld [vmem:[#allocation2 + $0x2aa] sm:$0xff] }
 0x75c   :  { %14853 = vmatmul.mubr.msk.bf16.gmra.mrb[28].mxu1 %vm18503_vm3, %v14852_v51  ;;  %v14744_v51 = vld [vmem:[%s20725_s2 + $0xf8] sm:$0xff]  }
 0x75d   :  { %13021 = vmatprep.mubr.bf16.mxu1 %v5493_v44  ;;  %v14872_v44 = vpack.c.bf16 %v21158_v35, %v18184_v15  ;;  %v21162_v15 = vld [vmem:[#allocation15_spill] sm:$0xff] }
 0x75e   :  { %v14888_v63 = vpack.c.bf16 %v21162_v15, %v18239_v20  ;;  %v21166_v20 = vld [vmem:[#allocation45_spill] sm:$0xff]  ;;  %v6350_v35 = vld [vmem:[#allocation2 + $0x10a] sm:$0xff] }
 0x75f   :  { %v14904_v28 = vpack.c.bf16 %v21166_v20, %v18295_v41  ;;  %v6330_v41 = vld [vmem:[#allocation2 + $0x1a] sm:$0xff]  ;;  %v6356_v15 = vld [vmem:[#allocation2 + $0x152] sm:$0xff] }
 0x760   :  { %v18648_v48 = vpack.c.bf16 %v6331_v23, %v6330_v41  ;;  %v6367_v41 = vld [vmem:[#allocation2 + $0x202] sm:$0xff]  ;;  %v6368_v23 = vld [vmem:[#allocation2 + $0x212] sm:$0xff] }
 0x764   :  { %14857 = vmatmul.mubr.msk.bf16.gmra.mrb[32].mxu1 %vm18503_vm3, %v14856_v1  ;;  %v18696_v1 = vld [vmem:[%s20725_s2 + $0x100] sm:$0xff]  }
 0x765   :  { %14861 = vmatprep.mubr.msk.bf16.mxu1 %vm18503_vm3, %v14860_v11  ;;  %v6347_v11 = vld [vmem:[#allocation2 + $0xe2] sm:$0xff] }
 0x766   :  { %v18698_v53 = vpack.c.bf16 %v6347_v11, %v6346_v57  ;;  %v6382_v57 = vld [vmem:[#allocation2 + $0x2ba] sm:$0xff]  ;;  %v6383_v11 = vld [vmem:[#allocation2 + $0x2c2] sm:$0xff] }
 0x76c   :  { %14865 = vmatmul.mubr.msk.bf16.gmra.mrb[36].mxu1 %vm18503_vm3, %v14864_v6  ;;  %v6349_v6 = vld [vmem:[#allocation2 + $0xfa] sm:$0xff] }
 0x76d   :  { %14869 = vmatprep.mubr.msk.bf16.mxu1 %vm18503_vm3, %v14868_v17  ;;  %v18701_v17 = vpack.c.bf16 %v6349_v6, %v6348_v19  ;;  %v6384_v19 = vld [vmem:[#allocation2 + $0x2d2] sm:$0xff]  ;;  %v6385_v6 = vld [vmem:[#allocation2 + $0x2da] sm:$0xff] }
 0x774   :  { %14873 = vmatmul.mubr.msk.bf16.gmra.mrb[40].mxu1 %vm18503_vm3, %v14872_v44  ;;  %v6351_v44 = vld [vmem:[#allocation2 + $0x112] sm:$0xff] }
 0x775   :  { %14877 = vmatprep.mubr.msk.bf16.mxu1 %vm18503_vm3, %v14876_v0  ;;  %v6353_v0 = vld [vmem:[#allocation2 + $0x12a] sm:$0xff]  ;;  %v18705_v4 = vpack.c.bf16 %v6351_v44, %v6350_v35  ;;  %v18750_v35 = vpack.c.bf16 %v6383_v11, %v6382_v57  ;;  %v18752_v44 = vpack.c.bf16 %v6385_v6, %v6384_v19 }
 0x776   :  { %v14750_v11 = vld [vmem:[%s20725_s2 + $0x128] sm:$0xff]   ;;  %v14751_v6 = vld [vmem:[%s20725_s2 + $0x130] sm:$0xff]  }
 0x77c   :  { %14881 = vmatmul.mubr.msk.bf16.gmra.mrb[44].mxu1 %vm18503_vm3, %v14880_v21  ;;  %v18707_v21 = vpack.c.bf16 %v6353_v0, %v6352_v50  ;;  %v6386_v50 = vld [vmem:[#allocation2 + $0x2ea] sm:$0xff]  ;;  %v6387_v0 = vld [vmem:[#allocation2 + $0x2f2] sm:$0xff] }
 0x77d   :  { %14885 = vmatprep.mubr.msk.bf16.mxu1 %vm18503_vm3, %v14884_v46  ;;  %v6355_v46 = vld [vmem:[#allocation2 + $0x142] sm:$0xff] }
 0x77e   :  { %v18711_v12 = vpack.c.bf16 %v6355_v46, %v6354_v34  ;;  %v6388_v34 = vld [vmem:[#allocation2 + $0x302] sm:$0xff]  ;;  %v6389_v46 = vld [vmem:[#allocation2 + $0x30a] sm:$0xff] }
 0x784   :  { %14889 = vmatmul.mubr.msk.bf16.gmra.mrb[48].mxu1 %vm18503_vm3, %v14888_v63  ;;  %v6357_v63 = vld [vmem:[#allocation2 + $0x15a] sm:$0xff] }
 0x785   :  { %14893 = vmatprep.mubr.msk.bf16.mxu1 %vm18503_vm3, %v14892_v13  ;;  %v18713_v13 = vpack.c.bf16 %v6357_v63, %v6356_v15  ;;  %v18756_v15 = vpack.c.bf16 %v6387_v0, %v6386_v50  ;;  %v18758_v63 = vpack.c.bf16 %v6389_v46, %v6388_v34  ;;  %v6856_v50 = vld [vmem:[#allocation2 + $0xc0] sm:$0xff]  ;;  %v6857_v0 = vld [vmem:[#allocation2 + $0xc8] sm:$0xff]  ;;  %v6858_v34 = vld [vmem:[#allocation2 + $0xd8] sm:$0xff] }
 0x786   :  { %v6859_v46 = vld [vmem:[#allocation2 + $0xe0] sm:$0xff] }
 0x78c   :  { %14897 = vmatmul.mubr.msk.bf16.gmra.mrb[52].mxu1 %vm18503_vm3, %v14896_v26  ;;  %v6361_v26 = vld [vmem:[#allocation2 + $0x1ba] sm:$0xff] }
 0x78d   :  { %14901 = vmatprep.mubr.msk.bf16.mxu1 %vm18503_vm3, %v14900_v7  ;;  %v6359_v7 = vld [vmem:[#allocation2 + $0x172] sm:$0xff]  ;;  %v6408_v20 = vpack.c.bf16 %v6361_v26, %v6360_v24  ;;  %v6390_v24 = vld [vmem:[#allocation2 + $0x31a] sm:$0xff]  ;;  %v6391_v26 = vld [vmem:[#allocation2 + $0x322] sm:$0xff] }
 0x794   :  { %14905 = vmatmul.mubr.msk.bf16.gmra.mrb[56].mxu1 %vm18503_vm3, %v14904_v28  ;;  %v18717_v28 = vpack.c.bf16 %v6359_v7, %v6358_v16  ;;  %v6842_v16 = vld [vmem:[#allocation2 + $0x18] sm:$0xff]  ;;  %v6843_v7 = vld [vmem:[#allocation2 + $0x20] sm:$0xff] }
 0x795   :  { %14909 = vmatprep.mubr.msk.bf16.mxu1 %vm18503_vm3, %v14908_v3  ;;  %v6363_v3 = vld [vmem:[#allocation2 + $0x1d2] sm:$0xff] }
 0x79c   :  { %13050 = vmatmul.mubr.bf16.gmra.mrb[60].mxu1 %v5524_v60  ;;  %v6366_v60 = vld [vmem:[#allocation2 + $0x1fa] sm:$0xff] }
 0x79d   :  { %13069 = vmatprep.mubr.bf16.mxu1 %v6392_v56  ;;  %v18720_v56 = vpack.c.bf16 %v6363_v3, %v6362_v9  ;;  %v18726_v10 = vpack.c.bf16 %v6367_v41, %v6366_v60  ;;  %v6906_v9 = vpack.c.bf16 %v6843_v7, %v6842_v16  ;;  %v6844_v3 = vld [vmem:[#allocation2 + $0x30] sm:$0xff]  ;;  %v18807_v16 = vpack.c.bf16 %v6859_v46, %v6858_v34  ;;  %v18814_v7 = vld [vmem:[%s20725_s2 + $0x140] sm:$0xff]  }
 0x79e   :  { %v6847_v60 = vld [vmem:[#allocation2 + $0x50] sm:$0xff]  ;;  %v18765_v41 = vpack.c.bf16 %v6845_v30, %v6844_v3  ;;  %v6861_v3 = vld [vmem:[#allocation2 + $0xf8] sm:$0xff]  ;;  %v6862_v30 = vld [vmem:[#allocation2 + $0x108] sm:$0xff] }
 0x79f   :  { %v6875_v34 = vld [vmem:[#allocation2 + $0x1d0] sm:$0xff] }
 0x7a4   :  { %13070 = vmatmul.mubr.bf16.vlgmr.msra.gmra.mrb[0].mxu1 %v18648_v48 }
 0x7a5   :  { %13073 = vmatprep.mubr.bf16.mxu1 %v18653_v22  ;;  %13134 = vmatpush3.bf16.msra.mxu1 %v14737_v36  ;;  %v14741_v36 = vld [vmem:[%s20725_s2 + $0xe0] sm:$0xff]  }
 0x7a6   :  { %13135 = vmatprep.subr.bf16.mxu1 %v14738_v49 }
 0x7a9   :  { %13136 = vmatpush3.bf16.msra.mxu1 %v14738_v49  ;;  %v18728_v49 = vpack.c.bf16 %v6369_v43, %v6368_v23  ;;  %v14746_v23 = vld [vmem:[%s20725_s2 + $0x108] sm:$0xff]   ;;  %v18770_v43 = vpack.c.bf16 %v6847_v60, %v6846_v42  ;;  %v6863_v42 = vld [vmem:[#allocation2 + $0x110] sm:$0xff] }
 0x7aa   :  { %13137 = vmatprep.subr.bf16.mxu1 %v14739_v39 }
 0x7ac   :  { %13074 = vmatmul.mubr.bf16.gmra.mrb[4].mxu1 %v18660_v52 }
 0x7ad   :  { %13077 = vmatprep.mubr.bf16.mxu1 %v18665_v5  ;;  %13138 = vmatpush3.bf16.msra.mxu1 %v14739_v39  ;;  %v6370_v39 = vld [vmem:[#allocation2 + $0x22a] sm:$0xff] }
 0x7ae   :  { %13139 = vmatprep.subr.bf16.mxu1 %v14740_v27  ;;  %v18732_v25 = vpack.c.bf16 %v6371_v2, %v6370_v39  ;;  %v14747_v39 = vld [vmem:[%s20725_s2 + $0x110] sm:$0xff]   ;;  %v6848_v2 = vld [vmem:[#allocation2 + $0x60] sm:$0xff] }
 0x7b1   :  { %13140 = vmatpush3.bf16.msra.mxu1 %v14740_v27  ;;  %v18734_v27 = vpack.c.bf16 %v6373_v18, %v6372_v58  ;;  %v6849_v58 = vld [vmem:[#allocation2 + $0x68] sm:$0xff]  ;;  %v6850_v18 = vld [vmem:[#allocation2 + $0x78] sm:$0xff] }
 0x7b2   :  { %13141 = vmatprep.subr.bf16.mxu1 %v14741_v36 }
 0x7b4   :  { %13078 = vmatmul.mubr.bf16.gmra.mrb[8].mxu1 %v18672_v47 }
 0x7b5   :  { %13081 = vmatprep.mubr.bf16.mxu1 %v18677_v31  ;;  %13142 = vmatpush3.bf16.msra.mxu1 %v14741_v36  ;;  %v6374_v36 = vld [vmem:[#allocation2 + $0x25a] sm:$0xff] }
 0x7b6   :  { %13143 = vmatprep.subr.bf16.mxu1 %v14742_v61  ;;  %v18738_v59 = vpack.c.bf16 %v6375_v29, %v6374_v36  ;;  %v6851_v36 = vld [vmem:[#allocation2 + $0x80] sm:$0xff]  ;;  %v18778_v29 = vpack.c.bf16 %v6849_v58, %v6848_v2  ;;  %v6865_v2 = vld [vmem:[#allocation2 + $0x128] sm:$0xff]  ;;  %v6866_v58 = vld [vmem:[#allocation2 + $0x138] sm:$0xff] }
 0x7b9   :  { %13144 = vmatpush3.bf16.msra.mxu1 %v14742_v61  ;;  %v18740_v61 = vpack.c.bf16 %v6377_v40, %v6376_v32  ;;  %v14748_v32 = vld [vmem:[%s20725_s2 + $0x118] sm:$0xff]   ;;  %v18783_v40 = vpack.c.bf16 %v6851_v36, %v6850_v18  ;;  %v6867_v18 = vld [vmem:[#allocation2 + $0x140] sm:$0xff] }
 0x7ba   :  { %13145 = vmatprep.subr.bf16.mxu1 %v14743_v8 }
 0x7bc   :  { %13082 = vmatmul.mubr.bf16.gmra.mrb[12].mxu1 %v18684_v45 }
 0x7bd   :  { %13085 = vmatprep.mubr.bf16.mxu1 %v18689_v62  ;;  %13146 = vmatpush3.bf16.msra.mxu1 %v14743_v8  ;;  %v6378_v8 = vld [vmem:[#allocation2 + $0x28a] sm:$0xff] }
 0x7be   :  { %13147 = vmatprep.subr.bf16.mxu1 %v14744_v51  ;;  %v18744_v37 = vpack.c.bf16 %v6379_v55, %v6378_v8  ;;  %v6852_v8 = vld [vmem:[#allocation2 + $0x90] sm:$0xff]  ;;  %v6853_v55 = vld [vmem:[#allocation2 + $0x98] sm:$0xff] }
 0x7bf   :  { %v18790_v57 = vpack.c.bf16 %v6853_v55, %v6852_v8  ;;  %v6869_v8 = vld [vmem:[#allocation2 + $0x158] sm:$0xff]  ;;  %v6870_v55 = vld [vmem:[#allocation2 + $0x168] sm:$0xff] }
 0x7c1   :  { %13148 = vmatpush3.bf16.msra.mxu1 %v14744_v51  ;;  %v18746_v51 = vpack.c.bf16 %v6381_v14, %v6380_v54  ;;  %v6854_v54 = vld [vmem:[#allocation2 + $0xa8] sm:$0xff]  ;;  %v6855_v14 = vld [vmem:[#allocation2 + $0xb0] sm:$0xff] }
 0x7c2   :  { %13213 = vmatprep.subr.bf16.mxu1 %v18696_v1  ;;  %v18795_v19 = vpack.c.bf16 %v6855_v14, %v6854_v54  ;;  %v6871_v54 = vld [vmem:[#allocation2 + $0x170] sm:$0xff] }
 0x7c4   :  { %13086 = vmatmul.mubr.bf16.gmra.mrb[16].mxu1 %v18698_v53 }
 0x7c5   :  { %13089 = vmatprep.mubr.bf16.mxu1 %v18701_v17 }
 0x7cc   :  { %13090 = vmatmul.mubr.bf16.gmra.mrb[20].mxu1 %v18705_v4 }
 0x7cd   :  { %13093 = vmatprep.mubr.bf16.mxu1 %v18707_v21 }
 0x7d4   :  { %13094 = vmatmul.mubr.bf16.gmra.mrb[24].mxu1 %v18711_v12 }
 0x7d5   :  { %13097 = vmatprep.mubr.bf16.mxu1 %v18713_v13 }
 0x7dc   :  { %13098 = vmatmul.mubr.bf16.gmra.mrb[28].mxu1 %v18717_v28 }
 0x7dd   :  { %13101 = vmatprep.mubr.bf16.mxu1 %v6408_v20  ;;  %v18762_v20 = vpack.c.bf16 %v6391_v26, %v6390_v24  ;;  %v18802_v24 = vpack.c.bf16 %v6857_v0, %v6856_v50  ;;  %v14752_v26 = vld [vmem:[%s20725_s2 + $0x138] sm:$0xff]   ;;  %v6873_v50 = vld [vmem:[#allocation2 + $0x188] sm:$0xff] }
 0x7de   :  { %v6874_v0 = vld [vmem:[#allocation2 + $0x1c8] sm:$0xff] }
 0x7e4   :  { %13102 = vmatmul.mubr.bf16.gmra.mrb[32].mxu1 %v18720_v56 }
 0x7e5   :  { %13105 = vmatprep.mubr.bf16.mxu1 %v18722_v33 }
 0x7ec   :  { %13106 = vmatmul.mubr.bf16.gmra.mrb[36].mxu1 %v18726_v10 }
 0x7ed   :  { %13109 = vmatprep.mubr.bf16.mxu1 %v18728_v49 }
 0x7f4   :  { %13110 = vmatmul.mubr.bf16.gmra.mrb[40].mxu1 %v18732_v25 }
 0x7f5   :  { %13113 = vmatprep.mubr.bf16.mxu1 %v18734_v27 }
 0x7fc   :  { %13114 = vmatmul.mubr.bf16.gmra.mrb[44].mxu1 %v18738_v59 }
 0x7fd   :  { %13117 = vmatprep.mubr.bf16.mxu1 %v18740_v61 }
 0x804   :  { %13118 = vmatmul.mubr.bf16.gmra.mrb[48].mxu1 %v18744_v37 }
 0x805   :  { %13121 = vmatprep.mubr.bf16.mxu1 %v18746_v51 }
 0x80c   :  { %13122 = vmatmul.mubr.bf16.gmra.mrb[52].mxu1 %v18750_v35 }
 0x80d   :  { %13125 = vmatprep.mubr.bf16.mxu1 %v18752_v44 }
 0x814   :  { %13126 = vmatmul.mubr.bf16.gmra.mrb[56].mxu1 %v18756_v15 }
 0x815   :  { %13129 = vmatprep.mubr.bf16.mxu1 %v18758_v63 }
 0x81c   :  { %13130 = vmatmul.mubr.bf16.gmra.mrb[60].mxu1 %v18762_v20 }
 0x81d   :  { %13149 = vmatprep.mubr.bf16.mxu1 %v6906_v9  ;;  %v6860_v9 = vld [vmem:[#allocation2 + $0xf0] sm:$0xff] }
 0x81e   :  { %v18816_v60 = vpack.c.bf16 %v6861_v3, %v6860_v9  ;;  %v6876_v9 = vld [vmem:[#allocation2 + $0x1e0] sm:$0xff]  ;;  %v6877_v3 = vld [vmem:[#allocation2 + $0x1e8] sm:$0xff] }
 0x824   :  { %13150 = vmatmul.mubr.bf16.vlgmr.msra.gmra.mrb[0].mxu1 %v18765_v41 }
 0x825   :  { %13153 = vmatprep.mubr.bf16.mxu1 %v18770_v43  ;;  %13214 = vmatpush3.bf16.msra.mxu1 %v18696_v1  ;;  %v14749_v1 = vld [vmem:[%s20725_s2 + $0x120] sm:$0xff]  }
 0x826   :  { %13215 = vmatprep.subr.bf16.mxu1 %v14746_v23 }
 0x829   :  { %13216 = vmatpush3.bf16.msra.mxu1 %v14746_v23  ;;  %v18819_v23 = vpack.c.bf16 %v6863_v42, %v6862_v30  ;;  %v6878_v30 = vld [vmem:[#allocation2 + $0x1f8] sm:$0xff]  ;;  %v6879_v42 = vld [vmem:[#allocation2 + $0x200] sm:$0xff] }
 0x82a   :  { %13217 = vmatprep.subr.bf16.mxu1 %v14747_v39 }
 0x82c   :  { %13154 = vmatmul.mubr.bf16.gmra.mrb[4].mxu1 %v18778_v29 }
 0x82d   :  { %13157 = vmatprep.mubr.bf16.mxu1 %v18783_v40  ;;  %13218 = vmatpush3.bf16.msra.mxu1 %v14747_v39  ;;  %v6864_v39 = vld [vmem:[#allocation2 + $0x120] sm:$0xff] }
 0x82e   :  { %13219 = vmatprep.subr.bf16.mxu1 %v14748_v32  ;;  %v18823_v36 = vpack.c.bf16 %v6865_v2, %v6864_v39  ;;  %v18838_v39 = vpack.c.bf16 %v6877_v3, %v6876_v9  ;;  %v18840_v2 = vpack.c.bf16 %v6879_v42, %v6878_v30  ;;  %v6888_v3 = vld [vmem:[#allocation2 + $0x270] sm:$0xff]  ;;  %v6889_v30 = vld [vmem:[#allocation2 + $0x278] sm:$0xff]  ;;  %v6890_v42 = vld [vmem:[#allocation2 + $0x288] sm:$0xff] }
 0x831   :  { %13220 = vmatpush3.bf16.msra.mxu1 %v14748_v32  ;;  %v18825_v32 = vpack.c.bf16 %v6867_v18, %v6866_v58  ;;  %v6880_v58 = vld [vmem:[#allocation2 + $0x210] sm:$0xff]  ;;  %v6881_v18 = vld [vmem:[#allocation2 + $0x218] sm:$0xff] }
 0x832   :  { %13221 = vmatprep.subr.bf16.mxu1 %v14749_v1 }
 0x834   :  { %13158 = vmatmul.mubr.bf16.gmra.mrb[8].mxu1 %v18790_v57 }
 0x835   :  { %13161 = vmatprep.mubr.bf16.mxu1 %v18795_v19  ;;  %13222 = vmatpush3.bf16.msra.mxu1 %v14749_v1  ;;  %v6868_v1 = vld [vmem:[#allocation2 + $0x150] sm:$0xff] }
 0x836   :  { %13223 = vmatprep.subr.bf16.mxu1 %v14750_v11  ;;  %v18829_v14 = vpack.c.bf16 %v6869_v8, %v6868_v1  ;;  %v6882_v1 = vld [vmem:[#allocation2 + $0x228] sm:$0xff]  ;;  %v6883_v8 = vld [vmem:[#allocation2 + $0x230] sm:$0xff] }
 0x839   :  { %13224 = vmatpush3.bf16.msra.mxu1 %v14750_v11  ;;  %v18831_v11 = vpack.c.bf16 %v6871_v54, %v6870_v55  ;;  %v18844_v55 = vpack.c.bf16 %v6881_v18, %v6880_v58  ;;  %v18846_v54 = vpack.c.bf16 %v6883_v8, %v6882_v1  ;;  %v6891_v58 = vld [vmem:[#allocation2 + $0x290] sm:$0xff]  ;;  %v18856_v18 = vpack.c.bf16 %v6889_v30, %v6888_v3  ;;  %v6892_v8 = vld [vmem:[#allocation2 + $0x2a0] sm:$0xff]  ;;  %v6897_v30 = vld [vmem:[#allocation2 + $0x2d8] sm:$0xff] }
 0x83a   :  { %13225 = vmatprep.subr.bf16.mxu1 %v14751_v6  ;;  %v18858_v1 = vpack.c.bf16 %v6891_v58, %v6890_v42  ;;  %v6896_v3 = vld [vmem:[#allocation2 + $0x2d0] sm:$0xff]  ;;  %v6898_v42 = vld [vmem:[#allocation2 + $0x2e8] sm:$0xff] }
 0x83b   :  { %21168 = vst [vmem:[#allocation29_spill] sm:$0xff] %v18846_v54  ;;  %21171 = vst [vmem:[#allocation36_spill] sm:$0xff] %v18856_v18  ;;  %v6899_v58 = vld [vmem:[#allocation2 + $0x2f0] sm:$0xff] }
 0x83c   :  { %13162 = vmatmul.mubr.bf16.gmra.mrb[12].mxu1 %v18802_v24  ;;  %21172 = vst [vmem:[#allocation37_spill] sm:$0xff] %v18858_v1 }
 0x83d   :  { %13165 = vmatprep.mubr.bf16.mxu1 %v18807_v16  ;;  %13226 = vmatpush3.bf16.msra.mxu1 %v14751_v6  ;;  %v6872_v6 = vld [vmem:[#allocation2 + $0x180] sm:$0xff] }
 0x83e   :  { %13227 = vmatprep.subr.bf16.mxu1 %v14752_v26  ;;  %v18835_v46 = vpack.c.bf16 %v6873_v50, %v6872_v6  ;;  %v6884_v6 = vld [vmem:[#allocation2 + $0x240] sm:$0xff]  ;;  %v6885_v50 = vld [vmem:[#allocation2 + $0x248] sm:$0xff] }
 0x841   :  { %13228 = vmatpush3.bf16.msra.mxu1 %v14752_v26  ;;  %v6922_v26 = vpack.c.bf16 %v6875_v34, %v6874_v0  ;;  %v6886_v0 = vld [vmem:[#allocation2 + $0x258] sm:$0xff]  ;;  %v6887_v34 = vld [vmem:[#allocation2 + $0x260] sm:$0xff] }
 0x842   :  { %13293 = vmatprep.subr.bf16.mxu1 %v18814_v7  ;;  %v18852_v9 = vpack.c.bf16 %v6887_v34, %v6886_v0  ;;  %v6895_v0 = vld [vmem:[#allocation2 + $0x2c0] sm:$0xff] }
 0x844   :  { %13166 = vmatmul.mubr.bf16.gmra.mrb[16].mxu1 %v18816_v60  ;;  %21170 = vst [vmem:[#allocation34_spill] sm:$0xff] %v18852_v9 }
 0x845   :  { %13169 = vmatprep.mubr.bf16.mxu1 %v18819_v23 }
 0x84c   :  { %13170 = vmatmul.mubr.bf16.gmra.mrb[20].mxu1 %v18823_v36 }
 0x84d   :  { %13173 = vmatprep.mubr.bf16.mxu1 %v18825_v32 }
 0x854   :  { %13174 = vmatmul.mubr.bf16.gmra.mrb[24].mxu1 %v18829_v14 }
 0x855   :  { %13177 = vmatprep.mubr.bf16.mxu1 %v18831_v11 }
 0x85c   :  { %13178 = vmatmul.mubr.bf16.gmra.mrb[28].mxu1 %v18835_v46 }
 0x85d   :  { %13181 = vmatprep.mubr.bf16.mxu1 %v6922_v26  ;;  %v18850_v26 = vpack.c.bf16 %v6885_v50, %v6884_v6  ;;  %v6893_v6 = vld [vmem:[#allocation2 + $0x2a8] sm:$0xff]  ;;  %v6894_v50 = vld [vmem:[#allocation2 + $0x2b8] sm:$0xff] }
 0x85e   :  { %v18862_v34 = vpack.c.bf16 %v6893_v6, %v6892_v8  ;;  %v6900_v8 = vld [vmem:[#allocation2 + $0x300] sm:$0xff]  ;;  %v6901_v6 = vld [vmem:[#allocation2 + $0x308] sm:$0xff] }
 0x85f   :  { %21169 = vst [vmem:[#allocation31_spill] sm:$0xff] %v18850_v26 }
 0x860   :  { %21173 = vst [vmem:[#allocation9_spill] sm:$0xff] %v18862_v34 }
 0x864   :  { %13182 = vmatmul.mubr.bf16.gmra.mrb[32].mxu1 %v18838_v39 }
 0x865   :  { %13185 = vmatprep.mubr.bf16.mxu1 %v18840_v2 }
 0x86c   :  { %13186 = vmatmul.mubr.bf16.gmra.mrb[36].mxu1 %v18844_v55 }
 0x86d   :  { %13189 = vmatprep.mubr.bf16.mxu1 %v18846_v54 }
 0x874   :  { %13190 = vmatmul.mubr.bf16.gmra.mrb[40].mxu1 %v18850_v26  ;;  %v18864_v26 = vpack.c.bf16 %v6895_v0, %v6894_v50  ;;  %v18874_v50 = vld [vmem:[#allocation2 + $0x318] sm:$0xff]  ;;  %v18876_v0 = vpack.c.bf16 %v6901_v6, %v6900_v8  ;;  %v7360_v8 = vld [vmem:[#allocation2 + $0x49] sm:$0xff] }
 0x875   :  { %13193 = vmatprep.mubr.bf16.mxu1 %v18852_v9  ;;  %v18868_v9 = vpack.c.bf16 %v6897_v30, %v6896_v3  ;;  %21177 = vst [vmem:[#allocation18_spill] sm:$0xff] %v18874_v50  ;;  %v6904_v3 = vld [vmem:[#allocation2 + $0x330] sm:$0xff]  ;;  %v6905_v30 = vld [vmem:[#allocation2 + $0x338] sm:$0xff] }
 0x876   :  { %21174 = vst [vmem:[#allocation8_spill] sm:$0xff] %v18864_v26  ;;  %v7361_v6 = vld [vmem:[#allocation2 + $0x51] sm:$0xff] }
 0x877   :  { %21175 = vst [vmem:[#allocation40_spill] sm:$0xff] %v18868_v9 }
 0x87c   :  { %13194 = vmatmul.mubr.bf16.gmra.mrb[44].mxu1 %v18856_v18  ;;  %v18870_v18 = vpack.c.bf16 %v6899_v58, %v6898_v42  ;;  %v7356_v42 = vld [vmem:[#allocation2 + $0x19] sm:$0xff]  ;;  %v7357_v58 = vld [vmem:[#allocation2 + $0x21] sm:$0xff] }
 0x87d   :  { %13197 = vmatprep.mubr.bf16.mxu1 %v18858_v1  ;;  %v7359_v1 = vld [vmem:[#allocation2 + $0x39] sm:$0xff] }
 0x87e   :  { %21176 = vst [vmem:[#allocation41_spill] sm:$0xff] %v18870_v18 }
 0x884   :  { %13198 = vmatmul.mubr.bf16.gmra.mrb[48].mxu1 %v18862_v34  ;;  %v18881_v34 = vpack.c.bf16 %v6905_v30, %v6904_v3  ;;  %v7362_v3 = vld [vmem:[#allocation2 + $0x61] sm:$0xff] }
 0x885   :  { %13201 = vmatprep.mubr.bf16.mxu1 %v18864_v26  ;;  %v6936_v26 = vpack.c.bf16 %v18645_v38, %v18874_v50  ;;  %v14754_v38 = vld [vmem:[%s20725_s2 + $0x148] sm:$0xff]  }
 0x886   :  { %21178 = vst [vmem:[#allocation21_spill] sm:$0xff] %v18881_v34  ;;  %v7365_v30 = vld [vmem:[#allocation2 + $0x81] sm:$0xff]  ;;  %v7391_v50 = vld [vmem:[#allocation2 + $0x1e9] sm:$0xff] }
 0x88c   :  { %13202 = vmatmul.mubr.bf16.gmra.mrb[52].mxu1 %v18868_v9  ;;  %v7420_v9 = vpack.c.bf16 %v7357_v58, %v7356_v42  ;;  %v14756_v58 = vld [vmem:[%s20725_s2 + $0x158] sm:$0xff]  }
 0x88d   :  { %13205 = vmatprep.mubr.bf16.mxu1 %v18870_v18  ;;  %v7358_v18 = vld [vmem:[#allocation2 + $0x31] sm:$0xff] }
 0x88e   :  { %v18884_v54 = vpack.c.bf16 %v7359_v1, %v7358_v18  ;;  %v7363_v18 = vld [vmem:[#allocation2 + $0x69] sm:$0xff]  ;;  %v7364_v1 = vld [vmem:[#allocation2 + $0x79] sm:$0xff] }
 0x88f   :  { %v18897_v42 = vpack.c.bf16 %v7363_v18, %v7362_v3  ;;  %v7368_v3 = vld [vmem:[#allocation2 + $0xa9] sm:$0xff]  ;;  %v7369_v18 = vld [vmem:[#allocation2 + $0xb1] sm:$0xff] }
 0x890   :  { %21179 = vst [vmem:[#allocation23_spill] sm:$0xff] %v18884_v54 }
 0x891   :  { %21181 = vst [vmem:[#allocation7_spill] sm:$0xff] %v18897_v42 }
 0x894   :  { %13206 = vmatmul.mubr.bf16.gmra.mrb[56].mxu1 %v18876_v0 }
 0x895   :  { %13209 = vmatprep.mubr.bf16.mxu1 %v6936_v26  ;;  %v18889_v26 = vpack.c.bf16 %v7361_v6, %v7360_v8  ;;  %v18902_v8 = vpack.c.bf16 %v7365_v30, %v7364_v1  ;;  %v7366_v6 = vld [vmem:[#allocation2 + $0x91] sm:$0xff]  ;;  %v14758_v1 = vld [vmem:[%s20725_s2 + $0x168] sm:$0xff]   ;;  %v18914_v30 = vpack.c.bf16 %v7369_v18, %v7368_v3 }
 0x896   :  { %v14760_v3 = vld [vmem:[%s20725_s2 + $0x178] sm:$0xff]  }
 0x897   :  { %21180 = vst [vmem:[#allocation24_spill] sm:$0xff] %v18889_v26  ;;  %21182 = vst [vmem:[#allocation22_spill] sm:$0xff] %v18902_v8 }
 0x898   :  { %21184 = vst [vmem:[#allocation16_spill] sm:$0xff] %v18914_v30 }
 0x89c   :  { %13210 = vmatmul.mubr.bf16.gmra.mrb[60].mxu1 %v18881_v34 }
 0x89d   :  { %13229 = vmatprep.mubr.bf16.mxu1 %v7420_v9  ;;  %v14755_v9 = vld [vmem:[%s20725_s2 + $0x150] sm:$0xff]  }
 0x8a4   :  { %13230 = vmatmul.mubr.bf16.vlgmr.msra.gmra.mrb[0].mxu1 %v18884_v54 }
 0x8a5   :  { %13233 = vmatprep.mubr.bf16.mxu1 %v18889_v26  ;;  %13294 = vmatpush3.bf16.msra.mxu1 %v18814_v7  ;;  %v14757_v7 = vld [vmem:[%s20725_s2 + $0x160] sm:$0xff]  }
 0x8a6   :  { %13295 = vmatprep.subr.bf16.mxu1 %v14754_v38 }
 0x8a9   :  { %13296 = vmatpush3.bf16.msra.mxu1 %v14754_v38  ;;  %v7367_v38 = vld [vmem:[#allocation2 + $0x99] sm:$0xff] }
 0x8aa   :  { %13297 = vmatprep.subr.bf16.mxu1 %v14755_v9  ;;  %v18909_v26 = vpack.c.bf16 %v7367_v38, %v7366_v6  ;;  %v7371_v6 = vld [vmem:[#allocation2 + $0xc9] sm:$0xff]  ;;  %v7372_v38 = vld [vmem:[#allocation2 + $0xd9] sm:$0xff] }
 0x8ac   :  { %13234 = vmatmul.mubr.bf16.gmra.mrb[4].mxu1 %v18897_v42  ;;  %21183 = vst [vmem:[#allocation17_spill] sm:$0xff] %v18909_v26 }
 0x8ad   :  { %13237 = vmatprep.mubr.bf16.mxu1 %v18902_v8  ;;  %13298 = vmatpush3.bf16.msra.mxu1 %v14755_v9  ;;  %v14759_v9 = vld [vmem:[%s20725_s2 + $0x170] sm:$0xff]   ;;  %v7373_v8 = vld [vmem:[#allocation2 + $0xe1] sm:$0xff] }
 0x8ae   :  { %13299 = vmatprep.subr.bf16.mxu1 %v14756_v58  ;;  %v18926_v18 = vpack.c.bf16 %v7373_v8, %v7372_v38  ;;  %v7379_v38 = vld [vmem:[#allocation2 + $0x129] sm:$0xff] }
 0x8b0   :  { %21186 = vst [vmem:[#allocation27_spill] sm:$0xff] %v18926_v18 }
 0x8b1   :  { %13300 = vmatpush3.bf16.msra.mxu1 %v14756_v58  ;;  %v7370_v58 = vld [vmem:[#allocation2 + $0xc1] sm:$0xff] }
 0x8b2   :  { %13301 = vmatprep.subr.bf16.mxu1 %v14757_v7  ;;  %v18921_v42 = vpack.c.bf16 %v7371_v6, %v7370_v58  ;;  %v7375_v58 = vld [vmem:[#allocation2 + $0xf9] sm:$0xff]  ;;  %v7376_v6 = vld [vmem:[#allocation2 + $0x109] sm:$0xff] }
 0x8b4   :  { %13238 = vmatmul.mubr.bf16.gmra.mrb[8].mxu1 %v18909_v26  ;;  %21185 = vst [vmem:[#allocation26_spill] sm:$0xff] %v18921_v42 }
 0x8b5   :  { %13241 = vmatprep.mubr.bf16.mxu1 %v18914_v30  ;;  %13302 = vmatpush3.bf16.msra.mxu1 %v14757_v7  ;;  %v18933_v7 = vld [vmem:[%s20725_s2 + $0x180] sm:$0xff]   ;;  %v7377_v30 = vld [vmem:[#allocation2 + $0x111] sm:$0xff] }
 0x8b6   :  { %13303 = vmatprep.subr.bf16.mxu1 %v14758_v1  ;;  %v18938_v8 = vpack.c.bf16 %v7377_v30, %v7376_v6  ;;  %v7384_v30 = vld [vmem:[#allocation2 + $0x169] sm:$0xff] }
 0x8b8   :  { %21188 = vst [vmem:[#allocation20_spill] sm:$0xff] %v18938_v8 }
 0x8b9   :  { %13304 = vmatpush3.bf16.msra.mxu1 %v14758_v1  ;;  %v7374_v1 = vld [vmem:[#allocation2 + $0xf1] sm:$0xff] }
 0x8ba   :  { %13305 = vmatprep.subr.bf16.mxu1 %v14759_v9  ;;  %v18935_v26 = vpack.c.bf16 %v7375_v58, %v7374_v1  ;;  %v7383_v1 = vld [vmem:[#allocation2 + $0x159] sm:$0xff]  ;;  %v7385_v58 = vld [vmem:[#allocation2 + $0x171] sm:$0xff] }
 0x8bc   :  { %13242 = vmatmul.mubr.bf16.gmra.mrb[12].mxu1 %v18921_v42  ;;  %21187 = vst [vmem:[#allocation19_spill] sm:$0xff] %v18935_v26  ;;  %v7381_v42 = vld [vmem:[#allocation2 + $0x141] sm:$0xff] }
 0x8bd   :  { %13245 = vmatprep.mubr.bf16.mxu1 %v18926_v18  ;;  %13306 = vmatpush3.bf16.msra.mxu1 %v14759_v9  ;;  %v7378_v9 = vld [vmem:[#allocation2 + $0x121] sm:$0xff]  ;;  %v7380_v18 = vld [vmem:[#allocation2 + $0x139] sm:$0xff] }
 0x8be   :  { %13307 = vmatprep.subr.bf16.mxu1 %v14760_v3  ;;  %v18942_v54 = vpack.c.bf16 %v7379_v38, %v7378_v9  ;;  %v18944_v34 = vpack.c.bf16 %v7381_v42, %v7380_v18  ;;  %v7386_v9 = vld [vmem:[#allocation2 + $0x181] sm:$0xff]  ;;  %v7387_v38 = vld [vmem:[#allocation2 + $0x189] sm:$0xff]  ;;  %v7389_v18 = vld [vmem:[#allocation2 + $0x1d1] sm:$0xff] }
 0x8bf   :  { %v7388_v42 = vld [vmem:[#allocation2 + $0x1c9] sm:$0xff] }
 0x8c0   :  { %21189 = vst [vmem:[#allocation28_spill] sm:$0xff] %v18942_v54  ;;  %21190 = vst [vmem:[#allocation30_spill] sm:$0xff] %v18944_v34 }
 0x8c1   :  { %13308 = vmatpush3.bf16.msra.mxu1 %v14760_v3  ;;  %v7382_v3 = vld [vmem:[#allocation2 + $0x151] sm:$0xff] }
 0x8c2   :  { %13373 = vmatprep.subr.bf16.mxu1 %v18933_v7  ;;  %v18948_v6 = vpack.c.bf16 %v7383_v1, %v7382_v3  ;;  %v7392_v3 = vld [vmem:[#allocation2 + $0x1f9] sm:$0xff]  ;;  %v7393_v1 = vld [vmem:[#allocation2 + $0x201] sm:$0xff] }
 0x8c4   :  { %13246 = vmatmul.mubr.bf16.gmra.mrb[16].mxu1 %v18935_v26  ;;  %21191 = vst [vmem:[#allocation32_spill] sm:$0xff] %v18948_v6  ;;  %v18950_v26 = vpack.c.bf16 %v7385_v58, %v7384_v30  ;;  %v18959_v58 = vpack.c.bf16 %v7393_v1, %v7392_v3  ;;  %v7401_v3 = vld [vmem:[#allocation2 + $0x261] sm:$0xff] }
 0x8c5   :  { %13249 = vmatprep.mubr.bf16.mxu1 %v18938_v8  ;;  %v18954_v8 = vpack.c.bf16 %v7387_v38, %v7386_v9  ;;  %v7396_v9 = vld [vmem:[#allocation2 + $0x229] sm:$0xff]  ;;  %v7397_v38 = vld [vmem:[#allocation2 + $0x231] sm:$0xff] }
 0x8c6   :  { %21192 = vst [vmem:[#allocation33_spill] sm:$0xff] %v18950_v26  ;;  %21194 = vst [vmem:[#allocation6_spill] sm:$0xff] %v18959_v58 }
 0x8cc   :  { %13250 = vmatmul.mubr.bf16.gmra.mrb[20].mxu1 %v18942_v54  ;;  %v7436_v54 = vpack.c.bf16 %v7389_v18, %v7388_v42  ;;  %v18965_v18 = vpack.c.bf16 %v7397_v38, %v7396_v9  ;;  %v7404_v9 = vld [vmem:[#allocation2 + $0x289] sm:$0xff]  ;;  %v7405_v38 = vld [vmem:[#allocation2 + $0x291] sm:$0xff] }
 0x8cd   :  { %13253 = vmatprep.mubr.bf16.mxu1 %v18944_v34  ;;  %v7390_v34 = vld [vmem:[#allocation2 + $0x1e1] sm:$0xff] }
 0x8ce   :  { %v18957_v30 = vpack.c.bf16 %v7391_v50, %v7390_v34  ;;  %21196 = vst [vmem:[#allocation39_spill] sm:$0xff] %v18965_v18  ;;  %v7399_v34 = vld [vmem:[#allocation2 + $0x249] sm:$0xff]  ;;  %v7400_v50 = vld [vmem:[#allocation2 + $0x259] sm:$0xff] }
 0x8d0   :  { %21193 = vst [vmem:[#allocation35_spill] sm:$0xff] %v18957_v30 }
 0x8d4   :  { %13254 = vmatmul.mubr.bf16.gmra.mrb[24].mxu1 %v18948_v6  ;;  %v7395_v6 = vld [vmem:[#allocation2 + $0x219] sm:$0xff] }
 0x8d5   :  { %13257 = vmatprep.mubr.bf16.mxu1 %v18950_v26  ;;  %v7394_v26 = vld [vmem:[#allocation2 + $0x211] sm:$0xff] }
 0x8d6   :  { %v18963_v42 = vpack.c.bf16 %v7395_v6, %v7394_v26  ;;  %v7402_v26 = vld [vmem:[#allocation2 + $0x271] sm:$0xff]  ;;  %v7403_v6 = vld [vmem:[#allocation2 + $0x279] sm:$0xff] }
 0x8d8   :  { %21195 = vst [vmem:[#allocation38_spill] sm:$0xff] %v18963_v42 }
 0x8dc   :  { %13258 = vmatmul.mubr.bf16.gmra.mrb[28].mxu1 %v18954_v8 }
 0x8dd   :  { %13261 = vmatprep.mubr.bf16.mxu1 %v7436_v54  ;;  %v7398_v54 = vld [vmem:[#allocation2 + $0x241] sm:$0xff] }
 0x8de   :  { %v18969_v1 = vpack.c.bf16 %v7399_v34, %v7398_v54  ;;  %v7406_v54 = vld [vmem:[#allocation2 + $0x2a1] sm:$0xff]  ;;  %v7407_v34 = vld [vmem:[#allocation2 + $0x2a9] sm:$0xff] }
 0x8e0   :  { %21197 = vst [vmem:[#allocation42_spill] sm:$0xff] %v18969_v1 }
 0x8e4   :  { %13262 = vmatmul.mubr.bf16.gmra.mrb[32].mxu1 %v18957_v30  ;;  %v18971_v30 = vpack.c.bf16 %v7401_v3, %v7400_v50  ;;  %v7408_v50 = vld [vmem:[#allocation2 + $0x2b9] sm:$0xff]  ;;  %v7409_v3 = vld [vmem:[#allocation2 + $0x2c1] sm:$0xff] }
 0x8e5   :  { %13265 = vmatprep.mubr.bf16.mxu1 %v18959_v58  ;;  %v18975_v58 = vpack.c.bf16 %v7403_v6, %v7402_v26  ;;  %v7410_v26 = vld [vmem:[#allocation2 + $0x2d1] sm:$0xff]  ;;  %v7411_v6 = vld [vmem:[#allocation2 + $0x2d9] sm:$0xff] }
 0x8e6   :  { %21198 = vst [vmem:[#allocation11_spill] sm:$0xff] %v18971_v30 }
 0x8e7   :  { %21199 = vst [vmem:[#allocation13_spill] sm:$0xff] %v18975_v58 }
 0x8ec   :  { %13266 = vmatmul.mubr.bf16.gmra.mrb[36].mxu1 %v18963_v42  ;;  %v18977_v42 = vpack.c.bf16 %v7405_v38, %v7404_v9  ;;  %v7412_v9 = vld [vmem:[#allocation2 + $0x2e9] sm:$0xff]  ;;  %v7413_v38 = vld [vmem:[#allocation2 + $0x2f1] sm:$0xff] }
 0x8ed   :  { %13269 = vmatprep.mubr.bf16.mxu1 %v18965_v18  ;;  %v18981_v18 = vpack.c.bf16 %v7407_v34, %v7406_v54  ;;  %v7414_v54 = vld [vmem:[#allocation2 + $0x301] sm:$0xff]  ;;  %v7415_v34 = vld [vmem:[#allocation2 + $0x309] sm:$0xff] }
 0x8ee   :  { %21200 = vst [vmem:[#allocation10_spill] sm:$0xff] %v18977_v42 }
 0x8ef   :  { %21201 = vst [vmem:[#allocation12_spill] sm:$0xff] %v18981_v18 }
 0x8f4   :  { %13270 = vmatmul.mubr.bf16.gmra.mrb[40].mxu1 %v18969_v1  ;;  %v18983_v1 = vpack.c.bf16 %v7409_v3, %v7408_v50  ;;  %v7416_v50 = vld [vmem:[#allocation2 + $0x319] sm:$0xff]  ;;  %v7417_v3 = vld [vmem:[#allocation2 + $0x321] sm:$0xff] }
 0x8f5   :  { %13273 = vmatprep.mubr.bf16.mxu1 %v18971_v30  ;;  %v18987_v30 = vpack.c.bf16 %v7411_v6, %v7410_v26  ;;  %v7418_v26 = vld [vmem:[#allocation2 + $0x331] sm:$0xff]  ;;  %v7419_v6 = vld [vmem:[#allocation2 + $0x339] sm:$0xff] }
 0x8fc   :  { %13274 = vmatmul.mubr.bf16.gmra.mrb[44].mxu1 %v18975_v58  ;;  %v18989_v58 = vpack.c.bf16 %v7413_v38, %v7412_v9  ;;  %v18999_v9 = vpack.c.bf16 %v7419_v6, %v7418_v26  ;;  %v14762_v38 = vld [vmem:[%s20725_s2 + $0x188] sm:$0xff]   ;;  %v21224_v26 = vld [vmem:[#allocation30_spill] sm:$0xff]  ;;  %v21225_v6 = vld [vmem:[#allocation32_spill] sm:$0xff] }
 0x8fd   :  { %13277 = vmatprep.mubr.bf16.mxu1 %v18977_v42  ;;  %v18993_v42 = vpack.c.bf16 %v7415_v34, %v7414_v54  ;;  %v14763_v54 = vld [vmem:[%s20725_s2 + $0x190] sm:$0xff]   ;;  %v21221_v34 = vld [vmem:[#allocation19_spill] sm:$0xff] }
 0x904   :  { %13278 = vmatmul.mubr.bf16.gmra.mrb[48].mxu1 %v18981_v18  ;;  %v18995_v18 = vpack.c.bf16 %v7417_v3, %v7416_v50  ;;  %v21222_v50 = vld [vmem:[#allocation20_spill] sm:$0xff] }
 0x905   :  { %13281 = vmatprep.mubr.bf16.mxu1 %v18983_v1  ;;  %v21223_v3 = vld [vmem:[#allocation28_spill] sm:$0xff] }
 0x90c   :  { %13282 = vmatmul.mubr.bf16.gmra.mrb[52].mxu1 %v18987_v30 }
 0x90d   :  { %13285 = vmatprep.mubr.bf16.mxu1 %v18989_v58 }
 0x914   :  { %13286 = vmatmul.mubr.bf16.gmra.mrb[56].mxu1 %v18993_v42 }
 0x915   :  { %13289 = vmatprep.mubr.bf16.mxu1 %v18995_v18 }
 0x91c   :  { %13290 = vmatmul.mubr.bf16.gmra.mrb[60].mxu1 %v18999_v9 }
 0x91d   :  { %13309 = vmatprep.mubr.bf16.mxu1 %v18648_v48  ;;  %v14764_v48 = vld [vmem:[%s20725_s2 + $0x198] sm:$0xff]  }
 0x924   :  { %13310 = vmatmul.mubr.bf16.vlgmr.msra.gmra.mrb[0].mxu1 %v18653_v22  ;;  %v14765_v22 = vld [vmem:[%s20725_s2 + $0x1a0] sm:$0xff]  }
 0x925   :  { %13313 = vmatprep.mubr.bf16.mxu1 %v18660_v52  ;;  %13374 = vmatpush3.bf16.msra.mxu1 %v18933_v7  ;;  %v14766_v52 = vld [vmem:[%s20725_s2 + $0x1a8] sm:$0xff]  }
 0x926   :  { %13375 = vmatprep.subr.bf16.mxu1 %v14762_v38  ;;  %v21220_v7 = vld [vmem:[#allocation27_spill] sm:$0xff] }
 0x929   :  { %13376 = vmatpush3.bf16.msra.mxu1 %v14762_v38  ;;  %v21226_v38 = vld [vmem:[#allocation33_spill] sm:$0xff] }
 0x92a   :  { %13377 = vmatprep.subr.bf16.mxu1 %v14763_v54 }
 0x92c   :  { %13314 = vmatmul.mubr.bf16.gmra.mrb[4].mxu1 %v18665_v5  ;;  %v14767_v5 = vld [vmem:[%s20725_s2 + $0x1b0] sm:$0xff]  }
 0x92d   :  { %13317 = vmatprep.mubr.bf16.mxu1 %v18672_v47  ;;  %13378 = vmatpush3.bf16.msra.mxu1 %v14763_v54  ;;  %v14768_v47 = vld [vmem:[%s20725_s2 + $0x1b8] sm:$0xff]  }
 0x92e   :  { %13379 = vmatprep.subr.bf16.mxu1 %v14764_v48  ;;  %v8929_v54 = vld [vmem:[#allocation2 + $0x199] sm:$0xff] }
 0x931   :  { %13380 = vmatpush3.bf16.msra.mxu1 %v14764_v48  ;;  %v8930_v48 = vld [vmem:[#allocation2 + $0x1a1] sm:$0xff] }
 0x932   :  { %13381 = vmatprep.subr.bf16.mxu1 %v14765_v22 }
 0x934   :  { %13318 = vmatmul.mubr.bf16.gmra.mrb[8].mxu1 %v18677_v31  ;;  %v14769_v31 = vld [vmem:[%s20725_s2 + $0x1c0] sm:$0xff]  }
 0x935   :  { %13321 = vmatprep.mubr.bf16.mxu1 %v18684_v45  ;;  %13382 = vmatpush3.bf16.msra.mxu1 %v14765_v22  ;;  %v7900_v45 = vld [vmem:[#allocation2 + $0x182] sm:$0xff]  ;;  %v8978_v22 = vpack.c.bf16 %v8930_v48, %v8929_v54  ;;  %v9447_v48 = vld [vmem:[#allocation2 + $0x1fa] sm:$0xff] }
 0x936   :  { %13383 = vmatprep.subr.bf16.mxu1 %v14766_v52 }
 0x939   :  { %13384 = vmatpush3.bf16.msra.mxu1 %v14766_v52  ;;  %v21227_v52 = vld [vmem:[#allocation35_spill] sm:$0xff] }
 0x93a   :  { %13385 = vmatprep.subr.bf16.mxu1 %v14767_v5 }
 0x93c   :  { %13322 = vmatmul.mubr.bf16.gmra.mrb[12].mxu1 %v18689_v62  ;;  %v7901_v62 = vld [vmem:[#allocation2 + $0x18a] sm:$0xff] }
 0x93d   :  { %13325 = vmatprep.mubr.bf16.mxu1 %v18698_v53  ;;  %13386 = vmatpush3.bf16.msra.mxu1 %v14767_v5  ;;  %v19042_v53 = vpack.c.bf16 %v7901_v62, %v7900_v45  ;;  %v21228_v5 = vld [vmem:[#allocation6_spill] sm:$0xff]  ;;  %v21232_v62 = vld [vmem:[#allocation11_spill] sm:$0xff] }
 0x93e   :  { %13387 = vmatprep.subr.bf16.mxu1 %v14768_v47  ;;  %v21231_v45 = vld [vmem:[#allocation42_spill] sm:$0xff] }
 0x941   :  { %13388 = vmatpush3.bf16.msra.mxu1 %v14768_v47  ;;  %v21229_v47 = vld [vmem:[#allocation38_spill] sm:$0xff] }
 0x942   :  { %13453 = vmatprep.subr.bf16.mxu1 %v14769_v31 }
 0x944   :  { %13326 = vmatmul.mubr.bf16.gmra.mrb[16].mxu1 %v18701_v17  ;;  %v7932_v17 = vld [vmem:[#allocation2 + $0x332] sm:$0xff] }
 0x945   :  { %13329 = vmatprep.mubr.bf16.mxu1 %v18705_v4  ;;  %v7933_v4 = vld [vmem:[#allocation2 + $0x33a] sm:$0xff] }
 0x94c   :  { %13330 = vmatmul.mubr.bf16.gmra.mrb[20].mxu1 %v18707_v21  ;;  %v19060_v21 = vpack.c.bf16 %v7933_v4, %v7932_v17  ;;  %v21233_v17 = vld [vmem:[#allocation13_spill] sm:$0xff]  ;;  %v21234_v4 = vld [vmem:[#allocation10_spill] sm:$0xff] }
 0x94d   :  { %13333 = vmatprep.mubr.bf16.mxu1 %v18711_v12  ;;  %v14770_v12 = vld [vmem:[%s20725_s2 + $0x1c8] sm:$0xff]  }
 0x954   :  { %13334 = vmatmul.mubr.bf16.gmra.mrb[24].mxu1 %v18713_v13  ;;  %v14771_v13 = vld [vmem:[%s20725_s2 + $0x1d0] sm:$0xff]  }
 0x955   :  { %13337 = vmatprep.mubr.bf16.mxu1 %v18717_v28  ;;  %v14772_v28 = vld [vmem:[%s20725_s2 + $0x1d8] sm:$0xff]  }
 0x95c   :  { %13338 = vmatmul.mubr.bf16.gmra.mrb[28].mxu1 %v19042_v53 }
 0x95d   :  { %13341 = vmatprep.mubr.bf16.mxu1 %v18720_v56  ;;  %v14773_v56 = vld [vmem:[%s20725_s2 + $0x1e0] sm:$0xff]  }
 0x964   :  { %13342 = vmatmul.mubr.bf16.gmra.mrb[32].mxu1 %v18722_v33  ;;  %v14774_v33 = vld [vmem:[%s20725_s2 + $0x1e8] sm:$0xff]  }
 0x965   :  { %13345 = vmatprep.mubr.bf16.mxu1 %v18726_v10  ;;  %v14775_v10 = vld [vmem:[%s20725_s2 + $0x1f0] sm:$0xff]  }
 0x96c   :  { %13346 = vmatmul.mubr.bf16.gmra.mrb[36].mxu1 %v18728_v49  ;;  %v14776_v49 = vld [vmem:[%s20725_s2 + $0x1f8] sm:$0xff]  }
 0x96d   :  { %13349 = vmatprep.mubr.bf16.mxu1 %v18732_v25  ;;  %v14777_v25 = vld [vmem:[%s20725_s2 + $0x200] sm:$0xff]  }
 0x974   :  { %13350 = vmatmul.mubr.bf16.gmra.mrb[40].mxu1 %v18734_v27  ;;  %v14791_v27 = vld [vmem:[#allocation2] sm:$0xff] }
 0x975   :  { %13353 = vmatprep.mubr.bf16.mxu1 %v18738_v59  ;;  %v8464_v59 = vpack.c.bf16 %v14791_v27, %v14791_v27 }
 0x97c   :  { %13354 = vmatmul.mubr.bf16.gmra.mrb[44].mxu1 %v18740_v61  ;;  %v21202_v61 = vld [vmem:[#allocation29_spill] sm:$0xff] }
 0x97d   :  { %13357 = vmatprep.mubr.bf16.mxu1 %v18744_v37  ;;  %v21203_v37 = vld [vmem:[#allocation31_spill] sm:$0xff] }
 0x984   :  { %13358 = vmatmul.mubr.bf16.gmra.mrb[48].mxu1 %v18746_v51  ;;  %v21204_v51 = vld [vmem:[#allocation34_spill] sm:$0xff] }
 0x985   :  { %13361 = vmatprep.mubr.bf16.mxu1 %v18750_v35  ;;  %v21205_v35 = vld [vmem:[#allocation36_spill] sm:$0xff] }
 0x98c   :  { %13362 = vmatmul.mubr.bf16.gmra.mrb[52].mxu1 %v18752_v44  ;;  %v21206_v44 = vld [vmem:[#allocation37_spill] sm:$0xff] }
 0x98d   :  { %13365 = vmatprep.mubr.bf16.mxu1 %v18756_v15  ;;  %v21207_v15 = vld [vmem:[#allocation9_spill] sm:$0xff] }
 0x994   :  { %13366 = vmatmul.mubr.bf16.gmra.mrb[56].mxu1 %v18758_v63  ;;  %v21208_v63 = vld [vmem:[#allocation8_spill] sm:$0xff] }
 0x995   :  { %13369 = vmatprep.mubr.bf16.mxu1 %v18762_v20  ;;  %v21209_v20 = vld [vmem:[#allocation40_spill] sm:$0xff] }
 0x99c   :  { %13370 = vmatmul.mubr.bf16.gmra.mrb[60].mxu1 %v19060_v21 }
 0x99d   :  { %13389 = vmatprep.mubr.bf16.mxu1 %v18765_v41  ;;  %v21210_v41 = vld [vmem:[#allocation41_spill] sm:$0xff] }
 0x9a4   :  { %13390 = vmatmul.mubr.bf16.vlgmr.msra.gmra.mrb[0].mxu1 %v18770_v43  ;;  %v8444_v43 = vld [vmem:[#allocation2 + $0x320] sm:$0xff] }
 0x9a5   :  { %13393 = vmatprep.mubr.bf16.mxu1 %v18778_v29  ;;  %13454 = vmatpush3.bf16.msra.mxu1 %v14769_v31  ;;  %v21211_v29 = vld [vmem:[#allocation18_spill] sm:$0xff]  ;;  %v21230_v31 = vld [vmem:[#allocation39_spill] sm:$0xff] }
 0x9a6   :  { %13455 = vmatprep.subr.bf16.mxu1 %v14770_v12 }
 0x9a9   :  { %13456 = vmatpush3.bf16.msra.mxu1 %v14770_v12  ;;  %v8961_v12 = vld [vmem:[#allocation2 + $0x349] sm:$0xff] }
 0x9aa   :  { %13457 = vmatprep.subr.bf16.mxu1 %v14771_v13 }
 0x9ac   :  { %13394 = vmatmul.mubr.bf16.gmra.mrb[4].mxu1 %v18783_v40  ;;  %v8478_v40 = vpack.c.bf16 %v8444_v43, %v21211_v29  ;;  %v9428_v43 = vld [vmem:[#allocation2 + $0xe2] sm:$0xff]  ;;  %v9429_v29 = vld [vmem:[#allocation2 + $0xf2] sm:$0xff] }
 0x9ad   :  { %13397 = vmatprep.mubr.bf16.mxu1 %v18790_v57  ;;  %13458 = vmatpush3.bf16.msra.mxu1 %v14771_v13  ;;  %v21212_v57 = vld [vmem:[#allocation21_spill] sm:$0xff] }
 0x9ae   :  { %13459 = vmatprep.subr.bf16.mxu1 %v14772_v28  ;;  %v8962_v13 = vld [vmem:[#allocation2 + $0x351] sm:$0xff] }
 0x9b1   :  { %13460 = vmatpush3.bf16.msra.mxu1 %v14772_v28  ;;  %v8994_v28 = vpack.c.bf16 %v8962_v13, %v8961_v12  ;;  %v9455_v12 = vld [vmem:[#allocation2 + $0x25a] sm:$0xff]  ;;  %v9456_v13 = vld [vmem:[#allocation2 + $0x262] sm:$0xff] }
 0x9b2   :  { %13461 = vmatprep.subr.bf16.mxu1 %v14773_v56 }
 0x9b4   :  { %13398 = vmatmul.mubr.bf16.gmra.mrb[8].mxu1 %v18795_v19  ;;  %v21213_v19 = vld [vmem:[#allocation23_spill] sm:$0xff] }
 0x9b5   :  { %13401 = vmatprep.mubr.bf16.mxu1 %v18802_v24  ;;  %13462 = vmatpush3.bf16.msra.mxu1 %v14773_v56  ;;  %v14778_v24 = vld [vmem:[%s20725_s2 + $0x208] sm:$0xff]   ;;  %v9413_v56 = vld [vmem:[#allocation2 + $0x32] sm:$0xff] }
 0x9b6   :  { %13463 = vmatprep.subr.bf16.mxu1 %v14774_v33 }
 0x9b9   :  { %13464 = vmatpush3.bf16.msra.mxu1 %v14774_v33  ;;  %v9414_v33 = vld [vmem:[#allocation2 + $0x3a] sm:$0xff] }
 0x9ba   :  { %13465 = vmatprep.subr.bf16.mxu1 %v14775_v10 }
 0x9bc   :  { %13402 = vmatmul.mubr.bf16.gmra.mrb[12].mxu1 %v18807_v16  ;;  %v21214_v16 = vld [vmem:[#allocation24_spill] sm:$0xff] }
 0x9bd   :  { %13405 = vmatprep.mubr.bf16.mxu1 %v18816_v60  ;;  %13466 = vmatpush3.bf16.msra.mxu1 %v14775_v10  ;;  %v21215_v60 = vld [vmem:[#allocation7_spill] sm:$0xff]  ;;  %v9477_v10 = vpack.c.bf16 %v9414_v33, %v9413_v56  ;;  %v9458_v56 = vld [vmem:[#allocation2 + $0x27a] sm:$0xff]  ;;  %v9498_v33 = vpack.c.bf16 %v9456_v13, %v9455_v12 }
 0x9be   :  { %13467 = vmatprep.subr.bf16.mxu1 %v14776_v49 }
 0x9c1   :  { %13468 = vmatpush3.bf16.msra.mxu1 %v14776_v49  ;;  %v9415_v49 = vld [vmem:[#allocation2 + $0x4a] sm:$0xff] }
 0x9c2   :  { %13533 = vmatprep.subr.bf16.mxu1 %v14777_v25 }
 0x9c4   :  { %13406 = vmatmul.mubr.bf16.gmra.mrb[16].mxu1 %v18819_v23  ;;  %v14779_v23 = vld [vmem:[%s20725_s2 + $0x210] sm:$0xff]  }
 0x9c5   :  { %13409 = vmatprep.mubr.bf16.mxu1 %v18823_v36  ;;  %v14780_v36 = vld [vmem:[%s20725_s2 + $0x218] sm:$0xff]  }
 0x9cc   :  { %13410 = vmatmul.mubr.bf16.gmra.mrb[20].mxu1 %v18825_v32  ;;  %v21216_v32 = vld [vmem:[#allocation22_spill] sm:$0xff] }
 0x9cd   :  { %13413 = vmatprep.mubr.bf16.mxu1 %v18829_v14  ;;  %v21217_v14 = vld [vmem:[#allocation17_spill] sm:$0xff] }
 0x9d4   :  { %13414 = vmatmul.mubr.bf16.gmra.mrb[24].mxu1 %v18831_v11  ;;  %v14781_v11 = vld [vmem:[%s20725_s2 + $0x220] sm:$0xff]  }
 0x9d5   :  { %13417 = vmatprep.mubr.bf16.mxu1 %v18835_v46  ;;  %v14782_v46 = vld [vmem:[%s20725_s2 + $0x228] sm:$0xff]  }
 0x9dc   :  { %13418 = vmatmul.mubr.bf16.gmra.mrb[28].mxu1 %v8464_v59 }
 0x9dd   :  { %13421 = vmatprep.mubr.bf16.mxu1 %v18838_v39  ;;  %v21218_v39 = vld [vmem:[#allocation16_spill] sm:$0xff] }
 0x9e4   :  { %13422 = vmatmul.mubr.bf16.gmra.mrb[32].mxu1 %v18840_v2  ;;  %v21219_v2 = vld [vmem:[#allocation26_spill] sm:$0xff] }
 0x9e5   :  { %13425 = vmatprep.mubr.bf16.mxu1 %v18844_v55  ;;  %v14783_v55 = vld [vmem:[%s20725_s2 + $0x230] sm:$0xff]  }
 0x9ec   :  { %13426 = vmatmul.mubr.bf16.gmra.mrb[36].mxu1 %v21202_v61 }
 0x9ed   :  { %13429 = vmatprep.mubr.bf16.mxu1 %v21203_v37 }
 0x9f4   :  { %13430 = vmatmul.mubr.bf16.gmra.mrb[40].mxu1 %v21204_v51  ;;  %v9423_v51 = vld [vmem:[#allocation2 + $0xaa] sm:$0xff] }
 0x9f5   :  { %13433 = vmatprep.mubr.bf16.mxu1 %v21205_v35  ;;  %v9424_v35 = vld [vmem:[#allocation2 + $0xb2] sm:$0xff] }
 0x9fc   :  { %13434 = vmatmul.mubr.bf16.gmra.mrb[44].mxu1 %v21206_v44  ;;  %v9425_v44 = vld [vmem:[#allocation2 + $0xc2] sm:$0xff] }
 0x9fd   :  { %13437 = vmatprep.mubr.bf16.mxu1 %v21207_v15  ;;  %v9426_v15 = vld [vmem:[#allocation2 + $0xca] sm:$0xff] }
 0xa04   :  { %13438 = vmatmul.mubr.bf16.gmra.mrb[48].mxu1 %v21208_v63  ;;  %v9482_v63 = vpack.c.bf16 %v9424_v35, %v9423_v51  ;;  %v9467_v51 = vld [vmem:[#allocation2 + $0x2ea] sm:$0xff]  ;;  %v9468_v35 = vld [vmem:[#allocation2 + $0x2f2] sm:$0xff] }
 0xa05   :  { %13441 = vmatprep.mubr.bf16.mxu1 %v21209_v20  ;;  %v9483_v20 = vpack.c.bf16 %v9426_v15, %v9425_v44  ;;  %v9469_v44 = vld [vmem:[#allocation2 + $0x302] sm:$0xff]  ;;  %v9470_v15 = vld [vmem:[#allocation2 + $0x30a] sm:$0xff] }
 0xa0c   :  { %13442 = vmatmul.mubr.bf16.gmra.mrb[52].mxu1 %v21210_v41  ;;  %v9427_v41 = vld [vmem:[#allocation2 + $0xda] sm:$0xff] }
 0xa0d   :  { %13445 = vmatprep.mubr.bf16.mxu1 %v18876_v0  ;;  %v14784_v0 = vld [vmem:[%s20725_s2 + $0x238] sm:$0xff]  }
 0xa14   :  { %13446 = vmatmul.mubr.bf16.gmra.mrb[56].mxu1 %v8478_v40  ;;  %v9430_v40 = vld [vmem:[#allocation2 + $0xfa] sm:$0xff] }
 0xa15   :  { %13449 = vmatprep.mubr.bf16.mxu1 %v21212_v57  ;;  %v9484_v57 = vpack.c.bf16 %v9428_v43, %v9427_v41  ;;  %v9471_v41 = vld [vmem:[#allocation2 + $0x31a] sm:$0xff]  ;;  %v9472_v43 = vld [vmem:[#allocation2 + $0x322] sm:$0xff] }
 0xa1c   :  { %13450 = vmatmul.mubr.bf16.gmra.mrb[60].mxu1 %v8464_v59  ;;  %v9421_v59 = vld [vmem:[#allocation2 + $0x92] sm:$0xff] }
 0xa1d   :  { %13469 = vmatprep.mubr.bf16.mxu1 %v21213_v19  ;;  %v9485_v19 = vpack.c.bf16 %v9430_v40, %v9429_v29  ;;  %v9506_v29 = vpack.c.bf16 %v9472_v43, %v9471_v41  ;;  %v9475_v40 = vld [vmem:[#allocation2 + $0x34a] sm:$0xff] }
 0xa24   :  { %13470 = vmatmul.mubr.bf16.vlgmr.msra.gmra.mrb[0].mxu1 %v21214_v16  ;;  %v9432_v16 = vld [vmem:[#allocation2 + $0x112] sm:$0xff] }
 0xa25   :  { %13473 = vmatprep.mubr.bf16.mxu1 %v21215_v60  ;;  %13534 = vmatpush3.bf16.msra.mxu1 %v14777_v25  ;;  %v9417_v25 = vld [vmem:[#allocation2 + $0x62] sm:$0xff] }
 0xa26   :  { %13535 = vmatprep.subr.bf16.mxu1 %v14778_v24  ;;  %v9433_v60 = vld [vmem:[#allocation2 + $0x122] sm:$0xff] }
 0xa29   :  { %13536 = vmatpush3.bf16.msra.mxu1 %v14778_v24  ;;  %v9431_v24 = vld [vmem:[#allocation2 + $0x10a] sm:$0xff] }
 0xa2a   :  { %13537 = vmatprep.subr.bf16.mxu1 %v14779_v23 }
 0xa2c   :  { %13474 = vmatmul.mubr.bf16.gmra.mrb[4].mxu1 %v21216_v32 }
 0xa2d   :  { %13477 = vmatprep.mubr.bf16.mxu1 %v21217_v14  ;;  %13538 = vmatpush3.bf16.msra.mxu1 %v14779_v23  ;;  %v9434_v23 = vld [vmem:[#allocation2 + $0x12a] sm:$0xff]  ;;  %v9435_v14 = vld [vmem:[#allocation2 + $0x13a] sm:$0xff] }
 0xa2e   :  { %13539 = vmatprep.subr.bf16.mxu1 %v14780_v36  ;;  %v9487_v32 = vpack.c.bf16 %v9434_v23, %v9433_v60 }
 0xa31   :  { %13540 = vmatpush3.bf16.msra.mxu1 %v14780_v36  ;;  %v9486_v36 = vpack.c.bf16 %v9432_v16, %v9431_v24 }
 0xa32   :  { %13541 = vmatprep.subr.bf16.mxu1 %v14781_v11 }
 0xa34   :  { %13478 = vmatmul.mubr.bf16.gmra.mrb[8].mxu1 %v21218_v39  ;;  %v9438_v39 = vld [vmem:[#allocation2 + $0x15a] sm:$0xff] }
 0xa35   :  { %13481 = vmatprep.mubr.bf16.mxu1 %v21219_v2  ;;  %13542 = vmatpush3.bf16.msra.mxu1 %v14781_v11  ;;  %v9436_v11 = vld [vmem:[#allocation2 + $0x142] sm:$0xff] }
 0xa36   :  { %13543 = vmatprep.subr.bf16.mxu1 %v14782_v46  ;;  %v9488_v2 = vpack.c.bf16 %v9436_v11, %v9435_v14 }
 0xa39   :  { %13544 = vmatpush3.bf16.msra.mxu1 %v14782_v46  ;;  %v9437_v46 = vld [vmem:[#allocation2 + $0x152] sm:$0xff] }
 0xa3a   :  { %13545 = vmatprep.subr.bf16.mxu1 %v14783_v55 }
 0xa3c   :  { %13482 = vmatmul.mubr.bf16.gmra.mrb[12].mxu1 %v21220_v7  ;;  %v9440_v7 = vld [vmem:[#allocation2 + $0x172] sm:$0xff] }
 0xa3d   :  { %13485 = vmatprep.mubr.bf16.mxu1 %v21221_v34  ;;  %13546 = vmatpush3.bf16.msra.mxu1 %v14783_v55  ;;  %v9489_v55 = vpack.c.bf16 %v9438_v39, %v9437_v46 }
 0xa3e   :  { %13547 = vmatprep.subr.bf16.mxu1 %v14784_v0 }
 0xa41   :  { %13548 = vmatpush3.bf16.msra.mxu1 %v14784_v0  ;;  %v9439_v0 = vld [vmem:[#allocation2 + $0x16a] sm:$0xff] }
 0xa42   :  { %v9490_v34 = vpack.c.bf16 %v9440_v7, %v9439_v0 }
 0xa44   :  { %13486 = vmatmul.mubr.bf16.gmra.mrb[16].mxu1 %v21222_v50  ;;  %v9443_v50 = vld [vmem:[#allocation2 + $0x19a] sm:$0xff] }
 0xa45   :  { %13489 = vmatprep.mubr.bf16.mxu1 %v21223_v3  ;;  %v9444_v3 = vld [vmem:[#allocation2 + $0x1a2] sm:$0xff] }
 0xa4c   :  { %13490 = vmatmul.mubr.bf16.gmra.mrb[20].mxu1 %v21224_v26  ;;  %v9492_v26 = vpack.c.bf16 %v9444_v3, %v9443_v50 }
 0xa4d   :  { %13493 = vmatprep.mubr.bf16.mxu1 %v21225_v6  ;;  %v9445_v6 = vld [vmem:[#allocation2 + $0x1e2] sm:$0xff] }
 0xa54   :  { %13494 = vmatmul.mubr.bf16.gmra.mrb[24].mxu1 %v21226_v38  ;;  %v9446_v38 = vld [vmem:[#allocation2 + $0x1ea] sm:$0xff] }
 0xa55   :  { %13497 = vmatprep.mubr.bf16.mxu1 %v18954_v8  ;;  %v21235_v8 = vld [vmem:[#allocation12_spill] sm:$0xff]  ;;  %v9493_v54 = vpack.c.bf16 %v9446_v38, %v9445_v6 }
 0xa5c   :  { %13498 = vmatmul.mubr.bf16.gmra.mrb[28].mxu1 %v8978_v22  ;;  %v9448_v22 = vld [vmem:[#allocation2 + $0x202] sm:$0xff] }
 0xa5d   :  { %13501 = vmatprep.mubr.bf16.mxu1 %v21227_v52  ;;  %v9449_v52 = vld [vmem:[#allocation2 + $0x212] sm:$0xff] }
 0xa64   :  { %13502 = vmatmul.mubr.bf16.gmra.mrb[32].mxu1 %v21228_v5  ;;  %v9450_v5 = vld [vmem:[#allocation2 + $0x21a] sm:$0xff] }
 0xa65   :  { %13505 = vmatprep.mubr.bf16.mxu1 %v21229_v47  ;;  %v9494_v47 = vpack.c.bf16 %v9448_v22, %v9447_v48 }
 0xa6c   :  { %13506 = vmatmul.mubr.bf16.gmra.mrb[36].mxu1 %v21230_v31  ;;  %v9495_v31 = vpack.c.bf16 %v9450_v5, %v9449_v52 }
 0xa6d   :  { %13509 = vmatprep.mubr.bf16.mxu1 %v21231_v45  ;;  %v9451_v45 = vld [vmem:[#allocation2 + $0x22a] sm:$0xff] }
 0xa74   :  { %13510 = vmatmul.mubr.bf16.gmra.mrb[40].mxu1 %v21232_v62  ;;  %v9452_v62 = vld [vmem:[#allocation2 + $0x232] sm:$0xff] }
 0xa75   :  { %13513 = vmatprep.mubr.bf16.mxu1 %v21233_v17  ;;  %v9453_v17 = vld [vmem:[#allocation2 + $0x242] sm:$0xff] }
 0xa7c   :  { %13514 = vmatmul.mubr.bf16.gmra.mrb[44].mxu1 %v21234_v4  ;;  %v9496_v4 = vpack.c.bf16 %v9452_v62, %v9451_v45 }
 0xa7d   :  { %13517 = vmatprep.mubr.bf16.mxu1 %v21235_v8 }
 0xa84   :  { %13518 = vmatmul.mubr.bf16.gmra.mrb[48].mxu1 %v18983_v1  ;;  %v9416_v1 = vld [vmem:[#allocation2 + $0x52] sm:$0xff] }
 0xa85   :  { %13521 = vmatprep.mubr.bf16.mxu1 %v18987_v30  ;;  %v9418_v30 = vld [vmem:[#allocation2 + $0x6a] sm:$0xff]  ;;  %v9478_v27 = vpack.c.bf16 %v9416_v1, %v9415_v49  ;;  %v9460_v1 = vld [vmem:[#allocation2 + $0x292] sm:$0xff] }
 0xa86   :  { %v9459_v49 = vld [vmem:[#allocation2 + $0x28a] sm:$0xff] }
 0xa8c   :  { %13522 = vmatmul.mubr.bf16.gmra.mrb[52].mxu1 %v18989_v58  ;;  %v9479_v58 = vpack.c.bf16 %v9418_v30, %v9417_v25  ;;  %v9461_v25 = vld [vmem:[#allocation2 + $0x2a2] sm:$0xff]  ;;  %v9462_v30 = vld [vmem:[#allocation2 + $0x2aa] sm:$0xff] }
 0xa8d   :  { %13525 = vmatprep.mubr.bf16.mxu1 %v18993_v42  ;;  %v9419_v42 = vld [vmem:[#allocation2 + $0x7a] sm:$0xff] }
 0xa94   :  { %13526 = vmatmul.mubr.bf16.gmra.mrb[56].mxu1 %v18995_v18  ;;  %v9420_v18 = vld [vmem:[#allocation2 + $0x82] sm:$0xff] }
 0xa95   :  { %13529 = vmatprep.mubr.bf16.mxu1 %v18999_v9  ;;  %v9422_v9 = vld [vmem:[#allocation2 + $0x9a] sm:$0xff]  ;;  %v9480_v61 = vpack.c.bf16 %v9420_v18, %v9419_v42  ;;  %v9464_v18 = vld [vmem:[#allocation2 + $0x2c2] sm:$0xff] }
 0xa96   :  { %v9481_v37 = vpack.c.bf16 %v9422_v9, %v9421_v59  ;;  %v9463_v42 = vld [vmem:[#allocation2 + $0x2ba] sm:$0xff]  ;;  %v9465_v59 = vld [vmem:[#allocation2 + $0x2d2] sm:$0xff] }
 0xa97   :  { %v9466_v9 = vld [vmem:[#allocation2 + $0x2da] sm:$0xff] }
 0xa9c   :  { %13530 = vmatmul.mubr.bf16.gmra.mrb[60].mxu1 %v8994_v28  ;;  %v9457_v28 = vld [vmem:[#allocation2 + $0x272] sm:$0xff] }
 0xa9d   :  { %13549 = vmatprep.mubr.bf16.mxu1 %v9477_v10  ;;  %v9499_v10 = vpack.c.bf16 %v9458_v56, %v9457_v28 }
 0xaa4   :  { %13550 = vmatmul.mubr.bf16.vlgmr.msra.gmra.mrb[0].mxu1 %v9478_v27  ;;  %v9500_v27 = vpack.c.bf16 %v9460_v1, %v9459_v49 }
 0xaa5   :  { %13553 = vmatprep.mubr.bf16.mxu1 %v9479_v58  ;;  %v9501_v58 = vpack.c.bf16 %v9462_v30, %v9461_v25 }
 0xaac   :  { %13554 = vmatmul.mubr.bf16.gmra.mrb[4].mxu1 %v9480_v61  ;;  %v9502_v61 = vpack.c.bf16 %v9464_v18, %v9463_v42 }
 0xaad   :  { %13557 = vmatprep.mubr.bf16.mxu1 %v9481_v37  ;;  %v9503_v37 = vpack.c.bf16 %v9466_v9, %v9465_v59 }
 0xab4   :  { %13558 = vmatmul.mubr.bf16.gmra.mrb[8].mxu1 %v9482_v63  ;;  %v9504_v63 = vpack.c.bf16 %v9468_v35, %v9467_v51 }
 0xab5   :  { %13561 = vmatprep.mubr.bf16.mxu1 %v9483_v20  ;;  %v9505_v20 = vpack.c.bf16 %v9470_v15, %v9469_v44 }
 0xabc   :  { %13562 = vmatmul.mubr.bf16.gmra.mrb[12].mxu1 %v9484_v57  ;;  %v9476_v57 = vld [vmem:[#allocation2 + $0x352] sm:$0xff] }
 0xabd   :  { %13565 = vmatprep.mubr.bf16.mxu1 %v9485_v19  ;;  %v9508_v19 = vpack.c.bf16 %v9476_v57, %v9475_v40 }
 0xac4   :  { %13566 = vmatmul.mubr.bf16.gmra.mrb[16].mxu1 %v9486_v36 }
 0xac5   :  { %13569 = vmatprep.mubr.bf16.mxu1 %v9487_v32 }
 0xacc   :  { %13570 = vmatmul.mubr.bf16.gmra.mrb[20].mxu1 %v9488_v2 }
 0xacd   :  { %13573 = vmatprep.mubr.bf16.mxu1 %v9489_v55 }
 0xad4   :  { %13574 = vmatmul.mubr.bf16.gmra.mrb[24].mxu1 %v9490_v34 }
 0xad5   :  { %13577 = vmatprep.mubr.bf16.mxu1 %v19042_v53  ;;  %v9454_v53 = vld [vmem:[#allocation2 + $0x24a] sm:$0xff] }
 0xad6   :  { %v9497_v8 = vpack.c.bf16 %v9454_v53, %v9453_v17 }
 0xadc   :  { %13578 = vmatmul.mubr.bf16.gmra.mrb[28].mxu1 %v9492_v26 }
 0xadd   :  { %13581 = vmatprep.mubr.bf16.mxu1 %v9493_v54 }
 0xae4   :  { %13582 = vmatmul.mubr.bf16.gmra.mrb[32].mxu1 %v9494_v47 }
 0xae5   :  { %13585 = vmatprep.mubr.bf16.mxu1 %v9495_v31 }
 0xaec   :  { %13586 = vmatmul.mubr.bf16.gmra.mrb[36].mxu1 %v9496_v4 }
 0xaed   :  { %13589 = vmatprep.mubr.bf16.mxu1 %v9497_v8 }
 0xaf4   :  { %13590 = vmatmul.mubr.bf16.gmra.mrb[40].mxu1 %v9498_v33 }
 0xaf5   :  { %13593 = vmatprep.mubr.bf16.mxu1 %v9499_v10 }
 0xafc   :  { %13594 = vmatmul.mubr.bf16.gmra.mrb[44].mxu1 %v9500_v27 }
 0xafd   :  { %13597 = vmatprep.mubr.bf16.mxu1 %v9501_v58 }
 0xb04   :  { %13598 = vmatmul.mubr.bf16.gmra.mrb[48].mxu1 %v9502_v61 }
 0xb05   :  { %13601 = vmatprep.mubr.bf16.mxu1 %v9503_v37 }
 0xb0c   :  { %13602 = vmatmul.mubr.bf16.gmra.mrb[52].mxu1 %v9504_v63 }
 0xb0d   :  { %13605 = vmatprep.mubr.bf16.mxu1 %v9505_v20 }
 0xb14   :  { %13606 = vmatmul.mubr.bf16.gmra.mrb[56].mxu1 %v9506_v29 }
 0xb15   :  { %13609 = vmatprep.mubr.bf16.mxu1 %v19060_v21 }
 0xb1c   :  { %13610 = vmatmul.mubr.bf16.gmra.mrb[60].mxu1 %v9508_v19 }
 0xb77   :  { %v19170_v24 = vpop.f32.mrb[0].mxu1 }
 0xb78   :  { %v19172_v16 = vpop.f32.mrb[1].mxu1 }
 0xb79   :  { %v19174_v60 = vpop.f32.mrb[2].mxu1 }
 0xb7a   :  { %v19176_v23 = vpop.f32.mrb[3].mxu1 }
 0xb7b   :  { %v9927_v36 = vadd.f32 %v19176_v23, %v19172_v16 }
 0xb7d   :  { %v9928_v32 = vadd.f32 %v19170_v24, %v9927_v36 }
 0xb7f   :  { %v19181_v14 = vpop.f32.mrb[4].mxu1  ;;  %v9929_v21 = vadd.f32 %v19174_v60, %v9928_v32 }
 0xb80   :  { %v19184_v11 = vpop.f32.mrb[5].mxu1 }
 0xb81   :  { %v9930_v46 = vadd.f32 %v9929_v21, %v19184_v11  ;;  %v19187_v39 = vpop.f32.mrb[6].mxu1 }
 0xb82   :  { %v19189_v2 = vpop.f32.mrb[7].mxu1 }
 0xb83   :  { %v9931_v55 = vadd.f32 %v9930_v46, %v19189_v2 }
 0xb85   :  { %v9932_v0 = vadd.f32 %v19181_v14, %v9931_v55 }
 0xb87   :  { %v19193_v7 = vpop.f32.mrb[8].mxu1  ;;  %v9933_v34 = vadd.f32 %v19187_v39, %v9932_v0 }
 0xb88   :  { %v19196_v50 = vpop.f32.mrb[9].mxu1 }
 0xb89   :  { %v9934_v3 = vadd.f32 %v9933_v34, %v19196_v50  ;;  %v19199_v26 = vpop.f32.mrb[10].mxu1 }
 0xb8a   :  { %v19201_v6 = vpop.f32.mrb[11].mxu1 }
 0xb8b   :  { %v9935_v38 = vadd.f32 %v9934_v3, %v19201_v6 }
 0xb8d   :  { %v9936_v54 = vadd.f32 %v19193_v7, %v9935_v38 }
 0xb8f   :  { %v19205_v48 = vpop.f32.mrb[12].mxu1  ;;  %v9937_v22 = vadd.f32 %v19199_v26, %v9936_v54 }
 0xb90   :  { %v19208_v52 = vpop.f32.mrb[13].mxu1 }
 0xb91   :  { %v9938_v5 = vadd.f32 %v9937_v22, %v19208_v52  ;;  %v19211_v47 = vpop.f32.mrb[14].mxu1 }
 0xb92   :  { %v19213_v31 = vpop.f32.mrb[15].mxu1 }
 0xb93   :  { %v9939_v45 = vadd.f32 %v9938_v5, %v19213_v31 }
 0xb95   :  { %v9940_v62 = vadd.f32 %v19205_v48, %v9939_v45 }
 0xb97   :  { %v19217_v17 = vpop.f32.mrb[16].mxu1  ;;  %v9941_v53 = vadd.f32 %v19211_v47, %v9940_v62 }
 0xb98   :  { %v19220_v4 = vpop.f32.mrb[17].mxu1 }
 0xb99   :  { %v9942_v8 = vadd.f32 %v9941_v53, %v19220_v4  ;;  %v19223_v12 = vpop.f32.mrb[18].mxu1 }
 0xb9a   :  { %v19225_v13 = vpop.f32.mrb[19].mxu1 }
 0xb9b   :  { %v9943_v28 = vadd.f32 %v9942_v8, %v19225_v13 }
 0xb9d   :  { %v9944_v56 = vadd.f32 %v19217_v17, %v9943_v28 }
 0xb9f   :  { %v19229_v33 = vpop.f32.mrb[20].mxu1  ;;  %v9945_v10 = vadd.f32 %v19223_v12, %v9944_v56 }
 0xba0   :  { %v19232_v49 = vpop.f32.mrb[21].mxu1 }
 0xba1   :  { %v9946_v1 = vadd.f32 %v9945_v10, %v19232_v49  ;;  %v19235_v25 = vpop.f32.mrb[22].mxu1 }
 0xba2   :  { %v19237_v30 = vpop.f32.mrb[23].mxu1 }
 0xba3   :  { %v9947_v27 = vadd.f32 %v9946_v1, %v19237_v30 }
 0xba5   :  { %v9948_v58 = vadd.f32 %v19229_v33, %v9947_v27 }
 0xba7   :  { %v19241_v42 = vpop.f32.mrb[24].mxu1  ;;  %v9949_v18 = vadd.f32 %v19235_v25, %v9948_v58 }
 0xba8   :  { %v19244_v59 = vpop.f32.mrb[25].mxu1 }
 0xba9   :  { %v9950_v9 = vadd.f32 %v9949_v18, %v19244_v59  ;;  %v19247_v61 = vpop.f32.mrb[26].mxu1 }
 0xbaa   :  { %v19249_v37 = vpop.f32.mrb[27].mxu1 }
 0xbab   :  { %v9951_v51 = vadd.f32 %v9950_v9, %v19249_v37 }
 0xbad   :  { %v9952_v35 = vadd.f32 %v19241_v42, %v9951_v51 }
 0xbaf   :  { %v19253_v44 = vpop.f32.mrb[28].mxu1  ;;  %v9953_v15 = vadd.f32 %v19247_v61, %v9952_v35 }
 0xbb0   :  { %v19256_v63 = vpop.f32.mrb[29].mxu1 }
 0xbb1   :  { %v9954_v20 = vadd.f32 %v9953_v15, %v19256_v63  ;;  %v19259_v41 = vpop.f32.mrb[30].mxu1 }
 0xbb2   :  { %v19261_v43 = vpop.f32.mrb[31].mxu1 }
 0xbb3   :  { %v9955_v29 = vadd.f32 %v9954_v20, %v19261_v43 }
 0xbb5   :  { %v9956_v40 = vadd.f32 %v19253_v44, %v9955_v29 }
 0xbb7   :  { %v19265_v57 = vpop.f32.mrb[32].mxu1  ;;  %v9957_v19 = vadd.f32 %v19259_v41, %v9956_v40 }
 0xbb8   :  { %v19268_v36 = vpop.f32.mrb[33].mxu1 }
 0xbb9   :  { %v9958_v32 = vadd.f32 %v9957_v19, %v19268_v36  ;;  %v19271_v21 = vpop.f32.mrb[34].mxu1 }
 0xbba   :  { %v19273_v46 = vpop.f32.mrb[35].mxu1 }
 0xbbb   :  { %v9959_v55 = vadd.f32 %v9958_v32, %v19273_v46 }
 0xbbd   :  { %v9960_v0 = vadd.f32 %v19265_v57, %v9959_v55 }
 0xbbf   :  { %v19277_v34 = vpop.f32.mrb[36].mxu1  ;;  %v9961_v3 = vadd.f32 %v19271_v21, %v9960_v0 }
 0xbc0   :  { %v19280_v38 = vpop.f32.mrb[37].mxu1 }
 0xbc1   :  { %v9962_v54 = vadd.f32 %v9961_v3, %v19280_v38  ;;  %v19283_v22 = vpop.f32.mrb[38].mxu1 }
 0xbc2   :  { %v19285_v5 = vpop.f32.mrb[39].mxu1 }
 0xbc3   :  { %v9963_v45 = vadd.f32 %v9962_v54, %v19285_v5 }
 0xbc5   :  { %v9964_v62 = vadd.f32 %v19277_v34, %v9963_v45 }
 0xbc7   :  { %v19289_v53 = vpop.f32.mrb[40].mxu1  ;;  %v9965_v8 = vadd.f32 %v19283_v22, %v9964_v62 }
 0xbc8   :  { %v19292_v28 = vpop.f32.mrb[41].mxu1 }
 0xbc9   :  { %v9966_v56 = vadd.f32 %v9965_v8, %v19292_v28  ;;  %v19295_v10 = vpop.f32.mrb[42].mxu1 }
 0xbca   :  { %v19297_v1 = vpop.f32.mrb[43].mxu1 }
 0xbcb   :  { %v9967_v27 = vadd.f32 %v9966_v56, %v19297_v1 }
 0xbcd   :  { %v9968_v58 = vadd.f32 %v19289_v53, %v9967_v27 }
 0xbcf   :  { %v19301_v18 = vpop.f32.mrb[44].mxu1  ;;  %v9969_v9 = vadd.f32 %v19295_v10, %v9968_v58 }
 0xbd0   :  { %v19304_v51 = vpop.f32.mrb[45].mxu1 }
 0xbd1   :  { %v9970_v35 = vadd.f32 %v9969_v9, %v19304_v51  ;;  %v19307_v15 = vpop.f32.mrb[46].mxu1 }
 0xbd2   :  { %v19309_v20 = vpop.f32.mrb[47].mxu1 }
 0xbd3   :  { %v9971_v29 = vadd.f32 %v9970_v35, %v19309_v20 }
 0xbd5   :  { %v9972_v40 = vadd.f32 %v19301_v18, %v9971_v29 }
 0xbd7   :  { %v19313_v19 = vpop.f32.mrb[48].mxu1  ;;  %v9973_v32 = vadd.f32 %v19307_v15, %v9972_v40 }
 0xbd8   :  { %21236 = vst [vmem:[#allocation15_spill] sm:$0xff] %v19313_v19  ;;  %v19316_v55 = vpop.f32.mrb[49].mxu1 }
 0xbd9   :  { %21237 = vst [vmem:[#allocation14_spill] sm:$0xff] %v19316_v55  ;;  %v9974_v0 = vadd.f32 %v9973_v32, %v19316_v55  ;;  %v19319_v3 = vpop.f32.mrb[50].mxu1 }
 0xbda   :  { %21238 = vst [vmem:[#allocation43_spill] sm:$0xff] %v19319_v3  ;;  %v19321_v54 = vpop.f32.mrb[51].mxu1 }
 0xbdb   :  { %21239 = vst [vmem:[#allocation44_spill] sm:$0xff] %v19321_v54  ;;  %v9975_v45 = vadd.f32 %v9974_v0, %v19321_v54 }
 0xbdd   :  { %v9976_v62 = vadd.f32 %v19313_v19, %v9975_v45 }
 0xbdf   :  { %v19325_v8 = vpop.f32.mrb[52].mxu1  ;;  %v9977_v56 = vadd.f32 %v19319_v3, %v9976_v62 }
 0xbe0   :  { %21240 = vst [vmem:[#allocation45_spill] sm:$0xff] %v19325_v8  ;;  %v19328_v27 = vpop.f32.mrb[53].mxu1 }
 0xbe1   :  { %21241 = vst [vmem:[#allocation46_spill] sm:$0xff] %v19328_v27  ;;  %v9978_v58 = vadd.f32 %v9977_v56, %v19328_v27  ;;  %v19331_v9 = vpop.f32.mrb[54].mxu1 }
 0xbe2   :  { %21242 = vst [vmem:[#allocation29_spill] sm:$0xff] %v19331_v9  ;;  %v19333_v35 = vpop.f32.mrb[55].mxu1 }
 0xbe3   :  { %21243 = vst [vmem:[#allocation31_spill] sm:$0xff] %v19333_v35  ;;  %v9979_v29 = vadd.f32 %v9978_v58, %v19333_v35 }
 0xbe5   :  { %v9980_v40 = vadd.f32 %v19325_v8, %v9979_v29 }
 0xbe7   :  { %v19337_v32 = vpop.f32.mrb[56].mxu1  ;;  %v9981_v0 = vadd.f32 %v19331_v9, %v9980_v40 }
 0xbe8   :  { %21244 = vst [vmem:[#allocation34_spill] sm:$0xff] %v19337_v32  ;;  %v19340_v45 = vpop.f32.mrb[57].mxu1 }
 0xbe9   :  { %21245 = vst [vmem:[#allocation36_spill] sm:$0xff] %v19340_v45  ;;  %v9982_v62 = vadd.f32 %v9981_v0, %v19340_v45  ;;  %v19343_v3 = vpop.f32.mrb[58].mxu1 }
 0xbea   :  { %21246 = vst [vmem:[#allocation37_spill] sm:$0xff] %v19343_v3  ;;  %v19345_v19 = vpop.f32.mrb[59].mxu1 }
 0xbeb   :  { %21247 = vst [vmem:[#allocation9_spill] sm:$0xff] %v19345_v19  ;;  %v9983_v56 = vadd.f32 %v9982_v62, %v19345_v19 }
 0xbed   :  { %v9984_v27 = vadd.f32 %v19337_v32, %v9983_v56 }
 0xbef   :  { %v19349_v54 = vpop.f32.mrb[60].mxu1  ;;  %v9985_v58 = vadd.f32 %v19343_v3, %v9984_v27 }
 0xbf0   :  { %v19352_v29 = vpop.f32.mrb[61].mxu1 }
 0xbf1   :  { %21248 = vst [vmem:[#allocation8_spill] sm:$0xff] %v19352_v29  ;;  %v9986_v40 = vadd.f32 %v9985_v58, %v19352_v29  ;;  %v19355_v9 = vpop.f32.mrb[62].mxu1 }
 0xbf2   :  { %v19357_v8 = vpop.f32.mrb[63].mxu1 }
 0xbf3   :  { %v9987_v0 = vadd.f32 %v9986_v40, %v19357_v8 }
 0xbf5   :  { %v9988_v45 = vadd.f32 %v19349_v54, %v9987_v0  ;;  %v21262_v0 = vld [vmem:[#allocation43_spill] sm:$0xff] }
 0xbf7   :  { %v9989_v62 = vadd.f32 %v19355_v9, %v9988_v45  ;;  %v21260_v45 = vld [vmem:[#allocation15_spill] sm:$0xff] }
 0xbf9   :  { %v9990_v19 = vrot.slane %v9989_v62, 4 }
 0xbfb   :  { %v9991_v56 = vadd.f32 %v9990_v19, %v9989_v62  ;;  %v21264_v62 = vld [vmem:[#allocation46_spill] sm:$0xff] }
 0xbfd   :  { %v9992_v32 = vrot.slane %v9991_v56, 2 }
 0xbff   :  { %v9993_v35 = vadd.f32 %v9992_v32, %v9991_v56  ;;  %v21258_v32 = vld [vmem:[#allocation44_spill] sm:$0xff]  ;;  %v21266_v56 = vld [vmem:[#allocation31_spill] sm:$0xff] }
 0xc01   :  { %v9994_v55 = vrot.slane %v9993_v35, 1 }
 0xc03   :  { %v9995_v27 = vadd.f32 %v9994_v55, %v9993_v35  ;;  %v21256_v35 = vld [vmem:[#allocation14_spill] sm:$0xff] }
 0xc05   :  { %v19362_v3 = vmul.f32 0.001953125, %v9995_v27 }
 0xc07   :  { %v19366_v58 = vsub.f32 %v19172_v16, %v19362_v3  ;;  %v19370_v29 = vsub.f32 %v19176_v23, %v19362_v3  ;;  %v19374_v40 = vsub.f32 %v19170_v24, %v19362_v3  ;;  %v19378_v19 = vsub.f32 %v19174_v60, %v19362_v3 }
 0xc08   :  { %v19382_v55 = vsub.f32 %v19184_v11, %v19362_v3  ;;  %v19386_v16 = vsub.f32 %v19189_v2, %v19362_v3  ;;  %v19390_v23 = vsub.f32 %v19181_v14, %v19362_v3  ;;  %v19394_v24 = vsub.f32 %v19187_v39, %v19362_v3 }
 0xc09   :  { %21249 = vst [vmem:[#allocation40_spill] sm:$0xff] %v19366_v58  ;;  %21250 = vst [vmem:[#allocation41_spill] sm:$0xff] %v19370_v29  ;;  %v19398_v60 = vsub.f32 %v19196_v50, %v19362_v3  ;;  %v19402_v11 = vsub.f32 %v19201_v6, %v19362_v3  ;;  %v19406_v2 = vsub.f32 %v19193_v7, %v19362_v3 }
 0xc0a   :  { %21251 = vst [vmem:[#allocation18_spill] sm:$0xff] %v19374_v40  ;;  %v19410_v14 = vsub.f32 %v19199_v26, %v19362_v3  ;;  %v19414_v39 = vsub.f32 %v19208_v52, %v19362_v3  ;;  %v19418_v50 = vsub.f32 %v19213_v31, %v19362_v3  ;;  %v19422_v6 = vsub.f32 %v19205_v48, %v19362_v3 }
 0xc0b   :  { %v19426_v7 = vsub.f32 %v19211_v47, %v19362_v3  ;;  %v19430_v26 = vsub.f32 %v19220_v4, %v19362_v3  ;;  %v19434_v52 = vsub.f32 %v19225_v13, %v19362_v3  ;;  %v19438_v31 = vsub.f32 %v19217_v17, %v19362_v3 }
 0xc0c   :  { %v19442_v48 = vsub.f32 %v19223_v12, %v19362_v3  ;;  %v19446_v47 = vsub.f32 %v19232_v49, %v19362_v3  ;;  %v19450_v4 = vsub.f32 %v19237_v30, %v19362_v3  ;;  %v19454_v13 = vsub.f32 %v19229_v33, %v19362_v3 }
 0xc0d   :  { %v19458_v17 = vsub.f32 %v19235_v25, %v19362_v3  ;;  %v19462_v12 = vsub.f32 %v19244_v59, %v19362_v3  ;;  %v19466_v49 = vsub.f32 %v19249_v37, %v19362_v3  ;;  %v19470_v30 = vsub.f32 %v19241_v42, %v19362_v3 }
 0xc0e   :  { %v19474_v33 = vsub.f32 %v19247_v61, %v19362_v3  ;;  %v19478_v25 = vsub.f32 %v19256_v63, %v19362_v3  ;;  %v19482_v59 = vsub.f32 %v19261_v43, %v19362_v3  ;;  %v19486_v37 = vsub.f32 %v19253_v44, %v19362_v3 }
 0xc0f   :  { %v19490_v42 = vsub.f32 %v19259_v41, %v19362_v3  ;;  %v19494_v61 = vsub.f32 %v19268_v36, %v19362_v3  ;;  %v19498_v63 = vsub.f32 %v19273_v46, %v19362_v3  ;;  %v19502_v43 = vsub.f32 %v19265_v57, %v19362_v3 }
 0xc10   :  { %v19506_v44 = vsub.f32 %v19271_v21, %v19362_v3  ;;  %v19510_v41 = vsub.f32 %v19280_v38, %v19362_v3  ;;  %v19514_v36 = vsub.f32 %v19285_v5, %v19362_v3  ;;  %v19518_v46 = vsub.f32 %v19277_v34, %v19362_v3 }
 0xc11   :  { %v19522_v57 = vsub.f32 %v19283_v22, %v19362_v3  ;;  %v19526_v21 = vsub.f32 %v19292_v28, %v19362_v3  ;;  %v19530_v38 = vsub.f32 %v19297_v1, %v19362_v3  ;;  %v19534_v5 = vsub.f32 %v19289_v53, %v19362_v3 }
 0xc12   :  { %v19538_v34 = vsub.f32 %v19295_v10, %v19362_v3  ;;  %v19542_v22 = vsub.f32 %v19304_v51, %v19362_v3  ;;  %v19546_v28 = vsub.f32 %v19309_v20, %v19362_v3  ;;  %v19550_v1 = vsub.f32 %v19301_v18, %v19362_v3 }
 0xc13   :  { %v19554_v53 = vsub.f32 %v19307_v15, %v19362_v3  ;;  %v19558_v10 = vsub.f32 %v21256_v35, %v19362_v3  ;;  %v19562_v51 = vsub.f32 %v21258_v32, %v19362_v3  ;;  %v19566_v20 = vsub.f32 %v21260_v45, %v19362_v3  ;;  %v21268_v35 = vld [vmem:[#allocation45_spill] sm:$0xff] }
 0xc14   :  { %21252 = vst [vmem:[#allocation21_spill] sm:$0xff] %v19542_v22  ;;  %21253 = vst [vmem:[#allocation23_spill] sm:$0xff] %v19546_v28  ;;  %v19570_v18 = vsub.f32 %v21262_v0, %v19362_v3  ;;  %v19574_v15 = vsub.f32 %v21264_v62, %v19362_v3  ;;  %v19578_v27 = vsub.f32 %v21266_v56, %v19362_v3 }
 0xc15   :  { %21254 = vst [vmem:[#allocation24_spill] sm:$0xff] %v19550_v1  ;;  %21255 = vst [vmem:[#allocation7_spill] sm:$0xff] %v19554_v53  ;;  %v19582_v32 = vsub.f32 %v21268_v35, %v19362_v3 }
 0xc16   :  { %21257 = vst [vmem:[#allocation22_spill] sm:$0xff] %v19558_v10  ;;  %21259 = vst [vmem:[#allocation17_spill] sm:$0xff] %v19562_v51  ;;  %v21270_v51 = vld [vmem:[#allocation29_spill] sm:$0xff] }
 0xc17   :  { %21261 = vst [vmem:[#allocation16_spill] sm:$0xff] %v19566_v20  ;;  %21263 = vst [vmem:[#allocation26_spill] sm:$0xff] %v19570_v18  ;;  %v19586_v45 = vsub.f32 %v21270_v51, %v19362_v3  ;;  %v21272_v20 = vld [vmem:[#allocation36_spill] sm:$0xff]  ;;  %v21274_v18 = vld [vmem:[#allocation9_spill] sm:$0xff] }
 0xc18   :  { %21265 = vst [vmem:[#allocation27_spill] sm:$0xff] %v19574_v15  ;;  %21267 = vst [vmem:[#allocation19_spill] sm:$0xff] %v19578_v27  ;;  %v19590_v0 = vsub.f32 %v21272_v20, %v19362_v3  ;;  %v19594_v62 = vsub.f32 %v21274_v18, %v19362_v3  ;;  %v21276_v15 = vld [vmem:[#allocation34_spill] sm:$0xff]  ;;  %v21278_v27 = vld [vmem:[#allocation37_spill] sm:$0xff]  ;;  %v19610_v20 = vsub.f32 %v19357_v8, %v19362_v3 }
 0xc19   :  { %21269 = vst [vmem:[#allocation20_spill] sm:$0xff] %v19582_v32  ;;  %21271 = vst [vmem:[#allocation28_spill] sm:$0xff] %v19586_v45  ;;  %v19598_v56 = vsub.f32 %v21276_v15, %v19362_v3  ;;  %v19602_v35 = vsub.f32 %v21278_v27, %v19362_v3  ;;  %v21280_v32 = vld [vmem:[#allocation8_spill] sm:$0xff]  ;;  %v19614_v18 = vsub.f32 %v19349_v54, %v19362_v3 }
 0xc1a   :  { %21273 = vst [vmem:[#allocation30_spill] sm:$0xff] %v19590_v0  ;;  %21275 = vst [vmem:[#allocation32_spill] sm:$0xff] %v19594_v62  ;;  %v19606_v51 = vsub.f32 %v21280_v32, %v19362_v3  ;;  %v19618_v15 = vsub.f32 %v19355_v9, %v19362_v3  ;;  %v10061_v27 = vmul.f32 %v19366_v58, %v19366_v58 }
 0xc1b   :  { %21277 = vst [vmem:[#allocation33_spill] sm:$0xff] %v19598_v56  ;;  %21279 = vst [vmem:[#allocation35_spill] sm:$0xff] %v19602_v35  ;;  %v10062_v35 = vmul.f32 %v19370_v29, %v19370_v29  ;;  %v10063_v32 = vmul.f32 %v19374_v40, %v19374_v40  ;;  %v10064_v8 = vmul.f32 %v19378_v19, %v19378_v19 }
 0xc1c   :  { %21281 = vst [vmem:[#allocation6_spill] sm:$0xff] %v19606_v51  ;;  %21282 = vst [vmem:[#allocation38_spill] sm:$0xff] %v19610_v20  ;;  %v10065_v54 = vmul.f32 %v19382_v55, %v19382_v55  ;;  %v10066_v3 = vmul.f32 %v19386_v16, %v19386_v16  ;;  %v10067_v58 = vmul.f32 %v19390_v23, %v19390_v23 }
 0xc1d   :  { %21283 = vst [vmem:[#allocation39_spill] sm:$0xff] %v19614_v18  ;;  %21284 = vst [vmem:[#allocation42_spill] sm:$0xff] %v19618_v15  ;;  %v10125_v51 = vadd.f32 %v10062_v35, %v10061_v27  ;;  %v10068_v40 = vmul.f32 %v19394_v24, %v19394_v24  ;;  %v10069_v27 = vmul.f32 %v19398_v60, %v19398_v60 }
 0xc1f   :  { %v10126_v20 = vadd.f32 %v10125_v51, %v10063_v32  ;;  %v10070_v32 = vmul.f32 %v19402_v11, %v19402_v11 }
 0xc21   :  { %v10127_v18 = vadd.f32 %v10126_v20, %v10064_v8  ;;  %v10071_v8 = vmul.f32 %v19406_v2, %v19406_v2 }
 0xc23   :  { %v10128_v9 = vadd.f32 %v10127_v18, %v10065_v54  ;;  %v10072_v54 = vmul.f32 %v19410_v14, %v19410_v14 }
 0xc25   :  { %v10129_v29 = vadd.f32 %v10128_v9, %v10066_v3  ;;  %v10073_v9 = vmul.f32 %v19414_v39, %v19414_v39 }
 0xc27   :  { %v10130_v35 = vadd.f32 %v10129_v29, %v10067_v58  ;;  %v10074_v58 = vmul.f32 %v19418_v50, %v19418_v50 }
 0xc29   :  { %v10131_v51 = vadd.f32 %v10130_v35, %v10068_v40  ;;  %v10075_v35 = vmul.f32 %v19422_v6, %v19422_v6 }
 0xc2b   :  { %v10132_v20 = vadd.f32 %v10131_v51, %v10069_v27  ;;  %v10076_v51 = vmul.f32 %v19426_v7, %v19426_v7 }
 0xc2d   :  { %v10133_v18 = vadd.f32 %v10132_v20, %v10070_v32  ;;  %v10077_v20 = vmul.f32 %v19430_v26, %v19430_v26 }
 0xc2f   :  { %v10134_v3 = vadd.f32 %v10133_v18, %v10071_v8  ;;  %v10078_v18 = vmul.f32 %v19434_v52, %v19434_v52 }
 0xc31   :  { %v10135_v29 = vadd.f32 %v10134_v3, %v10072_v54  ;;  %v10079_v3 = vmul.f32 %v19438_v31, %v19438_v31 }
 0xc33   :  { %v10136_v40 = vadd.f32 %v10135_v29, %v10073_v9  ;;  %v10080_v29 = vmul.f32 %v19442_v48, %v19442_v48 }
 0xc35   :  { %v10137_v27 = vadd.f32 %v10136_v40, %v10074_v58  ;;  %v10081_v40 = vmul.f32 %v19446_v47, %v19446_v47 }
 0xc37   :  { %v10138_v32 = vadd.f32 %v10137_v27, %v10075_v35  ;;  %v10082_v27 = vmul.f32 %v19450_v4, %v19450_v4 }
 0xc39   :  { %v10139_v8 = vadd.f32 %v10138_v32, %v10076_v51  ;;  %v10083_v32 = vmul.f32 %v19454_v13, %v19454_v13 }
 0xc3b   :  { %v10140_v54 = vadd.f32 %v10139_v8, %v10077_v20  ;;  %v10084_v8 = vmul.f32 %v19458_v17, %v19458_v17 }
 0xc3d   :  { %v10141_v9 = vadd.f32 %v10140_v54, %v10078_v18  ;;  %v10085_v54 = vmul.f32 %v19462_v12, %v19462_v12 }
 0xc3f   :  { %v10142_v58 = vadd.f32 %v10141_v9, %v10079_v3  ;;  %v10086_v9 = vmul.f32 %v19466_v49, %v19466_v49 }
 0xc41   :  { %v10143_v35 = vadd.f32 %v10142_v58, %v10080_v29  ;;  %v10087_v58 = vmul.f32 %v19470_v30, %v19470_v30 }
 0xc43   :  { %v10144_v51 = vadd.f32 %v10143_v35, %v10081_v40  ;;  %v10088_v35 = vmul.f32 %v19474_v33, %v19474_v33 }
 0xc45   :  { %v10145_v20 = vadd.f32 %v10144_v51, %v10082_v27  ;;  %v10089_v51 = vmul.f32 %v19478_v25, %v19478_v25 }
 0xc47   :  { %v10146_v18 = vadd.f32 %v10145_v20, %v10083_v32  ;;  %v10090_v20 = vmul.f32 %v19482_v59, %v19482_v59 }
 0xc49   :  { %v10147_v3 = vadd.f32 %v10146_v18, %v10084_v8  ;;  %v10091_v18 = vmul.f32 %v19486_v37, %v19486_v37 }
 0xc4b   :  { %v10148_v29 = vadd.f32 %v10147_v3, %v10085_v54  ;;  %v10092_v3 = vmul.f32 %v19490_v42, %v19490_v42 }
 0xc4d   :  { %v10149_v40 = vadd.f32 %v10148_v29, %v10086_v9  ;;  %v10093_v29 = vmul.f32 %v19494_v61, %v19494_v61 }
 0xc4f   :  { %v10150_v27 = vadd.f32 %v10149_v40, %v10087_v58  ;;  %v10094_v40 = vmul.f32 %v19498_v63, %v19498_v63 }
 0xc51   :  { %v10151_v32 = vadd.f32 %v10150_v27, %v10088_v35  ;;  %v10095_v27 = vmul.f32 %v19502_v43, %v19502_v43 }
 0xc53   :  { %v10152_v8 = vadd.f32 %v10151_v32, %v10089_v51  ;;  %v10096_v32 = vmul.f32 %v19506_v44, %v19506_v44 }
 0xc55   :  { %v10153_v54 = vadd.f32 %v10152_v8, %v10090_v20  ;;  %v10097_v8 = vmul.f32 %v19510_v41, %v19510_v41 }
 0xc57   :  { %v10154_v9 = vadd.f32 %v10153_v54, %v10091_v18  ;;  %v10098_v54 = vmul.f32 %v19514_v36, %v19514_v36 }
 0xc59   :  { %v10155_v58 = vadd.f32 %v10154_v9, %v10092_v3  ;;  %v10099_v9 = vmul.f32 %v19518_v46, %v19518_v46 }
 0xc5b   :  { %v10156_v35 = vadd.f32 %v10155_v58, %v10093_v29  ;;  %v10100_v58 = vmul.f32 %v19522_v57, %v19522_v57 }
 0xc5d   :  { %v10157_v51 = vadd.f32 %v10156_v35, %v10094_v40  ;;  %v10101_v35 = vmul.f32 %v19526_v21, %v19526_v21 }
 0xc5f   :  { %v10158_v20 = vadd.f32 %v10157_v51, %v10095_v27  ;;  %v10102_v51 = vmul.f32 %v19530_v38, %v19530_v38 }
 0xc61   :  { %v10159_v18 = vadd.f32 %v10158_v20, %v10096_v32  ;;  %v10103_v20 = vmul.f32 %v19534_v5, %v19534_v5 }
 0xc63   :  { %v10160_v3 = vadd.f32 %v10159_v18, %v10097_v8  ;;  %v10104_v18 = vmul.f32 %v19538_v34, %v19538_v34 }
 0xc65   :  { %v10161_v29 = vadd.f32 %v10160_v3, %v10098_v54  ;;  %v10105_v3 = vmul.f32 %v19542_v22, %v19542_v22 }
 0xc67   :  { %v10162_v40 = vadd.f32 %v10161_v29, %v10099_v9  ;;  %v10106_v29 = vmul.f32 %v19546_v28, %v19546_v28 }
 0xc69   :  { %v10163_v27 = vadd.f32 %v10162_v40, %v10100_v58  ;;  %v10107_v40 = vmul.f32 %v19550_v1, %v19550_v1 }
 0xc6b   :  { %v10164_v32 = vadd.f32 %v10163_v27, %v10101_v35  ;;  %v10108_v27 = vmul.f32 %v19554_v53, %v19554_v53 }
 0xc6d   :  { %v10165_v8 = vadd.f32 %v10164_v32, %v10102_v51  ;;  %v10109_v32 = vmul.f32 %v19558_v10, %v19558_v10 }
 0xc6f   :  { %v10166_v54 = vadd.f32 %v10165_v8, %v10103_v20  ;;  %v21285_v8 = vld [vmem:[#allocation17_spill] sm:$0xff] }
 0xc70   :  { %v10110_v22 = vmul.f32 %v21285_v8, %v21285_v8 }
 0xc71   :  { %v10167_v9 = vadd.f32 %v10166_v54, %v10104_v18  ;;  %v21286_v54 = vld [vmem:[#allocation16_spill] sm:$0xff] }
 0xc72   :  { %v10111_v28 = vmul.f32 %v21286_v54, %v21286_v54 }
 0xc73   :  { %v10168_v58 = vadd.f32 %v10167_v9, %v10105_v3  ;;  %v21287_v9 = vld [vmem:[#allocation26_spill] sm:$0xff] }
 0xc74   :  { %v10112_v1 = vmul.f32 %v21287_v9, %v21287_v9 }
 0xc75   :  { %v10169_v35 = vadd.f32 %v10168_v58, %v10106_v29  ;;  %v21288_v58 = vld [vmem:[#allocation27_spill] sm:$0xff] }
 0xc76   :  { %v10113_v53 = vmul.f32 %v21288_v58, %v21288_v58 }
 0xc77   :  { %v10170_v51 = vadd.f32 %v10169_v35, %v10107_v40  ;;  %v21289_v35 = vld [vmem:[#allocation19_spill] sm:$0xff] }
 0xc78   :  { %v10114_v10 = vmul.f32 %v21289_v35, %v21289_v35 }
 0xc79   :  { %v10171_v20 = vadd.f32 %v10170_v51, %v10108_v27  ;;  %v21290_v51 = vld [vmem:[#allocation20_spill] sm:$0xff] }
 0xc7a   :  { %v10115_v8 = vmul.f32 %v21290_v51, %v21290_v51 }
 0xc7b   :  { %v10172_v18 = vadd.f32 %v10171_v20, %v10109_v32  ;;  %v10116_v20 = vmul.f32 %v19586_v45, %v19586_v45 }
 0xc7d   :  { %v10173_v3 = vadd.f32 %v10172_v18, %v10110_v22  ;;  %v10117_v18 = vmul.f32 %v19590_v0, %v19590_v0 }
 0xc7f   :  { %v10174_v29 = vadd.f32 %v10173_v3, %v10111_v28  ;;  %v10118_v3 = vmul.f32 %v19594_v62, %v19594_v62 }
 0xc81   :  { %v10175_v40 = vadd.f32 %v10174_v29, %v10112_v1  ;;  %v10119_v29 = vmul.f32 %v19598_v56, %v19598_v56 }
 0xc83   :  { %v10176_v27 = vadd.f32 %v10175_v40, %v10113_v53  ;;  %v21291_v40 = vld [vmem:[#allocation35_spill] sm:$0xff] }
 0xc84   :  { %v10120_v51 = vmul.f32 %v21291_v40, %v21291_v40 }
 0xc85   :  { %v10177_v32 = vadd.f32 %v10176_v27, %v10114_v10  ;;  %v21292_v27 = vld [vmem:[#allocation6_spill] sm:$0xff] }
 0xc86   :  { %v10121_v45 = vmul.f32 %v21292_v27, %v21292_v27 }
 0xc87   :  { %v10178_v22 = vadd.f32 %v10177_v32, %v10115_v8  ;;  %v21293_v32 = vld [vmem:[#allocation38_spill] sm:$0xff] }
 0xc88   :  { %v10122_v0 = vmul.f32 %v21293_v32, %v21293_v32 }
 0xc89   :  { %v10179_v28 = vadd.f32 %v10178_v22, %v10116_v20  ;;  %v21294_v22 = vld [vmem:[#allocation39_spill] sm:$0xff] }
 0xc8a   :  { %v10123_v62 = vmul.f32 %v21294_v22, %v21294_v22 }
 0xc8b   :  { %v10180_v1 = vadd.f32 %v10179_v28, %v10117_v18  ;;  %v10124_v28 = vmul.f32 %v19618_v15, %v19618_v15 }
 0xc8d   :  { %v10181_v53 = vadd.f32 %v10180_v1, %v10118_v3 }
 0xc8f   :  { %v10182_v10 = vadd.f32 %v10181_v53, %v10119_v29 }
 0xc91   :  { %v10183_v8 = vadd.f32 %v10182_v10, %v10120_v51 }
 0xc93   :  { %v10184_v20 = vadd.f32 %v10183_v8, %v10121_v45  ;;  %v14792_v45 = vld [vmem:[%s20726_s3] sm:$0x1]  ;;  %v21295_v8 = vld [vmem:[#allocation25_spill] sm:$0xff] }
 0xc95   :  { %v10185_v18 = vadd.f32 %v10184_v20, %v10122_v0  ;;  %v21296_v20 = vsub.s32 0, %v21295_v8  ;;  %v21300_v8 = vld [vmem:[#allocation21_spill] sm:$0xff] }
 0xc97   :  { %v10186_v3 = vadd.f32 %v10185_v18, %v10123_v62  ;;  %v21299_v18 = vld [vmem:[#allocation18_spill] sm:$0xff] }
 0xc99   :  { %v10187_v1 = vadd.f32 %v10186_v3, %v10124_v28 }
 0xc9b   :  { %v10188_v56 = vrot.slane %v10187_v1, 4 }
 0xc9d   :  { %v10189_v40 = vadd.f32 %v10188_v56, %v10187_v1  ;;  %v21297_v56 = vld [vmem:[#allocation40_spill] sm:$0xff] }
 0xc9f   :  { %v10190_v29 = vrot.slane %v10189_v40, 2 }
 0xca1   :  { %v10191_v53 = vadd.f32 %v10190_v29, %v10189_v40 }
 0xca3   :  { %v10192_v35 = vrot.slane %v10191_v53, 1 }
 0xca5   :  { %v10193_v27 = vadd.f32 %v10192_v35, %v10191_v53  ;;  %v21298_v35 = vld [vmem:[#allocation41_spill] sm:$0xff]  ;;  %v19791_v53 = vld [vmem:[%s20727_s4] ss:$0 sm:$0xff] }
 0xca7   :  { %v10194_v51 = vmul.f32 0.001953125, %v10193_v27 }
 0xca9   :  { %v10195_v10 = vadd.f32 1e-05, %v10194_v51 }
 0xcab   :  { %14787 = vrsqrt.f32 %v10195_v10 }
 0xcb5   :  { %v14788_v58 = vpop.eup %14787 }
 0xcb6   :  { %v10197_v0 = vmul.f32 %v14792_v45, %v14788_v58  ;;  %v11450_v58 = vld [vmem:[%s20723_s0 + $0x321] sm:$0xff] }
 0xcb8   :  { %v19753_v15 = vrot.slane %v10197_v0, %v21296_v20  ;;  %v21301_v20 = vld [vmem:[#allocation23_spill] sm:$0xff] }
 0xcba   :  { %v10265_v62 = vmul.f32 %v19753_v15, %v21293_v32  ;;  %v19759_v40 = vmul.f32 %v19753_v15, %v21297_v56  ;;  %v19763_v27 = vmul.f32 %v19753_v15, %v21298_v35  ;;  %v19767_v28 = vmul.f32 %v19753_v15, %v21299_v18  ;;  %v21303_v56 = vld [vmem:[#allocation7_spill] sm:$0xff]  ;;  %v21304_v35 = vld [vmem:[#allocation22_spill] sm:$0xff]  ;;  %v21305_v18 = vld [vmem:[#allocation17_spill] sm:$0xff] }
 0xcbb   :  { %v19774_v3 = vmul.f32 %v19753_v15, %v19378_v19  ;;  %v19778_v32 = vmul.f32 %v19753_v15, %v19382_v55  ;;  %v19782_v1 = vmul.f32 %v19753_v15, %v19386_v16  ;;  %v19786_v29 = vmul.f32 %v19753_v15, %v19390_v23 }
 0xcbc   :  { %v10329_v19 = vadd.f32 %v19791_v53, %v10265_v62  ;;  %v19796_v51 = vmul.f32 %v19753_v15, %v19394_v24  ;;  %v19800_v55 = vmul.f32 %v19753_v15, %v19398_v60  ;;  %v19804_v16 = vmul.f32 %v19753_v15, %v19402_v11  ;;  %v21302_v62 = vld [vmem:[#allocation24_spill] sm:$0xff] }
 0xcbd   :  { %v19808_v23 = vmul.f32 %v19753_v15, %v19406_v2  ;;  %v19812_v10 = vmul.f32 %v19753_v15, %v19410_v14  ;;  %v19816_v24 = vmul.f32 %v19753_v15, %v19414_v39  ;;  %v19820_v60 = vmul.f32 %v19753_v15, %v19418_v50 }
 0xcbe   :  { %v10457_v45 = vadd.f32 %v11450_v58, %v10329_v19  ;;  %v19824_v11 = vmul.f32 %v19753_v15, %v19422_v6  ;;  %v19828_v2 = vmul.f32 %v19753_v15, %v19426_v7  ;;  %v19832_v14 = vmul.f32 %v19753_v15, %v19430_v26 }
 0xcbf   :  { %v19836_v39 = vmul.f32 %v19753_v15, %v19434_v52  ;;  %v19840_v50 = vmul.f32 %v19753_v15, %v19438_v31  ;;  %v19844_v6 = vmul.f32 %v19753_v15, %v19442_v48  ;;  %v19848_v7 = vmul.f32 %v19753_v15, %v19446_v47 }
 0xcc0   :  { %v10521_v0 = vmax.f32 %v10457_v45, 0.0  ;;  %v19852_v26 = vmul.f32 %v19753_v15, %v19450_v4  ;;  %v19856_v52 = vmul.f32 %v19753_v15, %v19454_v13  ;;  %v19860_v31 = vmul.f32 %v19753_v15, %v19458_v17 }
 0xcc1   :  { %v19864_v48 = vmul.f32 %v19753_v15, %v19462_v12  ;;  %v19868_v47 = vmul.f32 %v19753_v15, %v19466_v49  ;;  %v19872_v4 = vmul.f32 %v19753_v15, %v19470_v30  ;;  %v19876_v13 = vmul.f32 %v19753_v15, %v19474_v33 }
 0xcc2   :  { %10585 = vst [vmem:[#allocation3 + $0x1e8] sm:$0xff] %v10521_v0  ;;  %v19880_v17 = vmul.f32 %v19753_v15, %v19478_v25  ;;  %v19884_v12 = vmul.f32 %v19753_v15, %v19482_v59  ;;  %v19888_v49 = vmul.f32 %v19753_v15, %v19486_v37  ;;  %v19892_v30 = vmul.f32 %v19753_v15, %v19490_v42  ;;  %v21308_v0 = vld [vmem:[#allocation27_spill] sm:$0xff] }
 0xcc3   :  { %v19896_v33 = vmul.f32 %v19753_v15, %v19494_v61  ;;  %v19900_v25 = vmul.f32 %v19753_v15, %v19498_v63  ;;  %v19904_v59 = vmul.f32 %v19753_v15, %v19502_v43  ;;  %v19908_v37 = vmul.f32 %v19753_v15, %v19506_v44 }
 0xcc4   :  { %v19912_v42 = vmul.f32 %v19753_v15, %v19510_v41  ;;  %v19916_v61 = vmul.f32 %v19753_v15, %v19514_v36  ;;  %v19920_v63 = vmul.f32 %v19753_v15, %v19518_v46  ;;  %v19924_v43 = vmul.f32 %v19753_v15, %v19522_v57 }
 0xcc5   :  { %v19928_v44 = vmul.f32 %v19753_v15, %v19526_v21  ;;  %v19932_v41 = vmul.f32 %v19753_v15, %v19530_v38  ;;  %v19936_v36 = vmul.f32 %v19753_v15, %v19534_v5  ;;  %v19940_v46 = vmul.f32 %v19753_v15, %v19538_v34 }
 0xcc6   :  { %v19944_v57 = vmul.f32 %v19753_v15, %v21300_v8  ;;  %v19948_v21 = vmul.f32 %v19753_v15, %v21301_v20  ;;  %v19952_v38 = vmul.f32 %v19753_v15, %v21302_v62  ;;  %v19956_v5 = vmul.f32 %v19753_v15, %v21303_v56  ;;  %v21310_v20 = vld [vmem:[#allocation19_spill] sm:$0xff]  ;;  %v21312_v56 = vld [vmem:[#allocation20_spill] sm:$0xff] }
 0xcc7   :  { %v19960_v34 = vmul.f32 %v19753_v15, %v21304_v35  ;;  %v19964_v58 = vmul.f32 %v19753_v15, %v21305_v18  ;;  %v19968_v19 = vmul.f32 %v19753_v15, %v21286_v54  ;;  %v19972_v45 = vmul.f32 %v19753_v15, %v21287_v9  ;;  %v21314_v18 = vld [vmem:[#allocation28_spill] sm:$0xff] }
 0xcc8   :  { %v19976_v8 = vmul.f32 %v19753_v15, %v21308_v0  ;;  %v19980_v62 = vmul.f32 %v19753_v15, %v21310_v20  ;;  %v19984_v35 = vmul.f32 %v19753_v15, %v21312_v56  ;;  %v19988_v54 = vmul.f32 %v19753_v15, %v21314_v18 }
 0xcc9   :  { %21306 = vst [vmem:[#allocation11_spill] sm:$0xff] %v19968_v19  ;;  %21307 = vst [vmem:[#allocation13_spill] sm:$0xff] %v19972_v45  ;;  %v21315_v19 = vld [vmem:[#allocation30_spill] sm:$0xff]  ;;  %v21317_v45 = vld [vmem:[#allocation32_spill] sm:$0xff] }
 0xcca   :  { %21309 = vst [vmem:[#allocation10_spill] sm:$0xff] %v19976_v8  ;;  %21311 = vst [vmem:[#allocation12_spill] sm:$0xff] %v19980_v62  ;;  %v19992_v9 = vmul.f32 %v19753_v15, %v21315_v19  ;;  %v19996_v0 = vmul.f32 %v19753_v15, %v21317_v45  ;;  %v21318_v8 = vld [vmem:[#allocation33_spill] sm:$0xff]  ;;  %v21319_v62 = vld [vmem:[#allocation35_spill] sm:$0xff]  ;;  %v20012_v19 = vmul.f32 %v19753_v15, %v21294_v22 }
 0xccb   :  { %21313 = vst [vmem:[#allocation14_spill] sm:$0xff] %v19984_v35  ;;  %v20000_v20 = vmul.f32 %v19753_v15, %v21318_v8  ;;  %v20004_v56 = vmul.f32 %v19753_v15, %v21319_v62  ;;  %v21320_v35 = vld [vmem:[#allocation6_spill] sm:$0xff]  ;;  %v20020_v8 = vadd.f32 %v19791_v53, %v19759_v40  ;;  %v20024_v62 = vadd.f32 %v19791_v53, %v19763_v27 }
 0xccc   :  { %21316 = vst [vmem:[#allocation44_spill] sm:$0xff] %v19992_v9  ;;  %v20008_v18 = vmul.f32 %v19753_v15, %v21320_v35  ;;  %v21321_v9 = vld [vmem:[#allocation42_spill] sm:$0xff]  ;;  %v20028_v35 = vadd.f32 %v19791_v53, %v19767_v28  ;;  %v20032_v22 = vadd.f32 %v19791_v53, %v19774_v3  ;;  %v20040_v40 = vadd.f32 %v19791_v53, %v19782_v1 }
 0xccd   :  { %v20016_v45 = vmul.f32 %v19753_v15, %v21321_v9  ;;  %v20036_v15 = vadd.f32 %v19791_v53, %v19778_v32  ;;  %v20044_v27 = vadd.f32 %v19791_v53, %v19786_v29  ;;  %v20048_v28 = vadd.f32 %v19791_v53, %v19796_v51 }
 0xcce   :  { %v20052_v3 = vadd.f32 %v19791_v53, %v19800_v55  ;;  %v20056_v32 = vadd.f32 %v19791_v53, %v19804_v16  ;;  %v20060_v1 = vadd.f32 %v19791_v53, %v19808_v23  ;;  %v20064_v29 = vadd.f32 %v19791_v53, %v19812_v10 }
 0xccf   :  { %v20068_v51 = vadd.f32 %v19791_v53, %v19816_v24  ;;  %v20072_v55 = vadd.f32 %v19791_v53, %v19820_v60  ;;  %v20076_v16 = vadd.f32 %v19791_v53, %v19824_v11  ;;  %v20080_v23 = vadd.f32 %v19791_v53, %v19828_v2 }
 0xcd0   :  { %v20084_v10 = vadd.f32 %v19791_v53, %v19832_v14  ;;  %v20088_v24 = vadd.f32 %v19791_v53, %v19836_v39  ;;  %v20092_v60 = vadd.f32 %v19791_v53, %v19840_v50  ;;  %v20096_v11 = vadd.f32 %v19791_v53, %v19844_v6 }
 0xcd1   :  { %v20100_v2 = vadd.f32 %v19791_v53, %v19848_v7  ;;  %v20104_v14 = vadd.f32 %v19791_v53, %v19852_v26  ;;  %v20108_v39 = vadd.f32 %v19791_v53, %v19856_v52  ;;  %v20112_v50 = vadd.f32 %v19791_v53, %v19860_v31 }
 0xcd2   :  { %v20116_v6 = vadd.f32 %v19791_v53, %v19864_v48  ;;  %v20120_v7 = vadd.f32 %v19791_v53, %v19868_v47  ;;  %v20124_v26 = vadd.f32 %v19791_v53, %v19872_v4  ;;  %v20128_v52 = vadd.f32 %v19791_v53, %v19876_v13 }
 0xcd3   :  { %v20132_v31 = vadd.f32 %v19791_v53, %v19880_v17  ;;  %v20136_v48 = vadd.f32 %v19791_v53, %v19884_v12  ;;  %v20140_v47 = vadd.f32 %v19791_v53, %v19888_v49  ;;  %v20144_v4 = vadd.f32 %v19791_v53, %v19892_v30 }
 0xcd4   :  { %v20148_v13 = vadd.f32 %v19791_v53, %v19896_v33  ;;  %v20152_v17 = vadd.f32 %v19791_v53, %v19900_v25  ;;  %v20156_v12 = vadd.f32 %v19791_v53, %v19904_v59  ;;  %v20160_v49 = vadd.f32 %v19791_v53, %v19908_v37 }
 0xcd5   :  { %v20164_v30 = vadd.f32 %v19791_v53, %v19912_v42  ;;  %v20168_v33 = vadd.f32 %v19791_v53, %v19916_v61  ;;  %v20172_v25 = vadd.f32 %v19791_v53, %v19920_v63  ;;  %v20176_v59 = vadd.f32 %v19791_v53, %v19924_v43 }
 0xcd6   :  { %21322 = vst [vmem:[#allocation15_spill] sm:$0xff] %v20160_v49  ;;  %v20180_v37 = vadd.f32 %v19791_v53, %v19928_v44  ;;  %v20184_v42 = vadd.f32 %v19791_v53, %v19932_v41  ;;  %v20188_v61 = vadd.f32 %v19791_v53, %v19936_v36  ;;  %v20192_v63 = vadd.f32 %v19791_v53, %v19940_v46  ;;  %v11391_v44 = vld [vmem:[%s20723_s0 + $0x31] sm:$0xff]  ;;  %v11389_v41 = vld [vmem:[%s20723_s0 + $0x19] sm:$0xff]  ;;  %v11390_v46 = vld [vmem:[%s20723_s0 + $0x21] sm:$0xff] }
 0xcd7   :  { %21323 = vst [vmem:[#allocation43_spill] sm:$0xff] %v20164_v30  ;;  %21324 = vst [vmem:[#allocation46_spill] sm:$0xff] %v20168_v33  ;;  %v20196_v43 = vadd.f32 %v19791_v53, %v19944_v57  ;;  %v11392_v36 = vld [vmem:[%s20723_s0 + $0x39] sm:$0xff]  ;;  %v20212_v57 = vadd.f32 %v19791_v53, %v19948_v21  ;;  %v20216_v9 = vadd.f32 %v19791_v53, %v19952_v38  ;;  %v11393_v21 = vld [vmem:[%s20723_s0 + $0x49] sm:$0xff] }
 0xcd8   :  { %21325 = vst [vmem:[#allocation31_spill] sm:$0xff] %v20172_v25  ;;  %21326 = vst [vmem:[#allocation45_spill] sm:$0xff] %v20176_v59  ;;  %v11396_v38 = vld [vmem:[%s20723_s0 + $0x69] sm:$0xff]  ;;  %v11399_v59 = vld [vmem:[%s20723_s0 + $0x91] sm:$0xff] }
 0xcd9   :  { %21327 = vst [vmem:[#allocation29_spill] sm:$0xff] %v20180_v37  ;;  %21328 = vst [vmem:[#allocation36_spill] sm:$0xff] %v20184_v42  ;;  %v21341_v42 = vld [vmem:[#allocation10_spill] sm:$0xff]  ;;  %v21348_v25 = vld [vmem:[#allocation44_spill] sm:$0xff] }
 0xcda   :  { %21329 = vst [vmem:[#allocation9_spill] sm:$0xff] %v20188_v61  ;;  %21330 = vst [vmem:[#allocation34_spill] sm:$0xff] %v20192_v63  ;;  %v20224_v63 = vadd.f32 %v19791_v53, %v19960_v34  ;;  %v11395_v61 = vld [vmem:[%s20723_s0 + $0x61] sm:$0xff]  ;;  %v20240_v34 = vadd.f32 %v19791_v53, %v19964_v58  ;;  %v20252_v37 = vadd.f32 %v19791_v53, %v21341_v42  ;;  %v11397_v58 = vld [vmem:[%s20723_s0 + $0x79] sm:$0xff] }
 0xcdb   :  { %21331 = vst [vmem:[#allocation37_spill] sm:$0xff] %v20196_v43  ;;  %21332 = vst [vmem:[#allocation8_spill] sm:$0xff] %v20212_v57  ;;  %v20220_v43 = vadd.f32 %v19791_v53, %v19956_v5  ;;  %v11394_v5 = vld [vmem:[%s20723_s0 + $0x51] sm:$0xff]  ;;  %v20280_v33 = vadd.f32 %v19791_v53, %v21348_v25  ;;  %v11403_v30 = vld [vmem:[%s20723_s0 + $0xc1] sm:$0xff]  ;;  %v20296_v25 = vadd.f32 %v19791_v53, %v19996_v0 }
 0xcdc   :  { %21333 = vst [vmem:[#allocation16_spill] sm:$0xff] %v20216_v9  ;;  %21335 = vst [vmem:[#allocation38_spill] sm:$0xff] %v20224_v63  ;;  %v21337_v63 = vld [vmem:[#allocation11_spill] sm:$0xff]  ;;  %v21339_v9 = vld [vmem:[#allocation13_spill] sm:$0xff] }
 0xcdd   :  { %21334 = vst [vmem:[#allocation26_spill] sm:$0xff] %v20220_v43  ;;  %21336 = vst [vmem:[#allocation39_spill] sm:$0xff] %v20240_v34  ;;  %v20244_v43 = vadd.f32 %v19791_v53, %v21337_v63  ;;  %v20248_v57 = vadd.f32 %v19791_v53, %v21339_v9  ;;  %v11400_v63 = vld [vmem:[%s20723_s0 + $0x99] sm:$0xff]  ;;  %v11398_v9 = vld [vmem:[%s20723_s0 + $0x81] sm:$0xff]  ;;  %v20276_v34 = vadd.f32 %v19791_v53, %v19988_v54 }
 0xcde   :  { %21342 = vst [vmem:[#allocation41_spill] sm:$0xff] %v20252_v37  ;;  %v21345_v37 = vld [vmem:[#allocation14_spill] sm:$0xff]  ;;  %21349 = vst [vmem:[#allocation24_spill] sm:$0xff] %v20280_v33  ;;  %v11402_v54 = vld [vmem:[%s20723_s0 + $0xb1] sm:$0xff]  ;;  %v20300_v33 = vadd.f32 %v19791_v53, %v20000_v20 }
 0xcdf   :  { %21338 = vst [vmem:[#allocation25_spill] sm:$0xff] %v20244_v43  ;;  %21340 = vst [vmem:[#allocation40_spill] sm:$0xff] %v20248_v57  ;;  %v21343_v57 = vld [vmem:[#allocation12_spill] sm:$0xff]  ;;  %v20272_v43 = vadd.f32 %v19791_v53, %v21345_v37  ;;  %v11405_v0 = vld [vmem:[%s20723_s0 + $0xd9] sm:$0xff] }
 0xce0   :  { %v20268_v42 = vadd.f32 %v19791_v53, %v21343_v57  ;;  %21347 = vst [vmem:[#allocation23_spill] sm:$0xff] %v20276_v34  ;;  %v11401_v57 = vld [vmem:[%s20723_s0 + $0xa9] sm:$0xff]  ;;  %21350 = vst [vmem:[#allocation7_spill] sm:$0xff] %v20296_v25  ;;  %v20304_v34 = vadd.f32 %v19791_v53, %v20004_v56  ;;  %v11408_v20 = vld [vmem:[%s20723_s0 + $0xf9] sm:$0xff] }
 0xce1   :  { %21346 = vst [vmem:[#allocation21_spill] sm:$0xff] %v20272_v43  ;;  %v11404_v37 = vld [vmem:[%s20723_s0 + $0xc9] sm:$0xff]  ;;  %21351 = vst [vmem:[#allocation22_spill] sm:$0xff] %v20300_v33  ;;  %v20308_v43 = vadd.f32 %v19791_v53, %v20008_v18  ;;  %v11406_v56 = vld [vmem:[%s20723_s0 + $0xe1] sm:$0xff]  ;;  %v20324_v18 = vadd.f32 %v19791_v53, %v20012_v19  ;;  %v20334_v33 = vadd.f32 %v11390_v46, %v20024_v62 }
 0xce2   :  { %21344 = vst [vmem:[#allocation18_spill] sm:$0xff] %v20268_v42  ;;  %21352 = vst [vmem:[#allocation17_spill] sm:$0xff] %v20304_v34  ;;  %v11407_v42 = vld [vmem:[%s20723_s0 + $0xf1] sm:$0xff]  ;;  %v20331_v34 = vadd.f32 %v11389_v41, %v20020_v8  ;;  %v11411_v25 = vld [vmem:[%s20723_s0 + $0x121] sm:$0xff]  ;;  %v20352_v8 = vadd.f32 %v11392_v36, %v20032_v22  ;;  %v20355_v62 = vadd.f32 %v11393_v21, %v20036_v15 }
 0xce3   :  { %21353 = vst [vmem:[#allocation27_spill] sm:$0xff] %v20308_v43  ;;  %v20328_v43 = vadd.f32 %v19791_v53, %v20016_v45  ;;  %21354 = vst [vmem:[#allocation19_spill] sm:$0xff] %v20334_v33  ;;  %v11409_v49 = vld [vmem:[%s20723_s0 + $0x109] sm:$0xff]  ;;  %v11410_v53 = vld [vmem:[%s20723_s0 + $0x111] sm:$0xff]  ;;  %v20349_v45 = vadd.f32 %v11391_v44, %v20028_v35  ;;  %v20358_v41 = vadd.f32 %v11394_v5, %v20040_v40 }
 0xce4   :  { %v11412_v19 = vld [vmem:[%s20723_s0 + $0x129] sm:$0xff]  ;;  %v11415_v46 = vld [vmem:[%s20723_s0 + $0x151] sm:$0xff]  ;;  %v11413_v33 = vld [vmem:[%s20723_s0 + $0x139] sm:$0xff]  ;;  %v20373_v15 = vadd.f32 %v11395_v61, %v20044_v27  ;;  %v20376_v40 = vadd.f32 %v11396_v38, %v20048_v28  ;;  %v20379_v44 = vadd.f32 %v11397_v58, %v20052_v3  ;;  %v20382_v36 = vadd.f32 %v11398_v9, %v20056_v32 }
 0xce5   :  { %v11416_v35 = vld [vmem:[%s20723_s0 + $0x159] sm:$0xff]  ;;  %v11414_v22 = vld [vmem:[%s20723_s0 + $0x141] sm:$0xff]  ;;  %v11417_v5 = vld [vmem:[%s20723_s0 + $0x169] sm:$0xff]  ;;  %v20397_v3 = vadd.f32 %v11399_v59, %v20060_v1  ;;  %v20400_v32 = vadd.f32 %v11400_v63, %v20064_v29  ;;  %v20403_v61 = vadd.f32 %v11401_v57, %v20068_v51  ;;  %v20406_v38 = vadd.f32 %v11402_v54, %v20072_v55 }
 0xce6   :  { %v11419_v21 = vld [vmem:[%s20723_s0 + $0x181] sm:$0xff]  ;;  %v11420_v27 = vld [vmem:[%s20723_s0 + $0x189] sm:$0xff]  ;;  %v11418_v28 = vld [vmem:[%s20723_s0 + $0x171] sm:$0xff]  ;;  %v20421_v51 = vadd.f32 %v11403_v30, %v20076_v16  ;;  %v20424_v55 = vadd.f32 %v11404_v37, %v20080_v23  ;;  %v20427_v59 = vadd.f32 %v11405_v0, %v20084_v10  ;;  %v20430_v63 = vadd.f32 %v11406_v56, %v20088_v24 }
 0xce7   :  { %v11423_v58 = vld [vmem:[%s20723_s0 + $0x1e1] sm:$0xff]  ;;  %v11421_v9 = vld [vmem:[%s20723_s0 + $0x1c9] sm:$0xff]  ;;  %v11422_v29 = vld [vmem:[%s20723_s0 + $0x1d1] sm:$0xff]  ;;  %v20445_v10 = vadd.f32 %v11407_v42, %v20092_v60  ;;  %v20448_v24 = vadd.f32 %v11408_v20, %v20096_v11  ;;  %v20451_v30 = vadd.f32 %v11409_v49, %v20100_v2  ;;  %v20454_v37 = vadd.f32 %v11410_v53, %v20104_v14 }
 0xce8   :  { %v11424_v1 = vld [vmem:[%s20723_s0 + $0x1e9] sm:$0xff]  ;;  %v11427_v57 = vld [vmem:[%s20723_s0 + $0x211] sm:$0xff]  ;;  %v11425_v54 = vld [vmem:[%s20723_s0 + $0x1f9] sm:$0xff]  ;;  %v20469_v2 = vadd.f32 %v11411_v25, %v20108_v39  ;;  %v20472_v14 = vadd.f32 %v11412_v19, %v20112_v50  ;;  %v20475_v49 = vadd.f32 %v11413_v33, %v20116_v6  ;;  %v20478_v42 = vadd.f32 %v11414_v22, %v20120_v7 }
 0xce9   :  { %v11428_v16 = vld [vmem:[%s20723_s0 + $0x219] sm:$0xff]  ;;  %v11426_v23 = vld [vmem:[%s20723_s0 + $0x201] sm:$0xff]  ;;  %v11429_v56 = vld [vmem:[%s20723_s0 + $0x229] sm:$0xff]  ;;  %v20490_v50 = vadd.f32 %v11415_v46, %v20124_v26  ;;  %v20493_v6 = vadd.f32 %v11416_v35, %v20128_v52  ;;  %v20496_v7 = vadd.f32 %v11417_v5, %v20132_v31  ;;  %v20499_v33 = vadd.f32 %v11418_v28, %v20136_v48 }
 0xcea   :  { %v11431_v0 = vld [vmem:[%s20723_s0 + $0x241] sm:$0xff]  ;;  %v11432_v60 = vld [vmem:[%s20723_s0 + $0x249] sm:$0xff]  ;;  %v11430_v11 = vld [vmem:[%s20723_s0 + $0x231] sm:$0xff]  ;;  %v20511_v52 = vadd.f32 %v11419_v21, %v20140_v47  ;;  %v20514_v31 = vadd.f32 %v11420_v27, %v20144_v4  ;;  %v20517_v48 = vadd.f32 %v11421_v9, %v20148_v13  ;;  %v20520_v46 = vadd.f32 %v11422_v29, %v20152_v17 }
 0xceb   :  { %v11435_v20 = vld [vmem:[%s20723_s0 + $0x271] sm:$0xff]  ;;  %v11433_v53 = vld [vmem:[%s20723_s0 + $0x259] sm:$0xff]  ;;  %v11434_v25 = vld [vmem:[%s20723_s0 + $0x261] sm:$0xff]  ;;  %v20532_v4 = vadd.f32 %v11423_v58, %v20156_v12 }
 0xcec   :  { %v11436_v39 = vld [vmem:[%s20723_s0 + $0x279] sm:$0xff]  ;;  %v11439_v19 = vld [vmem:[%s20723_s0 + $0x2a1] sm:$0xff]  ;;  %v11437_v26 = vld [vmem:[%s20723_s0 + $0x289] sm:$0xff] }
 0xced   :  { %v11440_v35 = vld [vmem:[%s20723_s0 + $0x2a9] sm:$0xff]  ;;  %v11438_v22 = vld [vmem:[%s20723_s0 + $0x291] sm:$0xff]  ;;  %21355 = vst [vmem:[#allocation20_spill] sm:$0xff] %v20532_v4  ;;  %v21360_v27 = vld [vmem:[#allocation46_spill] sm:$0xff] }
 0xcee   :  { %v11443_v47 = vld [vmem:[%s20723_s0 + $0x2d1] sm:$0xff]  ;;  %v21356_v13 = vld [vmem:[#allocation15_spill] sm:$0xff]  ;;  %v20541_v28 = vadd.f32 %v11426_v23, %v21360_v27  ;;  %v11441_v9 = vld [vmem:[%s20723_s0 + $0x2b9] sm:$0xff] }
 0xcef   :  { %v20535_v21 = vadd.f32 %v11424_v1, %v21356_v13  ;;  %v21358_v17 = vld [vmem:[#allocation43_spill] sm:$0xff]  ;;  %v11444_v29 = vld [vmem:[%s20723_s0 + $0x2d9] sm:$0xff]  ;;  %v21368_v27 = vld [vmem:[#allocation36_spill] sm:$0xff] }
 0xcf0   :  { %v20538_v5 = vadd.f32 %v11425_v54, %v21358_v17  ;;  %21361 = vst [vmem:[#allocation32_spill] sm:$0xff] %v20541_v28  ;;  %v11442_v12 = vld [vmem:[%s20723_s0 + $0x2c1] sm:$0xff]  ;;  %v21364_v54 = vld [vmem:[#allocation45_spill] sm:$0xff]  ;;  %v20562_v28 = vadd.f32 %v11430_v11, %v21368_v27  ;;  %v21376_v27 = vld [vmem:[#allocation8_spill] sm:$0xff] }
 0xcf1   :  { %21357 = vst [vmem:[#allocation28_spill] sm:$0xff] %v20535_v21  ;;  %v21362_v58 = vld [vmem:[#allocation31_spill] sm:$0xff]  ;;  %v20556_v13 = vadd.f32 %v11428_v16, %v21364_v54  ;;  %v21366_v23 = vld [vmem:[#allocation29_spill] sm:$0xff] }
 0xcf2   :  { %21359 = vst [vmem:[#allocation30_spill] sm:$0xff] %v20538_v5  ;;  %v20553_v1 = vadd.f32 %v11427_v57, %v21362_v58  ;;  %v20559_v17 = vadd.f32 %v11429_v56, %v21366_v23  ;;  %21369 = vst [vmem:[#allocation42_spill] sm:$0xff] %v20562_v28  ;;  %v11447_v5 = vld [vmem:[%s20723_s0 + $0x301] sm:$0xff]  ;;  %v11445_v21 = vld [vmem:[%s20723_s0 + $0x2e9] sm:$0xff]  ;;  %v20583_v28 = vadd.f32 %v11434_v25, %v21376_v27 }
 0xcf3   :  { %21365 = vst [vmem:[#allocation35_spill] sm:$0xff] %v20556_v13  ;;  %v11446_v57 = vld [vmem:[%s20723_s0 + $0x2f1] sm:$0xff]  ;;  %v21372_v56 = vld [vmem:[#allocation34_spill] sm:$0xff]  ;;  %v21382_v27 = vld [vmem:[#allocation39_spill] sm:$0xff] }
 0xcf4   :  { %21363 = vst [vmem:[#allocation33_spill] sm:$0xff] %v20553_v1  ;;  %21367 = vst [vmem:[#allocation6_spill] sm:$0xff] %v20559_v17  ;;  %v21370_v16 = vld [vmem:[#allocation9_spill] sm:$0xff]  ;;  %v20577_v54 = vadd.f32 %v11432_v60, %v21372_v56  ;;  %v11448_v17 = vld [vmem:[%s20723_s0 + $0x309] sm:$0xff] }
 0xcf5   :  { %v20574_v58 = vadd.f32 %v11431_v0, %v21370_v16  ;;  %v21374_v11 = vld [vmem:[#allocation37_spill] sm:$0xff]  ;;  %21377 = vst [vmem:[#allocation12_spill] sm:$0xff] %v20583_v28  ;;  %v21378_v60 = vld [vmem:[#allocation16_spill] sm:$0xff]  ;;  %v21380_v25 = vld [vmem:[#allocation38_spill] sm:$0xff]  ;;  %v20604_v28 = vadd.f32 %v11438_v22, %v21382_v27 }
 0xcf6   :  { %21373 = vst [vmem:[#allocation13_spill] sm:$0xff] %v20577_v54  ;;  %v20580_v23 = vadd.f32 %v11433_v53, %v21374_v11  ;;  %v11451_v13 = vld [vmem:[%s20723_s0 + $0x331] sm:$0xff]  ;;  %v11449_v0 = vld [vmem:[%s20723_s0 + $0x319] sm:$0xff]  ;;  %v20595_v16 = vadd.f32 %v11435_v20, %v21378_v60  ;;  %v20601_v11 = vadd.f32 %v11437_v26, %v21380_v25  ;;  %v21389_v22 = vld [vmem:[#allocation23_spill] sm:$0xff] }
 0xcf7   :  { %21371 = vst [vmem:[#allocation11_spill] sm:$0xff] %v20574_v58  ;;  %v21379_v53 = vld [vmem:[#allocation26_spill] sm:$0xff]  ;;  %21383 = vst [vmem:[#allocation44_spill] sm:$0xff] %v20604_v28  ;;  %v21384_v54 = vld [vmem:[#allocation25_spill] sm:$0xff]  ;;  %v20625_v27 = vadd.f32 %v11444_v29, %v21389_v22  ;;  %v10465_v22 = vmax.f32 %v20358_v41, 0.0  ;;  %v10474_v41 = vmax.f32 %v20421_v51, 0.0 }
 0xcf8   :  { %21375 = vst [vmem:[#allocation10_spill] sm:$0xff] %v20580_v23  ;;  %v20598_v56 = vadd.f32 %v11436_v39, %v21379_v53  ;;  %21381 = vst [vmem:[#allocation14_spill] sm:$0xff] %v20601_v11  ;;  %v11452_v23 = vld [vmem:[%s20723_s0 + $0x339] sm:$0xff]  ;;  %v20610_v58 = vadd.f32 %v11439_v19, %v21384_v54  ;;  %v21385_v1 = vld [vmem:[#allocation40_spill] sm:$0xff]  ;;  %v10483_v51 = vmax.f32 %v20472_v14, 0.0  ;;  %v10492_v14 = vmax.f32 %v20517_v48, 0.0 }
 0xcf9   :  { %v20613_v4 = vadd.f32 %v11440_v35, %v21385_v1  ;;  %v21386_v20 = vld [vmem:[#allocation41_spill] sm:$0xff]  ;;  %v21387_v39 = vld [vmem:[#allocation18_spill] sm:$0xff]  ;;  %v21390_v28 = vld [vmem:[#allocation24_spill] sm:$0xff]  ;;  %v20646_v29 = vadd.f32 %v11452_v23, %v20328_v43  ;;  %v10469_v43 = vmax.f32 %v20382_v36, 0.0  ;;  %10529 = vst [vmem:[#allocation3 + $0x28] sm:$0xff] %v10465_v22  ;;  %v10478_v36 = vmax.f32 %v20445_v10, 0.0 }
 0xcfa   :  { %v20616_v60 = vadd.f32 %v11441_v9, %v21386_v20  ;;  %v20619_v53 = vadd.f32 %v11442_v12, %v21387_v39  ;;  %v21388_v26 = vld [vmem:[#allocation21_spill] sm:$0xff]  ;;  %v20628_v11 = vadd.f32 %v11445_v21, %v21390_v28  ;;  %v21391_v19 = vld [vmem:[#allocation7_spill] sm:$0xff]  ;;  %v21392_v35 = vld [vmem:[#allocation22_spill] sm:$0xff]  ;;  %v10460_v21 = vmax.f32 %v20331_v34, 0.0  ;;  %10538 = vst [vmem:[#allocation3 + $0x70] sm:$0xff] %v10474_v41  ;;  %s14936_s0 = smov [#allocation3]  }
 0xcfb   :  { %v20622_v25 = vadd.f32 %v11443_v47, %v21388_v26  ;;  %v20631_v54 = vadd.f32 %v11446_v57, %v21391_v19  ;;  %v20634_v1 = vadd.f32 %v11447_v5, %v21392_v35  ;;  %v21393_v9 = vld [vmem:[#allocation17_spill] sm:$0xff]  ;;  %v21394_v12 = vld [vmem:[#allocation27_spill] sm:$0xff]  ;;  %v20643_v47 = vadd.f32 %v11451_v13, %v20324_v18  ;;  %10533 = vst [vmem:[#allocation3 + $0x48] sm:$0xff] %v10469_v43  ;;  %v21399_v23 = vld [vmem:[#allocation32_spill] sm:$0xff]  ;;  %s10593_s12 = sshll.u32 %s14936_s0, 4  ;;  %s10594_s12 = int_to_ptr.vmem [resolvable:$true] %s10593_s12 }
 0xcfc   :  { %v20637_v20 = vadd.f32 %v11448_v17, %v21393_v9  ;;  %v20640_v39 = vadd.f32 %v11449_v0, %v21394_v12  ;;  %v21395_v28 = vld [vmem:[#allocation19_spill] sm:$0xff]  ;;  %v10462_v26 = vmax.f32 %v20349_v45, 0.0  ;;  %v10463_v5 = vmax.f32 %v20352_v8, 0.0  ;;  %10524 = vst [vmem:[#allocation3] sm:$0xff] %v10460_v21  ;;  %10542 = vst [vmem:[#allocation3 + $0x90] sm:$0xff] %v10478_v36  ;;  %v21400_v35 = vld [vmem:[#allocation33_spill] sm:$0xff]  ;;  %p14915_p1 = scmp.lt.s32.totalorder %s10594_s12, %s10594_s12 }
 0xcfd   :  { %v10461_v57 = vmax.f32 %v21395_v28, 0.0  ;;  %v10464_v17 = vmax.f32 %v20355_v62, 0.0  ;;  %v10466_v0 = vmax.f32 %v20373_v15, 0.0  ;;  %v10467_v18 = vmax.f32 %v20376_v40, 0.0  ;;  %10547 = vst [vmem:[#allocation3 + $0xb8] sm:$0xff] %v10483_v51  ;;  %v21403_v21 = vld [vmem:[#allocation42_spill] sm:$0xff] }
 0xcfe   :  { %v10468_v13 = vmax.f32 %v20379_v44, 0.0  ;;  %v10470_v34 = vmax.f32 %v20397_v3, 0.0  ;;  %10526 = vst [vmem:[#allocation3 + $0x10] sm:$0xff] %v10462_v26  ;;  %v10471_v45 = vmax.f32 %v20400_v32, 0.0  ;;  %v10472_v8 = vmax.f32 %v20403_v61, 0.0  ;;  %10527 = vst [vmem:[#allocation3 + $0x18] sm:$0xff] %v10463_v5 }
 0xcff   :  { %10525 = vst [vmem:[#allocation3 + $0x8] sm:$0xff] %v10461_v57  ;;  %v10473_v62 = vmax.f32 %v20406_v38, 0.0  ;;  %10528 = vst [vmem:[#allocation3 + $0x20] sm:$0xff] %v10464_v17  ;;  %v10475_v15 = vmax.f32 %v20424_v55, 0.0  ;;  %v10476_v40 = vmax.f32 %v20427_v59, 0.0  ;;  %v10477_v44 = vmax.f32 %v20430_v63, 0.0 }
 0xd00   :  { %10530 = vst [vmem:[#allocation3 + $0x30] sm:$0xff] %v10466_v0  ;;  %10531 = vst [vmem:[#allocation3 + $0x38] sm:$0xff] %v10467_v18  ;;  %v10479_v3 = vmax.f32 %v20448_v24, 0.0  ;;  %v10480_v32 = vmax.f32 %v20451_v30, 0.0  ;;  %v10481_v61 = vmax.f32 %v20454_v37, 0.0  ;;  %v10482_v38 = vmax.f32 %v20469_v2, 0.0 }
 0xd01   :  { %10532 = vst [vmem:[#allocation3 + $0x40] sm:$0xff] %v10468_v13  ;;  %10534 = vst [vmem:[#allocation3 + $0x50] sm:$0xff] %v10470_v34  ;;  %v10484_v55 = vmax.f32 %v20475_v49, 0.0  ;;  %v10485_v59 = vmax.f32 %v20478_v42, 0.0  ;;  %v10486_v63 = vmax.f32 %v20490_v50, 0.0  ;;  %v10487_v10 = vmax.f32 %v20493_v6, 0.0 }
 0xd02   :  { %10535 = vst [vmem:[#allocation3 + $0x58] sm:$0xff] %v10471_v45  ;;  %10536 = vst [vmem:[#allocation3 + $0x60] sm:$0xff] %v10472_v8  ;;  %v10488_v24 = vmax.f32 %v20496_v7, 0.0  ;;  %v10489_v30 = vmax.f32 %v20499_v33, 0.0  ;;  %v10490_v37 = vmax.f32 %v20511_v52, 0.0  ;;  %v10491_v2 = vmax.f32 %v20514_v31, 0.0 }
 0xd03   :  { %10537 = vst [vmem:[#allocation3 + $0x68] sm:$0xff] %v10473_v62  ;;  %10539 = vst [vmem:[#allocation3 + $0x78] sm:$0xff] %v10475_v15  ;;  %v10493_v49 = vmax.f32 %v20520_v46, 0.0  ;;  %v21396_v42 = vld [vmem:[#allocation20_spill] sm:$0xff]  ;;  %v21398_v33 = vld [vmem:[#allocation30_spill] sm:$0xff]  ;;  %v10497_v19 = vmax.f32 %v21399_v23, 0.0 }
 0xd04   :  { %10540 = vst [vmem:[#allocation3 + $0x80] sm:$0xff] %v10476_v40  ;;  %10541 = vst [vmem:[#allocation3 + $0x88] sm:$0xff] %v10477_v44  ;;  %v10494_v50 = vmax.f32 %v21396_v42, 0.0  ;;  %v21397_v6 = vld [vmem:[#allocation28_spill] sm:$0xff]  ;;  %v10496_v52 = vmax.f32 %v21398_v33, 0.0  ;;  %v10498_v9 = vmax.f32 %v21400_v35, 0.0 }
 0xd05   :  { %10543 = vst [vmem:[#allocation3 + $0x98] sm:$0xff] %v10479_v3  ;;  %10544 = vst [vmem:[#allocation3 + $0xa0] sm:$0xff] %v10480_v32  ;;  %v10495_v7 = vmax.f32 %v21397_v6, 0.0  ;;  %v21401_v31 = vld [vmem:[#allocation35_spill] sm:$0xff]  ;;  %v21402_v46 = vld [vmem:[#allocation6_spill] sm:$0xff]  ;;  %v10501_v28 = vmax.f32 %v21403_v21, 0.0 }
 0xd06   :  { %10545 = vst [vmem:[#allocation3 + $0xa8] sm:$0xff] %v10481_v61  ;;  %10546 = vst [vmem:[#allocation3 + $0xb0] sm:$0xff] %v10482_v38  ;;  %v10499_v48 = vmax.f32 %v21401_v31, 0.0  ;;  %v10500_v12 = vmax.f32 %v21402_v46, 0.0  ;;  %v21404_v57 = vld [vmem:[#allocation11_spill] sm:$0xff]  ;;  %v21405_v5 = vld [vmem:[#allocation13_spill] sm:$0xff] }
 0xd07   :  { %10548 = vst [vmem:[#allocation3 + $0xc0] sm:$0xff] %v10484_v55  ;;  %10549 = vst [vmem:[#allocation3 + $0xc8] sm:$0xff] %v10485_v59  ;;  %v10502_v26 = vmax.f32 %v21404_v57, 0.0  ;;  %v10503_v17 = vmax.f32 %v21405_v5, 0.0  ;;  %v21406_v22 = vld [vmem:[#allocation10_spill] sm:$0xff]  ;;  %v21407_v18 = vld [vmem:[#allocation12_spill] sm:$0xff] }
 0xd08   :  { %10550 = vst [vmem:[#allocation3 + $0xd0] sm:$0xff] %v10486_v63  ;;  %10551 = vst [vmem:[#allocation3 + $0xd8] sm:$0xff] %v10487_v10  ;;  %v10504_v0 = vmax.f32 %v21406_v22, 0.0  ;;  %v10505_v13 = vmax.f32 %v21407_v18, 0.0  ;;  %v10506_v43 = vmax.f32 %v20595_v16, 0.0  ;;  %v10507_v34 = vmax.f32 %v20598_v56, 0.0 }
 0xd09   :  { %10552 = vst [vmem:[#allocation3 + $0xe0] sm:$0xff] %v10488_v24  ;;  %10553 = vst [vmem:[#allocation3 + $0xe8] sm:$0xff] %v10489_v30  ;;  %v21408_v45 = vld [vmem:[#allocation14_spill] sm:$0xff]  ;;  %v21409_v62 = vld [vmem:[#allocation44_spill] sm:$0xff]  ;;  %v10510_v15 = vmax.f32 %v20610_v58, 0.0  ;;  %v10511_v16 = vmax.f32 %v20613_v4, 0.0 }
 0xd0a   :  { %10554 = vst [vmem:[#allocation3 + $0xf0] sm:$0xff] %v10490_v37  ;;  %10555 = vst [vmem:[#allocation3 + $0xf8] sm:$0xff] %v10491_v2  ;;  %v10508_v8 = vmax.f32 %v21408_v45, 0.0  ;;  %v10509_v41 = vmax.f32 %v21409_v62, 0.0  ;;  %v10512_v40 = vmax.f32 %v20616_v60, 0.0  ;;  %v10513_v44 = vmax.f32 %v20619_v53, 0.0 }
 0xd0b   :  { %10556 = vst [vmem:[#allocation3 + $0x100] sm:$0xff] %v10492_v14  ;;  %10557 = vst [vmem:[#allocation3 + $0x108] sm:$0xff] %v10493_v49  ;;  %v10514_v56 = vmax.f32 %v20622_v25, 0.0  ;;  %v10515_v58 = vmax.f32 %v20625_v27, 0.0  ;;  %v10516_v36 = vmax.f32 %v20628_v11, 0.0  ;;  %v10517_v3 = vmax.f32 %v20631_v54, 0.0 }
 0xd0c   :  { %10558 = vst [vmem:[#allocation3 + $0x110] sm:$0xff] %v10494_v50  ;;  %10559 = vst [vmem:[#allocation3 + $0x118] sm:$0xff] %v10495_v7  ;;  %v10518_v32 = vmax.f32 %v20634_v1, 0.0  ;;  %v10519_v4 = vmax.f32 %v20637_v20, 0.0  ;;  %v10520_v60 = vmax.f32 %v20640_v39, 0.0  ;;  %v10522_v53 = vmax.f32 %v20643_v47, 0.0 }
 0xd0d   :  { %10560 = vst [vmem:[#allocation3 + $0x120] sm:$0xff] %v10496_v52  ;;  %10561 = vst [vmem:[#allocation3 + $0x128] sm:$0xff] %v10497_v19  ;;  %v10523_v25 = vmax.f32 %v20646_v29, 0.0  ;;  %s14910_s13 = scalar_lea.vmem %s10594_s12, 8192 }
 0xd0e   :  { %10562 = vst [vmem:[#allocation3 + $0x130] sm:$0xff] %v10498_v9  ;;  %10563 = vst [vmem:[#allocation3 + $0x138] sm:$0xff] %v10499_v48  ;;  %p14911_p0 = scmp.ne.s32.totalorder %s10594_s12, %s14910_s13  ;;  %p14916_p2 = scmp.lt.s32.totalorder %s14910_s13, %s14910_s13 }
 0xd0f   :  { %10564 = vst [vmem:[#allocation3 + $0x140] sm:$0xff] %v10500_v12  ;;  %10565 = vst [vmem:[#allocation3 + $0x148] sm:$0xff] %v10501_v28 }
 0xd10   :  { %10566 = vst [vmem:[#allocation3 + $0x150] sm:$0xff] %v10502_v26  ;;  %10567 = vst [vmem:[#allocation3 + $0x158] sm:$0xff] %v10503_v17  ;;  %p14917_p3 = por %p14916_p2, %p14915_p1 }
 0xd11   :  { %10568 = vst [vmem:[#allocation3 + $0x160] sm:$0xff] %v10504_v0  ;;  %10569 = vst [vmem:[#allocation3 + $0x168] sm:$0xff] %v10505_v13 }
 0xd12   :  { %10570 = vst [vmem:[#allocation3 + $0x170] sm:$0xff] %v10506_v43  ;;  %10571 = vst [vmem:[#allocation3 + $0x178] sm:$0xff] %v10507_v34  ;;  %p14918_p4 = pnand %p14917_p3, %p14911_p0 }
 0xd13   :  { %10572 = vst [vmem:[#allocation3 + $0x180] sm:$0xff] %v10508_v8  ;;  %10573 = vst [vmem:[#allocation3 + $0x188] sm:$0xff] %v10509_v41 }
 0xd14   :  { %10574 = vst [vmem:[#allocation3 + $0x190] sm:$0xff] %v10510_v15  ;;  %10575 = vst [vmem:[#allocation3 + $0x198] sm:$0xff] %v10511_v16 }
 0xd15   :  { %10576 = vst [vmem:[#allocation3 + $0x1a0] sm:$0xff] %v10512_v40  ;;  %10577 = vst [vmem:[#allocation3 + $0x1a8] sm:$0xff] %v10513_v44 }
 0xd16   :  { %10578 = vst [vmem:[#allocation3 + $0x1b0] sm:$0xff] %v10514_v56  ;;  %10579 = vst [vmem:[#allocation3 + $0x1b8] sm:$0xff] %v10515_v58 }
 0xd17   :  { %10580 = vst [vmem:[#allocation3 + $0x1c0] sm:$0xff] %v10516_v36  ;;  %10581 = vst [vmem:[#allocation3 + $0x1c8] sm:$0xff] %v10517_v3 }
 0xd18   :  { %10582 = vst [vmem:[#allocation3 + $0x1d0] sm:$0xff] %v10518_v32  ;;  %10583 = vst [vmem:[#allocation3 + $0x1d8] sm:$0xff] %v10519_v4 }
 0xd19   :  { %10584 = vst [vmem:[#allocation3 + $0x1e0] sm:$0xff] %v10520_v60  ;;  %10586 = vst [vmem:[#allocation3 + $0x1f0] sm:$0xff] %v10522_v53 }
 0xd1a   :  { %10587 = vst [vmem:[#allocation3 + $0x1f8] sm:$0xff] %v10523_v25 }
 0xd1b   :  { %14921 = shalt.err (!%p14918_p4)
}
 0xd1c   :  { %s14922_s16 = scalar_lea.hbm %s20728_s5, 8192 }
 0xd1d   :  { %p14923_p5 = scmp.ne.s32.totalorder %s20728_s5, %s14922_s16  ;;  %p14926_p6 = scmp.lt.u32.totalorder %s14922_s16, %s20728_s5 }
 0xd1f   :  { %p14928_p7 = pnand %p14926_p6, %p14923_p5 }
 0xd21   :  { %14931 = shalt.err (!%p14928_p7)
}
 0xd22   :  { %s14937_s21 = smov 128   ;;  %s14938_s22 = smov 8  }
 0xd23   :  { %10599 = dma.vmem_to_hbm [thread:$0]  %s10594_s12, 8192, %s20728_s5, [#allocation4], %s14937_s21, %s14937_s21, %s14938_s22  }
 0xd24   :  { %14932 = dma.done.wait [#allocation4], 8192  }
 0xd25   :  { %14933 = vsyncadd [#allocation4], 4294959104 }
 0xd26   :  { %10603 = vsyncpa [#allocation4], 1 }

</bundles_post_ra>
